<compile_context>
chip_gen: v7x
topology: tpu7x:2x2x1
jax: 0.10.0
libtpu: 0.0.40
codegen_flags: <defaults>
</compile_context>

<pallas_src>
import numpy as np
import jax
import jax.numpy as jnp
from jax.experimental import pallas as pl
from jax.experimental.pallas import tpu as pltpu


# ----------------------------- in-kernel helpers -----------------------------

def _conv3x3_bn_relu(v, w_ref, b_ref, sc=None):
    """3x3 'SAME' conv (BN folded into the weights) + bias + ReLU.

    The three kw taps of the input are packed along the lane dim ("mini
    im2col"), so the conv is 3 row-shifted matmuls with K = 3*C instead of
    9 matmuls with K = C.  If `sc` is given, the 1x1-BN shortcut on `sc` is
    fused into the centre (kh == 1) matmul: its (pre-scaled) weights are the
    trailing rows of `w_ref` and its folded bias is already summed into `b_ref`.

      v     : (H, W, C)  input value
      w_ref : (9*C + Csc, Cout) packed weights, row blocks [kh=0 | kh=2 | kh=1 | sc]
      b_ref : (1, Cout)  folded bias
      sc    : optional (H, W, Csc) shortcut input
    Returns (H, W, Cout).
    """
    H, W, C = v.shape
    C3 = 3 * C
    HW = H * W
    Cout = b_ref.shape[-1]

    # kw taps packed along lanes; out-of-image W columns are zeroed inside the
    # packed value, so only a 1-row H halo is needed for the kh shifts.
    zcol = jnp.zeros((H, 1, C), jnp.float32)
    left = jnp.concatenate([zcol, v[:, :W - 1, :]], axis=1)    # kw = 0 tap
    right = jnp.concatenate([v[:, 1:, :], zcol], axis=1)       # kw = 2 tap
    packed = jnp.concatenate([left, v, right], axis=-1)        # (H, W, 3C)

    # kh row shifts via a 1-row zero halo above/below (leading-dim slices only).
    zrow = jnp.zeros((1, W, C3), jnp.float32)
    padded = jnp.concatenate([zrow, packed, zrow], axis=0)     # (H+2, W, 3C)

    p0 = padded[0:H].reshape(HW, C3)                           # kh = 0 rows
    p2 = padded[2:H + 2].reshape(HW, C3)                       # kh = 2 rows
    if sc is None:
        K1 = C3
        p1 = packed.reshape(HW, C3)                            # kh = 1 rows
    else:
        Csc = sc.shape[-1]
        K1 = C3 + Csc
        p1 = jnp.concatenate([packed, sc], axis=-1).reshape(HW, K1)  # + shortcut tap

    y = jnp.dot(p0, w_ref[0:C3, :], preferred_element_type=jnp.float32)
    y = y + jnp.dot(p2, w_ref[C3:2 * C3, :], preferred_element_type=jnp.float32)
    y = y + jnp.dot(p1, w_ref[2 * C3:2 * C3 + K1, :], preferred_element_type=jnp.float32)
    y = y + b_ref[...]
    return jnp.maximum(y, 0.0).reshape(H, W, Cout)


# --------------------------------- the kernel --------------------------------

def _encoder_block_kernel(x_ref, m_ref,
                          w1a, b1a, w1b, b1b, w2a, b2a, w2b, b2b, wmx, bmx,
                          skip_ref, xc_ref):
    x = x_ref[0]                                               # (H, W, in_c)

    # residual block 1 (second conv fused with its 1x1-BN shortcut on x)
    h1 = _conv3x3_bn_relu(x, w1a, b1a)
    x1 = _conv3x3_bn_relu(h1, w1b, b1b, sc=x)

    # residual block 2
    h2 = _conv3x3_bn_relu(x1, w2a, b2a)
    x2 = _conv3x3_bn_relu(h2, w2b, b2b, sc=x1)

    skip_ref[0] = x2                                           # second return value

    # MixPool gate: sigmoid(m) > 0.5  <=>  m > 0
    xg = jnp.where(m_ref[0] > 0.0, x2, 0.0)
    xc_ref[0] = _conv3x3_bn_relu(xg, wmx, bmx)


# --------------------------------- wrapper -----------------------------------

def _pack_conv_weights(p_main, p_shortcut=None):
    """Fold BN scale into the conv weights and pack rows [kh=0 | kh=2 | kh=1 | sc]."""
    w, s, b = p_main                                  # w: (3, 3, C, Co) HWIO
    C, Co = w.shape[2], w.shape[3]
    ws = w * s.reshape(1, 1, 1, Co)
    blocks = [ws[0].reshape(3 * C, Co),               # kh = 0
              ws[2].reshape(3 * C, Co),               # kh = 2
              ws[1].reshape(3 * C, Co)]               # kh = 1 (shortcut rows append here)
    bias = b
    if p_shortcut is not None:
        wsc, ssc, bsc = p_shortcut                    # wsc: (Cin, Co)
        blocks.append(wsc * ssc.reshape(1, Co))
        bias = b + bsc
    return jnp.concatenate(blocks, axis=0), bias


@jax.jit
def encoder_block_forward(x_nchw, m_nchw, params):
    x = jnp.transpose(x_nchw, (0, 2, 3, 1)).astype(jnp.float32)   # NHWC
    m = jnp.transpose(m_nchw, (0, 2, 3, 1)).astype(jnp.float32)   # NHWC, C=1
    B, H, W, Cin = x.shape
    Cout = params['r1a'][0].shape[-1]

    w1a, b1a = _pack_conv_weights(params['r1a'])
    w1b, b1b = _pack_conv_weights(params['r1b'], params['r1s'])
    w2a, b2a = _pack_conv_weights(params['r2a'])
    w2b, b2b = _pack_conv_weights(params['r2b'], params['r2s'])
    wmx, bmx = _pack_conv_weights(params['mix'])
    flat = [w1a, b1a, w1b, b1b, w2a, b2a, w2b, b2b, wmx, bmx]

    def batch_spec(shape):
        n = len(shape) - 1
        return pl.BlockSpec(shape, lambda b, _n=n: (b,) + (0,) * _n)

    def full_spec(shape):
        zeros = (0,) * len(shape)
        return pl.BlockSpec(shape, lambda b, _z=zeros: _z)

    in_specs = [batch_spec((1, H, W, Cin)), batch_spec((1, H, W, 1))]
    in_specs += [full_spec(p.shape) for p in flat]
    out_specs = [batch_spec((1, H, W, Cout)),
                 batch_spec((1, H, W, Cout))]
    out_shape = [jax.ShapeDtypeStruct((B, H, W, Cout), jnp.float32),
                 jax.ShapeDtypeStruct((B, H, W, Cout), jnp.float32)]

    skip, xc = pl.pallas_call(
        _encoder_block_kernel,
        out_shape=out_shape,
        grid_spec=pltpu.PrefetchScalarGridSpec(
            num_scalar_prefetch=0, grid=(B,),
            in_specs=in_specs, out_specs=out_specs),
        compiler_params=pltpu.CompilerParams(
            dimension_semantics=("parallel",)),   # v7x: shard the batch over 2 TCs
    )(x, m, *flat)

    # torch.cat([x2, xc], dim=1) + nn.MaxPool2d((2, 2)) done in XLA on the two
    # kernel outputs (robust; fusing it in-kernel needs sublane-strided ref
    # reads which are not reliable across interpret/Mosaic paths).
    p = jnp.concatenate([skip, xc], axis=-1)                       # (B, H, W, 2*Cout)
    o = p.reshape(B, H // 2, 2, W // 2, 2, 2 * Cout).max(axis=(2, 4))

    o_nchw = jnp.transpose(o, (0, 3, 1, 2))          # (B, 2*out_c, H/2, W/2)
    skip_nchw = jnp.transpose(skip, (0, 3, 1, 2))    # (B, out_c, H, W)
    return o_nchw, skip_nchw


# ------------------------- deterministic parameter init ----------------------

def init_params(key, in_c, out_c, eps=1e-5):
    keys = iter(jax.random.split(key, 64))

    def conv_bn(kh, kw, cin, cout):
        fan_in = kh * kw * cin
        w = jax.random.normal(next(keys), (kh, kw, cin, cout), jnp.float32) / (fan_in ** 0.5)
        conv_b = 0.05 * jax.random.normal(next(keys), (cout,), jnp.float32)
        gamma = 1.0 + 0.1 * jax.random.normal(next(keys), (cout,), jnp.float32)
        beta = 0.1 * jax.random.normal(next(keys), (cout,), jnp.float32)
        mean = 0.1 * jax.random.normal(next(keys), (cout,), jnp.float32)
        var = 0.5 + 0.5 * jnp.abs(jax.random.normal(next(keys), (cout,), jnp.float32))
        scale = gamma / jnp.sqrt(var + eps)      # eval-mode BN folded with conv bias
        bias = (conv_b - mean) * scale + beta
        if kh == 1:
            w = w.reshape(cin, cout)             # 1x1 shortcut stored as (Cin, Cout)
        return (w, scale.reshape(1, cout), bias.reshape(1, cout))

    return {
        'r1a': conv_bn(3, 3, in_c, out_c),
        'r1b': conv_bn(3, 3, out_c, out_c),
        'r1s': conv_bn(1, 1, in_c, out_c),
        'r2a': conv_bn(3, 3, out_c, out_c),
        'r2b': conv_bn(3, 3, out_c, out_c),
        'r2s': conv_bn(1, 1, out_c, out_c),
        'mix': conv_bn(3, 3, out_c, out_c),
    }


# ------------------------------ pure-JAX reference ---------------------------

def encoder_block_reference(x_nchw, m_nchw, params):
    x = jnp.transpose(x_nchw, (0, 2, 3, 1))
    m = jnp.transpose(m_nchw, (0, 2, 3, 1))

    def conv3(v, p, relu):
        w, s, b = p
        y = jax.lax.conv_general_dilated(
            v, w, window_strides=(1, 1), padding='SAME',
            dimension_numbers=('NHWC', 'HWIO', 'NHWC'))
        y = y * s.reshape(1, 1, 1, -1) + b.reshape(1, 1, 1, -1)
        return jnp.maximum(y, 0.0) if relu else y

    def conv1(v, p):
        w, s, b = p
        y = jnp.einsum('bhwc,cd->bhwd', v, w)
        return y * s.reshape(1, 1, 1, -1) + b.reshape(1, 1, 1, -1)

    def res(v, pa, pb, psc):
        h = conv3(v, pa, True)
        h = conv3(h, pb, False)
        return jnp.maximum(h + conv1(v, psc), 0.0)

    x1 = res(x, params['r1a'], params['r1b'], params['r1s'])
    x2 = res(x1, params['r2a'], params['r2b'], params['r2s'])
    fmask = (jax.nn.sigmoid(m) > 0.5).astype(jnp.float32)
    xc = conv3(x2 * fmask, params['mix'], True)
    p = jnp.concatenate([x2, xc], axis=-1)
    B, H, W, C = p.shape
    o = p.reshape(B, H // 2, 2, W // 2, 2, C).max(axis=(2, 4))
    return jnp.transpose(o, (0, 3, 1, 2)), jnp.transpose(x2, (0, 3, 1, 2))


# ------------------------------------ main ------------------------------------

if __name__ == "__main__":
    # Shapes of l3_FANet's first encoder stage: EncoderBlock(3, 32).
    B, IN_C, OUT_C, H, W = 2, 3, 32, 16, 16
    root = jax.random.PRNGKey(0)
    kx, km, kp = jax.random.split(root, 3)
    x = jax.random.normal(kx, (B, IN_C, H, W), jnp.float32)      # NCHW like PyTorch
    masks = jax.random.normal(km, (B, 1, H, W), jnp.float32)     # pre-sigmoid mask logits
    params = init_params(kp, IN_C, OUT_C)

    o, skip = encoder_block_forward(x, masks, params)
    o, skip = jax.block_until_ready((o, skip))

    assert o.shape == (B, 2 * OUT_C, H // 2, W // 2), o.shape
    assert skip.shape == (B, OUT_C, H, W), skip.shape

    o_ref, skip_ref = encoder_block_reference(x, masks, params)
    # Tolerance accounts for default-precision TPU matmuls: the kernel folds the
    # BN scale into the weights before the MXU sees them, the XLA reference
    # scales after the conv, so low-precision input passes round differently.
    np.testing.assert_allclose(np.asarray(o), np.asarray(o_ref), atol=1e-2, rtol=1e-2)
    np.testing.assert_allclose(np.asarray(skip), np.asarray(skip_ref), atol=1e-2, rtol=1e-2)

    print("KERNEL_OK")
</pallas_src>

<mosaic_0001>
module attributes {stable_mosaic.version = 11 : i64} {
  func.func @_encoder_block_kernel(%arg0: i32, %arg1: memref<1x16x16x3xf32, #tpu.memory_space<vmem>>, %arg2: memref<1x16x16x1xf32, #tpu.memory_space<vmem>>, %arg3: memref<27x32xf32, #tpu.memory_space<vmem>>, %arg4: memref<1x32xf32, #tpu.memory_space<vmem>>, %arg5: memref<291x32xf32, #tpu.memory_space<vmem>>, %arg6: memref<1x32xf32, #tpu.memory_space<vmem>>, %arg7: memref<288x32xf32, #tpu.memory_space<vmem>>, %arg8: memref<1x32xf32, #tpu.memory_space<vmem>>, %arg9: memref<320x32xf32, #tpu.memory_space<vmem>>, %arg10: memref<1x32xf32, #tpu.memory_space<vmem>>, %arg11: memref<288x32xf32, #tpu.memory_space<vmem>>, %arg12: memref<1x32xf32, #tpu.memory_space<vmem>>, %arg13: memref<1x16x16x32xf32, #tpu.memory_space<vmem>>, %arg14: memref<1x16x16x32xf32, #tpu.memory_space<vmem>>) attributes {dimension_semantics = [#tpu.dimension_semantics<parallel>], iteration_bounds = array<i64: 2>, scalar_prefetch = 0 : i64, scratch_operands = 0 : i64, tpu.core_type = #tpu.core_type<tc>, window_params = [{transform_indices = @transform_0, window_bounds = array<i64: 1, 16, 16, 3>}, {transform_indices = @transform_1, window_bounds = array<i64: 1, 16, 16, 1>}, {pipeline_mode = #tpu.pipeline_mode<synchronous>, transform_indices = @transform_2, window_bounds = array<i64: 27, 32>}, {pipeline_mode = #tpu.pipeline_mode<synchronous>, transform_indices = @transform_3, window_bounds = array<i64: 1, 32>}, {pipeline_mode = #tpu.pipeline_mode<synchronous>, transform_indices = @transform_4, window_bounds = array<i64: 291, 32>}, {pipeline_mode = #tpu.pipeline_mode<synchronous>, transform_indices = @transform_5, window_bounds = array<i64: 1, 32>}, {pipeline_mode = #tpu.pipeline_mode<synchronous>, transform_indices = @transform_6, window_bounds = array<i64: 288, 32>}, {pipeline_mode = #tpu.pipeline_mode<synchronous>, transform_indices = @transform_7, window_bounds = array<i64: 1, 32>}, {pipeline_mode = #tpu.pipeline_mode<synchronous>, transform_indices = @transform_8, window_bounds = array<i64: 320, 32>}, {pipeline_mode = #tpu.pipeline_mode<synchronous>, transform_indices = @transform_9, window_bounds = array<i64: 1, 32>}, {pipeline_mode = #tpu.pipeline_mode<synchronous>, transform_indices = @transform_10, window_bounds = array<i64: 288, 32>}, {pipeline_mode = #tpu.pipeline_mode<synchronous>, transform_indices = @transform_11, window_bounds = array<i64: 1, 32>}, {transform_indices = @transform_12, window_bounds = array<i64: 1, 16, 16, 32>}, {transform_indices = @transform_13, window_bounds = array<i64: 1, 16, 16, 32>}]} {
    %c0 = arith.constant 0 : index
    %c0_0 = arith.constant 0 : index
    %c0_1 = arith.constant 0 : index
    %c0_2 = arith.constant 0 : index
    %0 = vector.load %arg1[%c0, %c0_0, %c0_1, %c0_2] : memref<1x16x16x3xf32, #tpu.memory_space<vmem>>, vector<1x16x16x3xf32>
    %1 = vector.shape_cast %0 : vector<1x16x16x3xf32> to vector<16x16x3xf32>
    %cst = arith.constant 0.000000e+00 : f32
    %2 = vector.broadcast %cst : f32 to vector<16x1x3xf32>
    %3 = vector.extract_strided_slice %1 {offsets = [0, 0, 0], sizes = [16, 15, 3], strides = [1, 1, 1]} : vector<16x16x3xf32> to vector<16x15x3xf32>
    %4 = tpu.concatenate %2, %3 in 1 : vector<16x1x3xf32>, vector<16x15x3xf32> -> vector<16x16x3xf32>
    %5 = vector.extract_strided_slice %1 {offsets = [0, 1, 0], sizes = [16, 15, 3], strides = [1, 1, 1]} : vector<16x16x3xf32> to vector<16x15x3xf32>
    %6 = tpu.concatenate %5, %2 in 1 : vector<16x15x3xf32>, vector<16x1x3xf32> -> vector<16x16x3xf32>
    %7 = tpu.concatenate %4, %1, %6 in 2 : vector<16x16x3xf32>, vector<16x16x3xf32>, vector<16x16x3xf32> -> vector<16x16x9xf32>
    %cst_3 = arith.constant 0.000000e+00 : f32
    %8 = vector.broadcast %cst_3 : f32 to vector<1x16x9xf32>
    %9 = tpu.concatenate %8, %7, %8 in 0 : vector<1x16x9xf32>, vector<16x16x9xf32>, vector<1x16x9xf32> -> vector<18x16x9xf32>
    %10 = vector.extract_strided_slice %9 {offsets = [0, 0, 0], sizes = [16, 16, 9], strides = [1, 1, 1]} : vector<18x16x9xf32> to vector<16x16x9xf32>
    %11 = vector.shape_cast %10 : vector<16x16x9xf32> to vector<256x9xf32>
    %12 = vector.extract_strided_slice %9 {offsets = [2, 0, 0], sizes = [16, 16, 9], strides = [1, 1, 1]} : vector<18x16x9xf32> to vector<16x16x9xf32>
    %13 = vector.shape_cast %12 : vector<16x16x9xf32> to vector<256x9xf32>
    %14 = vector.shape_cast %7 : vector<16x16x9xf32> to vector<256x9xf32>
    %c0_4 = arith.constant 0 : index
    %c0_5 = arith.constant 0 : index
    %15 = vector.load %arg3[%c0_4, %c0_5] : memref<27x32xf32, #tpu.memory_space<vmem>>, vector<9x32xf32>
    %cst_6 = arith.constant dense<0.000000e+00> : vector<256x32xf32>
    %16 = tpu.matmul %11, %15, %cst_6 {dimension_numbers = #tpu.dot_dimension_numbers<[1], [0], [0], [1], [0, 0, 1, 1], [], []>} : vector<256x9xf32>, vector<9x32xf32>, vector<256x32xf32> -> vector<256x32xf32>
    %c9 = arith.constant 9 : index
    %c0_7 = arith.constant 0 : index
    %17 = vector.load %arg3[%c9, %c0_7] : memref<27x32xf32, #tpu.memory_space<vmem>>, vector<9x32xf32>
    %cst_8 = arith.constant dense<0.000000e+00> : vector<256x32xf32>
    %18 = tpu.matmul %13, %17, %cst_8 {dimension_numbers = #tpu.dot_dimension_numbers<[1], [0], [0], [1], [0, 0, 1, 1], [], []>} : vector<256x9xf32>, vector<9x32xf32>, vector<256x32xf32> -> vector<256x32xf32>
    %19 = arith.addf %16, %18 : vector<256x32xf32>
    %c18 = arith.constant 18 : index
    %c0_9 = arith.constant 0 : index
    %20 = vector.load %arg3[%c18, %c0_9] : memref<27x32xf32, #tpu.memory_space<vmem>>, vector<9x32xf32>
    %cst_10 = arith.constant dense<0.000000e+00> : vector<256x32xf32>
    %21 = tpu.matmul %14, %20, %cst_10 {dimension_numbers = #tpu.dot_dimension_numbers<[1], [0], [0], [1], [0, 0, 1, 1], [], []>} : vector<256x9xf32>, vector<9x32xf32>, vector<256x32xf32> -> vector<256x32xf32>
    %22 = arith.addf %19, %21 : vector<256x32xf32>
    %c0_11 = arith.constant 0 : index
    %c0_12 = arith.constant 0 : index
    %23 = vector.load %arg4[%c0_11, %c0_12] : memref<1x32xf32, #tpu.memory_space<vmem>>, vector<1x32xf32>
    %24 = vector.broadcast %23 : vector<1x32xf32> to vector<256x32xf32>
    %25 = arith.addf %22, %24 : vector<256x32xf32>
    %cst_13 = arith.constant 0.000000e+00 : f32
    %26 = vector.broadcast %cst_13 : f32 to vector<256x32xf32>
    %27 = arith.maximumf %25, %26 : vector<256x32xf32>
    %28 = vector.shape_cast %27 : vector<256x32xf32> to vector<16x16x32xf32>
    %cst_14 = arith.constant 0.000000e+00 : f32
    %29 = vector.broadcast %cst_14 : f32 to vector<16x1x32xf32>
    %30 = vector.extract_strided_slice %28 {offsets = [0, 0, 0], sizes = [16, 15, 32], strides = [1, 1, 1]} : vector<16x16x32xf32> to vector<16x15x32xf32>
    %31 = tpu.concatenate %29, %30 in 1 : vector<16x1x32xf32>, vector<16x15x32xf32> -> vector<16x16x32xf32>
    %32 = vector.extract_strided_slice %28 {offsets = [0, 1, 0], sizes = [16, 15, 32], strides = [1, 1, 1]} : vector<16x16x32xf32> to vector<16x15x32xf32>
    %33 = tpu.concatenate %32, %29 in 1 : vector<16x15x32xf32>, vector<16x1x32xf32> -> vector<16x16x32xf32>
    %34 = tpu.concatenate %31, %28, %33 in 2 : vector<16x16x32xf32>, vector<16x16x32xf32>, vector<16x16x32xf32> -> vector<16x16x96xf32>
    %cst_15 = arith.constant 0.000000e+00 : f32
    %35 = vector.broadcast %cst_15 : f32 to vector<1x16x96xf32>
    %36 = tpu.concatenate %35, %34, %35 in 0 : vector<1x16x96xf32>, vector<16x16x96xf32>, vector<1x16x96xf32> -> vector<18x16x96xf32>
    %37 = vector.extract_strided_slice %36 {offsets = [0, 0, 0], sizes = [16, 16, 96], strides = [1, 1, 1]} : vector<18x16x96xf32> to vector<16x16x96xf32>
    %38 = vector.shape_cast %37 : vector<16x16x96xf32> to vector<256x96xf32>
    %39 = vector.extract_strided_slice %36 {offsets = [2, 0, 0], sizes = [16, 16, 96], strides = [1, 1, 1]} : vector<18x16x96xf32> to vector<16x16x96xf32>
    %40 = vector.shape_cast %39 : vector<16x16x96xf32> to vector<256x96xf32>
    %41 = tpu.concatenate %34, %1 in 2 : vector<16x16x96xf32>, vector<16x16x3xf32> -> vector<16x16x99xf32>
    %42 = vector.shape_cast %41 : vector<16x16x99xf32> to vector<256x99xf32>
    %c0_16 = arith.constant 0 : index
    %c0_17 = arith.constant 0 : index
    %43 = vector.load %arg5[%c0_16, %c0_17] : memref<291x32xf32, #tpu.memory_space<vmem>>, vector<96x32xf32>
    %cst_18 = arith.constant dense<0.000000e+00> : vector<256x32xf32>
    %44 = tpu.matmul %38, %43, %cst_18 {dimension_numbers = #tpu.dot_dimension_numbers<[1], [0], [0], [1], [0, 0, 1, 1], [], []>} : vector<256x96xf32>, vector<96x32xf32>, vector<256x32xf32> -> vector<256x32xf32>
    %c96 = arith.constant 96 : index
    %c0_19 = arith.constant 0 : index
    %45 = vector.load %arg5[%c96, %c0_19] : memref<291x32xf32, #tpu.memory_space<vmem>>, vector<96x32xf32>
    %cst_20 = arith.constant dense<0.000000e+00> : vector<256x32xf32>
    %46 = tpu.matmul %40, %45, %cst_20 {dimension_numbers = #tpu.dot_dimension_numbers<[1], [0], [0], [1], [0, 0, 1, 1], [], []>} : vector<256x96xf32>, vector<96x32xf32>, vector<256x32xf32> -> vector<256x32xf32>
    %47 = arith.addf %44, %46 : vector<256x32xf32>
    %c192 = arith.constant 192 : index
    %c0_21 = arith.constant 0 : index
    %48 = vector.load %arg5[%c192, %c0_21] : memref<291x32xf32, #tpu.memory_space<vmem>>, vector<99x32xf32>
    %cst_22 = arith.constant dense<0.000000e+00> : vector<256x32xf32>
    %49 = tpu.matmul %42, %48, %cst_22 {dimension_numbers = #tpu.dot_dimension_numbers<[1], [0], [0], [1], [0, 0, 1, 1], [], []>} : vector<256x99xf32>, vector<99x32xf32>, vector<256x32xf32> -> vector<256x32xf32>
    %50 = arith.addf %47, %49 : vector<256x32xf32>
    %c0_23 = arith.constant 0 : index
    %c0_24 = arith.constant 0 : index
    %51 = vector.load %arg6[%c0_23, %c0_24] : memref<1x32xf32, #tpu.memory_space<vmem>>, vector<1x32xf32>
    %52 = vector.broadcast %51 : vector<1x32xf32> to vector<256x32xf32>
    %53 = arith.addf %50, %52 : vector<256x32xf32>
    %cst_25 = arith.constant 0.000000e+00 : f32
    %54 = vector.broadcast %cst_25 : f32 to vector<256x32xf32>
    %55 = arith.maximumf %53, %54 : vector<256x32xf32>
    %56 = vector.shape_cast %55 : vector<256x32xf32> to vector<16x16x32xf32>
    %cst_26 = arith.constant 0.000000e+00 : f32
    %57 = vector.broadcast %cst_26 : f32 to vector<16x1x32xf32>
    %58 = vector.extract_strided_slice %56 {offsets = [0, 0, 0], sizes = [16, 15, 32], strides = [1, 1, 1]} : vector<16x16x32xf32> to vector<16x15x32xf32>
    %59 = tpu.concatenate %57, %58 in 1 : vector<16x1x32xf32>, vector<16x15x32xf32> -> vector<16x16x32xf32>
    %60 = vector.extract_strided_slice %56 {offsets = [0, 1, 0], sizes = [16, 15, 32], strides = [1, 1, 1]} : vector<16x16x32xf32> to vector<16x15x32xf32>
    %61 = tpu.concatenate %60, %57 in 1 : vector<16x15x32xf32>, vector<16x1x32xf32> -> vector<16x16x32xf32>
    %62 = tpu.concatenate %59, %56, %61 in 2 : vector<16x16x32xf32>, vector<16x16x32xf32>, vector<16x16x32xf32> -> vector<16x16x96xf32>
    %cst_27 = arith.constant 0.000000e+00 : f32
    %63 = vector.broadcast %cst_27 : f32 to vector<1x16x96xf32>
    %64 = tpu.concatenate %63, %62, %63 in 0 : vector<1x16x96xf32>, vector<16x16x96xf32>, vector<1x16x96xf32> -> vector<18x16x96xf32>
    %65 = vector.extract_strided_slice %64 {offsets = [0, 0, 0], sizes = [16, 16, 96], strides = [1, 1, 1]} : vector<18x16x96xf32> to vector<16x16x96xf32>
    %66 = vector.shape_cast %65 : vector<16x16x96xf32> to vector<256x96xf32>
    %67 = vector.extract_strided_slice %64 {offsets = [2, 0, 0], sizes = [16, 16, 96], strides = [1, 1, 1]} : vector<18x16x96xf32> to vector<16x16x96xf32>
    %68 = vector.shape_cast %67 : vector<16x16x96xf32> to vector<256x96xf32>
    %69 = vector.shape_cast %62 : vector<16x16x96xf32> to vector<256x96xf32>
    %c0_28 = arith.constant 0 : index
    %c0_29 = arith.constant 0 : index
    %70 = vector.load %arg7[%c0_28, %c0_29] : memref<288x32xf32, #tpu.memory_space<vmem>>, vector<96x32xf32>
    %cst_30 = arith.constant dense<0.000000e+00> : vector<256x32xf32>
    %71 = tpu.matmul %66, %70, %cst_30 {dimension_numbers = #tpu.dot_dimension_numbers<[1], [0], [0], [1], [0, 0, 1, 1], [], []>} : vector<256x96xf32>, vector<96x32xf32>, vector<256x32xf32> -> vector<256x32xf32>
    %c96_31 = arith.constant 96 : index
    %c0_32 = arith.constant 0 : index
    %72 = vector.load %arg7[%c96_31, %c0_32] : memref<288x32xf32, #tpu.memory_space<vmem>>, vector<96x32xf32>
    %cst_33 = arith.constant dense<0.000000e+00> : vector<256x32xf32>
    %73 = tpu.matmul %68, %72, %cst_33 {dimension_numbers = #tpu.dot_dimension_numbers<[1], [0], [0], [1], [0, 0, 1, 1], [], []>} : vector<256x96xf32>, vector<96x32xf32>, vector<256x32xf32> -> vector<256x32xf32>
    %74 = arith.addf %71, %73 : vector<256x32xf32>
    %c192_34 = arith.constant 192 : index
    %c0_35 = arith.constant 0 : index
    %75 = vector.load %arg7[%c192_34, %c0_35] : memref<288x32xf32, #tpu.memory_space<vmem>>, vector<96x32xf32>
    %cst_36 = arith.constant dense<0.000000e+00> : vector<256x32xf32>
    %76 = tpu.matmul %69, %75, %cst_36 {dimension_numbers = #tpu.dot_dimension_numbers<[1], [0], [0], [1], [0, 0, 1, 1], [], []>} : vector<256x96xf32>, vector<96x32xf32>, vector<256x32xf32> -> vector<256x32xf32>
    %77 = arith.addf %74, %76 : vector<256x32xf32>
    %c0_37 = arith.constant 0 : index
    %c0_38 = arith.constant 0 : index
    %78 = vector.load %arg8[%c0_37, %c0_38] : memref<1x32xf32, #tpu.memory_space<vmem>>, vector<1x32xf32>
    %79 = vector.broadcast %78 : vector<1x32xf32> to vector<256x32xf32>
    %80 = arith.addf %77, %79 : vector<256x32xf32>
    %cst_39 = arith.constant 0.000000e+00 : f32
    %81 = vector.broadcast %cst_39 : f32 to vector<256x32xf32>
    %82 = arith.maximumf %80, %81 : vector<256x32xf32>
    %83 = vector.shape_cast %82 : vector<256x32xf32> to vector<16x16x32xf32>
    %cst_40 = arith.constant 0.000000e+00 : f32
    %84 = vector.broadcast %cst_40 : f32 to vector<16x1x32xf32>
    %85 = vector.extract_strided_slice %83 {offsets = [0, 0, 0], sizes = [16, 15, 32], strides = [1, 1, 1]} : vector<16x16x32xf32> to vector<16x15x32xf32>
    %86 = tpu.concatenate %84, %85 in 1 : vector<16x1x32xf32>, vector<16x15x32xf32> -> vector<16x16x32xf32>
    %87 = vector.extract_strided_slice %83 {offsets = [0, 1, 0], sizes = [16, 15, 32], strides = [1, 1, 1]} : vector<16x16x32xf32> to vector<16x15x32xf32>
    %88 = tpu.concatenate %87, %84 in 1 : vector<16x15x32xf32>, vector<16x1x32xf32> -> vector<16x16x32xf32>
    %89 = tpu.concatenate %86, %83, %88 in 2 : vector<16x16x32xf32>, vector<16x16x32xf32>, vector<16x16x32xf32> -> vector<16x16x96xf32>
    %cst_41 = arith.constant 0.000000e+00 : f32
    %90 = vector.broadcast %cst_41 : f32 to vector<1x16x96xf32>
    %91 = tpu.concatenate %90, %89, %90 in 0 : vector<1x16x96xf32>, vector<16x16x96xf32>, vector<1x16x96xf32> -> vector<18x16x96xf32>
    %92 = vector.extract_strided_slice %91 {offsets = [0, 0, 0], sizes = [16, 16, 96], strides = [1, 1, 1]} : vector<18x16x96xf32> to vector<16x16x96xf32>
    %93 = vector.shape_cast %92 : vector<16x16x96xf32> to vector<256x96xf32>
    %94 = vector.extract_strided_slice %91 {offsets = [2, 0, 0], sizes = [16, 16, 96], strides = [1, 1, 1]} : vector<18x16x96xf32> to vector<16x16x96xf32>
    %95 = vector.shape_cast %94 : vector<16x16x96xf32> to vector<256x96xf32>
    %96 = tpu.concatenate %89, %56 in 2 : vector<16x16x96xf32>, vector<16x16x32xf32> -> vector<16x16x128xf32>
    %97 = vector.shape_cast %96 : vector<16x16x128xf32> to vector<256x128xf32>
    %c0_42 = arith.constant 0 : index
    %c0_43 = arith.constant 0 : index
    %98 = vector.load %arg9[%c0_42, %c0_43] : memref<320x32xf32, #tpu.memory_space<vmem>>, vector<96x32xf32>
    %cst_44 = arith.constant dense<0.000000e+00> : vector<256x32xf32>
    %99 = tpu.matmul %93, %98, %cst_44 {dimension_numbers = #tpu.dot_dimension_numbers<[1], [0], [0], [1], [0, 0, 1, 1], [], []>} : vector<256x96xf32>, vector<96x32xf32>, vector<256x32xf32> -> vector<256x32xf32>
    %c96_45 = arith.constant 96 : index
    %c0_46 = arith.constant 0 : index
    %100 = vector.load %arg9[%c96_45, %c0_46] : memref<320x32xf32, #tpu.memory_space<vmem>>, vector<96x32xf32>
    %cst_47 = arith.constant dense<0.000000e+00> : vector<256x32xf32>
    %101 = tpu.matmul %95, %100, %cst_47 {dimension_numbers = #tpu.dot_dimension_numbers<[1], [0], [0], [1], [0, 0, 1, 1], [], []>} : vector<256x96xf32>, vector<96x32xf32>, vector<256x32xf32> -> vector<256x32xf32>
    %102 = arith.addf %99, %101 : vector<256x32xf32>
    %c192_48 = arith.constant 192 : index
    %c0_49 = arith.constant 0 : index
    %103 = vector.load %arg9[%c192_48, %c0_49] : memref<320x32xf32, #tpu.memory_space<vmem>>, vector<128x32xf32>
    %cst_50 = arith.constant dense<0.000000e+00> : vector<256x32xf32>
    %104 = tpu.matmul %97, %103, %cst_50 {dimension_numbers = #tpu.dot_dimension_numbers<[1], [0], [0], [1], [0, 0, 1, 1], [], []>} : vector<256x128xf32>, vector<128x32xf32>, vector<256x32xf32> -> vector<256x32xf32>
    %105 = arith.addf %102, %104 : vector<256x32xf32>
    %c0_51 = arith.constant 0 : index
    %c0_52 = arith.constant 0 : index
    %106 = vector.load %arg10[%c0_51, %c0_52] : memref<1x32xf32, #tpu.memory_space<vmem>>, vector<1x32xf32>
    %107 = vector.broadcast %106 : vector<1x32xf32> to vector<256x32xf32>
    %108 = arith.addf %105, %107 : vector<256x32xf32>
    %cst_53 = arith.constant 0.000000e+00 : f32
    %109 = vector.broadcast %cst_53 : f32 to vector<256x32xf32>
    %110 = arith.maximumf %108, %109 : vector<256x32xf32>
    %111 = vector.shape_cast %110 : vector<256x32xf32> to vector<16x16x32xf32>
    %c0_54 = arith.constant 0 : index
    %c0_55 = arith.constant 0 : index
    %c0_56 = arith.constant 0 : index
    %c0_57 = arith.constant 0 : index
    %112 = vector.load %arg13[%c0_54, %c0_55, %c0_56, %c0_57] : memref<1x16x16x32xf32, #tpu.memory_space<vmem>>, vector<1x16x16x32xf32>
    %113 = vector.shape_cast %112 : vector<1x16x16x32xf32> to vector<16x16x32xf32>
    %114 = vector.shape_cast %111 : vector<16x16x32xf32> to vector<1x16x16x32xf32>
    tpu.vector_store %arg13[%c0_54, %c0_55, %c0_56, %c0_57], %114 {strides = array<i32>} : memref<1x16x16x32xf32, #tpu.memory_space<vmem>>, vector<1x16x16x32xf32>,
    %c0_58 = arith.constant 0 : index
    %c0_59 = arith.constant 0 : index
    %c0_60 = arith.constant 0 : index
    %c0_61 = arith.constant 0 : index
    %115 = vector.load %arg2[%c0_58, %c0_59, %c0_60, %c0_61] : memref<1x16x16x1xf32, #tpu.memory_space<vmem>>, vector<1x16x16x1xf32>
    %116 = vector.shape_cast %115 : vector<1x16x16x1xf32> to vector<16x16x1xf32>
    %cst_62 = arith.constant 0.000000e+00 : f32
    %117 = vector.broadcast %cst_62 : f32 to vector<16x16x1xf32>
    %118 = arith.cmpf ogt, %116, %117 : vector<16x16x1xf32>
    %cst_63 = arith.constant 0.000000e+00 : f32
    %119 = vector.shape_cast %118 : vector<16x16x1xi1> to vector<16x16x1xi1>
    %120 = vector.broadcast %119 : vector<16x16x1xi1> to vector<16x16x32xi1>
    %121 = vector.broadcast %cst_63 : f32 to vector<16x16x32xf32>
    %122 = arith.select %120, %111, %121 : vector<16x16x32xi1>, vector<16x16x32xf32>
    %cst_64 = arith.constant 0.000000e+00 : f32
    %123 = vector.broadcast %cst_64 : f32 to vector<16x1x32xf32>
    %124 = vector.extract_strided_slice %122 {offsets = [0, 0, 0], sizes = [16, 15, 32], strides = [1, 1, 1]} : vector<16x16x32xf32> to vector<16x15x32xf32>
    %125 = tpu.concatenate %123, %124 in 1 : vector<16x1x32xf32>, vector<16x15x32xf32> -> vector<16x16x32xf32>
    %126 = vector.extract_strided_slice %122 {offsets = [0, 1, 0], sizes = [16, 15, 32], strides = [1, 1, 1]} : vector<16x16x32xf32> to vector<16x15x32xf32>
    %127 = tpu.concatenate %126, %123 in 1 : vector<16x15x32xf32>, vector<16x1x32xf32> -> vector<16x16x32xf32>
    %128 = tpu.concatenate %125, %122, %127 in 2 : vector<16x16x32xf32>, vector<16x16x32xf32>, vector<16x16x32xf32> -> vector<16x16x96xf32>
    %cst_65 = arith.constant 0.000000e+00 : f32
    %129 = vector.broadcast %cst_65 : f32 to vector<1x16x96xf32>
    %130 = tpu.concatenate %129, %128, %129 in 0 : vector<1x16x96xf32>, vector<16x16x96xf32>, vector<1x16x96xf32> -> vector<18x16x96xf32>
    %131 = vector.extract_strided_slice %130 {offsets = [0, 0, 0], sizes = [16, 16, 96], strides = [1, 1, 1]} : vector<18x16x96xf32> to vector<16x16x96xf32>
    %132 = vector.shape_cast %131 : vector<16x16x96xf32> to vector<256x96xf32>
    %133 = vector.extract_strided_slice %130 {offsets = [2, 0, 0], sizes = [16, 16, 96], strides = [1, 1, 1]} : vector<18x16x96xf32> to vector<16x16x96xf32>
    %134 = vector.shape_cast %133 : vector<16x16x96xf32> to vector<256x96xf32>
    %135 = vector.shape_cast %128 : vector<16x16x96xf32> to vector<256x96xf32>
    %c0_66 = arith.constant 0 : index
    %c0_67 = arith.constant 0 : index
    %136 = vector.load %arg11[%c0_66, %c0_67] : memref<288x32xf32, #tpu.memory_space<vmem>>, vector<96x32xf32>
    %cst_68 = arith.constant dense<0.000000e+00> : vector<256x32xf32>
    %137 = tpu.matmul %132, %136, %cst_68 {dimension_numbers = #tpu.dot_dimension_numbers<[1], [0], [0], [1], [0, 0, 1, 1], [], []>} : vector<256x96xf32>, vector<96x32xf32>, vector<256x32xf32> -> vector<256x32xf32>
    %c96_69 = arith.constant 96 : index
    %c0_70 = arith.constant 0 : index
    %138 = vector.load %arg11[%c96_69, %c0_70] : memref<288x32xf32, #tpu.memory_space<vmem>>, vector<96x32xf32>
    %cst_71 = arith.constant dense<0.000000e+00> : vector<256x32xf32>
    %139 = tpu.matmul %134, %138, %cst_71 {dimension_numbers = #tpu.dot_dimension_numbers<[1], [0], [0], [1], [0, 0, 1, 1], [], []>} : vector<256x96xf32>, vector<96x32xf32>, vector<256x32xf32> -> vector<256x32xf32>
    %140 = arith.addf %137, %139 : vector<256x32xf32>
    %c192_72 = arith.constant 192 : index
    %c0_73 = arith.constant 0 : index
    %141 = vector.load %arg11[%c192_72, %c0_73] : memref<288x32xf32, #tpu.memory_space<vmem>>, vector<96x32xf32>
    %cst_74 = arith.constant dense<0.000000e+00> : vector<256x32xf32>
    %142 = tpu.matmul %135, %141, %cst_74 {dimension_numbers = #tpu.dot_dimension_numbers<[1], [0], [0], [1], [0, 0, 1, 1], [], []>} : vector<256x96xf32>, vector<96x32xf32>, vector<256x32xf32> -> vector<256x32xf32>
    %143 = arith.addf %140, %142 : vector<256x32xf32>
    %c0_75 = arith.constant 0 : index
    %c0_76 = arith.constant 0 : index
    %144 = vector.load %arg12[%c0_75, %c0_76] : memref<1x32xf32, #tpu.memory_space<vmem>>, vector<1x32xf32>
    %145 = vector.broadcast %144 : vector<1x32xf32> to vector<256x32xf32>
    %146 = arith.addf %143, %145 : vector<256x32xf32>
    %cst_77 = arith.constant 0.000000e+00 : f32
    %147 = vector.broadcast %cst_77 : f32 to vector<256x32xf32>
    %148 = arith.maximumf %146, %147 : vector<256x32xf32>
    %149 = vector.shape_cast %148 : vector<256x32xf32> to vector<16x16x32xf32>
    %c0_78 = arith.constant 0 : index
    %c0_79 = arith.constant 0 : index
    %c0_80 = arith.constant 0 : index
    %c0_81 = arith.constant 0 : index
    %150 = vector.load %arg14[%c0_78, %c0_79, %c0_80, %c0_81] : memref<1x16x16x32xf32, #tpu.memory_space<vmem>>, vector<1x16x16x32xf32>
    %151 = vector.shape_cast %150 : vector<1x16x16x32xf32> to vector<16x16x32xf32>
    %152 = vector.shape_cast %149 : vector<16x16x32xf32> to vector<1x16x16x32xf32>
    tpu.vector_store %arg14[%c0_78, %c0_79, %c0_80, %c0_81], %152 {strides = array<i32>} : memref<1x16x16x32xf32, #tpu.memory_space<vmem>>, vector<1x16x16x32xf32>,
    return
  }
  func.func @transform_0(%arg0: i32) -> (i32, i32, i32, i32) {
    %c0_i32 = arith.constant 0 : i32
    %c0_i32_0 = arith.constant 0 : i32
    %c0_i32_1 = arith.constant 0 : i32
    %c0_i32_2 = arith.constant 0 : i32
    return %arg0, %c0_i32, %c0_i32_0, %c0_i32_1 : i32, i32, i32, i32
  }
  func.func @transform_1(%arg0: i32) -> (i32, i32, i32, i32) {
    %c0_i32 = arith.constant 0 : i32
    %c0_i32_0 = arith.constant 0 : i32
    %c0_i32_1 = arith.constant 0 : i32
    %c0_i32_2 = arith.constant 0 : i32
    return %arg0, %c0_i32, %c0_i32_0, %c0_i32_1 : i32, i32, i32, i32
  }
  func.func @transform_2(%arg0: i32) -> (i32, i32) {
    %c0_i32 = arith.constant 0 : i32
    %c0_i32_0 = arith.constant 0 : i32
    %c0_i32_1 = arith.constant 0 : i32
    return %c0_i32, %c0_i32_0 : i32, i32
  }
  func.func @transform_3(%arg0: i32) -> (i32, i32) {
    %c0_i32 = arith.constant 0 : i32
    %c0_i32_0 = arith.constant 0 : i32
    %c0_i32_1 = arith.constant 0 : i32
    return %c0_i32, %c0_i32_0 : i32, i32
  }
  func.func @transform_4(%arg0: i32) -> (i32, i32) {
    %c0_i32 = arith.constant 0 : i32
    %c0_i32_0 = arith.constant 0 : i32
    %c0_i32_1 = arith.constant 0 : i32
    return %c0_i32, %c0_i32_0 : i32, i32
  }
  func.func @transform_5(%arg0: i32) -> (i32, i32) {
    %c0_i32 = arith.constant 0 : i32
    %c0_i32_0 = arith.constant 0 : i32
    %c0_i32_1 = arith.constant 0 : i32
    return %c0_i32, %c0_i32_0 : i32, i32
  }
  func.func @transform_6(%arg0: i32) -> (i32, i32) {
    %c0_i32 = arith.constant 0 : i32
    %c0_i32_0 = arith.constant 0 : i32
    %c0_i32_1 = arith.constant 0 : i32
    return %c0_i32, %c0_i32_0 : i32, i32
  }
  func.func @transform_7(%arg0: i32) -> (i32, i32) {
    %c0_i32 = arith.constant 0 : i32
    %c0_i32_0 = arith.constant 0 : i32
    %c0_i32_1 = arith.constant 0 : i32
    return %c0_i32, %c0_i32_0 : i32, i32
  }
  func.func @transform_8(%arg0: i32) -> (i32, i32) {
    %c0_i32 = arith.constant 0 : i32
    %c0_i32_0 = arith.constant 0 : i32
    %c0_i32_1 = arith.constant 0 : i32
    return %c0_i32, %c0_i32_0 : i32, i32
  }
  func.func @transform_9(%arg0: i32) -> (i32, i32) {
    %c0_i32 = arith.constant 0 : i32
    %c0_i32_0 = arith.constant 0 : i32
    %c0_i32_1 = arith.constant 0 : i32
    return %c0_i32, %c0_i32_0 : i32, i32
  }
  func.func @transform_10(%arg0: i32) -> (i32, i32) {
    %c0_i32 = arith.constant 0 : i32
    %c0_i32_0 = arith.constant 0 : i32
    %c0_i32_1 = arith.constant 0 : i32
    return %c0_i32, %c0_i32_0 : i32, i32
  }
  func.func @transform_11(%arg0: i32) -> (i32, i32) {
    %c0_i32 = arith.constant 0 : i32
    %c0_i32_0 = arith.constant 0 : i32
    %c0_i32_1 = arith.constant 0 : i32
    return %c0_i32, %c0_i32_0 : i32, i32
  }
  func.func @transform_12(%arg0: i32) -> (i32, i32, i32, i32) {
    %c0_i32 = arith.constant 0 : i32
    %c0_i32_0 = arith.constant 0 : i32
    %c0_i32_1 = arith.constant 0 : i32
    %c0_i32_2 = arith.constant 0 : i32
    return %arg0, %c0_i32, %c0_i32_0, %c0_i32_1 : i32, i32, i32, i32
  }
  func.func @transform_13(%arg0: i32) -> (i32, i32, i32, i32) {
    %c0_i32 = arith.constant 0 : i32
    %c0_i32_0 = arith.constant 0 : i32
    %c0_i32_1 = arith.constant 0 : i32
    %c0_i32_2 = arith.constant 0 : i32
    return %arg0, %c0_i32, %c0_i32_0, %c0_i32_1 : i32, i32, i32, i32
  }
}

</mosaic_0001>

<bundles_post_ra>
// kernel: squeeze.15
= control target key start
LH: loop header
LB: loop body
LE: loop exit
PB: predicated region body
PF: predicated region fallthrough
CT: control target
= control target key end

     0   :  { %vm16_vm0 = vcmask 261120   ;;  %s61_s0 = inlined_call_operand.vmem [shape: f32[1,3,3,32], index: 0, kind: input, shape index: {}]   ;;  %s62_s1 = inlined_call_operand.vmem [shape: f32[9,32], index: 1, kind: output, shape index: {}]  }
   0x1   :  { %v29_v0 = vld [vmem:[%s61_s0 + $0x8] sm:$0xf]  ;;  %v30_v1 = vld [vmem:[%s61_s0 + $0x4] sm:$0xf]  ;;  %v13_v2 = vld [vmem:[%s61_s0] sm:$0xf] }
   0x2   :  { %8 = vst [vmem:[#allocation0 + $0x10] sm:$0xf] %v29_v0  ;;  %12 = vst [vmem:[#allocation0 + $0x8] sm:$0xf] %v30_v1 }
   0x3   :  { %14 = vst [vmem:[#allocation0] sm:$0xf] %v13_v2 }
   0x9   :  { %v19_v4 = vld [vmem:[#allocation0 + $0x8] sm:$0x7]   ;;  %v24_v5 = vld [vmem:[#allocation0 + $0x10] sm:$0x7]  }
   0xa   :  { %v15_v3 = vld [vmem:[#allocation0] sm:$0x7]   ;;  %31 = vst.msk [vmem:[%s62_s1 + $0x3] sm:$0x7] %vm16_vm0, %v19_v4   ;;  %32 = vst.msk [vmem:[%s62_s1 + $0x6] sm:$0x7] %vm16_vm0, %v24_v5  }
   0xb   :  { %17 = vst.msk [vmem:[%s62_s1] sm:$0x7] %vm16_vm0, %v15_v3  }

// kernel: encoder_block_forward.1
= control target key start
LH: loop header
LB: loop body
LE: loop exit
PB: predicated region body
PF: predicated region fallthrough
CT: control target
= control target key end

     0   :  { %s11203_s25 = smov 0   ;;  %s15999_s0 = inlined_call_operand.vmem [shape: f32[2,16,16,3], index: 0, kind: input, shape index: {}]   ;;  %s16000_s1 = inlined_call_operand.vmem [shape: f32[2,16,16,1], index: 1, kind: input, shape index: {}]   ;;  %s16001_s2 = inlined_call_operand.vmem [shape: f32[27,32], index: 2, kind: input, shape index: {}]   ;;  %s16002_s3 = inlined_call_operand.vmem [shape: f32[1,32], index: 3, kind: input, shape index: {}]   ;;  %s16003_s4 = inlined_call_operand.vmem [shape: f32[291,32], index: 4, kind: input, shape index: {}]   ;;  %s16004_s5 = inlined_call_operand.vmem [shape: f32[1,32], index: 5, kind: input, shape index: {}]   ;;  %s16005_s6 = inlined_call_operand.vmem [shape: f32[288,32], index: 6, kind: input, shape index: {}]   ;;  %s16006_s7 = inlined_call_operand.vmem [shape: f32[1,32], index: 7, kind: input, shape index: {}]   ;;  %s16007_s8 = inlined_call_operand.vmem [shape: f32[320,32], index: 8, kind: input, shape index: {}]   ;;  %s16008_s9 = inlined_call_operand.vmem [shape: f32[1,32], index: 9, kind: input, shape index: {}]   ;;  %s16009_s10 = inlined_call_operand.vmem [shape: f32[288,32], index: 10, kind: input, shape index: {}]   ;;  %s16010_s11 = inlined_call_operand.vmem [shape: f32[1,32], index: 11, kind: input, shape index: {}]   ;;  %s16011_s12 = inlined_call_operand.vmem [shape: f32[2,16,16,32], index: 12, kind: output, shape index: {0}]   ;;  %s16012_s13 = inlined_call_operand.vmem [shape: f32[2,16,16,32], index: 13, kind: output, shape index: {1}]  }
   0x1 LB: > { %s8230_s26 = sadd.s32 4294967295, %s11123_s25   ;;  %p8234_p0 = scmp.ge.s32.totalorder %s11123_s25, 1  ;;  %s11123_s25 = sphi %s11203_s25, %s24_s25  }
   0x2   : > { %p400_p1 = scmp.lt.s32.totalorder %s11123_s25, 3 }
   0x4   : > { %p401_p2 = pnand %p8234_p0, %p400_p1 }
   0x6   : > { %404 = sbr.rel (%p401_p2) target bundleno = 2594 (0xa22), region = 68 }
   0xd   : > { %p454_p3 = scmp.lt.s32.totalorder %s8230_s26, 1  ;;  %v992_v0 = vld [vmem:[%s16001_s2 + $0x9] sm:$0xff]  ;;  %vm538_vm0 = vcmask 1040384   ;;  %v993_v1 = vld [vmem:[%s16001_s2 + $0x11] sm:$0x1]  ;;  %vm11125_vm1 = vmmov 1  }
   0xe   : > { %v10351_v2 = vpack.c.bf16 %v993_v1, %v992_v0  ;;  %vm11218_vm2 = vmpackc.low %vm538_vm0, %vm11125_vm1  ;;  %v990_v4 = vld [vmem:[%s16001_s2] sm:$0xff]  ;;  %v991_v5 = vld [vmem:[%s16001_s2 + $0x8] sm:$0x1]  ;;  %vm635_vm3 = vcmask 1046528   ;;  %s11126_s22 = smov 3   ;;  %v16013_v12 = vmov 0.0  }
   0xf   : > { %s16231_s26 = smov (!%p454_p3, %s8230_s26), 1  ;;  %v11240_v6 = vpack.c.bf16 %v991_v5, %v990_v4  ;;  %9377 = vmatprep.mubr.f32.mxu0 %v16013_v12  ;;  %s11128_s23 = smov 6   ;;  %v1550_v34 = vld [vmem:[%s16001_s2 + $0x12] sm:$0xff]  ;;  %v1551_v35 = vld [vmem:[%s16001_s2 + $0x1a] sm:$0x1]  ;;  %vm924_vm4 = vcmask 23552  }
  0x10   : > { %s11222_s14 = sshll.u32 %s16231_s26, 8  ;;  %10353 = vmatprep.subr.msk.bf16.mxu1 %vm11218_vm2, %v10351_v2  ;;  %v10363_v36 = vpack.c.bf16 %v1551_v35, %v1550_v34  ;;  %vm957_vm5 = vcmask 48128   ;;  %vm994_vm6 = vcmask 72704   ;;  %s11129_s27 = smov 32   ;;  %vm2299_vm7 = vcmask 261120  }
  0x11   : > { %s11236_s21 = scalar_lea.vmem %s15999_s0, %s11222_s14  ;;  %10356 = vmatpush3.bf16.msk.msra.mxu1 %vm11218_vm2, %v10351_v2  ;;  %10359 = vmatprep.subr.msk.bf16.mxu0 %vm11218_vm2, %v11240_v6  ;;  %s11130_s28 = smov 64   ;;  %vm2332_vm8 = vcmask 523264   ;;  %vm2461_vm9 = vcmask 785408   ;;  %vm3176_vm10 = vcmask 1042432   ;;  %vm3079_vm11 = vcmask 809984  }
  0x12   : > { %v11243_v7 = vld [vmem:[%s11236_s21 + $0x20] sm:$0xff]  ;;  %v11246_v8 = vld [vmem:[%s11236_s21 + $0x10] sm:$0xff]  ;;  %v11249_v9 = vld [vmem:[%s11236_s21 + $0x18] sm:$0xff]  ;;  %10362 = vmatpush3.bf16.msk.msra.mxu0 %vm11218_vm2, %v11240_v6  ;;  %10665 = vmatprep.subr.msk.bf16.mxu1 %vm11218_vm2, %v11240_v6  ;;  %s11131_s17 = smov 96   ;;  %s14527_s26 = scalar_lea.vmem %s16000_s1, %s11222_s14 }
  0x13   : > { %724 = vrot.lane.b32.xlu1 %v11243_v7, %s11126_s22  ;;  %720 = vrot.lane.b32.xlu0 %v11246_v8, %s11126_s22  ;;  %v639_v10 = vrot.slane %v11246_v8, 1  ;;  %v640_v11 = vrot.slane %v11249_v9, 1  ;;  %v11273_v15 = vld [vmem:[%s11236_s21] sm:$0xff]  ;;  %v11277_v16 = vld [vmem:[%s11236_s21 + $0x28] sm:$0xff]  ;;  %v642_v18 = vrot.slane %v11243_v7, 1  ;;  %s14904_s18 = scalar_lea.vmem %s16011_s12, %s11222_s14  ;;  %s15899_s30 = scalar_lea.vmem %s16012_s13, %s11222_s14 }
  0x14   : > { %v11280_v17 = vld [vmem:[%s11236_s21 + $0x8] sm:$0xff]  ;;  %v643_v19 = vrot.slane %v11277_v16, 1  ;;  %v636_v20 = vrot.slane %v11273_v15, 1  ;;  %v11300_v26 = vld [vmem:[%s11236_s21 + $0x38] sm:$0xff]  ;;  %v11303_v27 = vld [vmem:[%s11236_s21 + $0x30] sm:$0xff]  ;;  %10365 = vmatprep.subr.msk.bf16.mxu0 %vm11218_vm2, %v10363_v36 }
  0x15   : > { %v641_v13 = vsel %vm635_vm3, %v639_v10, %v640_v11  ;;  %v701_v14 = vsel %vm635_vm3, %v640_v11, 0.0  ;;  %9378 = vmatmul.mubr.f32.vlgmr.msra.gmra.mrb[0].mxu0 %v16013_v12  ;;  %v637_v21 = vrot.slane %v11280_v17, 1  ;;  %v646_v28 = vrot.slane %v11300_v26, 1  ;;  %v11316_v32 = vld [vmem:[%s11236_s21 + $0x48] sm:$0xff]  ;;  %v11319_v33 = vld [vmem:[%s11236_s21 + $0x40] sm:$0xff]  ;;  %v11342_v41 = vld [vmem:[%s11236_s21 + $0x58] sm:$0xff] }
  0x16   : > { %v644_v22 = vsel %vm635_vm3, %v642_v18, %v643_v19  ;;  %v702_v24 = vsel %vm635_vm3, %v643_v19, 0.0  ;;  %v645_v29 = vrot.slane %v11303_v27, 1  ;;  %v649_v37 = vrot.slane %v11316_v32, 1  ;;  %10368 = vmatpush3.bf16.msk.msra.mxu0 %vm11218_vm2, %v10363_v36  ;;  %v11345_v42 = vld [vmem:[%s11236_s21 + $0x50] sm:$0xff]  ;;  %v11358_v47 = vld [vmem:[%s11236_s21 + $0x68] sm:$0xff]  ;;  %v11361_v48 = vld [vmem:[%s11236_s21 + $0x60] sm:$0xff] }
  0x17   : > { %722 = vrot.lane.b32.xlu0 %v11249_v9, %s11126_s22  ;;  %832 = vrot.lane.b32.xlu1 %v641_v13, %s11128_s23  ;;  %v638_v23 = vsel %vm635_vm3, %v636_v20, %v637_v21  ;;  %v700_v25 = vsel %vm635_vm3, %v637_v21, 0.0  ;;  %v703_v30 = vsel %vm635_vm3, %v646_v28, 0.0  ;;  %v648_v38 = vrot.slane %v11319_v33, 1  ;;  %v11374_v53 = vld [vmem:[%s11236_s21 + $0x78] sm:$0xff]  ;;  %v11377_v54 = vld [vmem:[%s11236_s21 + $0x70] sm:$0xff] }
  0x18   : > { %v647_v31 = vsel %vm635_vm3, %v645_v29, %v646_v28  ;;  %v704_v39 = vsel %vm635_vm3, %v649_v37, 0.0  ;;  %v652_v43 = vrot.slane %v11342_v41, 1  ;;  %v651_v44 = vrot.slane %v11345_v42, 1  ;;  %v11390_v59 = vld [vmem:[%s11236_s21 + $0x88] sm:$0xff]  ;;  %v11393_v60 = vld [vmem:[%s11236_s21 + $0x80] sm:$0xff]  ;;  %v11406_v1 = vld [vmem:[%s11236_s21 + $0x98] sm:$0xff] }
  0x19   : > { %v650_v40 = vsel %vm635_vm3, %v648_v38, %v649_v37  ;;  %v655_v49 = vrot.slane %v11358_v47, 1  ;;  %v654_v50 = vrot.slane %v11361_v48, 1  ;;  %v658_v55 = vrot.slane %v11374_v53, 1  ;;  %v11409_v2 = vld [vmem:[%s11236_s21 + $0x90] sm:$0xff]  ;;  %v11422_v13 = vld [vmem:[%s11236_s21 + $0xa8] sm:$0xff]  ;;  %v11470_v38 = vld [vmem:[%s11236_s21 + $0xd8] sm:$0xff] }
  0x1a   : > { %v705_v45 = vsel %vm635_vm3, %v652_v43, 0.0  ;;  %v653_v46 = vsel %vm635_vm3, %v651_v44, %v652_v43  ;;  %v657_v56 = vrot.slane %v11377_v54, 1  ;;  %v661_v61 = vrot.slane %v11390_v59, 1 }
  0x1b   : > { %834 = vrot.lane.b32.xlu1 %v701_v14, %s11128_s23  ;;  %716 = vrot.lane.b32.xlu0 %v11273_v15, %s11126_s22  ;;  %v706_v51 = vsel %vm635_vm3, %v655_v49, 0.0  ;;  %v656_v52 = vsel %vm635_vm3, %v654_v50, %v655_v49  ;;  %v707_v57 = vsel %vm635_vm3, %v658_v55, 0.0  ;;  %v660_v62 = vrot.slane %v11393_v60, 1  ;;  %v11425_v14 = vld [vmem:[%s11236_s21 + $0xa0] sm:$0xff] }
  0x1c   : > { %v659_v58 = vsel %vm635_vm3, %v657_v56, %v658_v55  ;;  %v708_v63 = vsel %vm635_vm3, %v661_v61, 0.0  ;;  %v664_v4 = vrot.slane %v11406_v1, 1  ;;  %v663_v5 = vrot.slane %v11409_v2, 1  ;;  %v11489_v49 = vld [vmem:[%s11236_s21 + $0xe0] sm:$0xff] }
  0x1d   : > { %v662_v0 = vsel %vm635_vm3, %v660_v62, %v661_v61  ;;  %v667_v18 = vrot.slane %v11422_v13, 1  ;;  %v666_v19 = vrot.slane %v11425_v14, 1  ;;  %v11503_v61 = vld [vmem:[%s11236_s21 + $0xf8] sm:$0xff]  ;;  %v543_v62 = vrot.slane %v11249_v9, 7 }
  0x1e   : > { %v709_v10 = vsel %vm635_vm3, %v664_v4, 0.0  ;;  %v665_v11 = vsel %vm635_vm3, %v663_v5, %v664_v4 }
  0x1f   : > { %726 = vrot.lane.b32.xlu1 %v11277_v16, %s11126_s22  ;;  %718 = vrot.lane.b32.xlu0 %v11280_v17, %s11126_s22  ;;  %v710_v20 = vsel %vm635_vm3, %v667_v18, 0.0  ;;  %v668_v21 = vsel %vm635_vm3, %v666_v19, %v667_v18 }
  0x23   : > { %836 = vrot.lane.b32.xlu1 %v644_v22, %s11128_s23  ;;  %828 = vrot.lane.b32.xlu0 %v638_v23, %s11128_s23  ;;  %v11438_v22 = vld [vmem:[%s11236_s21 + $0xb8] sm:$0xff]  ;;  %v11441_v23 = vld [vmem:[%s11236_s21 + $0xb0] sm:$0xff] }
  0x27   : > { %838 = vrot.lane.b32.xlu1 %v702_v24, %s11128_s23  ;;  %830 = vrot.lane.b32.xlu0 %v700_v25, %s11128_s23  ;;  %v670_v24 = vrot.slane %v11438_v22, 1  ;;  %v669_v25 = vrot.slane %v11441_v23, 1 }
  0x29   : > { %v711_v28 = vsel %vm635_vm3, %v670_v24, 0.0  ;;  %v671_v29 = vsel %vm635_vm3, %v669_v25, %v670_v24 }
  0x2b   : > { %730 = vrot.lane.b32.xlu1 %v11300_v26, %s11126_s22  ;;  %728 = vrot.lane.b32.xlu0 %v11303_v27, %s11126_s22 }
  0x2f   : > { %842 = vrot.lane.b32.xlu1 %v703_v30, %s11128_s23  ;;  %840 = vrot.lane.b32.xlu0 %v647_v31, %s11128_s23  ;;  %v11454_v30 = vld [vmem:[%s11236_s21 + $0xc8] sm:$0xff]  ;;  %v11457_v31 = vld [vmem:[%s11236_s21 + $0xc0] sm:$0xff] }
  0x30   : > { %v673_v34 = vrot.slane %v11454_v30, 1  ;;  %v672_v35 = vrot.slane %v11457_v31, 1 }
  0x32   : > { %v712_v36 = vsel %vm635_vm3, %v673_v34, 0.0  ;;  %v674_v37 = vsel %vm635_vm3, %v672_v35, %v673_v34  ;;  %v539_v34 = vrot.slane %v11273_v15, 7 }
  0x33   : > { %734 = vrot.lane.b32.xlu1 %v11316_v32, %s11126_s22  ;;  %732 = vrot.lane.b32.xlu0 %v11319_v33, %s11126_s22 }
  0x34   : > { %v619_v15 = vsel %vm538_vm0, 0.0, %v539_v34 }
  0x37   : > { %846 = vrot.lane.b32.xlu1 %v704_v39, %s11128_s23  ;;  %844 = vrot.lane.b32.xlu0 %v650_v40, %s11128_s23  ;;  %v11473_v39 = vld [vmem:[%s11236_s21 + $0xd0] sm:$0xff]  ;;  %v676_v40 = vrot.slane %v11470_v38, 1 }
  0x38   : > { %v675_v43 = vrot.slane %v11473_v39, 1 }
  0x39   : > { %v713_v44 = vsel %vm635_vm3, %v676_v40, 0.0 }
  0x3b   : > { %738 = vrot.lane.b32.xlu1 %v11342_v41, %s11126_s22  ;;  %736 = vrot.lane.b32.xlu0 %v11345_v42, %s11126_s22 }
  0x3f   : > { %850 = vrot.lane.b32.xlu1 %v705_v45, %s11128_s23  ;;  %848 = vrot.lane.b32.xlu0 %v653_v46, %s11128_s23  ;;  %v677_v45 = vsel %vm635_vm3, %v675_v43, %v676_v40  ;;  %v11486_v46 = vld [vmem:[%s11236_s21 + $0xe8] sm:$0xff] }
  0x40   : > { %v679_v50 = vrot.slane %v11486_v46, 1 }
  0x42   : > { %v714_v55 = vsel %vm635_vm3, %v679_v50, 0.0 }
  0x43   : > { %742 = vrot.lane.b32.xlu1 %v11358_v47, %s11126_s22  ;;  %740 = vrot.lane.b32.xlu0 %v11361_v48, %s11126_s22 }
  0x47   : > { %854 = vrot.lane.b32.xlu1 %v706_v51, %s11128_s23  ;;  %852 = vrot.lane.b32.xlu0 %v656_v52, %s11128_s23  ;;  %v678_v51 = vrot.slane %v11489_v49, 1  ;;  %v542_v52 = vrot.slane %v11246_v8, 7  ;;  %v11508_v8 = vld [vmem:[%s11236_s21 + $0xf0] sm:$0xff] }
  0x49   : > { %v680_v56 = vsel %vm635_vm3, %v678_v51, %v679_v50  ;;  %v544_v9 = vsel %vm538_vm0, %v542_v52, %v543_v62 }
  0x4b   : > { %746 = vrot.lane.b32.xlu1 %v11374_v53, %s11126_s22  ;;  %744 = vrot.lane.b32.xlu0 %v11377_v54, %s11126_s22 }
  0x4f   : > { %858 = vrot.lane.b32.xlu1 %v707_v57, %s11128_s23  ;;  %856 = vrot.lane.b32.xlu0 %v659_v58, %s11128_s23 }
  0x53   : > { %750 = vrot.lane.b32.xlu1 %v11390_v59, %s11126_s22  ;;  %748 = vrot.lane.b32.xlu0 %v11393_v60, %s11126_s22 }
  0x57   : > { %862 = vrot.lane.b32.xlu1 %v708_v63, %s11128_s23  ;;  %860 = vrot.lane.b32.xlu0 %v662_v0, %s11128_s23  ;;  %v620_v63 = vsel %vm538_vm0, 0.0, %v542_v52  ;;  %v682_v0 = vrot.slane %v11503_v61, 1 }
  0x59   : > { %v715_v19 = vsel %vm635_vm3, %v682_v0, 0.0 }
  0x5b   : > { %754 = vrot.lane.b32.xlu1 %v11406_v1, %s11126_s22  ;;  %752 = vrot.lane.b32.xlu0 %v11409_v2, %s11126_s22 }
  0x5f   : > { %866 = vrot.lane.b32.xlu1 %v709_v10, %s11128_s23  ;;  %864 = vrot.lane.b32.xlu0 %v665_v11, %s11128_s23  ;;  %v681_v11 = vrot.slane %v11508_v8, 1 }
  0x61   : > { %v683_v25 = vsel %vm635_vm3, %v681_v11, %v682_v0 }
  0x63   : > { %758 = vrot.lane.b32.xlu1 %v11422_v13, %s11126_s22  ;;  %756 = vrot.lane.b32.xlu0 %v11425_v14, %s11126_s22 }
  0x67   : > { %870 = vrot.lane.b32.xlu1 %v710_v20, %s11128_s23  ;;  %868 = vrot.lane.b32.xlu0 %v668_v21, %s11128_s23 }
  0x6b   : > { %762 = vrot.lane.b32.xlu1 %v11438_v22, %s11126_s22  ;;  %760 = vrot.lane.b32.xlu0 %v11441_v23, %s11126_s22 }
  0x6f   : > { %874 = vrot.lane.b32.xlu1 %v711_v28, %s11128_s23  ;;  %872 = vrot.lane.b32.xlu0 %v671_v29, %s11128_s23  ;;  %v545_v28 = vrot.slane %v11243_v7, 7  ;;  %v546_v7 = vrot.slane %v11277_v16, 7 }
  0x71   : > { %v621_v40 = vsel %vm538_vm0, 0.0, %v545_v28  ;;  %v547_v51 = vsel %vm538_vm0, %v545_v28, %v546_v7 }
  0x73   : > { %766 = vrot.lane.b32.xlu1 %v11454_v30, %s11126_s22  ;;  %764 = vrot.lane.b32.xlu0 %v11457_v31, %s11126_s22 }
  0x77   : > { %878 = vrot.lane.b32.xlu1 %v712_v36, %s11128_s23  ;;  %876 = vrot.lane.b32.xlu0 %v674_v37, %s11128_s23  ;;  %v540_v37 = vrot.slane %v11280_v17, 7 }
  0x79   : > { %v541_v3 = vsel %vm538_vm0, %v539_v34, %v540_v37  ;;  %v555_v37 = vrot.slane %v11342_v41, 7 }
  0x7b   : > { %770 = vrot.lane.b32.xlu1 %v11470_v38, %s11126_s22  ;;  %768 = vrot.lane.b32.xlu0 %v11473_v39, %s11126_s22 }
  0x7f   : > { %882 = vrot.lane.b32.xlu1 %v713_v44, %s11128_s23  ;;  %880 = vrot.lane.b32.xlu0 %v677_v45, %s11128_s23 }
  0x83   : > { %774 = vrot.lane.b32.xlu1 %v11486_v46, %s11126_s22  ;;  %772 = vrot.lane.b32.xlu0 %v11489_v49, %s11126_s22 }
  0x85   : > { %v725_v57 = vpop.permute.xlu1 %724  ;;  %v721_v58 = vpop.permute.xlu0 %720 }
  0x86   : > { %v927_v4 = vsel %vm924_vm4, %v620_v63, %v721_v58  ;;  %v929_v43 = vsel %vm924_vm4, %v621_v40, %v725_v57  ;;  %v549_v57 = vrot.slane %v11300_v26, 7  ;;  %v548_v58 = vrot.slane %v11303_v27, 7 }
  0x87   : > { %886 = vrot.lane.b32.xlu1 %v714_v55, %s11128_s23  ;;  %884 = vrot.lane.b32.xlu0 %v680_v56, %s11128_s23  ;;  %v554_v40 = vrot.slane %v11345_v42, 7 }
  0x88   : > { %v550_v26 = vsel %vm538_vm0, %v548_v58, %v549_v57  ;;  %v622_v27 = vsel %vm538_vm0, 0.0, %v548_v58 }
  0x89   : > { %v723_v5 = vpop.permute.xlu0 %722  ;;  %v833_v10 = vpop.permute.xlu1 %832 }
  0x8a   : > { %v11517_v18 = vsel %vm957_vm5, %v927_v4, %v833_v10  ;;  %v928_v20 = vsel %vm924_vm4, %v544_v9, %v723_v5 }
  0x8b   : > { %778 = vrot.lane.b32.xlu1 %v11503_v61, %s11126_s22  ;;  %9325 = vmatprep.mubr.msk.f32.mxu1 %vm994_vm6, %v11517_v18 }
  0x8c   : > { %776 = vrot.lane.b32.xlu0 %v11508_v8, %s11126_s22 }
  0x8d   : > { %v835_v21 = vpop.permute.xlu1 %834  ;;  %v717_v24 = vpop.permute.xlu0 %716 }
  0x8e   : > { %v11530_v29 = vsel %vm957_vm5, %v928_v20, %v835_v21  ;;  %v925_v44 = vsel %vm924_vm4, %v619_v15, %v717_v24  ;;  %v551_v20 = vrot.slane %v11319_v33, 7 }
  0x8f   : > { %890 = vrot.lane.b32.xlu1 %v715_v19, %s11128_s23  ;;  %9326 = vmatmul.mubr.msk.f32.vlgmr.msra.gmra.mrb[0].mxu1 %vm994_vm6, %v11530_v29  ;;  %v552_v19 = vrot.slane %v11316_v32, 7 }
  0x90   : > { %888 = vrot.lane.b32.xlu0 %v683_v25, %s11128_s23  ;;  %10666 = vmatpush3.bf16.msk.msra.mxu1 %vm11218_vm2, %v11240_v6  ;;  %v623_v28 = vsel %vm538_vm0, 0.0, %v551_v20 }
  0x91   : > { %v727_v35 = vpop.permute.xlu1 %726  ;;  %v719_v36 = vpop.permute.xlu0 %718  ;;  %v553_v25 = vsel %vm538_vm0, %v551_v20, %v552_v19 }
  0x92   : > { %v930_v17 = vsel %vm924_vm4, %v547_v51, %v727_v35  ;;  %v926_v52 = vsel %vm924_vm4, %v541_v3, %v719_v36 }
  0x95   : > { %v837_v45 = vpop.permute.xlu1 %836  ;;  %v829_v50 = vpop.permute.xlu0 %828 }
  0x96   : > { %v11549_v6 = vsel %vm957_vm5, %v929_v43, %v837_v45  ;;  %v11552_v16 = vsel %vm957_vm5, %v925_v44, %v829_v50  ;;  %v556_v44 = vsel %vm538_vm0, %v554_v40, %v555_v37  ;;  %v624_v45 = vsel %vm538_vm0, 0.0, %v554_v40 }
  0x97   : > { %9328 = vmatprep.mubr.msk.f32.mxu1 %vm994_vm6, %v11549_v6  ;;  %9380 = vmatprep.mubr.msk.f32.mxu0 %vm994_vm6, %v11552_v16 }
  0x99   : > { %v839_v55 = vpop.permute.xlu1 %838  ;;  %v831_v56 = vpop.permute.xlu0 %830 }
  0x9a   : > { %v11563_v62 = vsel %vm957_vm5, %v930_v17, %v839_v55  ;;  %v11566_v63 = vsel %vm957_vm5, %v926_v52, %v831_v56  ;;  %v558_v52 = vrot.slane %v11358_v47, 7  ;;  %v557_v55 = vrot.slane %v11361_v48, 7 }
  0x9b   : > { %9329 = vmatmul.mubr.msk.f32.gmra.mrb[2].mxu1 %vm994_vm6, %v11563_v62  ;;  %9381 = vmatmul.mubr.msk.f32.gmra.mrb[2].mxu0 %vm994_vm6, %v11566_v63 }
  0x9c   : > { %9383 = vmatprep.mubr.msk.f32.mxu0 %vm994_vm6, %v11517_v18  ;;  %v559_v58 = vsel %vm538_vm0, %v557_v55, %v558_v52 }
  0x9d   : > { %v731_v0 = vpop.permute.xlu1 %730  ;;  %v729_v4 = vpop.permute.xlu0 %728 }
  0x9e   : > { %v932_v5 = vsel %vm924_vm4, %v550_v26, %v731_v0  ;;  %v931_v10 = vsel %vm924_vm4, %v622_v27, %v729_v4  ;;  %v625_v0 = vsel %vm538_vm0, 0.0, %v557_v55 }
  0x9f   : > { %9384 = vmatmul.mubr.msk.f32.gmra.mrb[4].mxu0 %vm994_vm6, %v11530_v29 }
  0xa0   : > { %9386 = vmatprep.mubr.msk.f32.mxu0 %vm994_vm6, %v11549_v6 }
  0xa1   : > { %v843_v11 = vpop.permute.xlu1 %842  ;;  %v841_v9 = vpop.permute.xlu0 %840 }
  0xa2   : > { %v11585_v21 = vsel %vm957_vm5, %v932_v5, %v843_v11  ;;  %v11588_v24 = vsel %vm957_vm5, %v931_v10, %v841_v9  ;;  %v561_v10 = vrot.slane %v11374_v53, 7  ;;  %v560_v11 = vrot.slane %v11377_v54, 7 }
  0xa3   : > { %9331 = vmatprep.mubr.msk.f32.mxu1 %vm994_vm6, %v11588_v24  ;;  %9387 = vmatmul.mubr.msk.f32.gmra.mrb[6].mxu0 %vm994_vm6, %v11563_v62 }
  0xa4   : > { %9332 = vmatmul.mubr.msk.f32.gmra.mrb[4].mxu1 %vm994_vm6, %v11585_v21  ;;  %9389 = vmatprep.mubr.msk.f32.mxu0 %vm994_vm6, %v11588_v24  ;;  %v562_v53 = vsel %vm538_vm0, %v560_v11, %v561_v10  ;;  %v626_v54 = vsel %vm538_vm0, 0.0, %v560_v11 }
  0xa5   : > { %v735_v32 = vpop.permute.xlu1 %734  ;;  %v733_v33 = vpop.permute.xlu0 %732 }
  0xa6   : > { %v934_v34 = vsel %vm924_vm4, %v553_v25, %v735_v32  ;;  %v933_v35 = vsel %vm924_vm4, %v623_v28, %v733_v33 }
  0xa7   : > { %9390 = vmatmul.mubr.msk.f32.gmra.mrb[8].mxu0 %vm994_vm6, %v11585_v21 }
  0xa9   : > { %v847_v36 = vpop.permute.xlu1 %846  ;;  %v845_v7 = vpop.permute.xlu0 %844 }
  0xaa   : > { %v11607_v15 = vsel %vm957_vm5, %v934_v34, %v847_v36  ;;  %v11610_v43 = vsel %vm957_vm5, %v933_v35, %v845_v7  ;;  %v564_v35 = vrot.slane %v11390_v59, 7 }
  0xab   : > { %9334 = vmatprep.mubr.msk.f32.mxu1 %vm994_vm6, %v11610_v43  ;;  %9392 = vmatprep.mubr.msk.f32.mxu0 %vm994_vm6, %v11610_v43 }
  0xac   : > { %9335 = vmatmul.mubr.msk.f32.gmra.mrb[6].mxu1 %vm994_vm6, %v11607_v15  ;;  %9393 = vmatmul.mubr.msk.f32.gmra.mrb[10].mxu0 %vm994_vm6, %v11607_v15 }
  0xad   : > { %v739_v41 = vpop.permute.xlu1 %738  ;;  %v737_v42 = vpop.permute.xlu0 %736 }
  0xae   : > { %v936_v50 = vsel %vm924_vm4, %v556_v44, %v739_v41  ;;  %v935_v51 = vsel %vm924_vm4, %v624_v45, %v737_v42 }
  0xb1   : > { %v851_v3 = vpop.permute.xlu1 %850  ;;  %v849_v17 = vpop.permute.xlu0 %848 }
  0xb2   : > { %v11627_v56 = vsel %vm957_vm5, %v936_v50, %v851_v3  ;;  %v11630_v57 = vsel %vm957_vm5, %v935_v51, %v849_v17 }
  0xb3   : > { %9337 = vmatprep.mubr.msk.f32.mxu1 %vm994_vm6, %v11630_v57  ;;  %9395 = vmatprep.mubr.msk.f32.mxu0 %vm994_vm6, %v11630_v57 }
  0xb4   : > { %9338 = vmatmul.mubr.msk.f32.gmra.mrb[8].mxu1 %vm994_vm6, %v11627_v56  ;;  %9396 = vmatmul.mubr.msk.f32.gmra.mrb[12].mxu0 %vm994_vm6, %v11627_v56 }
  0xb5   : > { %v743_v47 = vpop.permute.xlu1 %742  ;;  %v741_v48 = vpop.permute.xlu0 %740 }
  0xb6   : > { %v938_v4 = vsel %vm924_vm4, %v559_v58, %v743_v47  ;;  %v937_v26 = vsel %vm924_vm4, %v625_v0, %v741_v48 }
  0xb9   : > { %v855_v27 = vpop.permute.xlu1 %854  ;;  %v853_v5 = vpop.permute.xlu0 %852 }
  0xba   : > { %v11647_v9 = vsel %vm957_vm5, %v938_v4, %v855_v27  ;;  %v970_v19 = vsel %vm957_vm5, %v937_v26, %v853_v5  ;;  %v572_v4 = vrot.slane %v11441_v23, 7 }
  0xbb   : > { %9340 = vmatprep.mubr.msk.f32.mxu1 %vm994_vm6, %v970_v19  ;;  %9398 = vmatprep.mubr.msk.f32.mxu0 %vm994_vm6, %v970_v19 }
  0xbc   : > { %9341 = vmatmul.mubr.msk.f32.gmra.mrb[10].mxu1 %vm994_vm6, %v11647_v9  ;;  %9399 = vmatmul.mubr.msk.f32.gmra.mrb[14].mxu0 %vm994_vm6, %v11647_v9  ;;  %v630_v23 = vsel %vm538_vm0, 0.0, %v572_v4 }
  0xbd   : > { %v747_v20 = vpop.permute.xlu1 %746  ;;  %v745_v32 = vpop.permute.xlu0 %744  ;;  %9429 = vmatprep.mubr.msk.f32.mxu0 %vm994_vm6, %v11552_v16  ;;  %v563_v16 = vrot.slane %v11393_v60, 7 }
  0xbe   : > { %v940_v33 = vsel %vm924_vm4, %v562_v53, %v747_v20  ;;  %v939_v25 = vsel %vm924_vm4, %v626_v54, %v745_v32  ;;  %v576_v32 = vrot.slane %v11454_v30, 7  ;;  %v575_v53 = vrot.slane %v11457_v31, 7 }
  0xbf   : > { %v565_v59 = vsel %vm538_vm0, %v563_v16, %v564_v35  ;;  %v627_v60 = vsel %vm538_vm0, 0.0, %v563_v16 }
  0xc0   : > { %9430 = vmatmul.mubr.msk.f32.vlgmr.msra.gmra.mrb[0].mxu0 %vm994_vm6, %v11566_v63  ;;  %v577_v30 = vsel %vm538_vm0, %v575_v53, %v576_v32  ;;  %v631_v31 = vsel %vm538_vm0, 0.0, %v575_v53  ;;  %v2510_v53 = vld [vmem:[%s16003_s4 + $0x80] sm:$0xff] }
  0xc1   : > { %v859_v28 = vpop.permute.xlu1 %858  ;;  %v857_v34 = vpop.permute.xlu0 %856  ;;  %9432 = vmatprep.mubr.msk.f32.mxu0 %vm994_vm6, %v11517_v18 }
  0xc2   : > { %v11669_v36 = vsel %vm957_vm5, %v940_v33, %v859_v28  ;;  %v11672_v7 = vsel %vm957_vm5, %v939_v25, %v857_v34 }
  0xc3   : > { %9343 = vmatprep.mubr.msk.f32.mxu1 %vm994_vm6, %v11672_v7 }
  0xc4   : > { %9344 = vmatmul.mubr.msk.f32.gmra.mrb[12].mxu1 %vm994_vm6, %v11669_v36  ;;  %9433 = vmatmul.mubr.msk.f32.gmra.mrb[2].mxu0 %vm994_vm6, %v11530_v29  ;;  %v567_v29 = vrot.slane %v11406_v1, 7 }
  0xc5   : > { %v751_v18 = vpop.permute.xlu1 %750  ;;  %v749_v63 = vpop.permute.xlu0 %748  ;;  %9435 = vmatprep.mubr.msk.f32.mxu0 %vm994_vm6, %v11549_v6  ;;  %v566_v6 = vrot.slane %v11409_v2, 7 }
  0xc6   : > { %v942_v37 = vsel %vm924_vm4, %v565_v59, %v751_v18  ;;  %v941_v40 = vsel %vm924_vm4, %v627_v60, %v749_v63  ;;  %v579_v63 = vrot.slane %v11470_v38, 7  ;;  %v578_v59 = vrot.slane %v11473_v39, 7 }
  0xc7   : > { %v568_v1 = vsel %vm538_vm0, %v566_v6, %v567_v29  ;;  %v628_v2 = vsel %vm538_vm0, 0.0, %v566_v6 }
  0xc8   : > { %9436 = vmatmul.mubr.msk.f32.gmra.mrb[4].mxu0 %vm994_vm6, %v11563_v62  ;;  %v580_v38 = vsel %vm538_vm0, %v578_v59, %v579_v63  ;;  %v632_v39 = vsel %vm538_vm0, 0.0, %v578_v59 }
  0xc9   : > { %v863_v41 = vpop.permute.xlu1 %862  ;;  %v861_v42 = vpop.permute.xlu0 %860  ;;  %9438 = vmatprep.mubr.msk.f32.mxu0 %vm994_vm6, %v11588_v24 }
  0xca   : > { %v11693_v44 = vsel %vm957_vm5, %v942_v37, %v863_v41  ;;  %v11696_v45 = vsel %vm957_vm5, %v941_v40, %v861_v42 }
  0xcb   : > { %9346 = vmatprep.mubr.msk.f32.mxu1 %vm994_vm6, %v11696_v45 }
  0xcc   : > { %9347 = vmatmul.mubr.msk.f32.gmra.mrb[14].mxu1 %vm994_vm6, %v11693_v44  ;;  %9439 = vmatmul.mubr.msk.f32.gmra.mrb[6].mxu0 %vm994_vm6, %v11585_v21  ;;  %v570_v21 = vrot.slane %v11422_v13, 7 }
  0xcd   : > { %v755_v62 = vpop.permute.xlu1 %754  ;;  %v753_v24 = vpop.permute.xlu0 %752  ;;  %9441 = vmatprep.mubr.msk.f32.mxu0 %vm994_vm6, %v11610_v43  ;;  %v569_v43 = vrot.slane %v11425_v14, 7 }
  0xce   : > { %v944_v50 = vsel %vm924_vm4, %v568_v1, %v755_v62  ;;  %v943_v51 = vsel %vm924_vm4, %v628_v2, %v753_v24  ;;  %v582_v24 = vrot.slane %v11486_v46, 7  ;;  %v581_v1 = vrot.slane %v11489_v49, 7 }
  0xcf   : > { %v571_v13 = vsel %vm538_vm0, %v569_v43, %v570_v21  ;;  %v629_v14 = vsel %vm538_vm0, 0.0, %v569_v43 }
  0xd0   : > { %9442 = vmatmul.mubr.msk.f32.gmra.mrb[8].mxu0 %vm994_vm6, %v11607_v15  ;;  %v633_v46 = vsel %vm538_vm0, 0.0, %v581_v1 }
  0xd1   : > { %v867_v3 = vpop.permute.xlu1 %866  ;;  %v865_v17 = vpop.permute.xlu0 %864  ;;  %9444 = vmatprep.mubr.msk.f32.mxu0 %vm994_vm6, %v11630_v57 }
  0xd2   : > { %v11717_v52 = vsel %vm957_vm5, %v944_v50, %v867_v3  ;;  %v11720_v55 = vsel %vm957_vm5, %v943_v51, %v865_v17  ;;  %v583_v17 = vsel %vm538_vm0, %v581_v1, %v582_v24 }
  0xd3   : > { %9349 = vmatprep.mubr.msk.f32.mxu1 %vm994_vm6, %v11720_v55 }
  0xd4   : > { %9350 = vmatmul.mubr.msk.f32.gmra.mrb[16].mxu1 %vm994_vm6, %v11717_v52  ;;  %9445 = vmatmul.mubr.msk.f32.gmra.mrb[10].mxu0 %vm994_vm6, %v11627_v56  ;;  %v573_v56 = vrot.slane %v11438_v22, 7 }
  0xd5   : > { %v759_v15 = vpop.permute.xlu1 %758  ;;  %v757_v57 = vpop.permute.xlu0 %756  ;;  %9447 = vmatprep.mubr.msk.f32.mxu0 %vm994_vm6, %v970_v19 }
  0xd6   : > { %v946_v47 = vsel %vm924_vm4, %v571_v13, %v759_v15  ;;  %v945_v48 = vsel %vm924_vm4, %v629_v14, %v757_v57  ;;  %v574_v22 = vsel %vm538_vm0, %v572_v4, %v573_v56  ;;  %v585_v57 = vrot.slane %v11503_v61, 7 }
  0xd7   : > { %v584_v13 = vrot.slane %v11508_v8, 7 }
  0xd8   : > { %9448 = vmatmul.mubr.msk.f32.gmra.mrb[12].mxu0 %vm994_vm6, %v11647_v9 }
  0xd9   : > { %v871_v58 = vpop.permute.xlu1 %870  ;;  %v869_v0 = vpop.permute.xlu0 %868  ;;  %9450 = vmatprep.mubr.msk.f32.mxu0 %vm994_vm6, %v11672_v7  ;;  %v634_v61 = vsel %vm538_vm0, 0.0, %v584_v13 }
  0xda   : > { %v11740_v26 = vsel %vm957_vm5, %v946_v47, %v871_v58  ;;  %v11743_v27 = vsel %vm957_vm5, %v945_v48, %v869_v0  ;;  %v586_v58 = vsel %vm538_vm0, %v584_v13, %v585_v57 }
  0xdb   : > { %9352 = vmatprep.mubr.msk.f32.mxu1 %vm994_vm6, %v11743_v27 }
  0xdc   : > { %9353 = vmatmul.mubr.msk.f32.gmra.mrb[18].mxu1 %vm994_vm6, %v11740_v26  ;;  %9451 = vmatmul.mubr.msk.f32.gmra.mrb[14].mxu0 %vm994_vm6, %v11669_v36 }
  0xdd   : > { %v763_v5 = vpop.permute.xlu1 %762  ;;  %v761_v10 = vpop.permute.xlu0 %760  ;;  %9453 = vmatprep.mubr.msk.f32.mxu0 %vm994_vm6, %v11696_v45 }
  0xde   : > { %v948_v11 = vsel %vm924_vm4, %v574_v22, %v763_v5  ;;  %v947_v9 = vsel %vm924_vm4, %v630_v23, %v761_v10 }
  0xe0   : > { %9454 = vmatmul.mubr.msk.f32.gmra.mrb[16].mxu0 %vm994_vm6, %v11693_v44 }
  0xe1   : > { %v875_v19 = vpop.permute.xlu1 %874  ;;  %v873_v20 = vpop.permute.xlu0 %872  ;;  %9456 = vmatprep.mubr.msk.f32.mxu0 %vm994_vm6, %v11720_v55 }
  0xe2   : > { %v11764_v54 = vsel %vm957_vm5, %v948_v11, %v875_v19  ;;  %v11767_v33 = vsel %vm957_vm5, %v947_v9, %v873_v20  ;;  %v2508_v19 = vld [vmem:[%s16003_s4 + $0x70] sm:$0xff]  ;;  %v2509_v20 = vld [vmem:[%s16003_s4 + $0x78] sm:$0xff] }
  0xe3   : > { %9355 = vmatprep.mubr.msk.f32.mxu1 %vm994_vm6, %v11767_v33  ;;  %v10373_v32 = vpack.c.bf16 %v2509_v20, %v2508_v19 }
  0xe4   : > { %9356 = vmatmul.mubr.msk.f32.gmra.mrb[20].mxu1 %vm994_vm6, %v11764_v54  ;;  %9457 = vmatmul.mubr.msk.f32.gmra.mrb[18].mxu0 %vm994_vm6, %v11717_v52 }
  0xe5   : > { %v767_v25 = vpop.permute.xlu1 %766  ;;  %v765_v28 = vpop.permute.xlu0 %764  ;;  %9459 = vmatprep.mubr.msk.f32.mxu0 %vm994_vm6, %v11743_v27 }
  0xe6   : > { %v950_v34 = vsel %vm924_vm4, %v577_v30, %v767_v25  ;;  %v949_v35 = vsel %vm924_vm4, %v631_v31, %v765_v28  ;;  %v2512_v30 = vld [vmem:[%s16003_s4 + $0x90] sm:$0xff]  ;;  %v2513_v31 = vld [vmem:[%s16003_s4 + $0x98] sm:$0xff] }
  0xe8   : > { %9460 = vmatmul.mubr.msk.f32.gmra.mrb[20].mxu0 %vm994_vm6, %v11740_v26 }
  0xe9   : > { %v879_v16 = vpop.permute.xlu1 %878  ;;  %v877_v18 = vpop.permute.xlu0 %876  ;;  %9462 = vmatprep.mubr.msk.f32.mxu0 %vm994_vm6, %v11767_v33 }
  0xea   : > { %v11788_v60 = vsel %vm957_vm5, %v950_v34, %v879_v16  ;;  %v11791_v37 = vsel %vm957_vm5, %v949_v35, %v877_v18  ;;  %v10381_v34 = vpack.c.bf16 %v2513_v31, %v2512_v30  ;;  %v2514_v35 = vld [vmem:[%s16003_s4 + $0xa0] sm:$0xff]  ;;  %v2515_v16 = vld [vmem:[%s16003_s4 + $0xa8] sm:$0xff] }
  0xeb   : > { %9358 = vmatprep.mubr.msk.f32.mxu1 %vm994_vm6, %v11791_v37  ;;  %v10385_v63 = vpack.c.bf16 %v2515_v16, %v2514_v35 }
  0xec   : > { %9359 = vmatmul.mubr.msk.f32.gmra.mrb[22].mxu1 %vm994_vm6, %v11788_v60  ;;  %9463 = vmatmul.mubr.msk.f32.gmra.mrb[22].mxu0 %vm994_vm6, %v11764_v54 }
  0xed   : > { %v771_v40 = vpop.permute.xlu1 %770  ;;  %v769_v41 = vpop.permute.xlu0 %768  ;;  %9465 = vmatprep.mubr.msk.f32.mxu0 %vm994_vm6, %v11791_v37 }
  0xee   : > { %v952_v42 = vsel %vm924_vm4, %v580_v38, %v771_v40  ;;  %v951_v29 = vsel %vm924_vm4, %v632_v39, %v769_v41 }
  0xf0   : > { %9466 = vmatmul.mubr.msk.f32.gmra.mrb[24].mxu0 %vm994_vm6, %v11788_v60 }
  0xf1   : > { %v883_v6 = vpop.permute.xlu1 %882  ;;  %v881_v62 = vpop.permute.xlu0 %880 }
  0xf2   : > { %v985_v2 = vsel %vm957_vm5, %v952_v42, %v883_v6  ;;  %v984_v50 = vsel %vm957_vm5, %v951_v29, %v881_v62 }
  0xf3   : > { %9361 = vmatprep.mubr.msk.f32.mxu1 %vm994_vm6, %v984_v50  ;;  %9468 = vmatprep.mubr.msk.f32.mxu0 %vm994_vm6, %v984_v50 }
  0xf4   : > { %9362 = vmatmul.mubr.msk.f32.gmra.mrb[24].mxu1 %vm994_vm6, %v985_v2  ;;  %9469 = vmatmul.mubr.msk.f32.gmra.mrb[26].mxu0 %vm994_vm6, %v985_v2 }
  0xf5   : > { %v775_v51 = vpop.permute.xlu1 %774  ;;  %v773_v3 = vpop.permute.xlu0 %772 }
  0xf6   : > { %v954_v49 = vsel %vm924_vm4, %v583_v17, %v775_v51  ;;  %v953_v21 = vsel %vm924_vm4, %v633_v46, %v773_v3 }
  0xf9   : > { %v887_v43 = vpop.permute.xlu1 %886  ;;  %v885_v15 = vpop.permute.xlu0 %884 }
  0xfa   : > { %v987_v14 = vsel %vm957_vm5, %v954_v49, %v887_v43  ;;  %v986_v47 = vsel %vm957_vm5, %v953_v21, %v885_v15 }
  0xfb   : > { %9364 = vmatprep.mubr.msk.f32.mxu1 %vm994_vm6, %v986_v47  ;;  %9471 = vmatprep.mubr.msk.f32.mxu0 %vm994_vm6, %v986_v47 }
  0xfc   : > { %9365 = vmatmul.mubr.msk.f32.gmra.mrb[26].mxu1 %vm994_vm6, %v987_v14  ;;  %9472 = vmatmul.mubr.msk.f32.gmra.mrb[28].mxu0 %vm994_vm6, %v987_v14 }
  0xfd   : > { %v779_v48 = vpop.permute.xlu1 %778 }
  0xfe   : > { %v777_v0 = vpop.permute.xlu0 %776  ;;  %v956_v8 = vsel %vm924_vm4, %v586_v58, %v779_v48 }
  0xff   : > { %v955_v4 = vsel %vm924_vm4, %v634_v61, %v777_v0 }
 0x101   : > { %v891_v56 = vpop.permute.xlu1 %890 }
 0x102   : > { %v989_v5 = vsel %vm957_vm5, %v956_v8, %v891_v56  ;;  %v889_v10 = vpop.permute.xlu0 %888 }
 0x103   : > { %v988_v22 = vsel %vm957_vm5, %v955_v4, %v889_v10 }
 0x104   : > { %9367 = vmatprep.mubr.msk.f32.mxu1 %vm994_vm6, %v988_v22  ;;  %9474 = vmatprep.mubr.msk.f32.mxu0 %vm994_vm6, %v988_v22 }
 0x105   : > { %9368 = vmatmul.mubr.msk.f32.gmra.mrb[28].mxu1 %vm994_vm6, %v989_v5  ;;  %9475 = vmatmul.mubr.msk.f32.gmra.mrb[30].mxu0 %vm994_vm6, %v989_v5 }
 0x106   : > { %9370 = vmatprep.mubr.f32.mxu1 %v16013_v12 }
 0x109   : > { %9371 = vmatmul.mubr.f32.gmra.mrb[30].mxu1 %v16013_v12 }
 0x10a   : > { %9401 = vmatprep.mubr.msk.f32.mxu1 %vm994_vm6, %v11672_v7 }
 0x10d   : > { %9402 = vmatmul.mubr.msk.f32.vlgmr.msra.gmra.mrb[16].mxu1 %vm994_vm6, %v11669_v36 }
 0x10e   : > { %9404 = vmatprep.mubr.msk.f32.mxu1 %vm994_vm6, %v11696_v45 }
 0x111   : > { %9405 = vmatmul.mubr.msk.f32.gmra.mrb[18].mxu1 %vm994_vm6, %v11693_v44 }
 0x112   : > { %9407 = vmatprep.mubr.msk.f32.mxu1 %vm994_vm6, %v11720_v55 }
 0x115   : > { %9408 = vmatmul.mubr.msk.f32.gmra.mrb[20].mxu1 %vm994_vm6, %v11717_v52 }
 0x116   : > { %9410 = vmatprep.mubr.msk.f32.mxu1 %vm994_vm6, %v11743_v27  ;;  %v2507_v27 = vld [vmem:[%s16003_s4 + $0x68] sm:$0xff] }
 0x119   : > { %9411 = vmatmul.mubr.msk.f32.gmra.mrb[22].mxu1 %vm994_vm6, %v11740_v26  ;;  %v2506_v26 = vld [vmem:[%s16003_s4 + $0x60] sm:$0xff] }
 0x11a   : > { %9413 = vmatprep.mubr.msk.f32.mxu1 %vm994_vm6, %v11767_v33  ;;  %v10369_v11 = vpack.c.bf16 %v2507_v27, %v2506_v26 }
 0x11c   : > { %10370 = vmatprep.subr.bf16.mxu1 %v10369_v11 }
 0x11d   : > { %9414 = vmatmul.mubr.msk.f32.gmra.mrb[24].mxu1 %vm994_vm6, %v11764_v54  ;;  %v2511_v54 = vld [vmem:[%s16003_s4 + $0x88] sm:$0xff] }
 0x11e   : > { %9416 = vmatprep.mubr.msk.f32.mxu1 %vm994_vm6, %v11791_v37  ;;  %10372 = vmatpush3.bf16.msra.mxu1 %v10369_v11  ;;  %v10377_v25 = vpack.c.bf16 %v2511_v54, %v2510_v53  ;;  %v2517_v37 = vld [vmem:[%s16003_s4 + $0xb8] sm:$0xff] }
 0x11f   : > { %10374 = vmatprep.subr.bf16.mxu1 %v10373_v32 }
 0x121   : > { %9417 = vmatmul.mubr.msk.f32.gmra.mrb[26].mxu1 %vm994_vm6, %v11788_v60  ;;  %v2516_v60 = vld [vmem:[%s16003_s4 + $0xb0] sm:$0xff] }
 0x122   : > { %9419 = vmatprep.mubr.msk.f32.mxu1 %vm994_vm6, %v984_v50  ;;  %10376 = vmatpush3.bf16.msra.mxu1 %v10373_v32  ;;  %v10389_v41 = vpack.c.bf16 %v2517_v37, %v2516_v60 }
 0x123   : > { %10378 = vmatprep.subr.bf16.mxu1 %v10377_v25 }
 0x125   : > { %9420 = vmatmul.mubr.msk.f32.gmra.mrb[28].mxu1 %vm994_vm6, %v985_v2  ;;  %v11926_v2 = vld [vmem:[%s16002_s3] ss:$0 sm:$0xff] }
 0x126   : > { %9422 = vmatprep.mubr.msk.f32.mxu1 %vm994_vm6, %v986_v47  ;;  %10380 = vmatpush3.bf16.msra.mxu1 %v10377_v25 }
 0x127   : > { %10382 = vmatprep.subr.bf16.mxu1 %v10381_v34 }
 0x129   : > { %9423 = vmatmul.mubr.msk.f32.gmra.mrb[30].mxu1 %vm994_vm6, %v987_v14 }
 0x12a   : > { %10384 = vmatpush3.bf16.msra.mxu1 %v10381_v34 }
 0x12b   : > { %10386 = vmatprep.subr.bf16.mxu1 %v10385_v63 }
 0x12e   : > { %10388 = vmatpush3.bf16.msra.mxu1 %v10385_v63 }
 0x12f   : > { %10390 = vmatprep.subr.bf16.mxu1 %v10389_v41 }
 0x132   : > { %10392 = vmatpush3.bf16.msra.mxu1 %v10389_v41 }
 0x162   : > { %v9327_v36 = vpop.f32.mrb[0].mxu1 }
 0x163   : > { %v1157_v7 = vpop.f32.mrb[1].mxu1 }
 0x16e   : > { %v9330_v44 = vpop.f32.mrb[2].mxu1 }
 0x16f   : > { %v1167_v45 = vpop.f32.mrb[3].mxu1 }
 0x177   : > { %v9333_v52 = vpop.f32.mrb[4].mxu1 }
 0x178   : > { %v1177_v55 = vpop.f32.mrb[5].mxu1 }
 0x17f   : > { %v11873_v23 = vpop.f32.mrb[6].mxu1 }
 0x180   : > { %v11875_v9 = vpop.f32.mrb[7].mxu1 }
 0x187   : > { %v11889_v33 = vpop.f32.mrb[8].mxu1 }
 0x188   : > { %v11891_v28 = vpop.f32.mrb[9].mxu1 }
 0x18f   : > { %v11905_v18 = vpop.f32.mrb[10].mxu1 }
 0x190   : > { %v11907_v59 = vpop.f32.mrb[11].mxu1 }
 0x193   : > { %v9431_v40 = vpop.f32.mrb[0].mxu0 }
 0x194   : > { %v11915_v38 = vadd.f32 %v9431_v40, %v9327_v36  ;;  %v1621_v39 = vpop.f32.mrb[1].mxu0 }
 0x195   : > { %v11917_v42 = vadd.f32 %v1621_v39, %v1157_v7 }
 0x197   : > { %v11919_v29 = vpop.f32.mrb[12].mxu1  ;;  %v9434_v6 = vpop.f32.mrb[2].mxu0 }
 0x198   : > { %v10669_v62 = vadd.f32 %v9434_v6, %v9330_v44  ;;  %v11921_v24 = vpop.f32.mrb[13].mxu1  ;;  %v1631_v1 = vpop.f32.mrb[3].mxu0 }
 0x199   : > { %v10670_v50 = vadd.f32 %v1631_v1, %v1167_v45 }
 0x19a   : > { %v1822_v51 = vadd.f32 %v10669_v62, %v11926_v2 }
 0x19b   : > { %v1821_v3 = vadd.f32 %v10670_v50, %v11926_v2  ;;  %v9437_v17 = vpop.f32.mrb[4].mxu0 }
 0x19c   : > { %v1854_v46 = vmax.f32 %v1822_v51, 0.0  ;;  %v10671_v49 = vadd.f32 %v9437_v17, %v9333_v52  ;;  %v1641_v21 = vpop.f32.mrb[5].mxu0 }
 0x19d   : > { %v11930_v43 = vmax.f32 %v1821_v3, 0.0  ;;  %v10672_v15 = vadd.f32 %v1641_v21, %v1177_v55 }
 0x19e   : > { %v1919_v57 = vrot.slane %v1854_v46, 7  ;;  %v1824_v13 = vadd.f32 %v10671_v49, %v11926_v2  ;;  %2097 = vrot.lane.b32.xlu1 %v1854_v46, %s11129_s27  ;;  %v2015_v14 = vrot.slane %v1854_v46, 1 }
 0x19f   : > { %v1918_v47 = vrot.slane %v11930_v43, 7  ;;  %v1823_v48 = vadd.f32 %v10672_v15, %v11926_v2  ;;  %v11936_v58 = vpop.f32.mrb[14].mxu1  ;;  %2095 = vrot.lane.b32.xlu0 %v11930_v43, %s11129_s27  ;;  %v9440_v0 = vpop.f32.mrb[6].mxu0  ;;  %v2014_v61 = vrot.slane %v11930_v43, 1  ;;  %v2498_v43 = vld [vmem:[%s16003_s4 + $0x20] sm:$0xff] }
 0x1a0   : > { %v1856_v8 = vmax.f32 %v1824_v13, 0.0  ;;  %v10673_v56 = vadd.f32 %v9440_v0, %v11873_v23  ;;  %v11942_v4 = vpop.f32.mrb[15].mxu1  ;;  %v1651_v5 = vpop.f32.mrb[7].mxu0  ;;  %v2076_v10 = vsel %vm635_vm3, %v2015_v14, 0.0 }
 0x1a1   : > { %v11945_v22 = vmax.f32 %v1823_v48, 0.0  ;;  %v10674_v36 = vadd.f32 %v1651_v5, %v11875_v9  ;;  %v2016_v7 = vsel %vm635_vm3, %v2014_v61, %v2015_v14  ;;  %v11952_v44 = vsel %vm538_vm0, %v1918_v47, %v1919_v57 }
 0x1a2   : > { %v1922_v45 = vrot.slane %v1856_v8, 7  ;;  %v1826_v52 = vadd.f32 %v10673_v56, %v11926_v2  ;;  %2209 = vrot.lane.b32.xlu1 %v2076_v10, %s11130_s28  ;;  %v2018_v55 = vrot.slane %v1856_v8, 1 }
 0x1a3   : > { %v1921_v26 = vrot.slane %v11945_v22, 7  ;;  %v1825_v27 = vadd.f32 %v10674_v36, %v11926_v2  ;;  %2207 = vrot.lane.b32.xlu0 %v2016_v7, %s11130_s28  ;;  %v9443_v23 = vpop.f32.mrb[8].mxu0  ;;  %v2017_v11 = vrot.slane %v11945_v22, 1 }
 0x1a4   : > { %v1858_v9 = vmax.f32 %v1826_v52, 0.0  ;;  %v10675_v19 = vadd.f32 %v9443_v23, %v11889_v33  ;;  %v1661_v20 = vpop.f32.mrb[9].mxu0  ;;  %v2077_v40 = vsel %vm635_vm3, %v2018_v55, 0.0 }
 0x1a5   : > { %v11961_v32 = vmax.f32 %v1825_v27, 0.0  ;;  %v10676_v53 = vadd.f32 %v1661_v20, %v11891_v28  ;;  %v2019_v54 = vsel %vm635_vm3, %v2017_v11, %v2018_v55  ;;  %v11968_v25 = vsel %vm538_vm0, %v1921_v26, %v1922_v45 }
 0x1a6   : > { %v1925_v30 = vrot.slane %v1858_v9, 7  ;;  %v1828_v31 = vadd.f32 %v10675_v19, %v11926_v2  ;;  %2101 = vrot.lane.b32.xlu1 %v1856_v8, %s11129_s27  ;;  %v2021_v34 = vrot.slane %v1858_v9, 1 }
 0x1a7   : > { %v1924_v33 = vrot.slane %v11961_v32, 7  ;;  %v1827_v35 = vadd.f32 %v10676_v53, %v11926_v2  ;;  %2099 = vrot.lane.b32.xlu0 %v11945_v22, %s11129_s27  ;;  %v9446_v28 = vpop.f32.mrb[10].mxu0  ;;  %v2020_v16 = vrot.slane %v11961_v32, 1 }
 0x1a8   : > { %v11977_v63 = vmax.f32 %v1828_v31, 0.0  ;;  %v10677_v60 = vadd.f32 %v9446_v28, %v11905_v18  ;;  %v1671_v37 = vpop.f32.mrb[11].mxu0  ;;  %v2078_v7 = vsel %vm635_vm3, %v2021_v34, 0.0 }
 0x1a9   : > { %v11981_v41 = vmax.f32 %v1827_v35, 0.0  ;;  %v10678_v39 = vadd.f32 %v1671_v37, %v11907_v59  ;;  %v2022_v6 = vsel %vm635_vm3, %v2020_v16, %v2021_v34  ;;  %v11988_v62 = vsel %vm538_vm0, %v1924_v33, %v1925_v30 }
 0x1aa   : > { %v1928_v1 = vrot.slane %v11977_v63, 7  ;;  %v1830_v50 = vadd.f32 %v10677_v60, %v11926_v2  ;;  %2213 = vrot.lane.b32.xlu1 %v2077_v40, %s11130_s28  ;;  %v2024_v18 = vrot.slane %v11977_v63, 1 }
 0x1ab   : > { %v1927_v51 = vrot.slane %v11981_v41, 7  ;;  %v1829_v3 = vadd.f32 %v10678_v39, %v11926_v2  ;;  %2211 = vrot.lane.b32.xlu0 %v2019_v54, %s11130_s28  ;;  %v9449_v59 = vpop.f32.mrb[12].mxu0  ;;  %v2023_v17 = vrot.slane %v11981_v41, 1 }
 0x1ac   : > { %v1862_v46 = vmax.f32 %v1830_v50, 0.0  ;;  %v10679_v49 = vadd.f32 %v9449_v59, %v11919_v29  ;;  %v1681_v21 = vpop.f32.mrb[13].mxu0  ;;  %v2079_v39 = vsel %vm635_vm3, %v2024_v18, 0.0 }
 0x1ad   : > { %v11999_v15 = vmax.f32 %v1829_v3, 0.0  ;;  %v10680_v57 = vadd.f32 %v1681_v21, %v11921_v24  ;;  %v2025_v13 = vsel %vm635_vm3, %v2023_v17, %v2024_v18  ;;  %v12006_v14 = vsel %vm538_vm0, %v1927_v51, %v1928_v1 }
 0x1ae   : > { %v1931_v48 = vrot.slane %v1862_v46, 7  ;;  %v1832_v0 = vadd.f32 %v10679_v49, %v11926_v2  ;;  %2105 = vrot.lane.b32.xlu1 %v1858_v9, %s11129_s27  ;;  %v2027_v61 = vrot.slane %v1862_v46, 1 }
 0x1af   : > { %v1930_v29 = vrot.slane %v11999_v15, 7  ;;  %v1831_v8 = vadd.f32 %v10680_v57, %v11926_v2  ;;  %2103 = vrot.lane.b32.xlu0 %v11961_v32, %s11129_s27  ;;  %v9452_v24 = vpop.f32.mrb[14].mxu0  ;;  %v2026_v56 = vrot.slane %v11999_v15, 1 }
 0x1b0   : > { %v1864_v5 = vmax.f32 %v1832_v0, 0.0  ;;  %v10681_v10 = vadd.f32 %v9452_v24, %v11936_v58  ;;  %v1691_v36 = vpop.f32.mrb[15].mxu0  ;;  %v2080_v59 = vsel %vm635_vm3, %v2027_v61, 0.0 }
 0x1b1   : > { %v12017_v45 = vmax.f32 %v1831_v8, 0.0  ;;  %v10682_v52 = vadd.f32 %v1691_v36, %v11942_v4  ;;  %v2028_v55 = vsel %vm635_vm3, %v2026_v56, %v2027_v61  ;;  %v12024_v27 = vsel %vm538_vm0, %v1930_v29, %v1931_v48  ;;  %v2494_v56 = vld [vmem:[%s16003_s4] sm:$0xff] }
 0x1b2   : > { %v1934_v23 = vrot.slane %v1864_v5, 7  ;;  %v1834_v11 = vadd.f32 %v10681_v10, %v11926_v2  ;;  %2217 = vrot.lane.b32.xlu1 %v2078_v7, %s11130_s28  ;;  %v2030_v58 = vrot.slane %v1864_v5, 1 }
 0x1b3   : > { %v1933_v9 = vrot.slane %v12017_v45, 7  ;;  %v1833_v19 = vadd.f32 %v10682_v52, %v11926_v2  ;;  %2215 = vrot.lane.b32.xlu0 %v2022_v6, %s11130_s28  ;;  %v9455_v4 = vpop.f32.mrb[16].mxu0  ;;  %v2029_v20 = vrot.slane %v12017_v45, 1 }
 0x1b4   : > { %v1866_v53 = vmax.f32 %v1834_v11, 0.0  ;;  %v1701_v54 = vpop.f32.mrb[17].mxu0  ;;  %v2081_v57 = vsel %vm635_vm3, %v2030_v58, 0.0 }
 0x1b5   : > { %v12032_v30 = vmax.f32 %v1833_v19, 0.0  ;;  %v2031_v31 = vsel %vm635_vm3, %v2029_v20, %v2030_v58  ;;  %v12038_v34 = vsel %vm538_vm0, %v1933_v9, %v1934_v23 }
 0x1b6   : > { %v1937_v35 = vrot.slane %v1866_v53, 7  ;;  %2109 = vrot.lane.b32.xlu1 %v11977_v63, %s11129_s27  ;;  %v2033_v28 = vrot.slane %v1866_v53, 1 }
 0x1b7   : > { %v1936_v16 = vrot.slane %v12032_v30, 7  ;;  %2107 = vrot.lane.b32.xlu0 %v11981_v41, %s11129_s27  ;;  %v9458_v60 = vpop.f32.mrb[18].mxu0  ;;  %v2032_v37 = vrot.slane %v12032_v30, 1 }
 0x1b8   : > { %v1711_v40 = vpop.f32.mrb[19].mxu0  ;;  %v2082_v0 = vsel %vm635_vm3, %v2033_v28, 0.0 }
 0x1b9   : > { %v2034_v6 = vsel %vm635_vm3, %v2032_v37, %v2033_v28  ;;  %v12051_v1 = vsel %vm538_vm0, %v1936_v16, %v1937_v35 }
 0x1ba   : > { %2221 = vrot.lane.b32.xlu1 %v2079_v39, %s11130_s28 }
 0x1bb   : > { %2219 = vrot.lane.b32.xlu0 %v2025_v13, %s11130_s28  ;;  %v9461_v63 = vpop.f32.mrb[20].mxu0 }
 0x1bc   : > { %v1721_v50 = vpop.f32.mrb[21].mxu0 }
 0x1be   : > { %2113 = vrot.lane.b32.xlu1 %v1862_v46, %s11129_s27 }
 0x1bf   : > { %2111 = vrot.lane.b32.xlu0 %v11999_v15, %s11129_s27  ;;  %v12058_v3 = vpop.f32.mrb[22].mxu0  ;;  %v11089_v15 = vld [vmem:[%s11236_s21 + $0x28] sm:$0xff] }
 0x1c0   : > { %v12060_v18 = vpop.f32.mrb[23].mxu0 }
 0x1c2   : > { %2225 = vrot.lane.b32.xlu1 %v2080_v59, %s11130_s28 }
 0x1c3   : > { %2223 = vrot.lane.b32.xlu0 %v2028_v55, %s11130_s28  ;;  %v12065_v17 = vpop.f32.mrb[24].mxu0 }
 0x1c4   : > { %v12067_v49 = vpop.f32.mrb[25].mxu0 }
 0x1c6   : > { %2117 = vrot.lane.b32.xlu1 %v1864_v5, %s11129_s27  ;;  %v2495_v5 = vld [vmem:[%s16003_s4 + $0x8] sm:$0xff] }
 0x1c7   : > { %2115 = vrot.lane.b32.xlu0 %v12017_v45, %s11129_s27  ;;  %v12072_v46 = vpop.f32.mrb[26].mxu0  ;;  %v12099_v7 = vpack.c.bf16 %v2495_v5, %v2494_v56  ;;  %v11093_v45 = vld [vmem:[%s11236_s21 + $0x48] sm:$0xff] }
 0x1c8   : > { %v12074_v21 = vpop.f32.mrb[27].mxu0 }
 0x1c9   : > { %10394 = vmatprep.subr.bf16.mxu1 %v12099_v7 }
 0x1ca   : > { %2229 = vrot.lane.b32.xlu1 %v2081_v57, %s11130_s28 }
 0x1cb   : > { %2227 = vrot.lane.b32.xlu0 %v2031_v31, %s11130_s28 }
 0x1ce   : > { %2121 = vrot.lane.b32.xlu1 %v1866_v53, %s11129_s27 }
 0x1cf   : > { %2119 = vrot.lane.b32.xlu0 %v12032_v30, %s11129_s27  ;;  %v12082_v13 = vpop.f32.mrb[28].mxu0 }
 0x1d0   : > { %v12084_v48 = vpop.f32.mrb[29].mxu0 }
 0x1d2   : > { %2233 = vrot.lane.b32.xlu1 %v2082_v0, %s11130_s28 }
 0x1d3   : > { %2231 = vrot.lane.b32.xlu0 %v2034_v6, %s11130_s28 }
 0x1d8   : > { %v12089_v61 = vpop.f32.mrb[30].mxu0 }
 0x1d9   : > { %v12091_v8 = vpop.f32.mrb[31].mxu0 }
 0x1e0   : > { %v9403_v24 = vpop.f32.mrb[16].mxu1 }
 0x1e1   : > { %v10683_v10 = vadd.f32 %v9455_v4, %v9403_v24  ;;  %v1471_v36 = vpop.f32.mrb[17].mxu1 }
 0x1e2   : > { %v10684_v52 = vadd.f32 %v1701_v54, %v1471_v36 }
 0x1e3   : > { %v1836_v55 = vadd.f32 %v10683_v10, %v11926_v2 }
 0x1e4   : > { %v1835_v23 = vadd.f32 %v10684_v52, %v11926_v2  ;;  %v9406_v11 = vpop.f32.mrb[18].mxu1 }
 0x1e5   : > { %v1868_v58 = vmax.f32 %v1836_v55, 0.0  ;;  %v10685_v19 = vadd.f32 %v9458_v60, %v9406_v11  ;;  %v1481_v20 = vpop.f32.mrb[19].mxu1 }
 0x1e6   : > { %v12104_v53 = vmax.f32 %v1835_v23, 0.0  ;;  %v10686_v31 = vadd.f32 %v1711_v40, %v1481_v20 }
 0x1e7   : > { %v1940_v35 = vrot.slane %v1868_v58, 7  ;;  %v1838_v4 = vadd.f32 %v10685_v19, %v11926_v2  ;;  %2125 = vrot.lane.b32.xlu1 %v1868_v58, %s11129_s27  ;;  %v2036_v28 = vrot.slane %v1868_v58, 1 }
 0x1e8   : > { %v1939_v54 = vrot.slane %v12104_v53, 7  ;;  %v1837_v37 = vadd.f32 %v10686_v31, %v11926_v2  ;;  %v9409_v39 = vpop.f32.mrb[20].mxu1  ;;  %2123 = vrot.lane.b32.xlu0 %v12104_v53, %s11129_s27  ;;  %v2035_v60 = vrot.slane %v12104_v53, 1  ;;  %v11110_v53 = vld [vmem:[%s11236_s21 + $0xc0] sm:$0xff] }
 0x1e9   : > { %v1870_v6 = vmax.f32 %v1838_v4, 0.0  ;;  %v10687_v59 = vadd.f32 %v9461_v63, %v9409_v39  ;;  %v1491_v57 = vpop.f32.mrb[21].mxu1  ;;  %v2083_v40 = vsel %vm635_vm3, %v2036_v28, 0.0 }
 0x1ea   : > { %v12114_v0 = vmax.f32 %v1837_v37, 0.0  ;;  %v10688_v24 = vadd.f32 %v1721_v50, %v1491_v57  ;;  %v2037_v56 = vsel %vm635_vm3, %v2035_v60, %v2036_v28  ;;  %v12120_v5 = vsel %vm538_vm0, %v1939_v54, %v1940_v35 }
 0x1eb   : > { %v1943_v10 = vrot.slane %v1870_v6, 7  ;;  %v1840_v36 = vadd.f32 %v10687_v59, %v11926_v2  ;;  %2237 = vrot.lane.b32.xlu1 %v2083_v40, %s11130_s28  ;;  %v2039_v52 = vrot.slane %v1870_v6, 1 }
 0x1ec   : > { %v1942_v63 = vrot.slane %v12114_v0, 7  ;;  %v2038_v55 = vrot.slane %v12114_v0, 1  ;;  %v1839_v23 = vadd.f32 %v10688_v24, %v11926_v2  ;;  %v9412_v50 = vpop.f32.mrb[22].mxu1  ;;  %2235 = vrot.lane.b32.xlu0 %v2037_v56, %s11130_s28 }
 0x1ed   : > { %v1872_v11 = vmax.f32 %v1840_v36, 0.0  ;;  %v10689_v58 = vadd.f32 %v12058_v3, %v9412_v50  ;;  %v1501_v19 = vpop.f32.mrb[23].mxu1  ;;  %v2084_v56 = vsel %vm635_vm3, %v2039_v52, 0.0 }
 0x1ee   : > { %v12129_v20 = vmax.f32 %v1839_v23, 0.0  ;;  %v10690_v31 = vadd.f32 %v12060_v18, %v1501_v19  ;;  %v2040_v35 = vsel %vm635_vm3, %v2038_v55, %v2039_v52  ;;  %v12136_v4 = vsel %vm538_vm0, %v1942_v63, %v1943_v10 }
 0x1ef   : > { %v1946_v28 = vrot.slane %v1872_v11, 7  ;;  %v1842_v37 = vadd.f32 %v10689_v58, %v11926_v2  ;;  %2129 = vrot.lane.b32.xlu1 %v1870_v6, %s11129_s27  ;;  %v2042_v39 = vrot.slane %v1872_v11, 1 }
 0x1f0   : > { %v1945_v3 = vrot.slane %v12129_v20, 7  ;;  %v2041_v60 = vrot.slane %v12129_v20, 1  ;;  %v1841_v59 = vadd.f32 %v10690_v31, %v11926_v2  ;;  %v9415_v18 = vpop.f32.mrb[24].mxu1  ;;  %2127 = vrot.lane.b32.xlu0 %v12114_v0, %s11129_s27  ;;  %v11114_v0 = vld [vmem:[%s11236_s21 + $0xe0] sm:$0xff] }
 0x1f1   : > { %v12145_v57 = vmax.f32 %v1842_v37, 0.0  ;;  %v10691_v40 = vadd.f32 %v12065_v17, %v9415_v18  ;;  %v1511_v24 = vpop.f32.mrb[25].mxu1 }
 0x1f2   : > { %v12149_v10 = vmax.f32 %v1841_v59, 0.0  ;;  %v10692_v6 = vadd.f32 %v12067_v49, %v1511_v24  ;;  %v2043_v36 = vsel %vm635_vm3, %v2041_v60, %v2042_v39  ;;  %v12156_v55 = vsel %vm538_vm0, %v1945_v3, %v1946_v28 }
 0x1f3   : > { %v1949_v23 = vrot.slane %v12145_v57, 7  ;;  %v1844_v50 = vadd.f32 %v10691_v40, %v11926_v2  ;;  %2241 = vrot.lane.b32.xlu1 %v2084_v56, %s11130_s28  ;;  %v2045_v17 = vrot.slane %v12145_v57, 1 }
 0x1f4   : > { %v16015_v52 = vrot.slane %v12149_v10, 7  ;;  %v2044_v58 = vrot.slane %v12149_v10, 1  ;;  %v1843_v49 = vadd.f32 %v10692_v6, %v11926_v2  ;;  %v9418_v19 = vpop.f32.mrb[26].mxu1  ;;  %2239 = vrot.lane.b32.xlu0 %v2040_v35, %s11130_s28 }
 0x1f5   : > { %v12166_v31 = vmax.f32 %v1844_v50, 0.0  ;;  %v10693_v28 = vadd.f32 %v12072_v46, %v9418_v19  ;;  %v1521_v37 = vpop.f32.mrb[27].mxu1  ;;  %v2085_v19 = vsel %vm635_vm3, %v2042_v39, 0.0 }
 0x1f6   : > { %v12169_v60 = vmax.f32 %v1843_v49, 0.0  ;;  %v10694_v59 = vadd.f32 %v12074_v21, %v1521_v37  ;;  %v2046_v18 = vsel %vm635_vm3, %v2044_v58, %v2045_v17  ;;  %v12176_v40 = vsel %vm538_vm0, %v16015_v52, %v1949_v23 }
 0x1f7   : > { %v1952_v24 = vrot.slane %v12166_v31, 7  ;;  %v1846_v35 = vadd.f32 %v10693_v28, %v11926_v2  ;;  %2133 = vrot.lane.b32.xlu1 %v1872_v11, %s11129_s27  ;;  %v2048_v46 = vrot.slane %v12166_v31, 1 }
 0x1f8   : > { %v16016_v56 = vrot.slane %v12169_v60, 7  ;;  %v2047_v6 = vrot.slane %v12169_v60, 1  ;;  %v1845_v21 = vadd.f32 %v10694_v59, %v11926_v2  ;;  %v9421_v50 = vpop.f32.mrb[28].mxu1  ;;  %2131 = vrot.lane.b32.xlu0 %v12129_v20, %s11129_s27 }
 0x1f9   : > { %v1878_v23 = vmax.f32 %v1846_v35, 0.0  ;;  %v10695_v58 = vadd.f32 %v12082_v13, %v9421_v50  ;;  %v1531_v49 = vpop.f32.mrb[29].mxu1 }
 0x1fa   : > { %v12189_v28 = vmax.f32 %v1845_v21, 0.0  ;;  %v10696_v11 = vadd.f32 %v12084_v48, %v1531_v49  ;;  %v2049_v37 = vsel %vm635_vm3, %v2047_v6, %v2048_v46  ;;  %v12196_v59 = vsel %vm538_vm0, %v16016_v56, %v1952_v24 }
 0x1fb   : > { %v1955_v12 = vrot.slane %v1878_v23, 7  ;;  %v1848_v52 = vadd.f32 %v10695_v58, %v11926_v2  ;;  %2245 = vrot.lane.b32.xlu1 %v2085_v19, %s11130_s28  ;;  %v2051_v13 = vrot.slane %v1878_v23, 1 }
 0x1fc   : > { %v1954_v35 = vrot.slane %v12189_v28, 7  ;;  %v2050_v39 = vrot.slane %v12189_v28, 1  ;;  %v1847_v21 = vadd.f32 %v10696_v11, %v11926_v2  ;;  %v9424_v48 = vpop.f32.mrb[30].mxu1  ;;  %2243 = vrot.lane.b32.xlu0 %v2043_v36, %s11130_s28 }
 0x1fd   : > { %v12204_v6 = vmax.f32 %v1848_v52, 0.0  ;;  %v10697_v24 = vadd.f32 %v12089_v61, %v9424_v48  ;;  %v1541_v50 = vpop.f32.mrb[31].mxu1  ;;  %v2086_v48 = vsel %vm635_vm3, %v2045_v17, 0.0 }
 0x1fe   : > { %v12207_v49 = vmax.f32 %v1847_v21, 0.0  ;;  %v10698_v58 = vadd.f32 %v12091_v8, %v1541_v50  ;;  %v2052_v19 = vsel %vm635_vm3, %v2050_v39, %v2051_v13  ;;  %v12214_v56 = vsel %vm538_vm0, %v1954_v35, %v1955_v12 }
 0x1ff   : > { %v1958_v11 = vrot.slane %v12204_v6, 7  ;;  %v1850_v36 = vadd.f32 %v10697_v24, %v11926_v2  ;;  %2137 = vrot.lane.b32.xlu1 %v12145_v57, %s11129_s27  ;;  %v2054_v61 = vrot.slane %v12204_v6, 1 }
 0x200   : > { %v16018_v52 = vrot.slane %v12207_v49, 7  ;;  %v2053_v8 = vrot.slane %v12207_v49, 1  ;;  %v1849_v39 = vadd.f32 %v10698_v58, %v11926_v2  ;;  %2135 = vrot.lane.b32.xlu0 %v12149_v10, %s11129_s27 }
 0x201   : > { %v12226_v12 = vmax.f32 %v1850_v36, 0.0 }
 0x202   : > { %v12228_v21 = vmax.f32 %v1849_v39, 0.0  ;;  %v2055_v24 = vsel %vm635_vm3, %v2053_v8, %v2054_v61  ;;  %v12235_v57 = vsel %vm538_vm0, %v16018_v52, %v1958_v11  ;;  %v2087_v8 = vsel %vm635_vm3, %v2048_v46, 0.0  ;;  %v2497_v46 = vld [vmem:[%s16003_s4 + $0x18] sm:$0xff] }
 0x203   : > { %v1961_v50 = vrot.slane %v12226_v12, 7  ;;  %2249 = vrot.lane.b32.xlu1 %v2086_v48, %s11130_s28  ;;  %v2057_v58 = vrot.slane %v12226_v12, 1 }
 0x204   : > { %v16017_v36 = vrot.slane %v12228_v21, 7  ;;  %v2056_v39 = vrot.slane %v12228_v21, 1  ;;  %2247 = vrot.lane.b32.xlu0 %v2046_v18, %s11130_s28 }
 0x206   : > { %v12246_v17 = vsel %vm635_vm3, %v2056_v39, %v2057_v58  ;;  %v12251_v11 = vsel %vm538_vm0, %v16017_v36, %v1961_v50  ;;  %v2088_v50 = vsel %vm635_vm3, %v2051_v13, 0.0 }
 0x207   : > { %2141 = vrot.lane.b32.xlu1 %v12166_v31, %s11129_s27  ;;  %v2496_v31 = vld [vmem:[%s16003_s4 + $0x10] sm:$0xff] }
 0x208   : > { %2139 = vrot.lane.b32.xlu0 %v12169_v60, %s11129_s27  ;;  %v10397_v36 = vpack.c.bf16 %v2497_v46, %v2496_v31  ;;  %v2501_v31 = vld [vmem:[%s16003_s4 + $0x38] sm:$0xff]  ;;  %v1997_v46 = vsel %vm538_vm0, 0.0, %v1921_v26  ;;  %v1819_v26 = vadd.f32 %v11917_v42, %v11926_v2 }
 0x20b   : > { %2253 = vrot.lane.b32.xlu1 %v2087_v8, %s11130_s28 }
 0x20c   : > { %2251 = vrot.lane.b32.xlu0 %v2049_v37, %s11130_s28 }
 0x20f   : > { %2145 = vrot.lane.b32.xlu1 %v1878_v23, %s11129_s27  ;;  %v1996_v23 = vsel %vm538_vm0, 0.0, %v1918_v47  ;;  %v2499_v47 = vld [vmem:[%s16003_s4 + $0x28] sm:$0xff] }
 0x210   : > { %2143 = vrot.lane.b32.xlu0 %v12189_v28, %s11129_s27  ;;  %v2098_v18 = vpop.permute.xlu1 %2097 }
 0x211   : > { %v2096_v48 = vpop.permute.xlu0 %2095  ;;  %v2303_v8 = vsel %vm2299_vm7, %v11952_v44, %v2098_v18  ;;  %v10401_v18 = vpack.c.bf16 %v2499_v47, %v2498_v43  ;;  %v12343_v47 = vmax.f32 %v1819_v26, 0.0  ;;  %v1999_v26 = vsel %vm538_vm0, 0.0, %v1927_v51  ;;  %v11085_v51 = vld [vmem:[%s11236_s21 + $0x8] sm:$0xff] }
 0x212   : > { %v2302_v13 = vsel %vm2299_vm7, %v1996_v23, %v2096_v48  ;;  %v2500_v48 = vld [vmem:[%s16003_s4 + $0x30] sm:$0xff] }
 0x213   : > { %2257 = vrot.lane.b32.xlu1 %v2088_v50, %s11130_s28  ;;  %v10405_v22 = vpack.c.bf16 %v2501_v31, %v2500_v48 }
 0x214   : > { %2255 = vrot.lane.b32.xlu0 %v2052_v19, %s11130_s28  ;;  %v2210_v37 = vpop.permute.xlu1 %2209 }
 0x215   : > { %v2208_v39 = vpop.permute.xlu0 %2207  ;;  %v12282_v52 = vsel %vm2332_vm8, %v2303_v8, %v2210_v37  ;;  %v1820_v37 = vadd.f32 %v11915_v38, %v11926_v2  ;;  %v2502_v38 = vld [vmem:[%s16003_s4 + $0x40] sm:$0xff]  ;;  %v2090_v8 = vsel %vm635_vm3, %v2057_v58, 0.0 }
 0x216   : > { %v12279_v50 = vsel %vm2332_vm8, %v2302_v13, %v2208_v39 }
 0x217   : > { %2149 = vrot.lane.b32.xlu1 %v12204_v6, %s11129_s27  ;;  %9501 = vmatprep.mubr.msk.f32.mxu1 %vm2461_vm9, %v12279_v50  ;;  %v2089_v6 = vsel %vm635_vm3, %v2054_v61, 0.0 }
 0x218   : > { %2147 = vrot.lane.b32.xlu0 %v12207_v49, %s11129_s27  ;;  %9502 = vmatmul.mubr.msk.f32.vlgmr.msra.gmra.mrb[32].mxu1 %vm2461_vm9, %v12282_v52  ;;  %v2102_v44 = vpop.permute.xlu1 %2101 }
 0x219   : > { %v2100_v19 = vpop.permute.xlu0 %2099  ;;  %10396 = vmatpush3.bf16.msra.mxu1 %v12099_v7  ;;  %v2305_v13 = vsel %vm2299_vm7, %v11968_v25, %v2102_v44  ;;  %v2503_v25 = vld [vmem:[%s16003_s4 + $0x48] sm:$0xff]  ;;  %v2504_v44 = vld [vmem:[%s16003_s4 + $0x50] sm:$0xff] }
 0x21a   : > { %10398 = vmatprep.subr.bf16.mxu1 %v10397_v36  ;;  %v2304_v61 = vsel %vm2299_vm7, %v1997_v46, %v2100_v19  ;;  %v10409_v43 = vpack.c.bf16 %v2503_v25, %v2502_v38  ;;  %v2505_v19 = vld [vmem:[%s16003_s4 + $0x58] sm:$0xff] }
 0x21b   : > { %2261 = vrot.lane.b32.xlu1 %v2089_v6, %s11130_s28  ;;  %v10413_v32 = vpack.c.bf16 %v2505_v19, %v2504_v44  ;;  %v11087_v19 = vld [vmem:[%s11236_s21 + $0x18] sm:$0xff] }
 0x21c   : > { %2259 = vrot.lane.b32.xlu0 %v2055_v24, %s11130_s28  ;;  %v2214_v7 = vpop.permute.xlu1 %2213 }
 0x21d   : > { %v2212_v23 = vpop.permute.xlu0 %2211  ;;  %10400 = vmatpush3.bf16.msra.mxu1 %v10397_v36  ;;  %v12322_v24 = vsel %vm2332_vm8, %v2305_v13, %v2214_v7  ;;  %v12338_v36 = vmax.f32 %v1820_v37, 0.0 }
 0x21e   : > { %v12317_v39 = vsel %vm2332_vm8, %v2304_v61, %v2212_v23  ;;  %10402 = vmatprep.subr.bf16.mxu1 %v10401_v18 }
 0x21f   : > { %2153 = vrot.lane.b32.xlu1 %v12226_v12, %s11129_s27  ;;  %9504 = vmatprep.mubr.msk.f32.mxu1 %vm2461_vm9, %v12317_v39  ;;  %v1998_v12 = vsel %vm538_vm0, 0.0, %v1924_v33  ;;  %v2012_v46 = vrot.slane %v12338_v36, 1  ;;  %v2011_v33 = vrot.slane %v12343_v47, 1 }
 0x220   : > { %2151 = vrot.lane.b32.xlu0 %v12228_v21, %s11129_s27  ;;  %9505 = vmatmul.mubr.msk.f32.gmra.mrb[34].mxu1 %vm2461_vm9, %v12322_v24  ;;  %v2106_v42 = vpop.permute.xlu1 %2105 }
 0x221   : > { %v2104_v2 = vpop.permute.xlu0 %2103  ;;  %10404 = vmatpush3.bf16.msra.mxu1 %v10401_v18  ;;  %v2307_v48 = vsel %vm2299_vm7, %v11988_v62, %v2106_v42  ;;  %v3066_v62 = vld [vmem:[%s16003_s4 + $0xc0] sm:$0xff]  ;;  %v2075_v37 = vsel %vm635_vm3, %v2012_v46, 0.0 }
 0x222   : > { %10406 = vmatprep.subr.bf16.mxu1 %v10405_v22  ;;  %v2306_v6 = vsel %vm2299_vm7, %v1998_v12, %v2104_v2  ;;  %v2000_v12 = vsel %vm538_vm0, 0.0, %v1930_v29  ;;  %v11090_v29 = vld [vmem:[%s11236_s21 + $0x20] sm:$0xff] }
 0x223   : > { %2265 = vrot.lane.b32.xlu1 %v2090_v8, %s11130_s28 }
 0x224   : > { %2263 = vrot.lane.b32.xlu0 %v12246_v17, %s11130_s28  ;;  %v2218_v58 = vpop.permute.xlu1 %2217  ;;  %v3067_v17 = vld [vmem:[%s16003_s4 + $0xc8] sm:$0xff] }
 0x225   : > { %v2216_v18 = vpop.permute.xlu0 %2215  ;;  %10408 = vmatpush3.bf16.msra.mxu1 %v10405_v22  ;;  %v12366_v7 = vsel %vm2332_vm8, %v2307_v48, %v2218_v58  ;;  %v12383_v13 = vpack.c.bf16 %v3067_v17, %v3066_v62  ;;  %v2013_v22 = vsel %vm635_vm3, %v2011_v33, %v2012_v46  ;;  %v11088_v58 = vld [vmem:[%s11236_s21 + $0x10] sm:$0xff]  ;;  %v11091_v17 = vld [vmem:[%s11236_s21 + $0x38] sm:$0xff] }
 0x226   : > { %v12361_v31 = vsel %vm2332_vm8, %v2306_v6, %v2216_v18  ;;  %10410 = vmatprep.subr.bf16.mxu1 %v10409_v43 }
 0x227   : > { %2093 = vrot.lane.b32.xlu1 %v12338_v36, %s11129_s27  ;;  %9507 = vmatprep.mubr.msk.f32.mxu1 %vm2461_vm9, %v12361_v31 }
 0x228   : > { %2091 = vrot.lane.b32.xlu0 %v12343_v47, %s11129_s27  ;;  %9508 = vmatmul.mubr.msk.f32.gmra.mrb[36].mxu1 %vm2461_vm9, %v12366_v7  ;;  %v2110_v61 = vpop.permute.xlu1 %2109 }
 0x229   : > { %v2108_v23 = vpop.permute.xlu0 %2107  ;;  %10412 = vmatpush3.bf16.msra.mxu1 %v10409_v43  ;;  %v2309_v2 = vsel %vm2299_vm7, %v12006_v14, %v2110_v61  ;;  %v11086_v43 = vld [vmem:[%s11236_s21] sm:$0xff]  ;;  %v2001_v61 = vsel %vm538_vm0, 0.0, %v1933_v9 }
 0x22a   : > { %10414 = vmatprep.subr.bf16.mxu1 %v10413_v32  ;;  %v2308_v25 = vsel %vm2299_vm7, %v1999_v26, %v2108_v23  ;;  %v11092_v23 = vld [vmem:[%s11236_s21 + $0x30] sm:$0xff]  ;;  %v11094_v9 = vld [vmem:[%s11236_s21 + $0x40] sm:$0xff] }
 0x22b   : > { %2205 = vrot.lane.b32.xlu1 %v2075_v37, %s11130_s28 }
 0x22c   : > { %2203 = vrot.lane.b32.xlu0 %v2013_v22, %s11130_s28  ;;  %v2222_v38 = vpop.permute.xlu1 %2221 }
 0x22d   : > { %v2220_v42 = vpop.permute.xlu0 %2219  ;;  %10416 = vmatpush3.bf16.msra.mxu1 %v10413_v32  ;;  %v12399_v41 = vsel %vm2332_vm8, %v2309_v2, %v2222_v38 }
 0x22e   : > { %v12395_v8 = vsel %vm2332_vm8, %v2308_v25, %v2220_v42  ;;  %10418 = vmatprep.subr.bf16.mxu1 %v12383_v13 }
 0x22f   : > { %2367 = vrot.lane.b32.xlu1 %v11085_v51, %s11131_s17  ;;  %9510 = vmatprep.mubr.msk.f32.mxu1 %vm2461_vm9, %v12395_v8  ;;  %v11095_v51 = vld [vmem:[%s11236_s21 + $0x58] sm:$0xff] }
 0x230   : > { %2365 = vrot.lane.b32.xlu0 %v11086_v43, %s11131_s17  ;;  %9511 = vmatmul.mubr.msk.f32.gmra.mrb[38].mxu1 %vm2461_vm9, %v12399_v41  ;;  %v2114_v14 = vpop.permute.xlu1 %2113  ;;  %v2002_v43 = vsel %vm538_vm0, 0.0, %v1936_v16  ;;  %v11097_v16 = vld [vmem:[%s11236_s21 + $0x68] sm:$0xff] }
 0x231   : > { %v2112_v44 = vpop.permute.xlu0 %2111  ;;  %v2311_v46 = vsel %vm2299_vm7, %v12024_v27, %v2114_v14  ;;  %v11096_v14 = vld [vmem:[%s11236_s21 + $0x50] sm:$0xff] }
 0x232   : > { %v2310_v18 = vsel %vm2299_vm7, %v2000_v12, %v2112_v44 }
 0x233   : > { %2371 = vrot.lane.b32.xlu1 %v11087_v19, %s11131_s17 }
 0x234   : > { %2369 = vrot.lane.b32.xlu0 %v11088_v58, %s11131_s17  ;;  %v2226_v6 = vpop.permute.xlu1 %2225 }
 0x235   : > { %v2224_v48 = vpop.permute.xlu0 %2223  ;;  %v12423_v33 = vsel %vm2332_vm8, %v2311_v46, %v2226_v6  ;;  %v11101_v46 = vld [vmem:[%s11236_s21 + $0x88] sm:$0xff] }
 0x236   : > { %v12420_v32 = vsel %vm2332_vm8, %v2310_v18, %v2224_v48  ;;  %v11098_v18 = vld [vmem:[%s11236_s21 + $0x60] sm:$0xff]  ;;  %v11100_v48 = vld [vmem:[%s11236_s21 + $0x70] sm:$0xff] }
 0x237   : > { %2375 = vrot.lane.b32.xlu1 %v11089_v15, %s11131_s17  ;;  %9513 = vmatprep.mubr.msk.f32.mxu1 %vm2461_vm9, %v12420_v32  ;;  %v11102_v15 = vld [vmem:[%s11236_s21 + $0x80] sm:$0xff] }
 0x238   : > { %2373 = vrot.lane.b32.xlu0 %v11090_v29, %s11131_s17  ;;  %9514 = vmatmul.mubr.msk.f32.gmra.mrb[40].mxu1 %vm2461_vm9, %v12423_v33  ;;  %v2118_v27 = vpop.permute.xlu1 %2117  ;;  %v11103_v29 = vld [vmem:[%s11236_s21 + $0x98] sm:$0xff] }
 0x239   : > { %v2116_v62 = vpop.permute.xlu0 %2115  ;;  %v2313_v38 = vsel %vm2299_vm7, %v12038_v34, %v2118_v27  ;;  %v11104_v27 = vld [vmem:[%s11236_s21 + $0x90] sm:$0xff] }
 0x23a   : > { %v2312_v22 = vsel %vm2299_vm7, %v2001_v61, %v2116_v62  ;;  %v11105_v62 = vld [vmem:[%s11236_s21 + $0xa8] sm:$0xff] }
 0x23b   : > { %2379 = vrot.lane.b32.xlu1 %v11091_v17, %s11131_s17  ;;  %v11106_v17 = vld [vmem:[%s11236_s21 + $0xa0] sm:$0xff] }
 0x23c   : > { %2377 = vrot.lane.b32.xlu0 %v11092_v23, %s11131_s17  ;;  %v2230_v37 = vpop.permute.xlu1 %2229 }
 0x23d   : > { %v2228_v26 = vpop.permute.xlu0 %2227  ;;  %v12447_v42 = vsel %vm2332_vm8, %v2313_v38, %v2230_v37  ;;  %v11107_v37 = vld [vmem:[%s11236_s21 + $0xb8] sm:$0xff] }
 0x23e   : > { %v12444_v25 = vsel %vm2332_vm8, %v2312_v22, %v2228_v26  ;;  %v11108_v22 = vld [vmem:[%s11236_s21 + $0xb0] sm:$0xff]  ;;  %v2003_v26 = vsel %vm538_vm0, 0.0, %v1939_v54 }
 0x23f   : > { %2383 = vrot.lane.b32.xlu1 %v11093_v45, %s11131_s17  ;;  %9516 = vmatprep.mubr.msk.f32.mxu1 %vm2461_vm9, %v12444_v25 }
 0x240   : > { %2381 = vrot.lane.b32.xlu0 %v11094_v9, %s11131_s17  ;;  %9517 = vmatmul.mubr.msk.f32.gmra.mrb[42].mxu1 %vm2461_vm9, %v12447_v42  ;;  %v2122_v34 = vpop.permute.xlu1 %2121 }
 0x241   : > { %v2120_v2 = vpop.permute.xlu0 %2119  ;;  %v2315_v58 = vsel %vm2299_vm7, %v12051_v1, %v2122_v34  ;;  %v11099_v1 = vld [vmem:[%s11236_s21 + $0x78] sm:$0xff] }
 0x242   : > { %v2314_v19 = vsel %vm2299_vm7, %v2002_v43, %v2120_v2 }
 0x243   : > { %2387 = vrot.lane.b32.xlu1 %v11095_v51, %s11131_s17  ;;  %v11109_v51 = vld [vmem:[%s11236_s21 + $0xc8] sm:$0xff] }
 0x244   : > { %2385 = vrot.lane.b32.xlu0 %v11096_v14, %s11131_s17  ;;  %v2234_v44 = vpop.permute.xlu1 %2233  ;;  %v11111_v14 = vld [vmem:[%s11236_s21 + $0xd8] sm:$0xff] }
 0x245   : > { %v2232_v12 = vpop.permute.xlu0 %2231  ;;  %v12471_v30 = vsel %vm2332_vm8, %v2315_v58, %v2234_v44  ;;  %v11112_v44 = vld [vmem:[%s11236_s21 + $0xd0] sm:$0xff] }
 0x246   : > { %v12468_v6 = vsel %vm2332_vm8, %v2314_v19, %v2232_v12  ;;  %v2004_v19 = vsel %vm538_vm0, 0.0, %v1942_v63 }
 0x247   : > { %2391 = vrot.lane.b32.xlu1 %v11097_v16, %s11131_s17  ;;  %9519 = vmatprep.mubr.msk.f32.mxu1 %vm2461_vm9, %v12468_v6 }
 0x248   : > { %2389 = vrot.lane.b32.xlu0 %v11098_v18, %s11131_s17  ;;  %9520 = vmatmul.mubr.msk.f32.gmra.mrb[44].mxu1 %vm2461_vm9, %v12471_v30 }
 0x24b   : > { %2395 = vrot.lane.b32.xlu1 %v11099_v1, %s11131_s17 }
 0x24c   : > { %2393 = vrot.lane.b32.xlu0 %v11100_v48, %s11131_s17  ;;  %v11113_v48 = vld [vmem:[%s11236_s21 + $0xe8] sm:$0xff] }
 0x24f   : > { %2399 = vrot.lane.b32.xlu1 %v11101_v46, %s11131_s17 }
 0x250   : > { %2397 = vrot.lane.b32.xlu0 %v11102_v15, %s11131_s17  ;;  %v11115_v15 = vld [vmem:[%s11236_s21 + $0xf8] sm:$0xff] }
 0x253   : > { %2403 = vrot.lane.b32.xlu1 %v11103_v29, %s11131_s17  ;;  %v11116_v29 = vld [vmem:[%s11236_s21 + $0xf0] sm:$0xff] }
 0x254   : > { %2401 = vrot.lane.b32.xlu0 %v11104_v27, %s11131_s17  ;;  %v2005_v27 = vsel %vm538_vm0, 0.0, %v1945_v3 }
 0x257   : > { %2407 = vrot.lane.b32.xlu1 %v11105_v62, %s11131_s17 }
 0x258   : > { %2405 = vrot.lane.b32.xlu0 %v11106_v17, %s11131_s17 }
 0x259   : > { %v2126_v61 = vpop.permute.xlu1 %2125 }
 0x25a   : > { %v2124_v23 = vpop.permute.xlu0 %2123  ;;  %v2317_v34 = vsel %vm2299_vm7, %v12120_v5, %v2126_v61 }
 0x25b   : > { %2411 = vrot.lane.b32.xlu1 %v11107_v37, %s11131_s17  ;;  %v2316_v45 = vsel %vm2299_vm7, %v2003_v26, %v2124_v23  ;;  %v16096_v26 = vrot.slane %v12149_v10, 7 }
 0x25c   : > { %2409 = vrot.lane.b32.xlu0 %v11108_v22, %s11131_s17 }
 0x25d   : > { %v2238_v38 = vpop.permute.xlu1 %2237 }
 0x25e   : > { %v2236_v9 = vpop.permute.xlu0 %2235  ;;  %v12513_v43 = vsel %vm2332_vm8, %v2317_v34, %v2238_v38  ;;  %v2006_v38 = vsel %vm538_vm0, 0.0, %v16096_v26 }
 0x25f   : > { %v12508_v2 = vsel %vm2332_vm8, %v2316_v45, %v2236_v9  ;;  %2415 = vrot.lane.b32.xlu1 %v11109_v51, %s11131_s17 }
 0x260   : > { %9522 = vmatprep.mubr.msk.f32.mxu1 %vm2461_vm9, %v12508_v2  ;;  %2413 = vrot.lane.b32.xlu0 %v11110_v53, %s11131_s17 }
 0x261   : > { %9523 = vmatmul.mubr.msk.f32.gmra.mrb[46].mxu1 %vm2461_vm9, %v12513_v43  ;;  %v2130_v54 = vpop.permute.xlu1 %2129 }
 0x262   : > { %v2128_v5 = vpop.permute.xlu0 %2127  ;;  %v2319_v18 = vsel %vm2299_vm7, %v12136_v4, %v2130_v54 }
 0x263   : > { %2419 = vrot.lane.b32.xlu1 %v11111_v14, %s11131_s17  ;;  %v2318_v58 = vsel %vm2299_vm7, %v2004_v19, %v2128_v5  ;;  %v16097_v5 = vrot.slane %v12169_v60, 7 }
 0x264   : > { %2417 = vrot.lane.b32.xlu0 %v11112_v44, %s11131_s17 }
 0x265   : > { %v2242_v12 = vpop.permute.xlu1 %2241  ;;  %v2007_v14 = vsel %vm538_vm0, 0.0, %v16097_v5  ;;  %v16100_v5 = vmov 0.0  }
 0x266   : > { %v2240_v16 = vpop.permute.xlu0 %2239  ;;  %v12537_v46 = vsel %vm2332_vm8, %v2319_v18, %v2242_v12 }
 0x267   : > { %v12532_v1 = vsel %vm2332_vm8, %v2318_v58, %v2240_v16  ;;  %2423 = vrot.lane.b32.xlu1 %v11113_v48, %s11131_s17  ;;  %v2008_v48 = vsel %vm538_vm0, 0.0, %v1954_v35 }
 0x268   : > { %9525 = vmatprep.mubr.msk.f32.mxu1 %vm2461_vm9, %v12532_v1  ;;  %2421 = vrot.lane.b32.xlu0 %v11114_v0, %s11131_s17 }
 0x269   : > { %9526 = vmatmul.mubr.msk.f32.gmra.mrb[48].mxu1 %vm2461_vm9, %v12537_v46  ;;  %v2134_v63 = vpop.permute.xlu1 %2133 }
 0x26a   : > { %v2132_v4 = vpop.permute.xlu0 %2131  ;;  %v2321_v23 = vsel %vm2299_vm7, %v12156_v55, %v2134_v63 }
 0x26b   : > { %2427 = vrot.lane.b32.xlu1 %v11115_v15, %s11131_s17  ;;  %v2320_v17 = vsel %vm2299_vm7, %v2005_v27, %v2132_v4  ;;  %v16098_v27 = vrot.slane %v12207_v49, 7 }
 0x26c   : > { %2425 = vrot.lane.b32.xlu0 %v11116_v29, %s11131_s17 }
 0x26d   : > { %v2246_v62 = vpop.permute.xlu1 %2245 }
 0x26e   : > { %v2244_v61 = vpop.permute.xlu0 %2243  ;;  %v12559_v22 = vsel %vm2332_vm8, %v2321_v23, %v2246_v62  ;;  %v2009_v62 = vsel %vm538_vm0, 0.0, %v16098_v27  ;;  %v3072_v27 = vld [vmem:[%s16003_s4 + $0xf0] sm:$0xff] }
 0x26f   : > { %v12556_v37 = vsel %vm2332_vm8, %v2320_v17, %v2244_v61 }
 0x270   : > { %9528 = vmatprep.mubr.msk.f32.mxu1 %vm2461_vm9, %v12556_v37 }
 0x271   : > { %9529 = vmatmul.mubr.msk.f32.gmra.mrb[50].mxu1 %vm2461_vm9, %v12559_v22  ;;  %v2138_v20 = vpop.permute.xlu1 %2137 }
 0x272   : > { %v2136_v3 = vpop.permute.xlu0 %2135  ;;  %v2323_v34 = vsel %vm2299_vm7, %v12176_v40, %v2138_v20 }
 0x273   : > { %v2322_v55 = vsel %vm2299_vm7, %v2006_v38, %v2136_v3  ;;  %v16099_v38 = vrot.slane %v12228_v21, 7 }
 0x275   : > { %v2250_v45 = vpop.permute.xlu1 %2249 }
 0x276   : > { %v2248_v9 = vpop.permute.xlu0 %2247  ;;  %v12575_v53 = vsel %vm2332_vm8, %v2323_v34, %v2250_v45  ;;  %v2010_v45 = vsel %vm538_vm0, 0.0, %v16099_v38  ;;  %v3078_v38 = vld [vmem:[%s16003_s4 + $0x120] sm:$0x7] }
 0x277   : > { %v12572_v51 = vsel %vm2332_vm8, %v2322_v55, %v2248_v9 }
 0x278   : > { %9531 = vmatprep.mubr.msk.f32.mxu1 %vm2461_vm9, %v12572_v51 }
 0x279   : > { %9532 = vmatmul.mubr.msk.f32.gmra.mrb[52].mxu1 %vm2461_vm9, %v12575_v53  ;;  %v2142_v10 = vpop.permute.xlu1 %2141 }
 0x27a   : > { %v2140_v54 = vpop.permute.xlu0 %2139  ;;  %v2325_v12 = vsel %vm2299_vm7, %v12196_v59, %v2142_v10 }
 0x27b   : > { %v2324_v40 = vsel %vm2299_vm7, %v2007_v14, %v2140_v54  ;;  %v1915_v14 = vrot.slane %v12343_v47, 7 }
 0x27d   : > { %v2254_v44 = vpop.permute.xlu1 %2253 }
 0x27e   : > { %v2252_v19 = vpop.permute.xlu0 %2251  ;;  %v12591_v16 = vsel %vm2332_vm8, %v2325_v12, %v2254_v44 }
 0x27f   : > { %v12588_v58 = vsel %vm2332_vm8, %v2324_v40, %v2252_v19  ;;  %v3069_v40 = vld [vmem:[%s16003_s4 + $0xd8] sm:$0xff]  ;;  %v1916_v19 = vrot.slane %v12338_v36, 7 }
 0x280   : > { %9534 = vmatprep.mubr.msk.f32.mxu1 %vm2461_vm9, %v12588_v58 }
 0x281   : > { %9535 = vmatmul.mubr.msk.f32.gmra.mrb[54].mxu1 %vm2461_vm9, %v12591_v16  ;;  %v2146_v60 = vpop.permute.xlu1 %2145  ;;  %v1917_v36 = vsel %vm538_vm0, %v1915_v14, %v1916_v19 }
 0x282   : > { %v2144_v18 = vpop.permute.xlu0 %2143  ;;  %v2327_v4 = vsel %vm2299_vm7, %v12214_v56, %v2146_v60  ;;  %v1995_v60 = vsel %vm538_vm0, 0.0, %v1915_v14 }
 0x283   : > { %v2326_v59 = vsel %vm2299_vm7, %v2008_v48, %v2144_v18  ;;  %v3070_v48 = vld [vmem:[%s16003_s4 + $0xe0] sm:$0xff] }
 0x285   : > { %v2258_v0 = vpop.permute.xlu1 %2257 }
 0x286   : > { %v2256_v63 = vpop.permute.xlu0 %2255  ;;  %v12607_v29 = vsel %vm2332_vm8, %v2327_v4, %v2258_v0  ;;  %v3071_v0 = vld [vmem:[%s16003_s4 + $0xe8] sm:$0xff] }
 0x287   : > { %v12604_v15 = vsel %vm2332_vm8, %v2326_v59, %v2256_v63 }
 0x288   : > { %9537 = vmatprep.mubr.msk.f32.mxu1 %vm2461_vm9, %v12604_v15 }
 0x289   : > { %9538 = vmatmul.mubr.msk.f32.gmra.mrb[56].mxu1 %vm2461_vm9, %v12607_v29  ;;  %v2150_v28 = vpop.permute.xlu1 %2149 }
 0x28a   : > { %v2148_v35 = vpop.permute.xlu0 %2147  ;;  %v2329_v23 = vsel %vm2299_vm7, %v12235_v57, %v2150_v28  ;;  %v10425_v28 = vpack.c.bf16 %v3071_v0, %v3070_v48 }
 0x28b   : > { %v2328_v56 = vsel %vm2299_vm7, %v2009_v62, %v2148_v35  ;;  %v3073_v62 = vld [vmem:[%s16003_s4 + $0xf8] sm:$0xff] }
 0x28d   : > { %v2262_v17 = vpop.permute.xlu1 %2261 }
 0x28e   : > { %v2260_v61 = vpop.permute.xlu0 %2259  ;;  %v12623_v3 = vsel %vm2332_vm8, %v2329_v23, %v2262_v17  ;;  %v3074_v17 = vld [vmem:[%s16003_s4 + $0x100] sm:$0xff]  ;;  %v3076_v23 = vld [vmem:[%s16003_s4 + $0x110] sm:$0xff] }
 0x28f   : > { %v12620_v20 = vsel %vm2332_vm8, %v2328_v56, %v2260_v61  ;;  %v3075_v56 = vld [vmem:[%s16003_s4 + $0x108] sm:$0xff] }
 0x290   : > { %9540 = vmatprep.mubr.msk.f32.mxu1 %vm2461_vm9, %v12620_v20  ;;  %v10433_v61 = vpack.c.bf16 %v3075_v56, %v3074_v17 }
 0x291   : > { %9541 = vmatmul.mubr.msk.f32.gmra.mrb[58].mxu1 %vm2461_vm9, %v12623_v3  ;;  %v2154_v49 = vpop.permute.xlu1 %2153 }
 0x292   : > { %v2152_v26 = vpop.permute.xlu0 %2151  ;;  %v2331_v34 = vsel %vm2299_vm7, %v12251_v11, %v2154_v49  ;;  %v3068_v11 = vld [vmem:[%s16003_s4 + $0xd0] sm:$0xff]  ;;  %v3077_v49 = vld [vmem:[%s16003_s4 + $0x118] sm:$0xff] }
 0x293   : > { %v2330_v57 = vsel %vm2299_vm7, %v2010_v45, %v2152_v26  ;;  %v10421_v18 = vpack.c.bf16 %v3069_v40, %v3068_v11  ;;  %v10437_v26 = vpack.c.bf16 %v3077_v49, %v3076_v23 }
 0x295   : > { %v2266_v55 = vpop.permute.xlu1 %2265 }
 0x296   : > { %v2264_v9 = vpop.permute.xlu0 %2263  ;;  %v12639_v54 = vsel %vm2332_vm8, %v2331_v34, %v2266_v55 }
 0x297   : > { %v12636_v10 = vsel %vm2332_vm8, %v2330_v57, %v2264_v9 }
 0x298   : > { %9543 = vmatprep.mubr.msk.f32.mxu1 %vm2461_vm9, %v12636_v10 }
 0x299   : > { %9544 = vmatmul.mubr.msk.f32.gmra.mrb[60].mxu1 %vm2461_vm9, %v12639_v54  ;;  %v2094_v44 = vpop.permute.xlu1 %2093 }
 0x29a   : > { %v2092_v21 = vpop.permute.xlu0 %2091  ;;  %9546 = vmatprep.mubr.f32.mxu1 %v16100_v5  ;;  %v2301_v4 = vsel %vm2299_vm7, %v1917_v36, %v2094_v44 }
 0x29b   : > { %v2300_v47 = vsel %vm2299_vm7, %v1995_v60, %v2092_v21 }
 0x29d   : > { %9547 = vmatmul.mubr.f32.gmra.mrb[62].mxu1 %v16100_v5  ;;  %v2206_v59 = vpop.permute.xlu1 %2205 }
 0x29e   : > { %v2204_v12 = vpop.permute.xlu0 %2203  ;;  %9573 = vmatprep.mubr.f32.mxu1 %v16100_v5  ;;  %v12674_v35 = vsel %vm2332_vm8, %v2301_v4, %v2206_v59 }
 0x29f   : > { %v12665_v63 = vsel %vm2332_vm8, %v2300_v47, %v2204_v12 }
 0x2a1   : > { %9574 = vmatmul.mubr.f32.vlgmr.msra.gmra.mrb[32].mxu1 %v16100_v5  ;;  %v2368_v55 = vpop.permute.xlu1 %2367 }
 0x2a2   : > { %10420 = vmatpush3.bf16.msra.mxu1 %v12383_v13  ;;  %9576 = vmatprep.mubr.msk.f32.mxu1 %vm2461_vm9, %v12665_v63  ;;  %v10429_v13 = vpack.c.bf16 %v3073_v62, %v3072_v27  ;;  %v2366_v45 = vpop.permute.xlu0 %2365 }
 0x2a3   : > { %10422 = vmatprep.subr.bf16.mxu1 %v10421_v18  ;;  %v2462_v12 = vsel %vm2461_vm9, %v12665_v63, %v2366_v45 }
 0x2a5   : > { %9577 = vmatmul.mubr.msk.f32.gmra.mrb[34].mxu1 %vm2461_vm9, %v12674_v35  ;;  %v2372_v9 = vpop.permute.xlu1 %2371 }
 0x2a6   : > { %9579 = vmatprep.mubr.msk.f32.mxu1 %vm2461_vm9, %v12279_v50  ;;  %10424 = vmatpush3.bf16.msra.mxu1 %v10421_v18  ;;  %v2370_v57 = vpop.permute.xlu0 %2369  ;;  %v2463_v18 = vsel %vm2461_vm9, %v12674_v35, %v2368_v55  ;;  %v2465_v59 = vsel %vm2461_vm9, %v12282_v52, %v2372_v9 }
 0x2a7   : > { %10426 = vmatprep.subr.bf16.mxu1 %v10425_v28  ;;  %v2464_v48 = vsel %vm2461_vm9, %v12279_v50, %v2370_v57 }
 0x2a9   : > { %9580 = vmatmul.mubr.msk.f32.gmra.mrb[36].mxu1 %vm2461_vm9, %v12282_v52  ;;  %v2376_v21 = vpop.permute.xlu1 %2375 }
 0x2aa   : > { %9582 = vmatprep.mubr.msk.f32.mxu1 %vm2461_vm9, %v12317_v39  ;;  %10428 = vmatpush3.bf16.msra.mxu1 %v10425_v28  ;;  %v2374_v34 = vpop.permute.xlu0 %2373  ;;  %v2467_v4 = vsel %vm2461_vm9, %v12322_v24, %v2376_v21 }
 0x2ab   : > { %10430 = vmatprep.subr.bf16.mxu1 %v10429_v13  ;;  %v2466_v63 = vsel %vm2461_vm9, %v12317_v39, %v2374_v34 }
 0x2ad   : > { %9583 = vmatmul.mubr.msk.f32.gmra.mrb[38].mxu1 %vm2461_vm9, %v12322_v24  ;;  %v2380_v44 = vpop.permute.xlu1 %2379 }
 0x2ae   : > { %9585 = vmatprep.mubr.msk.f32.mxu1 %vm2461_vm9, %v12361_v31  ;;  %10432 = vmatpush3.bf16.msra.mxu1 %v10429_v13  ;;  %v2378_v14 = vpop.permute.xlu0 %2377  ;;  %v2469_v52 = vsel %vm2461_vm9, %v12366_v7, %v2380_v44  ;;  %v4004_v44 = vld [vmem:[%s16005_s6 + $0x80] sm:$0xff] }
 0x2af   : > { %10434 = vmatprep.subr.bf16.mxu1 %v10433_v61  ;;  %v2468_v50 = vsel %vm2461_vm9, %v12361_v31, %v2378_v14 }
 0x2b1   : > { %9586 = vmatmul.mubr.msk.f32.gmra.mrb[40].mxu1 %vm2461_vm9, %v12366_v7  ;;  %v2384_v40 = vpop.permute.xlu1 %2383 }
 0x2b2   : > { %9588 = vmatprep.mubr.msk.f32.mxu1 %vm2461_vm9, %v12395_v8  ;;  %10436 = vmatpush3.bf16.msra.mxu1 %v10433_v61  ;;  %v2382_v11 = vpop.permute.xlu0 %2381  ;;  %v2471_v31 = vsel %vm2461_vm9, %v12399_v41, %v2384_v40 }
 0x2b3   : > { %10438 = vmatprep.subr.bf16.mxu1 %v10437_v26  ;;  %v2470_v35 = vsel %vm2461_vm9, %v12395_v8, %v2382_v11  ;;  %v4005_v11 = vld [vmem:[%s16005_s6 + $0x88] sm:$0xff] }
 0x2b4   : > { %v10449_v40 = vpack.c.bf16 %v4005_v11, %v4004_v44 }
 0x2b5   : > { %9589 = vmatmul.mubr.msk.f32.gmra.mrb[42].mxu1 %vm2461_vm9, %v12399_v41  ;;  %v2388_v60 = vpop.permute.xlu1 %2387 }
 0x2b6   : > { %9591 = vmatprep.mubr.msk.f32.mxu1 %vm2461_vm9, %v12420_v32  ;;  %10440 = vmatpush3.bf16.msra.mxu1 %v10437_v26  ;;  %v2386_v19 = vpop.permute.xlu0 %2385  ;;  %v2473_v7 = vsel %vm2461_vm9, %v12423_v33, %v2388_v60 }
 0x2b7   : > { %9645 = vmatprep.subr.msk.mxu1 %vm3176_vm10, %v3078_v38  ;;  %v2472_v27 = vsel %vm2461_vm9, %v12420_v32, %v2386_v19  ;;  %v4006_v19 = vld [vmem:[%s16005_s6 + $0x90] sm:$0xff] }
 0x2b9   : > { %9592 = vmatmul.mubr.msk.f32.gmra.mrb[44].mxu1 %vm2461_vm9, %v12423_v33  ;;  %v2392_v0 = vpop.permute.xlu1 %2391 }
 0x2ba   : > { %9594 = vmatprep.mubr.msk.f32.mxu1 %vm2461_vm9, %v12444_v25  ;;  %9646 = vmatpush3.msk.msra.mxu1 %vm3176_vm10, %v3078_v38  ;;  %v2390_v47 = vpop.permute.xlu0 %2389  ;;  %v2475_v41 = vsel %vm2461_vm9, %v12447_v42, %v2392_v0  ;;  %v4010_v0 = vld [vmem:[%s16005_s6 + $0xb0] sm:$0xff] }
 0x2bb   : > { %v2474_v8 = vsel %vm2461_vm9, %v12444_v25, %v2390_v47  ;;  %v4009_v47 = vld [vmem:[%s16005_s6 + $0xa8] sm:$0xff] }
 0x2bd   : > { %9595 = vmatmul.mubr.msk.f32.gmra.mrb[46].mxu1 %vm2461_vm9, %v12447_v42  ;;  %v2396_v28 = vpop.permute.xlu1 %2395 }
 0x2be   : > { %9597 = vmatprep.mubr.msk.f32.mxu1 %vm2461_vm9, %v12468_v6  ;;  %v2394_v36 = vpop.permute.xlu0 %2393  ;;  %v2477_v25 = vsel %vm2461_vm9, %v12471_v30, %v2396_v28 }
 0x2bf   : > { %v2476_v17 = vsel %vm2461_vm9, %v12468_v6, %v2394_v36 }
 0x2c1   : > { %9598 = vmatmul.mubr.msk.f32.gmra.mrb[48].mxu1 %vm2461_vm9, %v12471_v30  ;;  %v2400_v24 = vpop.permute.xlu1 %2399 }
 0x2c2   : > { %9600 = vmatprep.mubr.msk.f32.mxu1 %vm2461_vm9, %v12508_v2  ;;  %v2398_v39 = vpop.permute.xlu0 %2397  ;;  %v2479_v42 = vsel %vm2461_vm9, %v12513_v43, %v2400_v24 }
 0x2c3   : > { %v2478_v56 = vsel %vm2461_vm9, %v12508_v2, %v2398_v39 }
 0x2c5   : > { %9601 = vmatmul.mubr.msk.f32.gmra.mrb[50].mxu1 %vm2461_vm9, %v12513_v43  ;;  %v2404_v13 = vpop.permute.xlu1 %2403 }
 0x2c6   : > { %9603 = vmatprep.mubr.msk.f32.mxu1 %vm2461_vm9, %v12532_v1  ;;  %v2402_v62 = vpop.permute.xlu0 %2401  ;;  %v2481_v30 = vsel %vm2461_vm9, %v12537_v46, %v2404_v13 }
 0x2c7   : > { %v2480_v6 = vsel %vm2461_vm9, %v12532_v1, %v2402_v62 }
 0x2c9   : > { %9604 = vmatmul.mubr.msk.f32.gmra.mrb[52].mxu1 %vm2461_vm9, %v12537_v46  ;;  %v2408_v33 = vpop.permute.xlu1 %2407 }
 0x2ca   : > { %9606 = vmatprep.mubr.msk.f32.mxu1 %vm2461_vm9, %v12556_v37  ;;  %v2406_v32 = vpop.permute.xlu0 %2405  ;;  %v2483_v1 = vsel %vm2461_vm9, %v12559_v22, %v2408_v33 }
 0x2cb   : > { %v2482_v49 = vsel %vm2461_vm9, %v12556_v37, %v2406_v32 }
 0x2cd   : > { %9607 = vmatmul.mubr.msk.f32.gmra.mrb[54].mxu1 %vm2461_vm9, %v12559_v22  ;;  %v2412_v23 = vpop.permute.xlu1 %2411 }
 0x2ce   : > { %9609 = vmatprep.mubr.msk.f32.mxu1 %vm2461_vm9, %v12572_v51  ;;  %v2410_v61 = vpop.permute.xlu0 %2409  ;;  %v2485_v46 = vsel %vm2461_vm9, %v12575_v53, %v2412_v23 }
 0x2cf   : > { %v2484_v26 = vsel %vm2461_vm9, %v12572_v51, %v2410_v61 }
 0x2d1   : > { %9610 = vmatmul.mubr.msk.f32.gmra.mrb[56].mxu1 %vm2461_vm9, %v12575_v53  ;;  %v2416_v43 = vpop.permute.xlu1 %2415 }
 0x2d2   : > { %9612 = vmatprep.mubr.msk.f32.mxu1 %vm2461_vm9, %v12588_v58  ;;  %v2414_v2 = vpop.permute.xlu0 %2413  ;;  %v2487_v22 = vsel %vm2461_vm9, %v12591_v16, %v2416_v43 }
 0x2d3   : > { %v2486_v37 = vsel %vm2461_vm9, %v12588_v58, %v2414_v2 }
 0x2d5   : > { %9613 = vmatmul.mubr.msk.f32.gmra.mrb[58].mxu1 %vm2461_vm9, %v12591_v16  ;;  %v2420_v45 = vpop.permute.xlu1 %2419 }
 0x2d6   : > { %9615 = vmatprep.mubr.msk.f32.mxu1 %vm2461_vm9, %v12604_v15  ;;  %v2418_v38 = vpop.permute.xlu0 %2417  ;;  %v2489_v58 = vsel %vm2461_vm9, %v12607_v29, %v2420_v45 }
 0x2d7   : > { %v2488_v55 = vsel %vm2461_vm9, %v12604_v15, %v2418_v38 }
 0x2d9   : > { %9616 = vmatmul.mubr.msk.f32.gmra.mrb[60].mxu1 %vm2461_vm9, %v12607_v29  ;;  %v2424_v53 = vpop.permute.xlu1 %2423 }
 0x2da   : > { %9618 = vmatprep.mubr.msk.f32.mxu1 %vm2461_vm9, %v12620_v20  ;;  %v2422_v51 = vpop.permute.xlu0 %2421  ;;  %v2491_v16 = vsel %vm2461_vm9, %v12623_v3, %v2424_v53 }
 0x2db   : > { %v2490_v57 = vsel %vm2461_vm9, %v12620_v20, %v2422_v51  ;;  %v4000_v20 = vld [vmem:[%s16005_s6 + $0x60] sm:$0xff] }
 0x2dd   : > { %9619 = vmatmul.mubr.msk.f32.gmra.mrb[62].mxu1 %vm2461_vm9, %v12623_v3  ;;  %v2428_v15 = vpop.permute.xlu1 %2427  ;;  %v4001_v3 = vld [vmem:[%s16005_s6 + $0x68] sm:$0xff] }
 0x2de   : > { %9647 = vmatprep.mubr.msk.f32.mxu1 %vm3079_vm11, %v2462_v12  ;;  %v2426_v9 = vpop.permute.xlu0 %2425  ;;  %v2493_v29 = vsel %vm2461_vm9, %v12639_v54, %v2428_v15  ;;  %v10441_v21 = vpack.c.bf16 %v4001_v3, %v4000_v20  ;;  %v4003_v54 = vld [vmem:[%s16005_s6 + $0x78] sm:$0xff] }
 0x2df   : > { %v2492_v34 = vsel %vm2461_vm9, %v12636_v10, %v2426_v9  ;;  %v4002_v10 = vld [vmem:[%s16005_s6 + $0x70] sm:$0xff]  ;;  %v4007_v12 = vld [vmem:[%s16005_s6 + $0x98] sm:$0xff] }
 0x2e0   : > { %10442 = vmatprep.subr.bf16.mxu0 %v10441_v21  ;;  %v10445_v14 = vpack.c.bf16 %v4003_v54, %v4002_v10  ;;  %v10453_v60 = vpack.c.bf16 %v4007_v12, %v4006_v19 }
 0x2e1   : > { %9648 = vmatmul.mubr.msk.f32.vlgmr.msra.gmra.mrb[32].mxu1 %vm3079_vm11, %v2463_v18  ;;  %10444 = vmatpush3.bf16.msra.mxu0 %v10441_v21  ;;  %v4008_v18 = vld [vmem:[%s16005_s6 + $0xa0] sm:$0xff] }
 0x2e2   : > { %9650 = vmatprep.mubr.msk.f32.mxu1 %vm3079_vm11, %v2464_v48  ;;  %10446 = vmatprep.subr.bf16.mxu0 %v10445_v14  ;;  %v10457_v48 = vpack.c.bf16 %v4009_v47, %v4008_v18 }
 0x2e5   : > { %9651 = vmatmul.mubr.msk.f32.gmra.mrb[34].mxu1 %vm3079_vm11, %v2465_v59  ;;  %10448 = vmatpush3.bf16.msra.mxu0 %v10445_v14  ;;  %v4011_v59 = vld [vmem:[%s16005_s6 + $0xb8] sm:$0xff] }
 0x2e6   : > { %9653 = vmatprep.mubr.msk.f32.mxu1 %vm3079_vm11, %v2466_v63  ;;  %10450 = vmatprep.subr.bf16.mxu0 %v10449_v40  ;;  %v12890_v63 = vld [vmem:[%s16004_s5] ss:$0 sm:$0xff]  ;;  %v10461_v36 = vpack.c.bf16 %v4011_v59, %v4010_v0 }
 0x2e9   : > { %9654 = vmatmul.mubr.msk.f32.gmra.mrb[36].mxu1 %vm3079_vm11, %v2467_v4  ;;  %10452 = vmatpush3.bf16.msra.mxu0 %v10449_v40 }
 0x2ea   : > { %9656 = vmatprep.mubr.msk.f32.mxu1 %vm3079_vm11, %v2468_v50  ;;  %10454 = vmatprep.subr.bf16.mxu0 %v10453_v60 }
 0x2ed   : > { %9657 = vmatmul.mubr.msk.f32.gmra.mrb[38].mxu1 %vm3079_vm11, %v2469_v52  ;;  %10456 = vmatpush3.bf16.msra.mxu0 %v10453_v60 }
 0x2ee   : > { %9659 = vmatprep.mubr.msk.f32.mxu1 %vm3079_vm11, %v2470_v35  ;;  %10458 = vmatprep.subr.bf16.mxu0 %v10457_v48 }
 0x2f1   : > { %9660 = vmatmul.mubr.msk.f32.gmra.mrb[40].mxu1 %vm3079_vm11, %v2471_v31  ;;  %10460 = vmatpush3.bf16.msra.mxu0 %v10457_v48 }
 0x2f2   : > { %9662 = vmatprep.mubr.msk.f32.mxu1 %vm3079_vm11, %v2472_v27  ;;  %10462 = vmatprep.subr.bf16.mxu0 %v10461_v36 }
 0x2f5   : > { %9663 = vmatmul.mubr.msk.f32.gmra.mrb[42].mxu1 %vm3079_vm11, %v2473_v7  ;;  %10464 = vmatpush3.bf16.msra.mxu0 %v10461_v36 }
 0x2f6   : > { %9665 = vmatprep.mubr.msk.f32.mxu1 %vm3079_vm11, %v2474_v8 }
 0x2f9   : > { %9666 = vmatmul.mubr.msk.f32.gmra.mrb[44].mxu1 %vm3079_vm11, %v2475_v41 }
 0x2fa   : > { %9668 = vmatprep.mubr.msk.f32.mxu1 %vm3079_vm11, %v2476_v17 }
 0x2fd   : > { %9669 = vmatmul.mubr.msk.f32.gmra.mrb[46].mxu1 %vm3079_vm11, %v2477_v25 }
 0x2fe   : > { %9671 = vmatprep.mubr.msk.f32.mxu1 %vm3079_vm11, %v2478_v56 }
 0x301   : > { %9672 = vmatmul.mubr.msk.f32.gmra.mrb[48].mxu1 %vm3079_vm11, %v2479_v42 }
 0x302   : > { %9674 = vmatprep.mubr.msk.f32.mxu1 %vm3079_vm11, %v2480_v6 }
 0x305   : > { %9675 = vmatmul.mubr.msk.f32.gmra.mrb[50].mxu1 %vm3079_vm11, %v2481_v30 }
 0x306   : > { %9677 = vmatprep.mubr.msk.f32.mxu1 %vm3079_vm11, %v2482_v49 }
 0x309   : > { %9678 = vmatmul.mubr.msk.f32.gmra.mrb[52].mxu1 %vm3079_vm11, %v2483_v1 }
 0x30a   : > { %9680 = vmatprep.mubr.msk.f32.mxu1 %vm3079_vm11, %v2484_v26 }
 0x30d   : > { %9681 = vmatmul.mubr.msk.f32.gmra.mrb[54].mxu1 %vm3079_vm11, %v2485_v46 }
 0x30e   : > { %9683 = vmatprep.mubr.msk.f32.mxu1 %vm3079_vm11, %v2486_v37 }
 0x311   : > { %9684 = vmatmul.mubr.msk.f32.gmra.mrb[56].mxu1 %vm3079_vm11, %v2487_v22 }
 0x312   : > { %9686 = vmatprep.mubr.msk.f32.mxu1 %vm3079_vm11, %v2488_v55 }
 0x315   : > { %9687 = vmatmul.mubr.msk.f32.gmra.mrb[58].mxu1 %vm3079_vm11, %v2489_v58 }
 0x316   : > { %9689 = vmatprep.mubr.msk.f32.mxu1 %vm3079_vm11, %v2490_v57 }
 0x319   : > { %9690 = vmatmul.mubr.msk.f32.gmra.mrb[60].mxu1 %vm3079_vm11, %v2491_v16 }
 0x31a   : > { %9692 = vmatprep.mubr.msk.f32.mxu1 %vm3079_vm11, %v2492_v34 }
 0x31d   : > { %9693 = vmatmul.mubr.msk.f32.gmra.mrb[62].mxu1 %vm3079_vm11, %v2493_v29 }
 0x3b4   : > { %v9649_v4 = vpop.f32.mrb[32].mxu1 }
 0x3b5   : > { %v12893_v50 = vadd.f32 %v9649_v4, %v12890_v63  ;;  %v3246_v28 = vpop.f32.mrb[33].mxu1 }
 0x3b6   : > { %v12896_v52 = vadd.f32 %v12890_v63, %v3246_v28 }
 0x3b8   : > { %v9652_v39 = vpop.f32.mrb[34].mxu1 }
 0x3b9   : > { %v3447_v35 = vadd.f32 %v9652_v39, %v12890_v63  ;;  %v3256_v24 = vpop.f32.mrb[35].mxu1 }
 0x3ba   : > { %v3446_v31 = vadd.f32 %v12890_v63, %v3256_v24 }
 0x3bb   : > { %v12900_v27 = vmax.f32 %v3447_v35, 0.0 }
 0x3bc   : > { %v12902_v62 = vmax.f32 %v3446_v31, 0.0  ;;  %v9655_v7 = vpop.f32.mrb[36].mxu1 }
 0x3bd   : > { %v3449_v8 = vadd.f32 %v9655_v7, %v12890_v63  ;;  %3722 = vrot.lane.b32.xlu1 %v12900_v27, %s11129_s27  ;;  %v3266_v13 = vpop.f32.mrb[37].mxu1  ;;  %v3640_v41 = vrot.slane %v12900_v27, 1  ;;  %v3544_v32 = vrot.slane %v12900_v27, 7 }
 0x3be   : > { %v3448_v17 = vadd.f32 %v12890_v63, %v3266_v13  ;;  %3720 = vrot.lane.b32.xlu0 %v12902_v62, %s11129_s27  ;;  %v3639_v33 = vrot.slane %v12902_v62, 1  ;;  %v16030_v25 = vrot.slane %v12902_v62, 7 }
 0x3bf   : > { %v12916_v61 = vmax.f32 %v3449_v8, 0.0  ;;  %v3701_v42 = vsel %vm635_vm3, %v3640_v41, 0.0 }
 0x3c0   : > { %v12919_v6 = vmax.f32 %v3448_v17, 0.0  ;;  %v9658_v23 = vpop.f32.mrb[38].mxu1  ;;  %v3641_v30 = vsel %vm635_vm3, %v3639_v33, %v3640_v41  ;;  %v12925_v2 = vsel %vm538_vm0, %v16030_v25, %v3544_v32 }
 0x3c1   : > { %v3451_v49 = vadd.f32 %v9658_v23, %v12890_v63  ;;  %3834 = vrot.lane.b32.xlu1 %v3701_v42, %s11130_s28  ;;  %v3276_v43 = vpop.f32.mrb[39].mxu1  ;;  %v3643_v1 = vrot.slane %v12916_v61, 1  ;;  %v3547_v26 = vrot.slane %v12916_v61, 7 }
 0x3c2   : > { %v3450_v38 = vadd.f32 %v12890_v63, %v3276_v43  ;;  %3832 = vrot.lane.b32.xlu0 %v3641_v30, %s11130_s28  ;;  %v3642_v46 = vrot.slane %v12919_v6, 1  ;;  %v16028_v37 = vrot.slane %v12919_v6, 7 }
 0x3c3   : > { %v12937_v22 = vmax.f32 %v3451_v49, 0.0  ;;  %v3702_v14 = vsel %vm635_vm3, %v3643_v1, 0.0 }
 0x3c4   : > { %v12939_v51 = vmax.f32 %v3450_v38, 0.0  ;;  %v9661_v55 = vpop.f32.mrb[40].mxu1  ;;  %v3644_v53 = vsel %vm635_vm3, %v3642_v46, %v3643_v1  ;;  %v12945_v58 = vsel %vm538_vm0, %v16028_v37, %v3547_v26 }
 0x3c5   : > { %v3453_v57 = vadd.f32 %v9661_v55, %v12890_v63  ;;  %3726 = vrot.lane.b32.xlu1 %v12916_v61, %s11129_s27  ;;  %v3286_v9 = vpop.f32.mrb[41].mxu1  ;;  %v3646_v16 = vrot.slane %v12937_v22, 1  ;;  %v3550_v15 = vrot.slane %v12937_v22, 7 }
 0x3c6   : > { %v3452_v34 = vadd.f32 %v12890_v63, %v3286_v9  ;;  %3724 = vrot.lane.b32.xlu0 %v12919_v6, %s11129_s27  ;;  %v3645_v29 = vrot.slane %v12939_v51, 1  ;;  %v16027_v20 = vrot.slane %v12939_v51, 7 }
 0x3c7   : > { %v12959_v21 = vmax.f32 %v3453_v57, 0.0  ;;  %v3703_v23 = vsel %vm635_vm3, %v3646_v16, 0.0 }
 0x3c8   : > { %v12961_v10 = vmax.f32 %v3452_v34, 0.0  ;;  %v9664_v54 = vpop.f32.mrb[42].mxu1  ;;  %v3647_v44 = vsel %vm635_vm3, %v3645_v29, %v3646_v16  ;;  %v12968_v11 = vsel %vm538_vm0, %v16027_v20, %v3550_v15 }
 0x3c9   : > { %v3455_v40 = vadd.f32 %v9664_v54, %v12890_v63  ;;  %3838 = vrot.lane.b32.xlu1 %v3702_v14, %s11130_s28  ;;  %v3296_v19 = vpop.f32.mrb[43].mxu1  ;;  %v3649_v12 = vrot.slane %v12959_v21, 1  ;;  %v3553_v60 = vrot.slane %v12959_v21, 7 }
 0x3ca   : > { %v3454_v18 = vadd.f32 %v12890_v63, %v3296_v19  ;;  %3836 = vrot.lane.b32.xlu0 %v3644_v53, %s11130_s28  ;;  %v3648_v47 = vrot.slane %v12961_v10, 1  ;;  %v16025_v48 = vrot.slane %v12961_v10, 7 }
 0x3cb   : > { %v12980_v59 = vmax.f32 %v3455_v40, 0.0 }
 0x3cc   : > { %v12982_v36 = vmax.f32 %v3454_v18, 0.0  ;;  %v9667_v4 = vpop.f32.mrb[44].mxu1  ;;  %v3650_v28 = vsel %vm635_vm3, %v3648_v47, %v3649_v12  ;;  %v12988_v39 = vsel %vm538_vm0, %v16025_v48, %v3553_v60 }
 0x3cd   : > { %v3457_v35 = vadd.f32 %v9667_v4, %v12890_v63  ;;  %3730 = vrot.lane.b32.xlu1 %v12937_v22, %s11129_s27  ;;  %v3306_v24 = vpop.f32.mrb[45].mxu1  ;;  %v3652_v31 = vrot.slane %v12980_v59, 1  ;;  %v3556_v7 = vrot.slane %v12980_v59, 7 }
 0x3ce   : > { %v3456_v8 = vadd.f32 %v12890_v63, %v3306_v24  ;;  %3728 = vrot.lane.b32.xlu0 %v12939_v51, %s11129_s27  ;;  %v3651_v13 = vrot.slane %v12982_v36, 1  ;;  %v16024_v41 = vrot.slane %v12982_v36, 7 }
 0x3cf   : > { %v13002_v17 = vmax.f32 %v3457_v35, 0.0  ;;  %v3705_v57 = vsel %vm635_vm3, %v3652_v31, 0.0 }
 0x3d0   : > { %v13004_v33 = vmax.f32 %v3456_v8, 0.0  ;;  %v9670_v42 = vpop.f32.mrb[46].mxu1  ;;  %v13010_v30 = vsel %vm635_vm3, %v3651_v13, %v3652_v31  ;;  %v13015_v49 = vsel %vm538_vm0, %v16024_v41, %v3556_v7  ;;  %v3704_v7 = vsel %vm635_vm3, %v3649_v12, 0.0 }
 0x3d1   : > { %16101 = vst [vmem:[#allocation2_spill] sm:$0xff] %v13002_v17  ;;  %v3459_v43 = vadd.f32 %v9670_v42, %v12890_v63  ;;  %3842 = vrot.lane.b32.xlu1 %v3703_v23, %s11130_s28  ;;  %v3316_v1 = vpop.f32.mrb[47].mxu1  ;;  %v3655_v26 = vrot.slane %v13002_v17, 1  ;;  %v3559_v38 = vrot.slane %v13002_v17, 7 }
 0x3d2   : > { %v3458_v46 = vadd.f32 %v12890_v63, %v3316_v1  ;;  %3840 = vrot.lane.b32.xlu0 %v3647_v44, %s11130_s28  ;;  %v3654_v55 = vrot.slane %v13004_v33, 1  ;;  %v16023_v53 = vrot.slane %v13004_v33, 7 }
 0x3d3   : > { %v13027_v9 = vmax.f32 %v3459_v43, 0.0 }
 0x3d4   : > { %v13029_v16 = vmax.f32 %v3458_v46, 0.0  ;;  %v9673_v15 = vpop.f32.mrb[48].mxu1  ;;  %v13034_v34 = vsel %vm635_vm3, %v3654_v55, %v3655_v26  ;;  %v13039_v29 = vsel %vm538_vm0, %v16023_v53, %v3559_v38 }
 0x3d5   : > { %v3461_v54 = vadd.f32 %v9673_v15, %v12890_v63  ;;  %3734 = vrot.lane.b32.xlu1 %v12959_v21, %s11129_s27  ;;  %v3326_v14 = vpop.f32.mrb[49].mxu1  ;;  %v3658_v44 = vrot.slane %v13027_v9, 1  ;;  %v3562_v40 = vrot.slane %v13027_v9, 7 }
 0x3d6   : > { %v3460_v19 = vadd.f32 %v12890_v63, %v3326_v14  ;;  %3732 = vrot.lane.b32.xlu0 %v12961_v10, %s11129_s27  ;;  %v3657_v60 = vrot.slane %v13029_v16, 1  ;;  %v16022_v18 = vrot.slane %v13029_v16, 7 }
 0x3d7   : > { %v13053_v4 = vmax.f32 %v3461_v54, 0.0 }
 0x3d8   : > { %v13055_v35 = vmax.f32 %v3460_v19, 0.0  ;;  %v9676_v24 = vpop.f32.mrb[50].mxu1  ;;  %v13061_v8 = vsel %vm635_vm3, %v3657_v60, %v3658_v44  ;;  %v13066_v13 = vsel %vm538_vm0, %v16022_v18, %v3562_v40  ;;  %v3706_v18 = vsel %vm635_vm3, %v3655_v26, 0.0 }
 0x3d9   : > { %16102 = vst [vmem:[#allocation3_spill] sm:$0xff] %v13053_v4  ;;  %v3463_v42 = vadd.f32 %v9676_v24, %v12890_v63  ;;  %3846 = vrot.lane.b32.xlu1 %v3704_v7, %s11130_s28  ;;  %v3336_v23 = vpop.f32.mrb[51].mxu1  ;;  %v16035_v43 = vrot.slane %v13053_v4, 1  ;;  %v3565_v1 = vrot.slane %v13053_v4, 7 }
 0x3da   : > { %16103 = vst [vmem:[#allocation4_spill] sm:$0xff] %v13055_v35  ;;  %v3462_v12 = vadd.f32 %v12890_v63, %v3336_v23  ;;  %3844 = vrot.lane.b32.xlu0 %v3650_v28, %s11130_s28  ;;  %v3660_v38 = vrot.slane %v13055_v35, 1  ;;  %v16021_v46 = vrot.slane %v13055_v35, 7 }
 0x3db   : > { %v13078_v15 = vmax.f32 %v3463_v42, 0.0 }
 0x3dc   : > { %v13080_v54 = vmax.f32 %v3462_v12, 0.0  ;;  %v9679_v14 = vpop.f32.mrb[52].mxu1  ;;  %v13085_v40 = vsel %vm635_vm3, %v3660_v38, %v16035_v43  ;;  %v13090_v28 = vsel %vm538_vm0, %v16021_v46, %v3565_v1 }
 0x3dd   : > { %v3465_v19 = vadd.f32 %v9679_v14, %v12890_v63  ;;  %3738 = vrot.lane.b32.xlu1 %v12980_v59, %s11129_s27  ;;  %v3346_v60 = vpop.f32.mrb[53].mxu1  ;;  %v16034_v24 = vrot.slane %v13078_v15, 1  ;;  %v3568_v7 = vrot.slane %v13078_v15, 7 }
 0x3de   : > { %16104 = vst [vmem:[#allocation5_spill] sm:$0xff] %v13080_v54  ;;  %v3464_v42 = vadd.f32 %v12890_v63, %v3346_v60  ;;  %3736 = vrot.lane.b32.xlu0 %v12982_v36, %s11129_s27  ;;  %v3663_v23 = vrot.slane %v13080_v54, 1  ;;  %v16020_v1 = vrot.slane %v13080_v54, 7 }
 0x3df   : > { %v13104_v38 = vmax.f32 %v3465_v19, 0.0 }
 0x3e0   : > { %v13106_v14 = vmax.f32 %v3464_v42, 0.0  ;;  %v9682_v55 = vpop.f32.mrb[54].mxu1  ;;  %v13114_v60 = vsel %vm635_vm3, %v3663_v23, %v16034_v24  ;;  %v13119_v47 = vsel %vm538_vm0, %v16020_v1, %v3568_v7  ;;  %v3707_v24 = vsel %vm635_vm3, %v3658_v44, 0.0 }
 0x3e1   : > { %16105 = vst [vmem:[#allocation6_spill] sm:$0xff] %v13104_v38  ;;  %v3467_v19 = vadd.f32 %v9682_v55, %v12890_v63  ;;  %3850 = vrot.lane.b32.xlu1 %v3705_v57, %s11130_s28  ;;  %v3356_v42 = vpop.f32.mrb[55].mxu1  ;;  %v16033_v12 = vrot.slane %v13104_v38, 1  ;;  %v3571_v0 = vrot.slane %v13104_v38, 7 }
 0x3e2   : > { %16106 = vst [vmem:[#allocation7_spill] sm:$0xff] %v13106_v14  ;;  %v3466_v31 = vadd.f32 %v12890_v63, %v3356_v42  ;;  %3848 = vrot.lane.b32.xlu0 %v13010_v30, %s11130_s28  ;;  %v3666_v23 = vrot.slane %v13106_v14, 1  ;;  %v16019_v32 = vrot.slane %v13106_v14, 7 }
 0x3e3   : > { %v13132_v55 = vmax.f32 %v3467_v19, 0.0 }
 0x3e4   : > { %v13134_v57 = vmax.f32 %v3466_v31, 0.0  ;;  %v9685_v45 = vpop.f32.mrb[56].mxu1  ;;  %v13139_v3 = vsel %vm635_vm3, %v3666_v23, %v16033_v12  ;;  %v13144_v30 = vsel %vm538_vm0, %v16019_v32, %v3571_v0 }
 0x3e5   : > { %16107 = vst [vmem:[#allocation8_spill] sm:$0xff] %v13132_v55  ;;  %v3469_v42 = vadd.f32 %v9685_v45, %v12890_v63  ;;  %3742 = vrot.lane.b32.xlu1 %v13002_v17, %s11129_s27  ;;  %v3366_v19 = vpop.f32.mrb[57].mxu1  ;;  %v16032_v31 = vrot.slane %v13132_v55, 1  ;;  %v3574_v7 = vrot.slane %v13132_v55, 7 }
 0x3e6   : > { %16108 = vst [vmem:[#allocation9_spill] sm:$0xff] %v13134_v57  ;;  %v3468_v56 = vadd.f32 %v12890_v63, %v3366_v19  ;;  %3740 = vrot.lane.b32.xlu0 %v13004_v33, %s11129_s27  ;;  %v3669_v23 = vrot.slane %v13134_v57, 1  ;;  %v16026_v0 = vrot.slane %v13134_v57, 7 }
 0x3e7   : > { %v13158_v32 = vmax.f32 %v3469_v42, 0.0 }
 0x3e8   : > { %v13160_v1 = vmax.f32 %v3468_v56, 0.0  ;;  %v9688_v46 = vpop.f32.mrb[58].mxu1  ;;  %v13168_v19 = vsel %vm635_vm3, %v3669_v23, %v16032_v31  ;;  %v13173_v53 = vsel %vm538_vm0, %v16026_v0, %v3574_v7 }
 0x3e9   : > { %16109 = vst [vmem:[#allocation10_spill] sm:$0xff] %v13158_v32  ;;  %v3471_v42 = vadd.f32 %v9688_v46, %v12890_v63  ;;  %3854 = vrot.lane.b32.xlu1 %v3706_v18, %s11130_s28  ;;  %v3376_v56 = vpop.f32.mrb[59].mxu1  ;;  %v16031_v45 = vrot.slane %v13158_v32, 1  ;;  %v3577_v41 = vrot.slane %v13158_v32, 7 }
 0x3ea   : > { %16110 = vst [vmem:[#allocation11_spill] sm:$0xff] %v13160_v1  ;;  %v3470_v26 = vadd.f32 %v12890_v63, %v3376_v56  ;;  %3852 = vrot.lane.b32.xlu0 %v13034_v34, %s11130_s28  ;;  %v3672_v23 = vrot.slane %v13160_v1, 1  ;;  %v16029_v48 = vrot.slane %v13160_v1, 7 }
 0x3eb   : > { %v13186_v46 = vmax.f32 %v3471_v42, 0.0 }
 0x3ec   : > { %v13188_v18 = vmax.f32 %v3470_v26, 0.0  ;;  %v9691_v0 = vpop.f32.mrb[60].mxu1  ;;  %v13193_v20 = vsel %vm635_vm3, %v3672_v23, %v16031_v45  ;;  %v13198_v34 = vsel %vm538_vm0, %v16029_v48, %v3577_v41  ;;  %v3988_v41 = vld [vmem:[%s16005_s6] sm:$0xff] }
 0x3ed   : > { %16111 = vst [vmem:[#allocation12_spill] sm:$0xff] %v13186_v46  ;;  %v3473_v56 = vadd.f32 %v9691_v0, %v12890_v63  ;;  %3746 = vrot.lane.b32.xlu1 %v13027_v9, %s11129_s27  ;;  %v3386_v42 = vpop.f32.mrb[61].mxu1  ;;  %v16039_v26 = vrot.slane %v13186_v46, 1  ;;  %v3580_v7 = vrot.slane %v13186_v46, 7  ;;  %v3989_v0 = vld [vmem:[%s16005_s6 + $0x8] sm:$0xff] }
 0x3ee   : > { %16112 = vst [vmem:[#allocation13_spill] sm:$0xff] %v13188_v18  ;;  %v3472_v37 = vadd.f32 %v12890_v63, %v3386_v42  ;;  %3744 = vrot.lane.b32.xlu0 %v13029_v16, %s11129_s27  ;;  %v3675_v23 = vrot.slane %v13188_v18, 1  ;;  %v16037_v48 = vrot.slane %v13188_v18, 7  ;;  %v13220_v42 = vpack.c.bf16 %v3989_v0, %v3988_v41 }
 0x3ef   : > { %v13218_v45 = vmax.f32 %v3473_v56, 0.0 }
 0x3f0   : > { %v13222_v31 = vmax.f32 %v3472_v37, 0.0  ;;  %v9694_v12 = vpop.f32.mrb[62].mxu1  ;;  %v3677_v43 = vsel %vm635_vm3, %v3675_v23, %v16039_v26  ;;  %v13233_v17 = vsel %vm538_vm0, %v16037_v48, %v3580_v7  ;;  %10466 = vmatprep.subr.bf16.mxu0 %v13220_v42 }
 0x3f1   : > { %16113 = vst [vmem:[#allocation14_spill] sm:$0xff] %v13218_v45  ;;  %v3475_v56 = vadd.f32 %v9694_v12, %v12890_v63  ;;  %3858 = vrot.lane.b32.xlu1 %v3707_v24, %s11130_s28  ;;  %v3396_v37 = vpop.f32.mrb[63].mxu1  ;;  %v3679_v41 = vrot.slane %v13218_v45, 1  ;;  %v3583_v44 = vrot.slane %v13218_v45, 7 }
 0x3f2   : > { %16114 = vst [vmem:[#allocation15_spill] sm:$0xff] %v13222_v31  ;;  %v3474_v0 = vadd.f32 %v12890_v63, %v3396_v37  ;;  %3856 = vrot.lane.b32.xlu0 %v13061_v8, %s11130_s28  ;;  %v3678_v23 = vrot.slane %v13222_v31, 1  ;;  %v16038_v7 = vrot.slane %v13222_v31, 7 }
 0x3f3   : > { %v13247_v24 = vmax.f32 %v3475_v56, 0.0 }
 0x3f4   : > { %v13249_v25 = vmax.f32 %v3474_v0, 0.0  ;;  %v3680_v48 = vsel %vm635_vm3, %v3678_v23, %v3679_v41  ;;  %v13255_v63 = vsel %vm538_vm0, %v16038_v7, %v3583_v44  ;;  %v16117_v44 = vrot.slane %v13053_v4, 1 }
 0x3f5   : > { %16115 = vst [vmem:[#allocation16_spill] sm:$0xff] %v13247_v24  ;;  %3750 = vrot.lane.b32.xlu1 %v13053_v4, %s11129_s27  ;;  %v3682_v8 = vrot.slane %v13247_v24, 1  ;;  %v3586_v37 = vrot.slane %v13247_v24, 7 }
 0x3f6   : > { %16116 = vst [vmem:[#allocation17_spill] sm:$0xff] %v13249_v25  ;;  %3748 = vrot.lane.b32.xlu0 %v13055_v35, %s11129_s27  ;;  %v3681_v56 = vrot.slane %v13249_v25, 1  ;;  %v16040_v0 = vrot.slane %v13249_v25, 7  ;;  %v3708_v12 = vsel %vm635_vm3, %v16117_v44, 0.0  ;;  %v16118_v44 = vrot.slane %v13078_v15, 1 }
 0x3f8   : > { %v3683_v7 = vsel %vm635_vm3, %v3681_v56, %v3682_v8  ;;  %v13274_v26 = vsel %vm538_vm0, %v16040_v0, %v3586_v37  ;;  %v3709_v56 = vsel %vm635_vm3, %v16118_v44, 0.0 }
 0x3f9   : > { %3862 = vrot.lane.b32.xlu1 %v3708_v12, %s11130_s28 }
 0x3fa   : > { %3860 = vrot.lane.b32.xlu0 %v13085_v40, %s11130_s28  ;;  %v16119_v40 = vrot.slane %v13104_v38, 1 }
 0x3fc   : > { %v3710_v12 = vsel %vm635_vm3, %v16119_v40, 0.0 }
 0x3fd   : > { %3754 = vrot.lane.b32.xlu1 %v13078_v15, %s11129_s27 }
 0x3fe   : > { %3752 = vrot.lane.b32.xlu0 %v13080_v54, %s11129_s27 }
 0x401   : > { %3866 = vrot.lane.b32.xlu1 %v3709_v56, %s11130_s28 }
 0x402   : > { %3864 = vrot.lane.b32.xlu0 %v13114_v60, %s11130_s28  ;;  %v16120_v60 = vrot.slane %v13132_v55, 1 }
 0x404   : > { %v3711_v37 = vsel %vm635_vm3, %v16120_v60, 0.0  ;;  %v3715_v60 = vsel %vm635_vm3, %v3682_v8, 0.0 }
 0x405   : > { %3758 = vrot.lane.b32.xlu1 %v13104_v38, %s11129_s27 }
 0x406   : > { %3756 = vrot.lane.b32.xlu0 %v13106_v14, %s11129_s27 }
 0x409   : > { %3870 = vrot.lane.b32.xlu1 %v3710_v12, %s11130_s28 }
 0x40a   : > { %3868 = vrot.lane.b32.xlu0 %v13139_v3, %s11130_s28  ;;  %v16121_v3 = vrot.slane %v13158_v32, 1 }
 0x40c   : > { %v3712_v44 = vsel %vm635_vm3, %v16121_v3, 0.0 }
 0x40d   : > { %3762 = vrot.lane.b32.xlu1 %v13132_v55, %s11129_s27 }
 0x40e   : > { %3760 = vrot.lane.b32.xlu0 %v13134_v57, %s11129_s27 }
 0x411   : > { %3874 = vrot.lane.b32.xlu1 %v3711_v37, %s11130_s28  ;;  %v13344_v37 = vmax.f32 %v12896_v52, 0.0 }
 0x412   : > { %3872 = vrot.lane.b32.xlu0 %v13168_v19, %s11130_s28  ;;  %v16122_v19 = vrot.slane %v13186_v46, 1 }
 0x414   : > { %v3713_v56 = vsel %vm635_vm3, %v16122_v19, 0.0 }
 0x415   : > { %3766 = vrot.lane.b32.xlu1 %v13158_v32, %s11129_s27 }
 0x416   : > { %3764 = vrot.lane.b32.xlu0 %v13160_v1, %s11129_s27 }
 0x419   : > { %3878 = vrot.lane.b32.xlu1 %v3712_v44, %s11130_s28 }
 0x41a   : > { %3876 = vrot.lane.b32.xlu0 %v13193_v20, %s11130_s28  ;;  %v3714_v20 = vsel %vm635_vm3, %v3679_v41, 0.0  ;;  %v3991_v41 = vld [vmem:[%s16005_s6 + $0x18] sm:$0xff] }
 0x41d   : > { %3770 = vrot.lane.b32.xlu1 %v13186_v46, %s11129_s27 }
 0x41e   : > { %3768 = vrot.lane.b32.xlu0 %v13188_v18, %s11129_s27 }
 0x421   : > { %3882 = vrot.lane.b32.xlu1 %v3713_v56, %s11130_s28 }
 0x422   : > { %3880 = vrot.lane.b32.xlu0 %v3677_v43, %s11130_s28  ;;  %v13340_v43 = vmax.f32 %v12893_v50, 0.0  ;;  %v16123_v50 = vrot.slane %v12902_v62, 7 }
 0x424   : > { %v3621_v3 = vsel %vm538_vm0, 0.0, %v16123_v50  ;;  %v3637_v19 = vrot.slane %v13340_v43, 1 }
 0x425   : > { %3774 = vrot.lane.b32.xlu1 %v13218_v45, %s11129_s27 }
 0x426   : > { %3772 = vrot.lane.b32.xlu0 %v13222_v31, %s11129_s27 }
 0x429   : > { %3886 = vrot.lane.b32.xlu1 %v3714_v20, %s11130_s28  ;;  %v3636_v20 = vrot.slane %v13344_v37, 1 }
 0x42a   : > { %3884 = vrot.lane.b32.xlu0 %v3680_v48, %s11130_s28  ;;  %v3990_v48 = vld [vmem:[%s16005_s6 + $0x10] sm:$0xff] }
 0x42d   : > { %3778 = vrot.lane.b32.xlu1 %v13247_v24, %s11129_s27 }
 0x42e   : > { %3776 = vrot.lane.b32.xlu0 %v13249_v25, %s11129_s27 }
 0x42f   : > { %v3723_v40 = vpop.permute.xlu1 %3722 }
 0x430   : > { %v3721_v12 = vpop.permute.xlu0 %3720 }
 0x431   : > { %3890 = vrot.lane.b32.xlu1 %v3715_v60, %s11130_s28  ;;  %v3926_v52 = vsel %vm2299_vm7, %v3621_v3, %v3721_v12  ;;  %v10469_v60 = vpack.c.bf16 %v3991_v41, %v3990_v48  ;;  %v3700_v41 = vsel %vm635_vm3, %v3637_v19, 0.0  ;;  %v3638_v3 = vsel %vm635_vm3, %v3636_v20, %v3637_v19 }
 0x432   : > { %3888 = vrot.lane.b32.xlu0 %v3683_v7, %s11130_s28  ;;  %v3927_v7 = vsel %vm2299_vm7, %v12925_v2, %v3723_v40  ;;  %v3992_v2 = vld [vmem:[%s16005_s6 + $0x20] sm:$0xff]  ;;  %v3993_v40 = vld [vmem:[%s16005_s6 + $0x28] sm:$0xff] }
 0x433   : > { %v3835_v8 = vpop.permute.xlu1 %3834 }
 0x434   : > { %v3833_v44 = vpop.permute.xlu0 %3832  ;;  %v13368_v50 = vsel %vm2332_vm8, %v3927_v7, %v3835_v8  ;;  %v10473_v8 = vpack.c.bf16 %v3993_v40, %v3992_v2  ;;  %v16124_v7 = vrot.slane %v12919_v6, 7 }
 0x435   : > { %v13362_v56 = vsel %vm2332_vm8, %v3926_v52, %v3833_v44  ;;  %3718 = vrot.lane.b32.xlu1 %v13340_v43, %s11129_s27  ;;  %v3994_v52 = vld [vmem:[%s16005_s6 + $0x30] sm:$0xff]  ;;  %v3995_v44 = vld [vmem:[%s16005_s6 + $0x38] sm:$0xff] }
 0x436   : > { %9719 = vmatprep.mubr.msk.f32.mxu0 %vm2461_vm9, %v13362_v56  ;;  %3716 = vrot.lane.b32.xlu0 %v13344_v37, %s11129_s27  ;;  %v10477_v40 = vpack.c.bf16 %v3995_v44, %v3994_v52  ;;  %v3998_v52 = vld [vmem:[%s16005_s6 + $0x50] sm:$0xff]  ;;  %v3999_v44 = vld [vmem:[%s16005_s6 + $0x58] sm:$0xff] }
 0x437   : > { %9720 = vmatmul.mubr.msk.f32.vlgmr.msra.gmra.mrb[32].mxu0 %vm2461_vm9, %v13368_v50  ;;  %v3727_v12 = vpop.permute.xlu1 %3726 }
 0x438   : > { %v3725_v48 = vpop.permute.xlu0 %3724  ;;  %10468 = vmatpush3.bf16.msra.mxu0 %v13220_v42  ;;  %v3622_v42 = vsel %vm538_vm0, 0.0, %v16124_v7  ;;  %v3929_v20 = vsel %vm2299_vm7, %v12945_v58, %v3727_v12  ;;  %v16125_v7 = vrot.slane %v12939_v51, 7 }
 0x439   : > { %3830 = vrot.lane.b32.xlu1 %v3700_v41, %s11130_s28  ;;  %10470 = vmatprep.subr.bf16.mxu0 %v10469_v60  ;;  %v3928_v41 = vsel %vm2299_vm7, %v3622_v42, %v3725_v48  ;;  %v3996_v48 = vld [vmem:[%s16005_s6 + $0x40] sm:$0xff] }
 0x43a   : > { %3828 = vrot.lane.b32.xlu0 %v3638_v3, %s11130_s28  ;;  %v3623_v42 = vsel %vm538_vm0, 0.0, %v16125_v7 }
 0x43b   : > { %v3839_v23 = vpop.permute.xlu1 %3838 }
 0x43c   : > { %v3837_v19 = vpop.permute.xlu0 %3836  ;;  %10472 = vmatpush3.bf16.msra.mxu0 %v10469_v60  ;;  %v13403_v3 = vsel %vm2332_vm8, %v3929_v20, %v3839_v23  ;;  %v3997_v60 = vld [vmem:[%s16005_s6 + $0x48] sm:$0xff] }
 0x43d   : > { %v13400_v2 = vsel %vm2332_vm8, %v3928_v41, %v3837_v19  ;;  %10474 = vmatprep.subr.bf16.mxu0 %v10473_v8  ;;  %v10481_v23 = vpack.c.bf16 %v3997_v60, %v3996_v48  ;;  %v10485_v60 = vpack.c.bf16 %v3999_v44, %v3998_v52  ;;  %v16126_v44 = vrot.slane %v12961_v10, 7 }
 0x43e   : > { %9722 = vmatprep.mubr.msk.f32.mxu0 %vm2461_vm9, %v13400_v2 }
 0x43f   : > { %9723 = vmatmul.mubr.msk.f32.gmra.mrb[34].mxu0 %vm2461_vm9, %v13403_v3  ;;  %v3731_v58 = vpop.permute.xlu1 %3730  ;;  %v3624_v7 = vsel %vm538_vm0, 0.0, %v16126_v44 }
 0x440   : > { %v3729_v12 = vpop.permute.xlu0 %3728  ;;  %10476 = vmatpush3.bf16.msra.mxu0 %v10473_v8  ;;  %v3931_v8 = vsel %vm2299_vm7, %v12968_v11, %v3731_v58 }
 0x441   : > { %10478 = vmatprep.subr.bf16.mxu0 %v10477_v40  ;;  %v3930_v19 = vsel %vm2299_vm7, %v3623_v42, %v3729_v12  ;;  %v4558_v12 = vld [vmem:[%s16005_s6 + $0xc0] sm:$0xff] }
 0x443   : > { %v3843_v41 = vpop.permute.xlu1 %3842 }
 0x444   : > { %v3841_v20 = vpop.permute.xlu0 %3840  ;;  %10480 = vmatpush3.bf16.msra.mxu0 %v10477_v40  ;;  %v13431_v0 = vsel %vm2332_vm8, %v3931_v8, %v3843_v41  ;;  %v4559_v40 = vld [vmem:[%s16005_s6 + $0xc8] sm:$0xff] }
 0x445   : > { %v13428_v48 = vsel %vm2332_vm8, %v3930_v19, %v3841_v20  ;;  %10482 = vmatprep.subr.bf16.mxu0 %v10481_v23  ;;  %v13443_v52 = vpack.c.bf16 %v4559_v40, %v4558_v12 }
 0x446   : > { %9725 = vmatprep.mubr.msk.f32.mxu0 %vm2461_vm9, %v13428_v48 }
 0x447   : > { %9726 = vmatmul.mubr.msk.f32.gmra.mrb[36].mxu0 %vm2461_vm9, %v13431_v0  ;;  %v3735_v11 = vpop.permute.xlu1 %3734 }
 0x448   : > { %v3733_v58 = vpop.permute.xlu0 %3732  ;;  %10484 = vmatpush3.bf16.msra.mxu0 %v10481_v23  ;;  %v3933_v20 = vsel %vm2299_vm7, %v12988_v39, %v3735_v11 }
 0x449   : > { %10486 = vmatprep.subr.bf16.mxu0 %v10485_v60  ;;  %v3932_v41 = vsel %vm2299_vm7, %v3624_v7, %v3733_v58 }
 0x44b   : > { %v3847_v42 = vpop.permute.xlu1 %3846 }
 0x44c   : > { %v3845_v19 = vpop.permute.xlu0 %3844  ;;  %10488 = vmatpush3.bf16.msra.mxu0 %v10485_v60  ;;  %v13456_v23 = vsel %vm2332_vm8, %v3933_v20, %v3847_v42  ;;  %v16127_v60 = vrot.slane %v12982_v36, 7 }
 0x44d   : > { %v13452_v8 = vsel %vm2332_vm8, %v3932_v41, %v3845_v19  ;;  %10490 = vmatprep.subr.bf16.mxu0 %v13443_v52 }
 0x44e   : > { %9728 = vmatprep.mubr.msk.f32.mxu0 %vm2461_vm9, %v13452_v8  ;;  %v3625_v39 = vsel %vm538_vm0, 0.0, %v16127_v60 }
 0x44f   : > { %9729 = vmatmul.mubr.msk.f32.gmra.mrb[38].mxu0 %vm2461_vm9, %v13456_v23  ;;  %v3739_v12 = vpop.permute.xlu1 %3738 }
 0x450   : > { %v3737_v40 = vpop.permute.xlu0 %3736  ;;  %v3935_v7 = vsel %vm2299_vm7, %v13015_v49, %v3739_v12 }
 0x451   : > { %v3934_v58 = vsel %vm2299_vm7, %v3625_v39, %v3737_v40  ;;  %v16128_v40 = vrot.slane %v13004_v33, 7 }
 0x453   : > { %v3851_v11 = vpop.permute.xlu1 %3850  ;;  %v3626_v60 = vsel %vm538_vm0, 0.0, %v16128_v40 }
 0x454   : > { %v3849_v44 = vpop.permute.xlu0 %3848  ;;  %v13472_v41 = vsel %vm2332_vm8, %v3935_v7, %v3851_v11 }
 0x455   : > { %v13469_v42 = vsel %vm2332_vm8, %v3934_v58, %v3849_v44 }
 0x456   : > { %9731 = vmatprep.mubr.msk.f32.mxu0 %vm2461_vm9, %v13469_v42 }
 0x457   : > { %9732 = vmatmul.mubr.msk.f32.gmra.mrb[40].mxu0 %vm2461_vm9, %v13472_v41  ;;  %v3743_v19 = vpop.permute.xlu1 %3742 }
 0x458   : > { %v3741_v20 = vpop.permute.xlu0 %3740  ;;  %v3937_v11 = vsel %vm2299_vm7, %v13039_v29, %v3743_v19 }
 0x459   : > { %v3936_v49 = vsel %vm2299_vm7, %v3626_v60, %v3741_v20  ;;  %v16129_v20 = vrot.slane %v13029_v16, 7 }
 0x45b   : > { %v3855_v39 = vpop.permute.xlu1 %3854  ;;  %v3627_v60 = vsel %vm538_vm0, 0.0, %v16129_v20 }
 0x45c   : > { %v3853_v12 = vpop.permute.xlu0 %3852  ;;  %v13488_v44 = vsel %vm2332_vm8, %v3937_v11, %v3855_v39 }
 0x45d   : > { %v13485_v58 = vsel %vm2332_vm8, %v3936_v49, %v3853_v12 }
 0x45e   : > { %9734 = vmatprep.mubr.msk.f32.mxu0 %vm2461_vm9, %v13485_v58 }
 0x45f   : > { %9735 = vmatmul.mubr.msk.f32.gmra.mrb[42].mxu0 %vm2461_vm9, %v13488_v44  ;;  %v3747_v7 = vpop.permute.xlu1 %3746 }
 0x460   : > { %v3745_v40 = vpop.permute.xlu0 %3744  ;;  %v3939_v39 = vsel %vm2299_vm7, %v13066_v13, %v3747_v7 }
 0x461   : > { %v3938_v29 = vsel %vm2299_vm7, %v3627_v60, %v3745_v40  ;;  %v16130_v40 = vrot.slane %v13055_v35, 7 }
 0x463   : > { %v3859_v45 = vpop.permute.xlu1 %3858  ;;  %v3628_v60 = vsel %vm538_vm0, 0.0, %v16130_v40 }
 0x464   : > { %v3857_v19 = vpop.permute.xlu0 %3856  ;;  %v13504_v12 = vsel %vm2332_vm8, %v3939_v39, %v3859_v45 }
 0x465   : > { %v13501_v49 = vsel %vm2332_vm8, %v3938_v29, %v3857_v19 }
 0x466   : > { %9737 = vmatprep.mubr.msk.f32.mxu0 %vm2461_vm9, %v13501_v49 }
 0x467   : > { %9738 = vmatmul.mubr.msk.f32.gmra.mrb[44].mxu0 %vm2461_vm9, %v13504_v12  ;;  %v3751_v11 = vpop.permute.xlu1 %3750 }
 0x468   : > { %v3749_v20 = vpop.permute.xlu0 %3748  ;;  %v3941_v45 = vsel %vm2299_vm7, %v13090_v28, %v3751_v11 }
 0x469   : > { %v3940_v13 = vsel %vm2299_vm7, %v3628_v60, %v3749_v20  ;;  %v16131_v20 = vrot.slane %v13080_v54, 7 }
 0x46b   : > { %v3863_v24 = vpop.permute.xlu1 %3862  ;;  %v3629_v60 = vsel %vm538_vm0, 0.0, %v16131_v20 }
 0x46c   : > { %v3861_v7 = vpop.permute.xlu0 %3860  ;;  %v13520_v19 = vsel %vm2332_vm8, %v3941_v45, %v3863_v24 }
 0x46d   : > { %v13517_v29 = vsel %vm2332_vm8, %v3940_v13, %v3861_v7 }
 0x46e   : > { %9740 = vmatprep.mubr.msk.f32.mxu0 %vm2461_vm9, %v13517_v29 }
 0x46f   : > { %9741 = vmatmul.mubr.msk.f32.gmra.mrb[46].mxu0 %vm2461_vm9, %v13520_v19  ;;  %v3755_v39 = vpop.permute.xlu1 %3754 }
 0x470   : > { %v3753_v40 = vpop.permute.xlu0 %3752  ;;  %v3943_v24 = vsel %vm2299_vm7, %v13119_v47, %v3755_v39 }
 0x471   : > { %v3942_v28 = vsel %vm2299_vm7, %v3629_v60, %v3753_v40  ;;  %v16132_v40 = vrot.slane %v13106_v14, 7 }
 0x473   : > { %v3867_v32 = vpop.permute.xlu1 %3866  ;;  %v3630_v60 = vsel %vm538_vm0, 0.0, %v16132_v40 }
 0x474   : > { %v3865_v11 = vpop.permute.xlu0 %3864  ;;  %v13536_v7 = vsel %vm2332_vm8, %v3943_v24, %v3867_v32 }
 0x475   : > { %v13533_v13 = vsel %vm2332_vm8, %v3942_v28, %v3865_v11 }
 0x476   : > { %9743 = vmatprep.mubr.msk.f32.mxu0 %vm2461_vm9, %v13533_v13 }
 0x477   : > { %9744 = vmatmul.mubr.msk.f32.gmra.mrb[48].mxu0 %vm2461_vm9, %v13536_v7  ;;  %v3759_v45 = vpop.permute.xlu1 %3758 }
 0x478   : > { %v3757_v20 = vpop.permute.xlu0 %3756  ;;  %v3945_v32 = vsel %vm2299_vm7, %v13144_v30, %v3759_v45 }
 0x479   : > { %v3944_v47 = vsel %vm2299_vm7, %v3630_v60, %v3757_v20  ;;  %v16133_v20 = vrot.slane %v13134_v57, 7  ;;  %v4563_v57 = vld [vmem:[%s16005_s6 + $0xe8] sm:$0xff] }
 0x47b   : > { %v3871_v46 = vpop.permute.xlu1 %3870  ;;  %v3631_v60 = vsel %vm538_vm0, 0.0, %v16133_v20 }
 0x47c   : > { %v3869_v39 = vpop.permute.xlu0 %3868  ;;  %v13552_v11 = vsel %vm2332_vm8, %v3945_v32, %v3871_v46 }
 0x47d   : > { %v13549_v28 = vsel %vm2332_vm8, %v3944_v47, %v3869_v39 }
 0x47e   : > { %9746 = vmatprep.mubr.msk.f32.mxu0 %vm2461_vm9, %v13549_v28 }
 0x47f   : > { %9747 = vmatmul.mubr.msk.f32.gmra.mrb[50].mxu0 %vm2461_vm9, %v13552_v11  ;;  %v3763_v24 = vpop.permute.xlu1 %3762 }
 0x480   : > { %v3761_v40 = vpop.permute.xlu0 %3760  ;;  %v3947_v46 = vsel %vm2299_vm7, %v13173_v53, %v3763_v24 }
 0x481   : > { %v3946_v30 = vsel %vm2299_vm7, %v3631_v60, %v3761_v40  ;;  %v16134_v40 = vrot.slane %v13160_v1, 7 }
 0x483   : > { %v3875_v14 = vpop.permute.xlu1 %3874  ;;  %v3632_v60 = vsel %vm538_vm0, 0.0, %v16134_v40 }
 0x484   : > { %v3873_v45 = vpop.permute.xlu0 %3872  ;;  %v13568_v39 = vsel %vm2332_vm8, %v3947_v46, %v3875_v14 }
 0x485   : > { %v13565_v47 = vsel %vm2332_vm8, %v3946_v30, %v3873_v45 }
 0x486   : > { %9749 = vmatprep.mubr.msk.f32.mxu0 %vm2461_vm9, %v13565_v47 }
 0x487   : > { %9750 = vmatmul.mubr.msk.f32.gmra.mrb[52].mxu0 %vm2461_vm9, %v13568_v39  ;;  %v3767_v32 = vpop.permute.xlu1 %3766 }
 0x488   : > { %v3765_v20 = vpop.permute.xlu0 %3764  ;;  %v3949_v14 = vsel %vm2299_vm7, %v13198_v34, %v3767_v32 }
 0x489   : > { %v3948_v53 = vsel %vm2299_vm7, %v3632_v60, %v3765_v20  ;;  %v16135_v20 = vrot.slane %v13188_v18, 7 }
 0x48b   : > { %v3879_v38 = vpop.permute.xlu1 %3878  ;;  %v3633_v60 = vsel %vm538_vm0, 0.0, %v16135_v20 }
 0x48c   : > { %v3877_v24 = vpop.permute.xlu0 %3876  ;;  %v13584_v45 = vsel %vm2332_vm8, %v3949_v14, %v3879_v38 }
 0x48d   : > { %v13581_v30 = vsel %vm2332_vm8, %v3948_v53, %v3877_v24 }
 0x48e   : > { %9752 = vmatprep.mubr.msk.f32.mxu0 %vm2461_vm9, %v13581_v30 }
 0x48f   : > { %9753 = vmatmul.mubr.msk.f32.gmra.mrb[54].mxu0 %vm2461_vm9, %v13584_v45  ;;  %v3771_v46 = vpop.permute.xlu1 %3770 }
 0x490   : > { %v3769_v40 = vpop.permute.xlu0 %3768  ;;  %v3951_v38 = vsel %vm2299_vm7, %v13233_v17, %v3771_v46 }
 0x491   : > { %v3950_v34 = vsel %vm2299_vm7, %v3633_v60, %v3769_v40  ;;  %v16136_v40 = vrot.slane %v13222_v31, 7 }
 0x493   : > { %v3883_v1 = vpop.permute.xlu1 %3882  ;;  %v3634_v60 = vsel %vm538_vm0, 0.0, %v16136_v40 }
 0x494   : > { %v3881_v32 = vpop.permute.xlu0 %3880  ;;  %v13600_v24 = vsel %vm2332_vm8, %v3951_v38, %v3883_v1 }
 0x495   : > { %v13597_v53 = vsel %vm2332_vm8, %v3950_v34, %v3881_v32 }
 0x496   : > { %9755 = vmatprep.mubr.msk.f32.mxu0 %vm2461_vm9, %v13597_v53 }
 0x497   : > { %9756 = vmatmul.mubr.msk.f32.gmra.mrb[56].mxu0 %vm2461_vm9, %v13600_v24  ;;  %v3775_v14 = vpop.permute.xlu1 %3774 }
 0x498   : > { %v3773_v20 = vpop.permute.xlu0 %3772  ;;  %v3953_v1 = vsel %vm2299_vm7, %v13255_v63, %v3775_v14 }
 0x499   : > { %v3952_v17 = vsel %vm2299_vm7, %v3634_v60, %v3773_v20  ;;  %v16137_v20 = vrot.slane %v13249_v25, 7  ;;  %v4562_v25 = vld [vmem:[%s16005_s6 + $0xe0] sm:$0xff] }
 0x49b   : > { %v3887_v18 = vpop.permute.xlu1 %3886  ;;  %v3635_v60 = vsel %vm538_vm0, 0.0, %v16137_v20 }
 0x49c   : > { %v3885_v46 = vpop.permute.xlu0 %3884  ;;  %v13616_v32 = vsel %vm2332_vm8, %v3953_v1, %v3887_v18 }
 0x49d   : > { %v13613_v34 = vsel %vm2332_vm8, %v3952_v17, %v3885_v46 }
 0x49e   : > { %9758 = vmatprep.mubr.msk.f32.mxu0 %vm2461_vm9, %v13613_v34 }
 0x49f   : > { %9759 = vmatmul.mubr.msk.f32.gmra.mrb[58].mxu0 %vm2461_vm9, %v13616_v32  ;;  %v3779_v38 = vpop.permute.xlu1 %3778 }
 0x4a0   : > { %v3777_v40 = vpop.permute.xlu0 %3776  ;;  %v3955_v18 = vsel %vm2299_vm7, %v13274_v26, %v3779_v38  ;;  %v4560_v26 = vld [vmem:[%s16005_s6 + $0xd0] sm:$0xff]  ;;  %v3541_v38 = vrot.slane %v13340_v43, 7 }
 0x4a1   : > { %v3954_v63 = vsel %vm2299_vm7, %v3635_v60, %v3777_v40  ;;  %v3540_v40 = vrot.slane %v13344_v37, 7 }
 0x4a3   : > { %v3891_v31 = vpop.permute.xlu1 %3890  ;;  %v3542_v4 = vsel %vm538_vm0, %v3540_v40, %v3541_v38 }
 0x4a4   : > { %v3889_v14 = vpop.permute.xlu0 %3888  ;;  %v13632_v46 = vsel %vm2332_vm8, %v3955_v18, %v3891_v31  ;;  %v4561_v31 = vld [vmem:[%s16005_s6 + $0xd8] sm:$0xff] }
 0x4a5   : > { %v13629_v17 = vsel %vm2332_vm8, %v3954_v63, %v3889_v14  ;;  %v3620_v63 = vsel %vm538_vm0, 0.0, %v3540_v40  ;;  %v10493_v14 = vpack.c.bf16 %v4561_v31, %v4560_v26  ;;  %v10497_v26 = vpack.c.bf16 %v4563_v57, %v4562_v25  ;;  %v4566_v25 = vld [vmem:[%s16005_s6 + $0x100] sm:$0xff]  ;;  %v4569_v40 = vld [vmem:[%s16005_s6 + $0x118] sm:$0xff] }
 0x4a6   : > { %9761 = vmatprep.mubr.msk.f32.mxu0 %vm2461_vm9, %v13629_v17 }
 0x4a7   : > { %9762 = vmatmul.mubr.msk.f32.gmra.mrb[60].mxu0 %vm2461_vm9, %v13632_v46  ;;  %v3719_v20 = vpop.permute.xlu1 %3718 }
 0x4a8   : > { %v3717_v1 = vpop.permute.xlu0 %3716  ;;  %9764 = vmatprep.mubr.f32.mxu0 %v16100_v5 }
 0x4a9   : > { %v3924_v18 = vsel %vm2299_vm7, %v3620_v63, %v3717_v1  ;;  %v3925_v1 = vsel %vm2299_vm7, %v3542_v4, %v3719_v20  ;;  %v4564_v63 = vld [vmem:[%s16005_s6 + $0xf0] sm:$0xff] }
 0x4ab   : > { %9765 = vmatmul.mubr.f32.gmra.mrb[62].mxu0 %v16100_v5  ;;  %v3831_v55 = vpop.permute.xlu1 %3830 }
 0x4ac   : > { %v3829_v60 = vpop.permute.xlu0 %3828  ;;  %9791 = vmatprep.mubr.f32.mxu0 %v16100_v5  ;;  %v3957_v31 = vsel %vm2332_vm8, %v3925_v1, %v3831_v55  ;;  %v4567_v55 = vld [vmem:[%s16005_s6 + $0x108] sm:$0xff] }
 0x4ad   : > { %v3956_v35 = vsel %vm2332_vm8, %v3924_v18, %v3829_v60  ;;  %v4565_v60 = vld [vmem:[%s16005_s6 + $0xf8] sm:$0xff]  ;;  %v10505_v57 = vpack.c.bf16 %v4567_v55, %v4566_v25 }
 0x4ae   : > { %v10501_v4 = vpack.c.bf16 %v4565_v60, %v4564_v63 }
 0x4af   : > { %9792 = vmatmul.mubr.f32.vlgmr.msra.gmra.mrb[32].mxu0 %v16100_v5 }
 0x4b0   : > { %10492 = vmatpush3.bf16.msra.mxu0 %v13443_v52  ;;  %9794 = vmatprep.mubr.msk.f32.mxu0 %vm2461_vm9, %v3956_v35  ;;  %v4568_v52 = vld [vmem:[%s16005_s6 + $0x110] sm:$0xff] }
 0x4b1   : > { %10494 = vmatprep.subr.bf16.mxu0 %v10493_v14  ;;  %v10509_v20 = vpack.c.bf16 %v4569_v40, %v4568_v52 }
 0x4b3   : > { %9795 = vmatmul.mubr.msk.f32.gmra.mrb[34].mxu0 %vm2461_vm9, %v3957_v31 }
 0x4b4   : > { %9797 = vmatprep.mubr.msk.f32.mxu0 %vm2461_vm9, %v13362_v56  ;;  %10496 = vmatpush3.bf16.msra.mxu0 %v10493_v14 }
 0x4b5   : > { %10498 = vmatprep.subr.bf16.mxu0 %v10497_v26 }
 0x4b7   : > { %9798 = vmatmul.mubr.msk.f32.gmra.mrb[36].mxu0 %vm2461_vm9, %v13368_v50 }
 0x4b8   : > { %9800 = vmatprep.mubr.msk.f32.mxu0 %vm2461_vm9, %v13400_v2  ;;  %10500 = vmatpush3.bf16.msra.mxu0 %v10497_v26 }
 0x4b9   : > { %10502 = vmatprep.subr.bf16.mxu0 %v10501_v4 }
 0x4bb   : > { %9801 = vmatmul.mubr.msk.f32.gmra.mrb[38].mxu0 %vm2461_vm9, %v13403_v3 }
 0x4bc   : > { %9803 = vmatprep.mubr.msk.f32.mxu0 %vm2461_vm9, %v13428_v48  ;;  %10504 = vmatpush3.bf16.msra.mxu0 %v10501_v4 }
 0x4bd   : > { %10506 = vmatprep.subr.bf16.mxu0 %v10505_v57 }
 0x4bf   : > { %9804 = vmatmul.mubr.msk.f32.gmra.mrb[40].mxu0 %vm2461_vm9, %v13431_v0 }
 0x4c0   : > { %9806 = vmatprep.mubr.msk.f32.mxu0 %vm2461_vm9, %v13452_v8  ;;  %10508 = vmatpush3.bf16.msra.mxu0 %v10505_v57 }
 0x4c1   : > { %10510 = vmatprep.subr.bf16.mxu0 %v10509_v20 }
 0x4c3   : > { %9807 = vmatmul.mubr.msk.f32.gmra.mrb[42].mxu0 %vm2461_vm9, %v13456_v23 }
 0x4c4   : > { %9809 = vmatprep.mubr.msk.f32.mxu0 %vm2461_vm9, %v13469_v42  ;;  %10512 = vmatpush3.bf16.msra.mxu0 %v10509_v20 }
 0x4c7   : > { %9810 = vmatmul.mubr.msk.f32.gmra.mrb[44].mxu0 %vm2461_vm9, %v13472_v41 }
 0x4c8   : > { %9812 = vmatprep.mubr.msk.f32.mxu0 %vm2461_vm9, %v13485_v58 }
 0x4cb   : > { %9813 = vmatmul.mubr.msk.f32.gmra.mrb[46].mxu0 %vm2461_vm9, %v13488_v44 }
 0x4cc   : > { %9815 = vmatprep.mubr.msk.f32.mxu0 %vm2461_vm9, %v13501_v49 }
 0x4cf   : > { %9816 = vmatmul.mubr.msk.f32.gmra.mrb[48].mxu0 %vm2461_vm9, %v13504_v12 }
 0x4d0   : > { %9818 = vmatprep.mubr.msk.f32.mxu0 %vm2461_vm9, %v13517_v29 }
 0x4d3   : > { %9819 = vmatmul.mubr.msk.f32.gmra.mrb[50].mxu0 %vm2461_vm9, %v13520_v19 }
 0x4d4   : > { %9821 = vmatprep.mubr.msk.f32.mxu0 %vm2461_vm9, %v13533_v13 }
 0x4d7   : > { %9822 = vmatmul.mubr.msk.f32.gmra.mrb[52].mxu0 %vm2461_vm9, %v13536_v7 }
 0x4d8   : > { %9824 = vmatprep.mubr.msk.f32.mxu0 %vm2461_vm9, %v13549_v28 }
 0x4db   : > { %9825 = vmatmul.mubr.msk.f32.gmra.mrb[54].mxu0 %vm2461_vm9, %v13552_v11 }
 0x4dc   : > { %9827 = vmatprep.mubr.msk.f32.mxu0 %vm2461_vm9, %v13565_v47 }
 0x4df   : > { %9828 = vmatmul.mubr.msk.f32.gmra.mrb[56].mxu0 %vm2461_vm9, %v13568_v39 }
 0x4e0   : > { %9830 = vmatprep.mubr.msk.f32.mxu0 %vm2461_vm9, %v13581_v30 }
 0x4e3   : > { %9831 = vmatmul.mubr.msk.f32.gmra.mrb[58].mxu0 %vm2461_vm9, %v13584_v45 }
 0x4e4   : > { %9833 = vmatprep.mubr.msk.f32.mxu0 %vm2461_vm9, %v13597_v53 }
 0x4e7   : > { %9834 = vmatmul.mubr.msk.f32.gmra.mrb[60].mxu0 %vm2461_vm9, %v13600_v24 }
 0x4e8   : > { %9836 = vmatprep.mubr.msk.f32.mxu0 %vm2461_vm9, %v13613_v34 }
 0x4eb   : > { %9837 = vmatmul.mubr.msk.f32.gmra.mrb[62].mxu0 %vm2461_vm9, %v13616_v32 }
 0x4ec   : > { %9863 = vmatprep.mubr.msk.f32.mxu0 %vm2461_vm9, %v3956_v35  ;;  %v5518_v35 = vld [vmem:[%s16007_s8 + $0x60] sm:$0xff] }
 0x4ef   : > { %9864 = vmatmul.mubr.msk.f32.vlgmr.msra.gmra.mrb[32].mxu0 %vm2461_vm9, %v3957_v31 }
 0x4f0   : > { %9866 = vmatprep.mubr.msk.f32.mxu0 %vm2461_vm9, %v13362_v56 }
 0x4f3   : > { %9867 = vmatmul.mubr.msk.f32.gmra.mrb[34].mxu0 %vm2461_vm9, %v13368_v50  ;;  %v5520_v50 = vld [vmem:[%s16007_s8 + $0x70] sm:$0xff] }
 0x4f4   : > { %9869 = vmatprep.mubr.msk.f32.mxu0 %vm2461_vm9, %v13400_v2  ;;  %v5521_v2 = vld [vmem:[%s16007_s8 + $0x78] sm:$0xff] }
 0x4f7   : > { %9870 = vmatmul.mubr.msk.f32.gmra.mrb[36].mxu0 %vm2461_vm9, %v13403_v3  ;;  %v10517_v3 = vpack.c.bf16 %v5521_v2, %v5520_v50 }
 0x4f8   : > { %9872 = vmatprep.mubr.msk.f32.mxu0 %vm2461_vm9, %v13428_v48  ;;  %v5522_v48 = vld [vmem:[%s16007_s8 + $0x80] sm:$0xff] }
 0x4fb   : > { %9873 = vmatmul.mubr.msk.f32.gmra.mrb[38].mxu0 %vm2461_vm9, %v13431_v0  ;;  %v5519_v0 = vld [vmem:[%s16007_s8 + $0x68] sm:$0xff] }
 0x4fc   : > { %9875 = vmatprep.mubr.msk.f32.mxu0 %vm2461_vm9, %v13452_v8  ;;  %v10513_v56 = vpack.c.bf16 %v5519_v0, %v5518_v35  ;;  %v5523_v8 = vld [vmem:[%s16007_s8 + $0x88] sm:$0xff] }
 0x4fe   : > { %10514 = vmatprep.subr.bf16.mxu1 %v10513_v56 }
 0x4ff   : > { %9876 = vmatmul.mubr.msk.f32.gmra.mrb[40].mxu0 %vm2461_vm9, %v13456_v23  ;;  %10516 = vmatpush3.bf16.msra.mxu1 %v10513_v56  ;;  %v10521_v23 = vpack.c.bf16 %v5523_v8, %v5522_v48 }
 0x500   : > { %9878 = vmatprep.mubr.msk.f32.mxu0 %vm2461_vm9, %v13469_v42  ;;  %10518 = vmatprep.subr.bf16.mxu1 %v10517_v3  ;;  %v5524_v42 = vld [vmem:[%s16007_s8 + $0x90] sm:$0xff] }
 0x503   : > { %9879 = vmatmul.mubr.msk.f32.gmra.mrb[42].mxu0 %vm2461_vm9, %v13472_v41  ;;  %10520 = vmatpush3.bf16.msra.mxu1 %v10517_v3  ;;  %v5525_v41 = vld [vmem:[%s16007_s8 + $0x98] sm:$0xff] }
 0x504   : > { %9881 = vmatprep.mubr.msk.f32.mxu0 %vm2461_vm9, %v13485_v58  ;;  %10522 = vmatprep.subr.bf16.mxu1 %v10521_v23  ;;  %v10525_v58 = vpack.c.bf16 %v5525_v41, %v5524_v42 }
 0x507   : > { %9882 = vmatmul.mubr.msk.f32.gmra.mrb[44].mxu0 %vm2461_vm9, %v13488_v44  ;;  %10524 = vmatpush3.bf16.msra.mxu1 %v10521_v23  ;;  %v5526_v44 = vld [vmem:[%s16007_s8 + $0xa0] sm:$0xff] }
 0x508   : > { %9884 = vmatprep.mubr.msk.f32.mxu0 %vm2461_vm9, %v13501_v49  ;;  %10526 = vmatprep.subr.bf16.mxu1 %v10525_v58  ;;  %v5527_v49 = vld [vmem:[%s16007_s8 + $0xa8] sm:$0xff] }
 0x50b   : > { %9885 = vmatmul.mubr.msk.f32.gmra.mrb[46].mxu0 %vm2461_vm9, %v13504_v12  ;;  %10528 = vmatpush3.bf16.msra.mxu1 %v10525_v58  ;;  %v10529_v12 = vpack.c.bf16 %v5527_v49, %v5526_v44 }
 0x50c   : > { %9887 = vmatprep.mubr.msk.f32.mxu0 %vm2461_vm9, %v13517_v29  ;;  %v5528_v29 = vld [vmem:[%s16007_s8 + $0xb0] sm:$0xff] }
 0x50d   : > { %10530 = vmatprep.subr.bf16.mxu1 %v10529_v12 }
 0x50f   : > { %9888 = vmatmul.mubr.msk.f32.gmra.mrb[48].mxu0 %vm2461_vm9, %v13520_v19  ;;  %10532 = vmatpush3.bf16.msra.mxu1 %v10529_v12  ;;  %v5529_v19 = vld [vmem:[%s16007_s8 + $0xb8] sm:$0xff] }
 0x510   : > { %9890 = vmatprep.mubr.msk.f32.mxu0 %vm2461_vm9, %v13533_v13  ;;  %v13840_v13 = vld [vmem:[%s16006_s7] ss:$0 sm:$0xff] }
 0x513   : > { %9891 = vmatmul.mubr.msk.f32.gmra.mrb[50].mxu0 %vm2461_vm9, %v13536_v7  ;;  %v10533_v7 = vpack.c.bf16 %v5529_v19, %v5528_v29 }
 0x514   : > { %9893 = vmatprep.mubr.msk.f32.mxu0 %vm2461_vm9, %v13549_v28 }
 0x515   : > { %10534 = vmatprep.subr.bf16.mxu1 %v10533_v7 }
 0x516   : > { %10536 = vmatpush3.bf16.msra.mxu1 %v10533_v7 }
 0x517   : > { %9894 = vmatmul.mubr.msk.f32.gmra.mrb[52].mxu0 %vm2461_vm9, %v13552_v11 }
 0x518   : > { %9896 = vmatprep.mubr.msk.f32.mxu0 %vm2461_vm9, %v13565_v47 }
 0x51b   : > { %9897 = vmatmul.mubr.msk.f32.gmra.mrb[54].mxu0 %vm2461_vm9, %v13568_v39 }
 0x51c   : > { %9899 = vmatprep.mubr.msk.f32.mxu0 %vm2461_vm9, %v13581_v30 }
 0x51f   : > { %9900 = vmatmul.mubr.msk.f32.gmra.mrb[56].mxu0 %vm2461_vm9, %v13584_v45 }
 0x520   : > { %9902 = vmatprep.mubr.msk.f32.mxu0 %vm2461_vm9, %v13597_v53 }
 0x523   : > { %9903 = vmatmul.mubr.msk.f32.gmra.mrb[58].mxu0 %vm2461_vm9, %v13600_v24 }
 0x524   : > { %9905 = vmatprep.mubr.msk.f32.mxu0 %vm2461_vm9, %v13613_v34 }
 0x527   : > { %9906 = vmatmul.mubr.msk.f32.gmra.mrb[60].mxu0 %vm2461_vm9, %v13616_v32 }
 0x528   : > { %9908 = vmatprep.mubr.msk.f32.mxu0 %vm2461_vm9, %v13629_v17 }
 0x52b   : > { %9909 = vmatmul.mubr.msk.f32.gmra.mrb[62].mxu0 %vm2461_vm9, %v13632_v46 }
 0x5c2   : > { %v9865_v28 = vpop.f32.mrb[32].mxu0 }
 0x5c3   : > { %v13843_v11 = vadd.f32 %v9865_v28, %v13840_v13  ;;  %v4636_v47 = vpop.f32.mrb[33].mxu0 }
 0x5c4   : > { %v13846_v39 = vadd.f32 %v13840_v13, %v4636_v47 }
 0x5c6   : > { %v9868_v30 = vpop.f32.mrb[34].mxu0 }
 0x5c7   : > { %v4837_v45 = vadd.f32 %v9868_v30, %v13840_v13  ;;  %v4646_v53 = vpop.f32.mrb[35].mxu0 }
 0x5c8   : > { %v4836_v24 = vadd.f32 %v13840_v13, %v4646_v53 }
 0x5c9   : > { %v4869_v34 = vmax.f32 %v4837_v45, 0.0 }
 0x5ca   : > { %v13850_v32 = vmax.f32 %v4836_v24, 0.0  ;;  %v9871_v17 = vpop.f32.mrb[36].mxu0 }
 0x5cb   : > { %v4934_v46 = vrot.slane %v4869_v34, 7  ;;  %v4839_v38 = vadd.f32 %v9871_v17, %v13840_v13  ;;  %5112 = vrot.lane.b32.xlu1 %v4869_v34, %s11129_s27  ;;  %v4656_v14 = vpop.f32.mrb[37].mxu0  ;;  %v5030_v18 = vrot.slane %v4869_v34, 1 }
 0x5cc   : > { %v16062_v1 = vrot.slane %v13850_v32, 7  ;;  %v5029_v26 = vrot.slane %v13850_v32, 1  ;;  %v4838_v31 = vadd.f32 %v13840_v13, %v4656_v14  ;;  %5110 = vrot.lane.b32.xlu0 %v13850_v32, %s11129_s27 }
 0x5cd   : > { %v4871_v63 = vmax.f32 %v4839_v38, 0.0  ;;  %v5091_v60 = vsel %vm635_vm3, %v5030_v18, 0.0 }
 0x5ce   : > { %v13860_v4 = vmax.f32 %v4838_v31, 0.0  ;;  %v9874_v25 = vpop.f32.mrb[38].mxu0  ;;  %v5031_v55 = vsel %vm635_vm3, %v5029_v26, %v5030_v18  ;;  %v13866_v57 = vsel %vm538_vm0, %v16062_v1, %v4934_v46 }
 0x5cf   : > { %v4937_v52 = vrot.slane %v4871_v63, 7  ;;  %v4841_v40 = vadd.f32 %v9874_v25, %v13840_v13  ;;  %5224 = vrot.lane.b32.xlu1 %v5091_v60, %s11130_s28  ;;  %v4666_v20 = vpop.f32.mrb[39].mxu0  ;;  %v5033_v35 = vrot.slane %v4871_v63, 1 }
 0x5d0   : > { %v16061_v0 = vrot.slane %v13860_v4, 7  ;;  %v5032_v56 = vrot.slane %v13860_v4, 1  ;;  %v4840_v50 = vadd.f32 %v13840_v13, %v4666_v20  ;;  %5222 = vrot.lane.b32.xlu0 %v5031_v55, %s11130_s28 }
 0x5d1   : > { %v4873_v2 = vmax.f32 %v4841_v40, 0.0  ;;  %v5092_v47 = vsel %vm635_vm3, %v5033_v35, 0.0 }
 0x5d2   : > { %v13874_v3 = vmax.f32 %v4840_v50, 0.0  ;;  %v9877_v48 = vpop.f32.mrb[40].mxu0  ;;  %v5034_v8 = vsel %vm635_vm3, %v5032_v56, %v5033_v35  ;;  %v13880_v23 = vsel %vm538_vm0, %v16061_v0, %v4937_v52 }
 0x5d3   : > { %v4940_v42 = vrot.slane %v4873_v2, 7  ;;  %v4843_v41 = vadd.f32 %v9877_v48, %v13840_v13  ;;  %5116 = vrot.lane.b32.xlu1 %v4871_v63, %s11129_s27  ;;  %v4676_v58 = vpop.f32.mrb[41].mxu0  ;;  %v5036_v44 = vrot.slane %v4873_v2, 1 }
 0x5d4   : > { %v16060_v49 = vrot.slane %v13874_v3, 7  ;;  %v5035_v12 = vrot.slane %v13874_v3, 1  ;;  %v4842_v29 = vadd.f32 %v13840_v13, %v4676_v58  ;;  %5114 = vrot.lane.b32.xlu0 %v13860_v4, %s11129_s27 }
 0x5d5   : > { %v4875_v19 = vmax.f32 %v4843_v41, 0.0 }
 0x5d6   : > { %v13889_v7 = vmax.f32 %v4842_v29, 0.0  ;;  %v9880_v28 = vpop.f32.mrb[42].mxu0  ;;  %v5037_v30 = vsel %vm635_vm3, %v5035_v12, %v5036_v44  ;;  %v13896_v45 = vsel %vm538_vm0, %v16060_v49, %v4940_v42  ;;  %v5093_v42 = vsel %vm635_vm3, %v5036_v44, 0.0 }
 0x5d7   : > { %v4943_v53 = vrot.slane %v4875_v19, 7  ;;  %v4845_v24 = vadd.f32 %v9880_v28, %v13840_v13  ;;  %5228 = vrot.lane.b32.xlu1 %v5092_v47, %s11130_s28  ;;  %v4686_v34 = vpop.f32.mrb[43].mxu0  ;;  %v5039_v17 = vrot.slane %v4875_v19, 1 }
 0x5d8   : > { %v16058_v46 = vrot.slane %v13889_v7, 7  ;;  %v5038_v38 = vrot.slane %v13889_v7, 1  ;;  %v4844_v14 = vadd.f32 %v13840_v13, %v4686_v34  ;;  %5226 = vrot.lane.b32.xlu0 %v5034_v8, %s11130_s28 }
 0x5d9   : > { %v13904_v18 = vmax.f32 %v4845_v24, 0.0 }
 0x5da   : > { %v13906_v26 = vmax.f32 %v4844_v14, 0.0  ;;  %v9883_v31 = vpop.f32.mrb[44].mxu0  ;;  %v5040_v63 = vsel %vm635_vm3, %v5038_v38, %v5039_v17  ;;  %v13912_v60 = vsel %vm538_vm0, %v16058_v46, %v4943_v53 }
 0x5db   : > { %v4946_v25 = vrot.slane %v13904_v18, 7  ;;  %v4847_v55 = vadd.f32 %v9883_v31, %v13840_v13  ;;  %5120 = vrot.lane.b32.xlu1 %v4873_v2, %s11129_s27  ;;  %v4696_v52 = vpop.f32.mrb[45].mxu0  ;;  %v5042_v40 = vrot.slane %v13904_v18, 1 }
 0x5dc   : > { %16138 = vst [vmem:[#allocation18_spill] sm:$0xff] %v13906_v26  ;;  %v16057_v20 = vrot.slane %v13906_v26, 7  ;;  %v5041_v35 = vrot.slane %v13906_v26, 1  ;;  %v4846_v56 = vadd.f32 %v13840_v13, %v4696_v52  ;;  %5118 = vrot.lane.b32.xlu0 %v13874_v3, %s11129_s27 }
 0x5dd   : > { %v13923_v50 = vmax.f32 %v4847_v55, 0.0  ;;  %v5095_v49 = vsel %vm635_vm3, %v5042_v40, 0.0 }
 0x5de   : > { %v13925_v48 = vmax.f32 %v4846_v56, 0.0  ;;  %v9886_v8 = vpop.f32.mrb[46].mxu0  ;;  %v13931_v2 = vsel %vm635_vm3, %v5041_v35, %v5042_v40  ;;  %v13936_v41 = vsel %vm538_vm0, %v16057_v20, %v4946_v25 }
 0x5df   : > { %16140 = vst [vmem:[#allocation20_spill] sm:$0xff] %v13936_v41  ;;  %v4949_v58 = vrot.slane %v13923_v50, 7  ;;  %v4849_v12 = vadd.f32 %v9886_v8, %v13840_v13  ;;  %5232 = vrot.lane.b32.xlu1 %v5093_v42, %s11130_s28  ;;  %v4706_v29 = vpop.f32.mrb[47].mxu0  ;;  %v5045_v28 = vrot.slane %v13923_v50, 1 }
 0x5e0   : > { %16139 = vst [vmem:[#allocation19_spill] sm:$0xff] %v13925_v48  ;;  %v16055_v44 = vrot.slane %v13925_v48, 7  ;;  %v5044_v47 = vrot.slane %v13925_v48, 1  ;;  %v4848_v53 = vadd.f32 %v13840_v13, %v4706_v29  ;;  %5230 = vrot.lane.b32.xlu0 %v5037_v30, %s11130_s28  ;;  %v5094_v29 = vsel %vm635_vm3, %v5039_v17, 0.0 }
 0x5e1   : > { %v13946_v24 = vmax.f32 %v4849_v12, 0.0  ;;  %v5096_v5 = vsel %vm635_vm3, %v5045_v28, 0.0 }
 0x5e2   : > { %v13948_v34 = vmax.f32 %v4848_v53, 0.0  ;;  %v9889_v38 = vpop.f32.mrb[48].mxu0  ;;  %v13953_v14 = vsel %vm635_vm3, %v5044_v47, %v5045_v28  ;;  %v13958_v31 = vsel %vm538_vm0, %v16055_v44, %v4949_v58 }
 0x5e3   : > { %16142 = vst [vmem:[#allocation22_spill] sm:$0xff] %v13958_v31  ;;  %v4952_v25 = vrot.slane %v13946_v24, 7  ;;  %v4851_v55 = vadd.f32 %v9889_v38, %v13840_v13  ;;  %5124 = vrot.lane.b32.xlu1 %v4875_v19, %s11129_s27  ;;  %v4716_v30 = vpop.f32.mrb[49].mxu0  ;;  %v16066_v52 = vrot.slane %v13946_v24, 1  ;;  %v16150_v31 = vrot.slane %v13946_v24, 1 }
 0x5e4   : > { %16141 = vst [vmem:[#allocation21_spill] sm:$0xff] %v13948_v34  ;;  %v16056_v35 = vrot.slane %v13948_v34, 7  ;;  %v5047_v56 = vrot.slane %v13948_v34, 1  ;;  %v4850_v8 = vadd.f32 %v13840_v13, %v4716_v30  ;;  %5122 = vrot.lane.b32.xlu0 %v13889_v7, %s11129_s27 }
 0x5e5   : > { %v13969_v42 = vmax.f32 %v4851_v55, 0.0 }
 0x5e6   : > { %v13971_v58 = vmax.f32 %v4850_v8, 0.0  ;;  %v9892_v12 = vpop.f32.mrb[50].mxu0  ;;  %v13977_v19 = vsel %vm635_vm3, %v5047_v56, %v16066_v52  ;;  %v13982_v47 = vsel %vm538_vm0, %v16056_v35, %v4952_v25 }
 0x5e7   : > { %16143 = vst [vmem:[#allocation23_spill] sm:$0xff] %v13982_v47  ;;  %v4955_v53 = vrot.slane %v13969_v42, 7  ;;  %v4853_v38 = vadd.f32 %v9892_v12, %v13840_v13  ;;  %5236 = vrot.lane.b32.xlu1 %v5094_v29, %s11130_s28  ;;  %v4726_v55 = vpop.f32.mrb[51].mxu0  ;;  %v16063_v30 = vrot.slane %v13969_v42, 1 }
 0x5e8   : > { %v16059_v17 = vrot.slane %v13971_v58, 7  ;;  %v5050_v8 = vrot.slane %v13971_v58, 1  ;;  %v4852_v56 = vadd.f32 %v13840_v13, %v4726_v55  ;;  %5234 = vrot.lane.b32.xlu0 %v5040_v63, %s11130_s28 }
 0x5e9   : > { %v13992_v44 = vmax.f32 %v4853_v38, 0.0 }
 0x5ea   : > { %v13994_v25 = vmax.f32 %v4852_v56, 0.0  ;;  %v9895_v35 = vpop.f32.mrb[52].mxu0  ;;  %v13999_v12 = vsel %vm635_vm3, %v5050_v8, %v16063_v30  ;;  %v14004_v29 = vsel %vm538_vm0, %v16059_v17, %v4955_v53 }
 0x5eb   : > { %16144 = vst [vmem:[#allocation24_spill] sm:$0xff] %v14004_v29  ;;  %v4958_v20 = vrot.slane %v13992_v44, 7  ;;  %v4855_v55 = vadd.f32 %v9895_v35, %v13840_v13  ;;  %5128 = vrot.lane.b32.xlu1 %v13904_v18, %s11129_s27  ;;  %v4736_v63 = vpop.f32.mrb[53].mxu0  ;;  %v16065_v38 = vrot.slane %v13992_v44, 1 }
 0x5ec   : > { %v16064_v56 = vrot.slane %v13994_v25, 7  ;;  %v5053_v8 = vrot.slane %v13994_v25, 1  ;;  %v4854_v46 = vadd.f32 %v13840_v13, %v4736_v63  ;;  %5126 = vrot.lane.b32.xlu0 %v13906_v26, %s11129_s27 }
 0x5ed   : > { %v14016_v53 = vmax.f32 %v4855_v55, 0.0 }
 0x5ee   : > { %v14018_v17 = vmax.f32 %v4854_v46, 0.0  ;;  %v9898_v35 = vpop.f32.mrb[54].mxu0  ;;  %v14026_v0 = vsel %vm635_vm3, %v5053_v8, %v16065_v38  ;;  %v14031_v63 = vsel %vm538_vm0, %v16064_v56, %v4958_v20 }
 0x5ef   : > { %16145 = vst [vmem:[#allocation25_spill] sm:$0xff] %v14031_v63  ;;  %v4961_v55 = vrot.slane %v14016_v53, 7  ;;  %v4857_v46 = vadd.f32 %v9898_v35, %v13840_v13  ;;  %5240 = vrot.lane.b32.xlu1 %v5095_v49, %s11130_s28  ;;  %v4746_v1 = vpop.f32.mrb[55].mxu0  ;;  %v16067_v18 = vrot.slane %v14016_v53, 1 }
 0x5f0   : > { %v16068_v40 = vrot.slane %v14018_v17, 7  ;;  %v5056_v30 = vrot.slane %v14018_v17, 1  ;;  %v4856_v8 = vadd.f32 %v13840_v13, %v4746_v1  ;;  %5238 = vrot.lane.b32.xlu0 %v13931_v2, %s11130_s28 }
 0x5f1   : > { %v14042_v20 = vmax.f32 %v4857_v46, 0.0 }
 0x5f2   : > { %v14044_v56 = vmax.f32 %v4856_v8, 0.0  ;;  %v9901_v38 = vpop.f32.mrb[56].mxu0  ;;  %v14049_v49 = vsel %vm635_vm3, %v5056_v30, %v16067_v18  ;;  %v14054_v35 = vsel %vm538_vm0, %v16068_v40, %v4961_v55 }
 0x5f3   : > { %16146 = vst [vmem:[#allocation26_spill] sm:$0xff] %v14054_v35  ;;  %v4964_v1 = vrot.slane %v14042_v20, 7  ;;  %v4859_v52 = vadd.f32 %v9901_v38, %v13840_v13  ;;  %5132 = vrot.lane.b32.xlu1 %v13923_v50, %s11129_s27  ;;  %v4756_v2 = vpop.f32.mrb[57].mxu0  ;;  %v16070_v46 = vrot.slane %v14042_v20, 1 }
 0x5f4   : > { %v5059_v30 = vrot.slane %v14044_v56, 1  ;;  %v4858_v18 = vadd.f32 %v13840_v13, %v4756_v2  ;;  %5130 = vrot.lane.b32.xlu0 %v13925_v48, %s11129_s27  ;;  %v16147_v35 = vrot.slane %v14044_v56, 7 }
 0x5f5   : > { %v14066_v55 = vmax.f32 %v4859_v52, 0.0 }
 0x5f6   : > { %v14068_v40 = vmax.f32 %v4858_v18, 0.0  ;;  %v9904_v38 = vpop.f32.mrb[58].mxu0  ;;  %v14076_v8 = vsel %vm635_vm3, %v5059_v30, %v16070_v46  ;;  %v14081_v2 = vsel %vm538_vm0, %v16147_v35, %v4964_v1 }
 0x5f7   : > { %16148 = vst [vmem:[#allocation27_spill] sm:$0xff] %v14081_v2  ;;  %v4967_v52 = vrot.slane %v14066_v55, 7  ;;  %v4861_v18 = vadd.f32 %v9904_v38, %v13840_v13  ;;  %5244 = vrot.lane.b32.xlu1 %v5096_v5, %s11130_s28  ;;  %v4766_v63 = vpop.f32.mrb[59].mxu0  ;;  %v16071_v50 = vrot.slane %v14066_v55, 1 }
 0x5f8   : > { %v16072_v28 = vrot.slane %v14068_v40, 7  ;;  %v5062_v29 = vrot.slane %v14068_v40, 1  ;;  %v4860_v30 = vadd.f32 %v13840_v13, %v4766_v63  ;;  %5242 = vrot.lane.b32.xlu0 %v13953_v14, %s11130_s28 }
 0x5f9   : > { %v14092_v35 = vmax.f32 %v4861_v18, 0.0 }
 0x5fa   : > { %v14094_v1 = vmax.f32 %v4860_v30, 0.0  ;;  %v9907_v46 = vpop.f32.mrb[60].mxu0  ;;  %v14099_v5 = vsel %vm635_vm3, %v5062_v29, %v16071_v50  ;;  %v14104_v38 = vsel %vm538_vm0, %v16072_v28, %v4967_v52  ;;  %v5506_v52 = vld [vmem:[%s16007_s8] sm:$0xff] }
 0x5fb   : > { %16149 = vst [vmem:[#allocation28_spill] sm:$0xff] %v14104_v38  ;;  %v4970_v63 = vrot.slane %v14092_v35, 7  ;;  %v4863_v2 = vadd.f32 %v9907_v46, %v13840_v13  ;;  %5136 = vrot.lane.b32.xlu1 %v13946_v24, %s11129_s27  ;;  %v4776_v14 = vpop.f32.mrb[61].mxu0  ;;  %v5066_v18 = vrot.slane %v14092_v35, 1  ;;  %v5507_v46 = vld [vmem:[%s16007_s8 + $0x8] sm:$0xff] }
 0x5fc   : > { %v5065_v29 = vrot.slane %v14094_v1, 1  ;;  %v4862_v50 = vadd.f32 %v13840_v13, %v4776_v14  ;;  %5134 = vrot.lane.b32.xlu0 %v13948_v34, %s11129_s27  ;;  %v14122_v38 = vpack.c.bf16 %v5507_v46, %v5506_v52  ;;  %v5097_v14 = vsel %vm635_vm3, %v16150_v31, 0.0 }
 0x5fd   : > { %v4895_v28 = vmax.f32 %v4863_v2, 0.0  ;;  %v16151_v48 = vrot.slane %v14094_v1, 7 }
 0x5fe   : > { %v14124_v47 = vmax.f32 %v4862_v50, 0.0  ;;  %v9910_v30 = vpop.f32.mrb[62].mxu0  ;;  %v5067_v34 = vsel %vm635_vm3, %v5065_v29, %v5066_v18  ;;  %10538 = vmatprep.subr.bf16.mxu1 %v14122_v38 }
 0x5ff   : > { %v14133_v41 = vsel %vm538_vm0, %v16151_v48, %v4970_v63  ;;  %v4973_v26 = vrot.slane %v4895_v28, 7  ;;  %v4865_v54 = vadd.f32 %v9910_v30, %v13840_v13  ;;  %5248 = vrot.lane.b32.xlu1 %v5097_v14, %s11130_s28  ;;  %v4786_v2 = vpop.f32.mrb[63].mxu0  ;;  %v5069_v50 = vrot.slane %v4895_v28, 1 }
 0x600   : > { %v4972_v24 = vrot.slane %v14124_v47, 7  ;;  %v5068_v31 = vrot.slane %v14124_v47, 1  ;;  %v4864_v29 = vadd.f32 %v13840_v13, %v4786_v2  ;;  %5246 = vrot.lane.b32.xlu0 %v13977_v19, %s11130_s28 }
 0x601   : > { %v4897_v48 = vmax.f32 %v4865_v54, 0.0  ;;  %v16152_v54 = vrot.slane %v13969_v42, 1 }
 0x602   : > { %v14143_v63 = vmax.f32 %v4864_v29, 0.0  ;;  %v5070_v30 = vsel %vm635_vm3, %v5068_v31, %v5069_v50  ;;  %v14149_v52 = vsel %vm538_vm0, %v4972_v24, %v4973_v26 }
 0x603   : > { %v4976_v46 = vrot.slane %v4897_v48, 7  ;;  %5140 = vrot.lane.b32.xlu1 %v13969_v42, %s11129_s27  ;;  %v5072_v14 = vrot.slane %v4897_v48, 1  ;;  %v5098_v19 = vsel %vm635_vm3, %v16152_v54, 0.0  ;;  %v16153_v42 = vrot.slane %v13992_v44, 1 }
 0x604   : > { %v4975_v13 = vrot.slane %v14143_v63, 7  ;;  %v5071_v2 = vrot.slane %v14143_v63, 1  ;;  %5138 = vrot.lane.b32.xlu0 %v13971_v58, %s11129_s27 }
 0x605   : > { %v5099_v29 = vsel %vm635_vm3, %v16153_v42, 0.0 }
 0x606   : > { %v5073_v31 = vsel %vm635_vm3, %v5071_v2, %v5072_v14  ;;  %v14164_v26 = vsel %vm538_vm0, %v4975_v13, %v4976_v46 }
 0x607   : > { %5252 = vrot.lane.b32.xlu1 %v5098_v19, %s11130_s28 }
 0x608   : > { %5250 = vrot.lane.b32.xlu0 %v13999_v12, %s11130_s28  ;;  %v16154_v12 = vrot.slane %v14016_v53, 1 }
 0x60a   : > { %v5100_v46 = vsel %vm635_vm3, %v16154_v12, 0.0 }
 0x60b   : > { %5144 = vrot.lane.b32.xlu1 %v13992_v44, %s11129_s27 }
 0x60c   : > { %5142 = vrot.lane.b32.xlu0 %v13994_v25, %s11129_s27 }
 0x60f   : > { %5256 = vrot.lane.b32.xlu1 %v5099_v29, %s11130_s28  ;;  %v5511_v29 = vld [vmem:[%s16007_s8 + $0x28] sm:$0xff] }
 0x610   : > { %5254 = vrot.lane.b32.xlu0 %v14026_v0, %s11130_s28  ;;  %v16155_v0 = vrot.slane %v14042_v20, 1 }
 0x612   : > { %v5101_v44 = vsel %vm635_vm3, %v16155_v0, 0.0 }
 0x613   : > { %5148 = vrot.lane.b32.xlu1 %v14016_v53, %s11129_s27  ;;  %v16156_v53 = vrot.slane %v14066_v55, 1 }
 0x614   : > { %5146 = vrot.lane.b32.xlu0 %v14018_v17, %s11129_s27 }
 0x617   : > { %5260 = vrot.lane.b32.xlu1 %v5100_v46, %s11130_s28 }
 0x618   : > { %5258 = vrot.lane.b32.xlu0 %v14049_v49, %s11130_s28  ;;  %v5102_v49 = vsel %vm635_vm3, %v16156_v53, 0.0 }
 0x61b   : > { %5152 = vrot.lane.b32.xlu1 %v14042_v20, %s11129_s27  ;;  %v5103_v20 = vsel %vm635_vm3, %v5066_v18, 0.0  ;;  %v5508_v18 = vld [vmem:[%s16007_s8 + $0x10] sm:$0xff] }
 0x61c   : > { %5150 = vrot.lane.b32.xlu0 %v14044_v56, %s11129_s27 }
 0x61f   : > { %5264 = vrot.lane.b32.xlu1 %v5101_v44, %s11130_s28 }
 0x620   : > { %5262 = vrot.lane.b32.xlu0 %v14076_v8, %s11130_s28  ;;  %v5104_v8 = vsel %vm635_vm3, %v5069_v50, 0.0  ;;  %v5509_v50 = vld [vmem:[%s16007_s8 + $0x18] sm:$0xff] }
 0x623   : > { %5156 = vrot.lane.b32.xlu1 %v14066_v55, %s11129_s27 }
 0x624   : > { %5154 = vrot.lane.b32.xlu0 %v14068_v40, %s11129_s27 }
 0x627   : > { %5268 = vrot.lane.b32.xlu1 %v5102_v49, %s11130_s28  ;;  %v5512_v49 = vld [vmem:[%s16007_s8 + $0x30] sm:$0xff] }
 0x628   : > { %5266 = vrot.lane.b32.xlu0 %v14099_v5, %s11130_s28  ;;  %v14230_v5 = vmax.f32 %v13846_v39, 0.0 }
 0x62a   : > { %v5026_v54 = vrot.slane %v14230_v5, 1 }
 0x62b   : > { %5160 = vrot.lane.b32.xlu1 %v14092_v35, %s11129_s27  ;;  %v14226_v35 = vmax.f32 %v13843_v11, 0.0  ;;  %v16157_v11 = vrot.slane %v13850_v32, 7  ;;  %v10541_v32 = vpack.c.bf16 %v5509_v50, %v5508_v18  ;;  %v11003_v18 = vpack.i.bf16 %v13340_v43, %v13344_v37  ;;  %v5514_v43 = vld [vmem:[%s16007_s8 + $0x40] sm:$0xff]  ;;  %v5515_v37 = vld [vmem:[%s16007_s8 + $0x48] sm:$0xff] }
 0x62c   : > { %5158 = vrot.lane.b32.xlu0 %v14094_v1, %s11129_s27 }
 0x62d   : > { %v5027_v2 = vrot.slane %v14226_v35, 1 }
 0x62f   : > { %5272 = vrot.lane.b32.xlu1 %v5103_v20, %s11130_s28  ;;  %v5090_v0 = vsel %vm635_vm3, %v5027_v2, 0.0  ;;  %v5028_v44 = vsel %vm635_vm3, %v5026_v54, %v5027_v2  ;;  %v5513_v20 = vld [vmem:[%s16007_s8 + $0x38] sm:$0xff]  ;;  %v5516_v2 = vld [vmem:[%s16007_s8 + $0x50] sm:$0xff] }
 0x630   : > { %5270 = vrot.lane.b32.xlu0 %v5067_v34, %s11130_s28  ;;  %v5517_v54 = vld [vmem:[%s16007_s8 + $0x58] sm:$0xff] }
 0x633   : > { %5164 = vrot.lane.b32.xlu1 %v4895_v28, %s11129_s27  ;;  %v5105_v28 = vsel %vm635_vm3, %v5072_v14, 0.0 }
 0x634   : > { %5162 = vrot.lane.b32.xlu0 %v14124_v47, %s11129_s27 }
 0x637   : > { %5276 = vrot.lane.b32.xlu1 %v5104_v8, %s11130_s28  ;;  %v16158_v8 = vrot.slane %v13860_v4, 7  ;;  %v16159_v4 = vpack.i.bf16 %v12900_v27, %v12902_v62 }
 0x638   : > { %5274 = vrot.lane.b32.xlu0 %v5070_v30, %s11130_s28 }
 0x63b   : > { %5168 = vrot.lane.b32.xlu1 %v4897_v48, %s11129_s27  ;;  %v5011_v48 = vsel %vm538_vm0, 0.0, %v16157_v11 }
 0x63c   : > { %5166 = vrot.lane.b32.xlu0 %v14143_v63, %s11129_s27 }
 0x63d   : > { %v5113_v55 = vpop.permute.xlu1 %5112 }
 0x63e   : > { %v5111_v34 = vpop.permute.xlu0 %5110  ;;  %v5317_v19 = vsel %vm2299_vm7, %v13866_v57, %v5113_v55  ;;  %v5510_v57 = vld [vmem:[%s16007_s8 + $0x20] sm:$0xff] }
 0x63f   : > { %5280 = vrot.lane.b32.xlu1 %v5105_v28, %s11130_s28  ;;  %v5316_v39 = vsel %vm2299_vm7, %v5011_v48, %v5111_v34  ;;  %v10545_v53 = vpack.c.bf16 %v5511_v29, %v5510_v57  ;;  %v10549_v48 = vpack.c.bf16 %v5513_v20, %v5512_v49  ;;  %v16163_v29 = vpack.i.bf16 %v12980_v59, %v12982_v36  ;;  %v6077_v59 = vld [vmem:[%s16007_s8 + $0xc8] sm:$0xff] }
 0x640   : > { %5278 = vrot.lane.b32.xlu0 %v5073_v31, %s11130_s28  ;;  %v16168_v49 = vrot.slane %v13889_v7, 7 }
 0x641   : > { %v5225_v30 = vpop.permute.xlu1 %5224 }
 0x642   : > { %v5223_v14 = vpop.permute.xlu0 %5222  ;;  %v14254_v42 = vsel %vm2332_vm8, %v5317_v19, %v5225_v30  ;;  %v16162_v19 = vrot.slane %v13874_v3, 7  ;;  %v10557_v3 = vpack.c.bf16 %v5517_v54, %v5516_v2  ;;  %v5014_v20 = vsel %vm538_vm0, 0.0, %v16168_v49  ;;  %v16192_v49 = vld [vmem:[#allocation14_spill] sm:$0xff] }
 0x643   : > { %v14249_v31 = vsel %vm2332_vm8, %v5316_v39, %v5223_v14  ;;  %5108 = vrot.lane.b32.xlu1 %v14226_v35, %s11129_s27  ;;  %v10553_v39 = vpack.c.bf16 %v5515_v37, %v5514_v43  ;;  %v16161_v14 = vpack.i.bf16 %v12916_v61, %v12919_v6  ;;  %v16177_v37 = vld [vmem:[#allocation6_spill] sm:$0xff] }
 0x644   : > { %9935 = vmatprep.mubr.msk.f32.mxu1 %vm2461_vm9, %v14249_v31  ;;  %5106 = vrot.lane.b32.xlu0 %v14230_v5, %s11129_s27 }
 0x645   : > { %9936 = vmatmul.mubr.msk.f32.vlgmr.msra.gmra.mrb[64].mxu1 %vm2461_vm9, %v14254_v42  ;;  %v5117_v12 = vpop.permute.xlu1 %5116 }
 0x646   : > { %v5115_v46 = vpop.permute.xlu0 %5114  ;;  %10540 = vmatpush3.bf16.msra.mxu1 %v14122_v38  ;;  %v5012_v38 = vsel %vm538_vm0, 0.0, %v16158_v8  ;;  %v5319_v50 = vsel %vm2299_vm7, %v13880_v23, %v5117_v12  ;;  %v16160_v23 = vpack.i.bf16 %v12937_v22, %v12939_v51  ;;  %v5013_v22 = vsel %vm538_vm0, 0.0, %v16162_v19 }
 0x647   : > { %5220 = vrot.lane.b32.xlu1 %v5090_v0, %s11130_s28  ;;  %10542 = vmatprep.subr.bf16.mxu1 %v10541_v32  ;;  %v5318_v34 = vsel %vm2299_vm7, %v5012_v38, %v5115_v46  ;;  %v6076_v46 = vld [vmem:[%s16007_s8 + $0xc0] sm:$0xff] }
 0x648   : > { %5218 = vrot.lane.b32.xlu0 %v5028_v44, %s11130_s28  ;;  %v16165_v44 = vpack.i.bf16 %v13027_v9, %v13029_v16 }
 0x649   : > { %v5229_v55 = vpop.permute.xlu1 %5228 }
 0x64a   : > { %v5227_v28 = vpop.permute.xlu0 %5226  ;;  %10544 = vmatpush3.bf16.msra.mxu1 %v10541_v32  ;;  %v14295_v30 = vsel %vm2332_vm8, %v5319_v50, %v5229_v55 }
 0x64b   : > { %v14288_v11 = vsel %vm2332_vm8, %v5318_v34, %v5227_v28  ;;  %11009 = vrot.lane.b32.xlu1 %v16159_v4, %s11131_s17  ;;  %10546 = vmatprep.subr.bf16.mxu1 %v10545_v53  ;;  %v16169_v34 = vld [vmem:[#allocation5_spill] sm:$0xff]  ;;  %v16171_v28 = vld [vmem:[#allocation3_spill] sm:$0xff] }
 0x64c   : > { %9938 = vmatprep.mubr.msk.f32.mxu1 %vm2461_vm9, %v14288_v11  ;;  %11004 = vrot.lane.b32.xlu0 %v11003_v18, %s11131_s17  ;;  %v16172_v18 = vld [vmem:[#allocation4_spill] sm:$0xff] }
 0x64d   : > { %9939 = vmatmul.mubr.msk.f32.gmra.mrb[66].mxu1 %vm2461_vm9, %v14295_v30  ;;  %v5121_v27 = vpop.permute.xlu1 %5120 }
 0x64e   : > { %v5119_v62 = vpop.permute.xlu0 %5118  ;;  %10548 = vmatpush3.bf16.msra.mxu1 %v10545_v53  ;;  %v5321_v61 = vsel %vm2299_vm7, %v13896_v45, %v5121_v27  ;;  %v16164_v45 = vpack.i.bf16 %v12959_v21, %v12961_v10  ;;  %v14356_v21 = vpack.c.bf16 %v6077_v59, %v6076_v46  ;;  %v16166_v10 = vld [vmem:[#allocation2_spill] sm:$0xff]  ;;  %v16178_v27 = vld [vmem:[#allocation7_spill] sm:$0xff] }
 0x64f   : > { %11019 = vrot.lane.b32.xlu1 %v16160_v23, %s11131_s17  ;;  %10550 = vmatprep.subr.bf16.mxu1 %v10549_v48  ;;  %v5320_v32 = vsel %vm2299_vm7, %v5013_v22, %v5119_v62  ;;  %v16167_v53 = vpack.i.bf16 %v16166_v10, %v13004_v33  ;;  %v16170_v33 = vpack.i.bf16 %v13078_v15, %v16169_v34  ;;  %v16174_v15 = vld [vmem:[#allocation8_spill] sm:$0xff]  ;;  %v16180_v23 = vld [vmem:[#allocation18_spill] sm:$0xff]  ;;  %v16187_v46 = vld [vmem:[#allocation11_spill] sm:$0xff] }
 0x650   : > { %11014 = vrot.lane.b32.xlu0 %v16161_v14, %s11131_s17  ;;  %v16179_v62 = vpack.i.bf16 %v16177_v37, %v16178_v27  ;;  %v16182_v22 = vld [vmem:[#allocation20_spill] sm:$0xff]  ;;  %v16190_v10 = vld [vmem:[#allocation17_spill] sm:$0xff] }
 0x651   : > { %v5233_v51 = vpop.permute.xlu1 %5232 }
 0x652   : > { %v5231_v57 = vpop.permute.xlu0 %5230  ;;  %10552 = vmatpush3.bf16.msra.mxu1 %v10549_v48  ;;  %v14336_v12 = vsel %vm2332_vm8, %v5321_v61, %v5233_v51  ;;  %v16175_v48 = vld [vmem:[#allocation9_spill] sm:$0xff] }
 0x653   : > { %v14329_v6 = vsel %vm2332_vm8, %v5320_v32, %v5231_v57  ;;  %11029 = vrot.lane.b32.xlu1 %v16163_v29, %s11131_s17  ;;  %10554 = vmatprep.subr.bf16.mxu1 %v10553_v39  ;;  %v16176_v43 = vpack.i.bf16 %v16174_v15, %v16175_v48  ;;  %v16183_v57 = vld [vmem:[#allocation12_spill] sm:$0xff]  ;;  %v16184_v61 = vld [vmem:[#allocation13_spill] sm:$0xff] }
 0x654   : > { %9941 = vmatprep.mubr.msk.f32.mxu1 %vm2461_vm9, %v14329_v6  ;;  %11024 = vrot.lane.b32.xlu0 %v16164_v45, %s11131_s17  ;;  %v16185_v29 = vpack.i.bf16 %v16183_v57, %v16184_v61  ;;  %v16186_v45 = vld [vmem:[#allocation10_spill] sm:$0xff]  ;;  %v16201_v57 = vrot.slane %v13971_v58, 7 }
 0x655   : > { %9942 = vmatmul.mubr.msk.f32.gmra.mrb[68].mxu1 %vm2461_vm9, %v14336_v12  ;;  %v5125_v36 = vpop.permute.xlu1 %5124  ;;  %v16188_v59 = vpack.i.bf16 %v16186_v45, %v16187_v46 }
 0x656   : > { %v5123_v0 = vpop.permute.xlu0 %5122  ;;  %10556 = vmatpush3.bf16.msra.mxu1 %v10553_v39  ;;  %v5323_v9 = vsel %vm2299_vm7, %v13912_v60, %v5125_v36  ;;  %v16173_v60 = vpack.i.bf16 %v16171_v28, %v16172_v18  ;;  %v16181_v39 = vrot.slane %v16180_v23, 7  ;;  %v16197_v18 = vld [vmem:[#allocation22_spill] sm:$0xff]  ;;  %v5018_v61 = vsel %vm538_vm0, 0.0, %v16201_v57 }
 0x657   : > { %11039 = vrot.lane.b32.xlu1 %v16165_v44, %s11131_s17  ;;  %10558 = vmatprep.subr.bf16.mxu1 %v10557_v3  ;;  %v5322_v38 = vsel %vm2299_vm7, %v5014_v20, %v5123_v0  ;;  %v16189_v44 = vld [vmem:[#allocation16_spill] sm:$0xff]  ;;  %v16193_v20 = vld [vmem:[#allocation15_spill] sm:$0xff] }
 0x658   : > { %11034 = vrot.lane.b32.xlu0 %v16167_v53, %s11131_s17  ;;  %v5015_v14 = vsel %vm538_vm0, 0.0, %v16181_v39  ;;  %v16191_v53 = vpack.i.bf16 %v16189_v44, %v16190_v10 }
 0x659   : > { %v5237_v8 = vpop.permute.xlu1 %5236 }
 0x65a   : > { %v5235_v55 = vpop.permute.xlu0 %5234  ;;  %10560 = vmatpush3.bf16.msra.mxu1 %v10557_v3  ;;  %v14377_v7 = vsel %vm2332_vm8, %v5323_v9, %v5237_v8  ;;  %v16194_v8 = vpack.i.bf16 %v16192_v49, %v16193_v20 }
 0x65b   : > { %v14369_v16 = vsel %vm2332_vm8, %v5322_v38, %v5235_v55  ;;  %11049 = vrot.lane.b32.xlu1 %v16170_v33, %s11131_s17  ;;  %10562 = vmatprep.subr.bf16.mxu1 %v14356_v21  ;;  %v16195_v38 = vld [vmem:[#allocation19_spill] sm:$0xff] }
 0x65c   : > { %9944 = vmatprep.mubr.msk.f32.mxu1 %vm2461_vm9, %v14369_v16  ;;  %11044 = vrot.lane.b32.xlu0 %v16173_v60, %s11131_s17  ;;  %v16196_v55 = vrot.slane %v16195_v38, 7 }
 0x65d   : > { %9945 = vmatmul.mubr.msk.f32.gmra.mrb[70].mxu1 %vm2461_vm9, %v14377_v7  ;;  %v5129_v50 = vpop.permute.xlu1 %5128 }
 0x65e   : > { %v5127_v4 = vpop.permute.xlu0 %5126  ;;  %v5325_v51 = vsel %vm2299_vm7, %v16182_v22, %v5129_v50  ;;  %v5016_v9 = vsel %vm538_vm0, 0.0, %v16196_v55  ;;  %v16204_v55 = vld [vmem:[#allocation25_spill] sm:$0xff] }
 0x65f   : > { %11059 = vrot.lane.b32.xlu1 %v16176_v43, %s11131_s17  ;;  %v5324_v54 = vsel %vm2299_vm7, %v5015_v14, %v5127_v4  ;;  %v16198_v43 = vld [vmem:[#allocation21_spill] sm:$0xff]  ;;  %v16200_v14 = vld [vmem:[#allocation23_spill] sm:$0xff] }
 0x660   : > { %11054 = vrot.lane.b32.xlu0 %v16179_v62, %s11131_s17  ;;  %v16199_v37 = vrot.slane %v16198_v43, 7 }
 0x661   : > { %v5241_v2 = vpop.permute.xlu1 %5240 }
 0x662   : > { %v5239_v19 = vpop.permute.xlu0 %5238  ;;  %v14409_v3 = vsel %vm2332_vm8, %v5325_v51, %v5241_v2  ;;  %v5017_v27 = vsel %vm538_vm0, 0.0, %v16199_v37  ;;  %v16206_v37 = vld [vmem:[#allocation26_spill] sm:$0xff] }
 0x663   : > { %v14402_v32 = vsel %vm2332_vm8, %v5324_v54, %v5239_v19  ;;  %11069 = vrot.lane.b32.xlu1 %v16185_v29, %s11131_s17 }
 0x664   : > { %9947 = vmatprep.mubr.msk.f32.mxu1 %vm2461_vm9, %v14402_v32  ;;  %11064 = vrot.lane.b32.xlu0 %v16188_v59, %s11131_s17  ;;  %v16202_v59 = vld [vmem:[#allocation24_spill] sm:$0xff] }
 0x665   : > { %9948 = vmatmul.mubr.msk.f32.gmra.mrb[72].mxu1 %vm2461_vm9, %v14409_v3  ;;  %v5133_v36 = vpop.permute.xlu1 %5132 }
 0x666   : > { %v5131_v0 = vpop.permute.xlu0 %5130  ;;  %v5327_v60 = vsel %vm2299_vm7, %v16197_v18, %v5133_v36  ;;  %v16205_v18 = vrot.slane %v14018_v17, 7 }
 0x667   : > { %11079 = vrot.lane.b32.xlu1 %v16191_v53, %s11131_s17  ;;  %v5326_v33 = vsel %vm2299_vm7, %v5016_v9, %v5131_v0  ;;  %v16203_v53 = vrot.slane %v13994_v25, 7 }
 0x668   : > { %11074 = vrot.lane.b32.xlu0 %v16194_v8, %s11131_s17 }
 0x669   : > { %v5245_v34 = vpop.permute.xlu1 %5244  ;;  %v5019_v49 = vsel %vm538_vm0, 0.0, %v16203_v53 }
 0x66a   : > { %v5243_v28 = vpop.permute.xlu0 %5242  ;;  %v14437_v4 = vsel %vm2332_vm8, %v5327_v60, %v5245_v34  ;;  %v5020_v60 = vsel %vm538_vm0, 0.0, %v16205_v18  ;;  %v16210_v18 = vld [vmem:[#allocation28_spill] sm:$0xff] }
 0x66b   : > { %v14434_v50 = vsel %vm2332_vm8, %v5326_v33, %v5243_v28 }
 0x66c   : > { %9950 = vmatprep.mubr.msk.f32.mxu1 %vm2461_vm9, %v14434_v50 }
 0x66d   : > { %9951 = vmatmul.mubr.msk.f32.gmra.mrb[74].mxu1 %vm2461_vm9, %v14437_v4  ;;  %v5137_v15 = vpop.permute.xlu1 %5136 }
 0x66e   : > { %v5135_v48 = vpop.permute.xlu0 %5134  ;;  %v5329_v2 = vsel %vm2299_vm7, %v16200_v14, %v5137_v15  ;;  %v16207_v14 = vrot.slane %v14044_v56, 7 }
 0x66f   : > { %v5328_v23 = vsel %vm2299_vm7, %v5017_v27, %v5135_v48 }
 0x671   : > { %v5249_v62 = vpop.permute.xlu1 %5248 }
 0x672   : > { %v5247_v39 = vpop.permute.xlu0 %5246  ;;  %v14453_v19 = vsel %vm2332_vm8, %v5329_v2, %v5249_v62  ;;  %v5021_v2 = vsel %vm538_vm0, 0.0, %v16207_v14 }
 0x673   : > { %v14450_v54 = vsel %vm2332_vm8, %v5328_v23, %v5247_v39 }
 0x674   : > { %9953 = vmatprep.mubr.msk.f32.mxu1 %vm2461_vm9, %v14450_v54 }
 0x675   : > { %9954 = vmatmul.mubr.msk.f32.gmra.mrb[76].mxu1 %vm2461_vm9, %v14453_v19  ;;  %v5141_v22 = vpop.permute.xlu1 %5140 }
 0x676   : > { %v5139_v51 = vpop.permute.xlu0 %5138  ;;  %v5331_v36 = vsel %vm2299_vm7, %v16202_v59, %v5141_v22 }
 0x677   : > { %v5330_v45 = vsel %vm2299_vm7, %v5018_v61, %v5139_v51  ;;  %v16208_v61 = vld [vmem:[#allocation27_spill] sm:$0xff] }
 0x679   : > { %v5253_v29 = vpop.permute.xlu1 %5252 }
 0x67a   : > { %v5251_v46 = vpop.permute.xlu0 %5250  ;;  %v14469_v44 = vsel %vm2332_vm8, %v5331_v36, %v5253_v29  ;;  %v6454_v36 = vld [vmem:[%s14527_s26 + $0x10] sm:$0xff] }
 0x67b   : > { %v14466_v0 = vsel %vm2332_vm8, %v5330_v45, %v5251_v46  ;;  %vm6486_vm12 = vcmp.gt.f32.partialorder %v6454_v36, 0.0 }
 0x67c   : > { %9956 = vmatprep.mubr.msk.f32.mxu1 %vm2461_vm9, %v14466_v0 }
 0x67d   : > { %9957 = vmatmul.mubr.msk.f32.gmra.mrb[78].mxu1 %vm2461_vm9, %v14469_v44  ;;  %v5145_v58 = vpop.permute.xlu1 %5144 }
 0x67e   : > { %v5143_v10 = vpop.permute.xlu0 %5142  ;;  %v5333_v9 = vsel %vm2299_vm7, %v16204_v55, %v5145_v58  ;;  %v6455_v58 = vld [vmem:[%s14527_s26 + $0x18] sm:$0xff] }
 0x67f   : > { %v5332_v8 = vsel %vm2299_vm7, %v5019_v49, %v5143_v10  ;;  %v11132_v10 = vmov 0   ;;  %vm6487_vm13 = vcmp.gt.f32.partialorder %v6455_v58, 0.0 }
 0x680   : > { %11083 = vset.pattern.permute.xlu0 %v11132_v10  ;;  %11084 = vset.pattern.permute.xlu1 %v11132_v10  ;;  %v6518_v53 = vsel %vm6486_vm12, 1, %v11132_v10  ;;  %v6519_v49 = vsel %vm6487_vm13, 1, %v11132_v10 }
 0x681   : > { %v5257_v20 = vpop.permute.xlu1 %5256  ;;  %6555 = vperm.xlu0 %11083, %v6518_v53   ;;  %6558 = vperm.xlu1 %11084, %v6519_v49  }
 0x682   : > { %v5255_v38 = vpop.permute.xlu0 %5254  ;;  %v14485_v33 = vsel %vm2332_vm8, %v5333_v9, %v5257_v20  ;;  %v16209_v20 = vrot.slane %v14068_v40, 7 }
 0x683   : > { %v14482_v34 = vsel %vm2332_vm8, %v5332_v8, %v5255_v38 }
 0x684   : > { %9959 = vmatprep.mubr.msk.f32.mxu1 %vm2461_vm9, %v14482_v34  ;;  %v5022_v8 = vsel %vm538_vm0, 0.0, %v16209_v20 }
 0x685   : > { %9960 = vmatmul.mubr.msk.f32.gmra.mrb[80].mxu1 %vm2461_vm9, %v14485_v33  ;;  %v5149_v25 = vpop.permute.xlu1 %5148 }
 0x686   : > { %v5147_v28 = vpop.permute.xlu0 %5146  ;;  %v5335_v27 = vsel %vm2299_vm7, %v16206_v37, %v5149_v25  ;;  %v6457_v25 = vld [vmem:[%s14527_s26 + $0x28] sm:$0xff] }
 0x687   : > { %v5334_v48 = vsel %vm2299_vm7, %v5020_v60, %v5147_v28  ;;  %v6456_v28 = vld [vmem:[%s14527_s26 + $0x20] sm:$0xff]  ;;  %vm6489_vm14 = vcmp.gt.f32.partialorder %v6457_v25, 0.0  ;;  %v5024_v25 = vsel %vm538_vm0, 0.0, %v4972_v24 }
 0x688   : > { %vm6488_vm15 = vcmp.gt.f32.partialorder %v6456_v28, 0.0 }
 0x689   : > { %v5261_v15 = vpop.permute.xlu1 %5260 }
 0x68a   : > { %v5259_v43 = vpop.permute.xlu0 %5258  ;;  %v14501_v23 = vsel %vm2332_vm8, %v5335_v27, %v5261_v15 }
 0x68b   : > { %v14498_v62 = vsel %vm2332_vm8, %v5334_v48, %v5259_v43  ;;  %v6521_v48 = vsel %vm6489_vm14, 1, %v11132_v10  ;;  %v6520_v43 = vsel %vm6488_vm15, 1, %v11132_v10 }
 0x68c   : > { %9962 = vmatprep.mubr.msk.f32.mxu1 %vm2461_vm9, %v14498_v62  ;;  %6564 = vperm.xlu0 %11083, %v6521_v48   ;;  %v6465_v48 = vld [vmem:[%s14527_s26 + $0x68] sm:$0xff] }
 0x68d   : > { %9963 = vmatmul.mubr.msk.f32.gmra.mrb[82].mxu1 %vm2461_vm9, %v14501_v23  ;;  %v5153_v17 = vpop.permute.xlu1 %5152  ;;  %6561 = vperm.xlu1 %11084, %v6520_v43   ;;  %v6464_v43 = vld [vmem:[%s14527_s26 + $0x60] sm:$0xff]  ;;  %vm6497_vm11 = vcmp.gt.f32.partialorder %v6465_v48, 0.0 }
 0x68e   : > { %v5151_v39 = vpop.permute.xlu0 %5150  ;;  %v5337_v29 = vsel %vm2299_vm7, %v16208_v61, %v5153_v17  ;;  %v6459_v17 = vld [vmem:[%s14527_s26 + $0x38] sm:$0xff]  ;;  %vm6496_vm12 = vcmp.gt.f32.partialorder %v6464_v43, 0.0  ;;  %v6529_v24 = vsel %vm6497_vm11, 1, %v11132_v10  ;;  %v6472_v48 = vld [vmem:[%s14527_s26 + $0xa0] sm:$0xff] }
 0x68f   : > { %v5336_v51 = vsel %vm2299_vm7, %v5021_v2, %v5151_v39  ;;  %v6458_v39 = vld [vmem:[%s14527_s26 + $0x30] sm:$0xff]  ;;  %vm6491_vm1 = vcmp.gt.f32.partialorder %v6459_v17, 0.0  ;;  %v6528_v17 = vsel %vm6496_vm12, 1, %v11132_v10  ;;  %v6475_v43 = vld [vmem:[%s14527_s26 + $0xb8] sm:$0xff] }
 0x690   : > { %vm6490_vm2 = vcmp.gt.f32.partialorder %v6458_v39, 0.0  ;;  %v6523_v14 = vsel %vm6491_vm1, 1, %v11132_v10 }
 0x691   : > { %v5265_v22 = vpop.permute.xlu1 %5264  ;;  %v6522_v2 = vsel %vm6490_vm2, 1, %v11132_v10  ;;  %6570 = vperm.xlu0 %11083, %v6523_v14   ;;  %v6467_v14 = vld [vmem:[%s14527_s26 + $0x78] sm:$0xff] }
 0x692   : > { %v5263_v57 = vpop.permute.xlu0 %5262  ;;  %v14517_v46 = vsel %vm2332_vm8, %v5337_v29, %v5265_v22  ;;  %v16211_v22 = vrot.slane %v14094_v1, 7  ;;  %6567 = vperm.xlu1 %11084, %v6522_v2   ;;  %v6466_v2 = vld [vmem:[%s14527_s26 + $0x70] sm:$0xff]  ;;  %vm6499_vm13 = vcmp.gt.f32.partialorder %v6467_v14, 0.0 }
 0x693   : > { %v14514_v45 = vsel %vm2332_vm8, %v5336_v51, %v5263_v57  ;;  %vm6498_vm14 = vcmp.gt.f32.partialorder %v6466_v2, 0.0 }
 0x694   : > { %9965 = vmatprep.mubr.msk.f32.mxu1 %vm2461_vm9, %v14514_v45  ;;  %v5023_v51 = vsel %vm538_vm0, 0.0, %v16211_v22  ;;  %v6531_v22 = vsel %vm6499_vm13, 1, %v11132_v10 }
 0x695   : > { %9966 = vmatmul.mubr.msk.f32.gmra.mrb[84].mxu1 %vm2461_vm9, %v14517_v46  ;;  %v5157_v56 = vpop.permute.xlu1 %5156 }
 0x696   : > { %v5155_v59 = vpop.permute.xlu0 %5154  ;;  %v5339_v60 = vsel %vm2299_vm7, %v16210_v18, %v5157_v56  ;;  %v6461_v56 = vld [vmem:[%s14527_s26 + $0x48] sm:$0xff] }
 0x697   : > { %v5338_v55 = vsel %vm2299_vm7, %v5022_v8, %v5155_v59  ;;  %v6460_v59 = vld [vmem:[%s14527_s26 + $0x40] sm:$0xff]  ;;  %vm6493_vm4 = vcmp.gt.f32.partialorder %v6461_v56, 0.0  ;;  %v6463_v8 = vld [vmem:[%s14527_s26 + $0x58] sm:$0xff] }
 0x698   : > { %vm6492_vm5 = vcmp.gt.f32.partialorder %v6460_v59, 0.0  ;;  %v6525_v53 = vsel %vm6493_vm4, 1, %v11132_v10  ;;  %vm6495_vm6 = vcmp.gt.f32.partialorder %v6463_v8, 0.0  ;;  %v6469_v59 = vld [vmem:[%s14527_s26 + $0x88] sm:$0xff]  ;;  %v6471_v8 = vld [vmem:[%s14527_s26 + $0x98] sm:$0xff] }
 0x699   : > { %v5269_v38 = vpop.permute.xlu1 %5268  ;;  %v6524_v49 = vsel %vm6492_vm5, 1, %v11132_v10  ;;  %6576 = vperm.xlu0 %11083, %v6525_v53   ;;  %vm6501_vm15 = vcmp.gt.f32.partialorder %v6469_v59, 0.0  ;;  %vm6503_vm2 = vcmp.gt.f32.partialorder %v6471_v8, 0.0 }
 0x69a   : > { %v5267_v9 = vpop.permute.xlu0 %5266  ;;  %v14547_v40 = vsel %vm2332_vm8, %v5339_v60, %v5269_v38  ;;  %6573 = vperm.xlu1 %11084, %v6524_v49   ;;  %v6462_v38 = vld [vmem:[%s14527_s26 + $0x50] sm:$0xff] }
 0x69b   : > { %v14544_v15 = vsel %vm2332_vm8, %v5338_v55, %v5267_v9  ;;  %vm6494_vm10 = vcmp.gt.f32.partialorder %v6462_v38, 0.0  ;;  %v6527_v55 = vsel %vm6495_vm6, 1, %v11132_v10  ;;  %v6470_v38 = vld [vmem:[%s14527_s26 + $0x90] sm:$0xff]  ;;  %vm6504_vm6 = vcmp.gt.f32.partialorder %v6472_v48, 0.0 }
 0x69c   : > { %9968 = vmatprep.mubr.msk.f32.mxu1 %vm2461_vm9, %v14544_v15  ;;  %v6526_v9 = vsel %vm6494_vm10, 1, %v11132_v10  ;;  %vm6502_vm4 = vcmp.gt.f32.partialorder %v6470_v38, 0.0  ;;  %vm6507_vm10 = vcmp.gt.f32.partialorder %v6475_v43, 0.0  ;;  %v6479_v38 = vld [vmem:[%s14527_s26 + $0xd8] sm:$0xff]  ;;  %v6480_v43 = vld [vmem:[%s14527_s26 + $0xe0] sm:$0xff] }
 0x69d   : > { %9969 = vmatmul.mubr.msk.f32.gmra.mrb[86].mxu1 %vm2461_vm9, %v14547_v40  ;;  %v5161_v37 = vpop.permute.xlu1 %5160  ;;  %6582 = vperm.xlu0 %11083, %v6527_v55   ;;  %v4930_v55 = vrot.slane %v14230_v5, 7  ;;  %v6473_v5 = vld [vmem:[%s14527_s26 + $0xa8] sm:$0xff]  ;;  %v6539_v59 = vsel %vm6507_vm10, 1, %v11132_v10 }
 0x69e   : > { %v5159_v27 = vpop.permute.xlu0 %5158  ;;  %v5341_v36 = vsel %vm2299_vm7, %v14133_v41, %v5161_v37  ;;  %6579 = vperm.xlu1 %11084, %v6526_v9   ;;  %vm6505_vm5 = vcmp.gt.f32.partialorder %v6473_v5, 0.0  ;;  %v6481_v5 = vld [vmem:[%s14527_s26 + $0xe8] sm:$0xff] }
 0x69f   : > { %v5340_v61 = vsel %vm2299_vm7, %v5023_v51, %v5159_v27  ;;  %v6530_v51 = vsel %vm6498_vm14, 1, %v11132_v10  ;;  %v6537_v14 = vsel %vm6505_vm5, 1, %v11132_v10  ;;  %vm6511_vm14 = vcmp.gt.f32.partialorder %v6479_v38, 0.0 }
 0x6a0   : > { %v6543_v48 = vsel %vm6511_vm14, 1, %v11132_v10 }
 0x6a1   : > { %v5273_v57 = vpop.permute.xlu1 %5272  ;;  %6588 = vperm.xlu0 %11083, %v6529_v24  }
 0x6a2   : > { %v5271_v29 = vpop.permute.xlu0 %5270  ;;  %v14571_v1 = vsel %vm2332_vm8, %v5341_v36, %v5273_v57  ;;  %6585 = vperm.xlu1 %11084, %v6528_v17   ;;  %v5025_v57 = vsel %vm538_vm0, 0.0, %v4975_v13  ;;  %v6468_v36 = vld [vmem:[%s14527_s26 + $0x80] sm:$0xff]  ;;  %v6533_v13 = vsel %vm6501_vm15, 1, %v11132_v10  ;;  %v6474_v17 = vld [vmem:[%s14527_s26 + $0xb0] sm:$0xff] }
 0x6a3   : > { %v14568_v58 = vsel %vm2332_vm8, %v5340_v61, %v5271_v29  ;;  %vm6500_vm1 = vcmp.gt.f32.partialorder %v6468_v36, 0.0  ;;  %vm6506_vm11 = vcmp.gt.f32.partialorder %v6474_v17, 0.0  ;;  %v6476_v36 = vld [vmem:[%s14527_s26 + $0xc0] sm:$0xff]  ;;  %v6087_v17 = vld [vmem:[%s16007_s8 + $0x118] sm:$0xff] }
 0x6a4   : > { %9971 = vmatprep.mubr.msk.f32.mxu1 %vm2461_vm9, %v14568_v58  ;;  %v6538_v8 = vsel %vm6506_vm11, 1, %v11132_v10  ;;  %vm6508_vm13 = vcmp.gt.f32.partialorder %v6476_v36, 0.0 }
 0x6a5   : > { %9972 = vmatmul.mubr.msk.f32.gmra.mrb[88].mxu1 %vm2461_vm9, %v14571_v1  ;;  %v5165_v20 = vpop.permute.xlu1 %5164  ;;  %6594 = vperm.xlu0 %11083, %v6531_v22   ;;  %v6081_v22 = vld [vmem:[%s16007_s8 + $0xe8] sm:$0xff] }
 0x6a6   : > { %v5163_v41 = vpop.permute.xlu0 %5162  ;;  %v5343_v37 = vsel %vm2299_vm7, %v14149_v52, %v5165_v20  ;;  %6591 = vperm.xlu1 %11084, %v6530_v51   ;;  %v6532_v20 = vsel %vm6500_vm1, 1, %v11132_v10  ;;  %v6536_v51 = vsel %vm6504_vm6, 1, %v11132_v10  ;;  %vm6513_vm1 = vcmp.gt.f32.partialorder %v6481_v5, 0.0 }
 0x6a7   : > { %v5342_v18 = vsel %vm2299_vm7, %v5024_v25, %v5163_v41  ;;  %v16212_v41 = vmov 0.0   ;;  %v6078_v25 = vld [vmem:[%s16007_s8 + $0xd0] sm:$0xff] }
 0x6a9   : > { %v5277_v28 = vpop.permute.xlu1 %5276  ;;  %6600 = vperm.xlu0 %11083, %v6533_v13  }
 0x6aa   : > { %v5275_v60 = vpop.permute.xlu0 %5274  ;;  %v14595_v47 = vsel %vm2332_vm8, %v5343_v37, %v5277_v28  ;;  %6597 = vperm.xlu1 %11084, %v6532_v20   ;;  %v6079_v28 = vld [vmem:[%s16007_s8 + $0xd8] sm:$0xff]  ;;  %v4931_v37 = vrot.slane %v14226_v35, 7  ;;  %v6080_v35 = vld [vmem:[%s16007_s8 + $0xe0] sm:$0xff] }
 0x6ab   : > { %v14592_v27 = vsel %vm2332_vm8, %v5342_v18, %v5275_v60  ;;  %v6535_v18 = vsel %vm6503_vm2, 1, %v11132_v10  ;;  %v6534_v60 = vsel %vm6502_vm4, 1, %v11132_v10  ;;  %v10569_v13 = vpack.c.bf16 %v6081_v22, %v6080_v35  ;;  %v6088_v22 = vld [vmem:[%s16007_s8 + $0x120] sm:$0xff] }
 0x6ac   : > { %9974 = vmatprep.mubr.msk.f32.mxu1 %vm2461_vm9, %v14592_v27  ;;  %vm6512_vm2 = vcmp.gt.f32.partialorder %v6480_v43, 0.0 }
 0x6ad   : > { %9975 = vmatmul.mubr.msk.f32.gmra.mrb[90].mxu1 %vm2461_vm9, %v14595_v47  ;;  %v5169_v39 = vpop.permute.xlu1 %5168  ;;  %6606 = vperm.xlu0 %11083, %v6535_v18   ;;  %v6085_v18 = vld [vmem:[%s16007_s8 + $0x108] sm:$0xff] }
 0x6ae   : > { %v5167_v52 = vpop.permute.xlu0 %5166  ;;  %v5345_v53 = vsel %vm2299_vm7, %v14164_v26, %v5169_v39  ;;  %6603 = vperm.xlu1 %11084, %v6534_v60   ;;  %v5010_v39 = vsel %vm538_vm0, 0.0, %v4930_v55  ;;  %v6540_v60 = vsel %vm6508_vm13, 1, %v11132_v10 }
 0x6af   : > { %v5344_v29 = vsel %vm2299_vm7, %v5025_v57, %v5167_v52  ;;  %v10565_v52 = vpack.c.bf16 %v6079_v28, %v6078_v25  ;;  %v6477_v57 = vld [vmem:[%s14527_s26 + $0xc8] sm:$0xff]  ;;  %v6084_v28 = vld [vmem:[%s16007_s8 + $0x100] sm:$0xff] }
 0x6b0   : > { %vm6509_vm12 = vcmp.gt.f32.partialorder %v6477_v57, 0.0  ;;  %v6544_v57 = vsel %vm6512_vm2, 1, %v11132_v10 }
 0x6b1   : > { %v5281_v61 = vpop.permute.xlu1 %5280  ;;  %6612 = vperm.xlu0 %11083, %v6537_v14   ;;  %v6545_v14 = vsel %vm6513_vm1, 1, %v11132_v10 }
 0x6b2   : > { %v5279_v56 = vpop.permute.xlu0 %5278  ;;  %v14619_v63 = vsel %vm2332_vm8, %v5345_v53, %v5281_v61  ;;  %6609 = vperm.xlu1 %11084, %v6536_v51   ;;  %v6089_v51 = vld [vmem:[%s16007_s8 + $0x128] sm:$0xff] }
 0x6b3   : > { %v14616_v49 = vsel %vm2332_vm8, %v5344_v29, %v5279_v56  ;;  %v4932_v56 = vsel %vm538_vm0, %v4930_v55, %v4931_v37  ;;  %v6541_v55 = vsel %vm6509_vm12, 1, %v11132_v10  ;;  %v10577_v37 = vpack.c.bf16 %v6085_v18, %v6084_v28 }
 0x6b4   : > { %9977 = vmatprep.mubr.msk.f32.mxu1 %vm2461_vm9, %v14616_v49  ;;  %v10585_v36 = vpack.c.bf16 %v6089_v51, %v6088_v22 }
 0x6b5   : > { %9978 = vmatmul.mubr.msk.f32.gmra.mrb[92].mxu1 %vm2461_vm9, %v14619_v63  ;;  %v5109_v9 = vpop.permute.xlu1 %5108  ;;  %6618 = vperm.xlu0 %11083, %v6539_v59   ;;  %v6452_v59 = vld [vmem:[%s14527_s26] sm:$0xff] }
 0x6b6   : > { %v5107_v26 = vpop.permute.xlu0 %5106  ;;  %9980 = vmatprep.mubr.f32.mxu1 %v16212_v41  ;;  %v5315_v53 = vsel %vm2299_vm7, %v4932_v56, %v5109_v9  ;;  %v6478_v9 = vld [vmem:[%s14527_s26 + $0xd0] sm:$0xff]  ;;  %6615 = vperm.xlu1 %11084, %v6538_v8   ;;  %vm6484_vm10 = vcmp.gt.f32.partialorder %v6452_v59, 0.0 }
 0x6b7   : > { %v5314_v2 = vsel %vm2299_vm7, %v5010_v39, %v5107_v26  ;;  %v6083_v26 = vld [vmem:[%s16007_s8 + $0xf8] sm:$0xff]  ;;  %vm6510_vm15 = vcmp.gt.f32.partialorder %v6478_v9, 0.0  ;;  %v6516_v38 = vsel %vm6484_vm10, 1, %v11132_v10 }
 0x6b8   : > { %v6542_v39 = vsel %vm6510_vm15, 1, %v11132_v10 }
 0x6b9   : > { %9981 = vmatmul.mubr.f32.gmra.mrb[94].mxu1 %v16212_v41  ;;  %v5221_v61 = vpop.permute.xlu1 %5220  ;;  %6624 = vperm.xlu0 %11083, %v6541_v55  }
 0x6ba   : > { %v5219_v24 = vpop.permute.xlu0 %5218  ;;  %10007 = vmatprep.mubr.f32.mxu1 %v16212_v41  ;;  %v14669_v20 = vsel %vm2332_vm8, %v5315_v53, %v5221_v61  ;;  %6621 = vperm.xlu1 %11084, %v6540_v60   ;;  %v6453_v61 = vld [vmem:[%s14527_s26 + $0x8] sm:$0xff]  ;;  %v6090_v53 = vld [vmem:[%s16007_s8 + $0x130] sm:$0xff] }
 0x6bb   : > { %v14658_v29 = vsel %vm2332_vm8, %v5314_v2, %v5219_v24  ;;  %v6086_v24 = vld [vmem:[%s16007_s8 + $0x110] sm:$0xff]  ;;  %vm6485_vm6 = vcmp.gt.f32.partialorder %v6453_v61, 0.0 }
 0x6bc   : > { %v6482_v2 = vld [vmem:[%s14527_s26 + $0xf0] sm:$0xff]  ;;  %v10581_v35 = vpack.c.bf16 %v6087_v17, %v6086_v24 }
 0x6bd   : > { %10008 = vmatmul.mubr.f32.vlgmr.msra.gmra.mrb[64].mxu1 %v16212_v41  ;;  %6630 = vperm.xlu0 %11083, %v6543_v48   ;;  %vm6514_vm5 = vcmp.gt.f32.partialorder %v6482_v2, 0.0  ;;  %v11010_v9 = vpop.permute.xlu1 %11009 }
 0x6be   : > { %10564 = vmatpush3.bf16.msra.mxu1 %v14356_v21  ;;  %10010 = vmatprep.mubr.msk.f32.mxu1 %vm2461_vm9, %v14658_v29  ;;  %v6082_v21 = vld [vmem:[%s16007_s8 + $0xf0] sm:$0xff]  ;;  %v11011_v28 = vunpack.i.l.bf16 %v11010_v9  ;;  %v11012_v5 = vunpack.i.h.bf16 %v11010_v9 }
 0x6bf   : > { %10566 = vmatprep.subr.bf16.mxu1 %v10565_v52  ;;  %v10573_v25 = vpack.c.bf16 %v6083_v26, %v6082_v21  ;;  %6627 = vperm.xlu1 %11084, %v6542_v39   ;;  %v6546_v21 = vsel %vm6514_vm5, 1, %v11132_v10  ;;  %v6517_v26 = vsel %vm6485_vm6, 1, %v11132_v10 }
 0x6c0   : > { %v5477_v39 = vsel %vm2461_vm9, %v14254_v42, %v11012_v5 }
 0x6c1   : > { %10011 = vmatmul.mubr.msk.f32.gmra.mrb[66].mxu1 %vm2461_vm9, %v14669_v20  ;;  %6636 = vperm.xlu0 %11083, %v6545_v14   ;;  %v11020_v24 = vpop.permute.xlu1 %11019 }
 0x6c2   : > { %10013 = vmatprep.mubr.msk.f32.mxu1 %vm2461_vm9, %v14249_v31  ;;  %10568 = vmatpush3.bf16.msra.mxu1 %v10565_v52  ;;  %v6483_v52 = vld [vmem:[%s14527_s26 + $0xf8] sm:$0xff]  ;;  %v11022_v2 = vunpack.i.h.bf16 %v11020_v24 }
 0x6c3   : > { %10570 = vmatprep.subr.bf16.mxu1 %v10569_v13  ;;  %vm6515_vm4 = vcmp.gt.f32.partialorder %v6483_v52, 0.0  ;;  %6633 = vperm.xlu1 %11084, %v6544_v57   ;;  %v11021_v52 = vunpack.i.l.bf16 %v11020_v24 }
 0x6c4   : > { %v6547_v56 = vsel %vm6515_vm4, 1, %v11132_v10  ;;  %v11005_v10 = vpop.permute.xlu0 %11004 }
 0x6c5   : > { %10014 = vmatmul.mubr.msk.f32.gmra.mrb[68].mxu1 %vm2461_vm9, %v14254_v42  ;;  %6642 = vperm.xlu0 %11083, %v6547_v56   ;;  %v11006_v55 = vunpack.i.l.bf16 %v11005_v10  ;;  %v11030_v22 = vpop.permute.xlu1 %11029  ;;  %v5481_v42 = vsel %vm2461_vm9, %v14336_v12, %v11022_v2 }
 0x6c6   : > { %10016 = vmatprep.mubr.msk.f32.mxu1 %vm2461_vm9, %v14288_v11  ;;  %10572 = vmatpush3.bf16.msra.mxu1 %v10569_v13  ;;  %v6091_v13 = vld [vmem:[%s16007_s8 + $0x138] sm:$0xff]  ;;  %v11031_v57 = vunpack.i.l.bf16 %v11030_v22  ;;  %v11032_v56 = vunpack.i.h.bf16 %v11030_v22 }
 0x6c7   : > { %10574 = vmatprep.subr.bf16.mxu1 %v10573_v25  ;;  %v10589_v8 = vpack.c.bf16 %v6091_v13, %v6090_v53  ;;  %6639 = vperm.xlu1 %11084, %v6546_v21   ;;  %v5474_v18 = vsel %vm2461_vm9, %v14658_v29, %v11006_v55 }
 0x6c8   : > { %v11015_v60 = vpop.permute.xlu0 %11014 }
 0x6c9   : > { %10017 = vmatmul.mubr.msk.f32.gmra.mrb[70].mxu1 %vm2461_vm9, %v14295_v30  ;;  %6552 = vperm.xlu0 %11083, %v6517_v26   ;;  %v11016_v43 = vunpack.i.l.bf16 %v11015_v60  ;;  %v11017_v17 = vunpack.i.h.bf16 %v11015_v60 }
 0x6ca   : > { %10019 = vmatprep.mubr.msk.f32.mxu1 %vm2461_vm9, %v14329_v6  ;;  %10576 = vmatpush3.bf16.msra.mxu1 %v10573_v25  ;;  %v11007_v25 = vunpack.i.h.bf16 %v11005_v10 }
 0x6cb   : > { %10578 = vmatprep.subr.bf16.mxu1 %v10577_v37  ;;  %6549 = vperm.xlu1 %11084, %v6516_v38   ;;  %v5478_v29 = vsel %vm2461_vm9, %v14288_v11, %v11016_v43 }
 0x6cc   : > { %v5475_v48 = vsel %vm2461_vm9, %v14669_v20, %v11007_v25  ;;  %v11025_v14 = vpop.permute.xlu0 %11024  ;;  %v5479_v20 = vsel %vm2461_vm9, %v14295_v30, %v11017_v17 }
 0x6cd   : > { %10020 = vmatmul.mubr.msk.f32.gmra.mrb[72].mxu1 %vm2461_vm9, %v14336_v12  ;;  %v11027_v51 = vunpack.i.h.bf16 %v11025_v14  ;;  %v5485_v12 = vsel %vm2461_vm9, %v14409_v3, %v11032_v56  ;;  %v7204_v56 = vld [vmem:[%s16009_s10 + $0x80] sm:$0xff] }
 0x6ce   : > { %10022 = vmatprep.mubr.msk.f32.mxu1 %vm2461_vm9, %v14369_v16  ;;  %10580 = vmatpush3.bf16.msra.mxu1 %v10577_v37  ;;  %v5476_v37 = vsel %vm2461_vm9, %v14249_v31, %v11011_v28  ;;  %v5480_v31 = vsel %vm2461_vm9, %v14329_v6, %v11021_v52  ;;  %v5484_v6 = vsel %vm2461_vm9, %v14402_v32, %v11031_v57 }
 0x6cf   : > { %10582 = vmatprep.subr.bf16.mxu1 %v10581_v35  ;;  %v5483_v30 = vsel %vm2461_vm9, %v14377_v7, %v11027_v51 }
 0x6d0   : > { %v11035_v61 = vpop.permute.xlu0 %11034 }
 0x6d1   : > { %10023 = vmatmul.mubr.msk.f32.gmra.mrb[74].mxu1 %vm2461_vm9, %v14377_v7  ;;  %v11036_v59 = vunpack.i.l.bf16 %v11035_v61  ;;  %v11037_v53 = vunpack.i.h.bf16 %v11035_v61 }
 0x6d2   : > { %10025 = vmatprep.mubr.msk.f32.mxu1 %vm2461_vm9, %v14402_v32  ;;  %10584 = vmatpush3.bf16.msra.mxu1 %v10581_v35  ;;  %v11026_v35 = vunpack.i.l.bf16 %v11025_v14 }
 0x6d3   : > { %10586 = vmatprep.subr.bf16.mxu1 %v10585_v36  ;;  %v5487_v7 = vsel %vm2461_vm9, %v14437_v4, %v11037_v53 }
 0x6d4   : > { %v5482_v11 = vsel %vm2461_vm9, %v14369_v16, %v11026_v35  ;;  %v5486_v16 = vsel %vm2461_vm9, %v14434_v50, %v11036_v59  ;;  %v11045_v21 = vpop.permute.xlu0 %11044 }
 0x6d5   : > { %10026 = vmatmul.mubr.msk.f32.gmra.mrb[76].mxu1 %vm2461_vm9, %v14409_v3  ;;  %v11047_v10 = vunpack.i.h.bf16 %v11045_v21 }
 0x6d6   : > { %10028 = vmatprep.mubr.msk.f32.mxu1 %vm2461_vm9, %v14434_v50  ;;  %10588 = vmatpush3.bf16.msra.mxu1 %v10585_v36  ;;  %v11040_v36 = vpop.permute.xlu1 %11039 }
 0x6d7   : > { %10590 = vmatprep.subr.bf16.mxu1 %v10589_v8  ;;  %v11041_v13 = vunpack.i.l.bf16 %v11040_v36  ;;  %v11042_v26 = vunpack.i.h.bf16 %v11040_v36  ;;  %v7207_v36 = vld [vmem:[%s16009_s10 + $0x98] sm:$0xff] }
 0x6d8   : > { %v11055_v9 = vpop.permute.xlu0 %11054 }
 0x6d9   : > { %10029 = vmatmul.mubr.msk.f32.gmra.mrb[78].mxu1 %vm2461_vm9, %v14437_v4  ;;  %v5488_v32 = vsel %vm2461_vm9, %v14450_v54, %v11041_v13  ;;  %v5489_v3 = vsel %vm2461_vm9, %v14453_v19, %v11042_v26  ;;  %v5491_v4 = vsel %vm2461_vm9, %v14469_v44, %v11047_v10  ;;  %v11056_v28 = vunpack.i.l.bf16 %v11055_v9  ;;  %v7211_v10 = vld [vmem:[%s16009_s10 + $0xb8] sm:$0xff] }
 0x6da   : > { %10031 = vmatprep.mubr.msk.f32.mxu1 %vm2461_vm9, %v14450_v54  ;;  %10592 = vmatpush3.bf16.msra.mxu1 %v10589_v8  ;;  %v11046_v8 = vunpack.i.l.bf16 %v11045_v21  ;;  %v11050_v38 = vpop.permute.xlu1 %11049  ;;  %v11057_v60 = vunpack.i.h.bf16 %v11055_v9  ;;  %v7209_v21 = vld [vmem:[%s16009_s10 + $0xa8] sm:$0xff] }
 0x6db   : > { %v11051_v55 = vunpack.i.l.bf16 %v11050_v38  ;;  %v11052_v25 = vunpack.i.h.bf16 %v11050_v38  ;;  %v7210_v38 = vld [vmem:[%s16009_s10 + $0xb0] sm:$0xff] }
 0x6dc   : > { %v5490_v50 = vsel %vm2461_vm9, %v14466_v0, %v11046_v8 }
 0x6dd   : > { %10032 = vmatmul.mubr.msk.f32.gmra.mrb[80].mxu1 %vm2461_vm9, %v14453_v19  ;;  %v5492_v54 = vsel %vm2461_vm9, %v14482_v34, %v11051_v55  ;;  %v5493_v19 = vsel %vm2461_vm9, %v14485_v33, %v11052_v25  ;;  %v10613_v55 = vpack.c.bf16 %v7211_v10, %v7210_v38 }
 0x6de   : > { %10034 = vmatprep.mubr.msk.f32.mxu1 %vm2461_vm9, %v14466_v0  ;;  %v5494_v0 = vsel %vm2461_vm9, %v14498_v62, %v11056_v28 }
 0x6e1   : > { %10035 = vmatmul.mubr.msk.f32.gmra.mrb[82].mxu1 %vm2461_vm9, %v14469_v44  ;;  %v5495_v44 = vsel %vm2461_vm9, %v14501_v23, %v11057_v60 }
 0x6e2   : > { %10037 = vmatprep.mubr.msk.f32.mxu1 %vm2461_vm9, %v14482_v34 }
 0x6e5   : > { %10038 = vmatmul.mubr.msk.f32.gmra.mrb[84].mxu1 %vm2461_vm9, %v14485_v33 }
 0x6e6   : > { %10040 = vmatprep.mubr.msk.f32.mxu1 %vm2461_vm9, %v14498_v62 }
 0x6e9   : > { %10041 = vmatmul.mubr.msk.f32.gmra.mrb[86].mxu1 %vm2461_vm9, %v14501_v23 }
 0x6ea   : > { %10043 = vmatprep.mubr.msk.f32.mxu1 %vm2461_vm9, %v14514_v45 }
 0x6ed   : > { %10044 = vmatmul.mubr.msk.f32.gmra.mrb[88].mxu1 %vm2461_vm9, %v14517_v46 }
 0x6ee   : > { %10046 = vmatprep.mubr.msk.f32.mxu1 %vm2461_vm9, %v14544_v15 }
 0x6f1   : > { %10047 = vmatmul.mubr.msk.f32.gmra.mrb[90].mxu1 %vm2461_vm9, %v14547_v40 }
 0x6f2   : > { %10049 = vmatprep.mubr.msk.f32.mxu1 %vm2461_vm9, %v14568_v58 }
 0x6f5   : > { %10050 = vmatmul.mubr.msk.f32.gmra.mrb[92].mxu1 %vm2461_vm9, %v14571_v1 }
 0x6f6   : > { %10052 = vmatprep.mubr.msk.f32.mxu1 %vm2461_vm9, %v14592_v27 }
 0x6f9   : > { %10053 = vmatmul.mubr.msk.f32.gmra.mrb[94].mxu1 %vm2461_vm9, %v14595_v47 }
 0x6fa   : > { %10087 = vmatprep.mubr.f32.mxu1 %v5474_v18  ;;  %v11060_v18 = vpop.permute.xlu1 %11059 }
 0x6fb   : > { %v11061_v5 = vunpack.i.l.bf16 %v11060_v18  ;;  %v11062_v43 = vunpack.i.h.bf16 %v11060_v18 }
 0x6fd   : > { %10088 = vmatmul.mubr.f32.vlgmr.msra.gmra.mrb[64].mxu1 %v5475_v48  ;;  %v11065_v48 = vpop.permute.xlu0 %11064  ;;  %v5496_v34 = vsel %vm2461_vm9, %v14514_v45, %v11061_v5  ;;  %v5497_v33 = vsel %vm2461_vm9, %v14517_v46, %v11062_v43 }
 0x6fe   : > { %10090 = vmatprep.mubr.f32.mxu1 %v5476_v37  ;;  %v11066_v37 = vunpack.i.l.bf16 %v11065_v48  ;;  %v11070_v24 = vpop.permute.xlu1 %11069  ;;  %v11067_v17 = vunpack.i.h.bf16 %v11065_v48 }
 0x700   : > { %v5498_v62 = vsel %vm2461_vm9, %v14544_v15, %v11066_v37  ;;  %v5499_v23 = vsel %vm2461_vm9, %v14547_v40, %v11067_v17 }
 0x701   : > { %10091 = vmatmul.mubr.f32.gmra.mrb[66].mxu1 %v5477_v39  ;;  %v11071_v39 = vunpack.i.l.bf16 %v11070_v24  ;;  %v11075_v52 = vpop.permute.xlu0 %11074 }
 0x702   : > { %10093 = vmatprep.mubr.f32.mxu1 %v5478_v29  ;;  %v11072_v29 = vunpack.i.h.bf16 %v11070_v24  ;;  %v11076_v14 = vunpack.i.l.bf16 %v11075_v52  ;;  %v11080_v2 = vpop.permute.xlu1 %11079 }
 0x703   : > { %v5500_v45 = vsel %vm2461_vm9, %v14568_v58, %v11071_v39  ;;  %v11081_v35 = vunpack.i.l.bf16 %v11080_v2 }
 0x704   : > { %v5501_v46 = vsel %vm2461_vm9, %v14571_v1, %v11072_v29  ;;  %v5502_v15 = vsel %vm2461_vm9, %v14592_v27, %v11076_v14  ;;  %v7200_v1 = vld [vmem:[%s16009_s10 + $0x60] sm:$0xff]  ;;  %v7201_v27 = vld [vmem:[%s16009_s10 + $0x68] sm:$0xff] }
 0x705   : > { %10094 = vmatmul.mubr.f32.gmra.mrb[68].mxu1 %v5479_v20  ;;  %v11077_v20 = vunpack.i.h.bf16 %v11075_v52  ;;  %v5504_v58 = vsel %vm2461_vm9, %v14616_v49, %v11081_v35  ;;  %v14848_v51 = vpop.permute.xlu0 %6555  ;;  %v7202_v49 = vld [vmem:[%s16009_s10 + $0x70] sm:$0xff] }
 0x706   : > { %10096 = vmatprep.mubr.f32.mxu1 %v5480_v31  ;;  %v11082_v31 = vunpack.i.h.bf16 %v11080_v2  ;;  %vm6646_vm12 = vcmp.eq.s32.totalorder %v14848_v51, 1 }
 0x707   : > { %v5503_v40 = vsel %vm2461_vm9, %v14595_v47, %v11077_v20  ;;  %v10593_v47 = vpack.c.bf16 %v7201_v27, %v7200_v1 }
 0x708   : > { %v5505_v22 = vsel %vm2461_vm9, %v14619_v63, %v11082_v31  ;;  %v7203_v63 = vld [vmem:[%s16009_s10 + $0x78] sm:$0xff] }
 0x709   : > { %10097 = vmatmul.mubr.f32.gmra.mrb[70].mxu1 %v5481_v42  ;;  %v6559_v42 = vpop.permute.xlu1 %6558  ;;  %10594 = vmatprep.subr.bf16.mxu0 %v10593_v47  ;;  %v10597_v57 = vpack.c.bf16 %v7203_v63, %v7202_v49 }
 0x70a   : > { %10099 = vmatprep.mubr.f32.mxu1 %v5482_v11  ;;  %10596 = vmatpush3.bf16.msra.mxu0 %v10593_v47  ;;  %vm6647_vm11 = vcmp.eq.s32.totalorder %v6559_v42, 1 }
 0x70b   : > { %v14856_v11 = vpop.permute.xlu0 %6564  ;;  %10598 = vmatprep.subr.bf16.mxu0 %v10597_v57 }
 0x70c   : > { %vm6649_vm13 = vcmp.eq.s32.totalorder %v14856_v11, 1 }
 0x70d   : > { %10100 = vmatmul.mubr.f32.gmra.mrb[72].mxu1 %v5483_v30  ;;  %v14858_v61 = vpop.permute.xlu1 %6561  ;;  %v7205_v30 = vld [vmem:[%s16009_s10 + $0x88] sm:$0xff] }
 0x70e   : > { %10102 = vmatprep.mubr.f32.mxu1 %v5484_v6  ;;  %10600 = vmatpush3.bf16.msra.mxu0 %v10597_v57  ;;  %v10601_v59 = vpack.c.bf16 %v7205_v30, %v7204_v56  ;;  %v7206_v6 = vld [vmem:[%s16009_s10 + $0x90] sm:$0xff]  ;;  %vm6648_vm14 = vcmp.eq.s32.totalorder %v14858_v61, 1 }
 0x710   : > { %10602 = vmatprep.subr.bf16.mxu0 %v10601_v59  ;;  %v14872_v53 = vpop.permute.xlu0 %6570 }
 0x711   : > { %10103 = vmatmul.mubr.f32.gmra.mrb[74].mxu1 %v5485_v12  ;;  %v10605_v12 = vpack.c.bf16 %v7207_v36, %v7206_v6  ;;  %v14874_v13 = vpop.permute.xlu1 %6567  ;;  %vm6651_vm15 = vcmp.eq.s32.totalorder %v14872_v53, 1 }
 0x712   : > { %10105 = vmatprep.mubr.f32.mxu1 %v5486_v16  ;;  %10604 = vmatpush3.bf16.msra.mxu0 %v10601_v59  ;;  %v7208_v16 = vld [vmem:[%s16009_s10 + $0xa0] sm:$0xff]  ;;  %vm6650_vm1 = vcmp.eq.s32.totalorder %v14874_v13, 1 }
 0x713   : > { %10606 = vmatprep.subr.bf16.mxu0 %v10605_v12  ;;  %v10609_v26 = vpack.c.bf16 %v7209_v21, %v7208_v16 }
 0x715   : > { %10106 = vmatmul.mubr.f32.gmra.mrb[76].mxu1 %v5487_v7 }
 0x716   : > { %10108 = vmatprep.mubr.f32.mxu1 %v5488_v32  ;;  %10608 = vmatpush3.bf16.msra.mxu0 %v10605_v12  ;;  %v14889_v32 = vld [vmem:[%s16008_s9] ss:$0 sm:$0xff] }
 0x717   : > { %10610 = vmatprep.subr.bf16.mxu0 %v10609_v26 }
 0x718   : > { %v14882_v7 = vpop.permute.xlu0 %6576 }
 0x719   : > { %10109 = vmatmul.mubr.f32.gmra.mrb[78].mxu1 %v5489_v3  ;;  %v14884_v8 = vpop.permute.xlu1 %6573  ;;  %vm6653_vm2 = vcmp.eq.s32.totalorder %v14882_v7, 1 }
 0x71a   : > { %10111 = vmatprep.mubr.f32.mxu1 %v5490_v50  ;;  %10612 = vmatpush3.bf16.msra.mxu0 %v10609_v26  ;;  %vm6652_vm4 = vcmp.eq.s32.totalorder %v14884_v8, 1 }
 0x71b   : > { %10614 = vmatprep.subr.bf16.mxu0 %v10613_v55 }
 0x71d   : > { %10112 = vmatmul.mubr.f32.gmra.mrb[80].mxu1 %v5491_v4  ;;  %v14909_v4 = vpop.permute.xlu0 %6582 }
 0x71e   : > { %10114 = vmatprep.mubr.f32.mxu1 %v5492_v54  ;;  %10616 = vmatpush3.bf16.msra.mxu0 %v10613_v55  ;;  %v14912_v54 = vpop.permute.xlu1 %6579  ;;  %vm6655_vm5 = vcmp.eq.s32.totalorder %v14909_v4, 1 }
 0x71f   : > { %vm6654_vm6 = vcmp.eq.s32.totalorder %v14912_v54, 1 }
 0x721   : > { %10115 = vmatmul.mubr.f32.gmra.mrb[82].mxu1 %v5493_v19  ;;  %v14926_v37 = vpop.permute.xlu0 %6588 }
 0x722   : > { %10117 = vmatprep.mubr.f32.mxu1 %v5494_v0  ;;  %vm6657_vm10 = vcmp.eq.s32.totalorder %v14926_v37, 1 }
 0x725   : > { %10118 = vmatmul.mubr.f32.gmra.mrb[84].mxu1 %v5495_v44  ;;  %v14961_v47 = vpop.permute.xlu0 %6594 }
 0x726   : > { %10120 = vmatprep.mubr.f32.mxu1 %v5496_v34 }
 0x729   : > { %10121 = vmatmul.mubr.f32.gmra.mrb[86].mxu1 %v5497_v33  ;;  %v14931_v33 = vpop.permute.xlu1 %6585 }
 0x72a   : > { %10123 = vmatprep.mubr.f32.mxu1 %v5498_v62 }
 0x72d   : > { %10124 = vmatmul.mubr.f32.gmra.mrb[88].mxu1 %v5499_v23  ;;  %v14968_v57 = vpop.permute.xlu1 %6591 }
 0x72e   : > { %10126 = vmatprep.mubr.f32.mxu1 %v5500_v45 }
 0x731   : > { %10127 = vmatmul.mubr.f32.gmra.mrb[90].mxu1 %v5501_v46  ;;  %v15009_v8 = vpop.permute.xlu1 %6597 }
 0x732   : > { %10129 = vmatprep.mubr.f32.mxu1 %v5502_v15 }
 0x735   : > { %10130 = vmatmul.mubr.f32.gmra.mrb[92].mxu1 %v5503_v40 }
 0x736   : > { %10132 = vmatprep.mubr.f32.mxu1 %v5504_v58 }
 0x739   : > { %10133 = vmatmul.mubr.f32.gmra.mrb[94].mxu1 %v5505_v22 }
 0x7d0   : > { %v10089_v3 = vpop.f32.mrb[64].mxu1 }
 0x7d1   : > { %v14898_v50 = vadd.f32 %v10089_v3, %v14889_v32  ;;  %v6158_v9 = vpop.f32.mrb[65].mxu1 }
 0x7d2   : > { %v14907_v25 = vadd.f32 %v14889_v32, %v6158_v9  ;;  %v14996_v9 = vpop.permute.xlu0 %6600 }
 0x7d3   : > { %v16090_v28 = vmax.f32 %v14898_v50, 0.0 }
 0x7d4   : > { %v16089_v18 = vmax.f32 %v14907_v25, 0.0  ;;  %v10092_v60 = vpop.f32.mrb[66].mxu1 }
 0x7d5   : > { %6421 = vst.msk [vmem:[%s14904_s18 + $0x8] sm:$0xff] %vm2299_vm7, %v16090_v28  ;;  %v6359_v19 = vadd.f32 %v10092_v60, %v14889_v32  ;;  %v6168_v5 = vpop.f32.mrb[67].mxu1 }
 0x7d6   : > { %6420 = vst.msk [vmem:[%s14904_s18] sm:$0xff] %vm2299_vm7, %v16089_v18  ;;  %v6358_v0 = vadd.f32 %v14889_v32, %v6168_v5 }
 0x7d7   : > { %v6391_v48 = vmax.f32 %v6359_v19, 0.0 }
 0x7d8   : > { %v6390_v43 = vmax.f32 %v6358_v0, 0.0  ;;  %v10095_v44 = vpop.f32.mrb[68].mxu1 }
 0x7d9   : > { %6423 = vst.msk [vmem:[%s14904_s18 + $0x18] sm:$0xff] %vm2299_vm7, %v6391_v48  ;;  %v6679_v34 = vsel %vm6647_vm11, %v6391_v48, 0.0  ;;  %v6361_v24 = vadd.f32 %v10095_v44, %v14889_v32  ;;  %v6178_v17 = vpop.f32.mrb[69].mxu1  ;;  %vm6656_vm11 = vcmp.eq.s32.totalorder %v14931_v33, 1 }
 0x7da   : > { %v6744_v39 = vrot.slane %v6679_v34, 7  ;;  %v6840_v62 = vrot.slane %v6679_v34, 1  ;;  %6422 = vst.msk [vmem:[%s14904_s18 + $0x10] sm:$0xff] %vm2299_vm7, %v6390_v43  ;;  %v14935_v52 = vsel %vm6646_vm12, %v6390_v43, 0.0  ;;  %v6360_v29 = vadd.f32 %v14889_v32, %v6178_v17  ;;  %6922 = vrot.lane.b32.xlu0 %v6679_v34, %s11129_s27 }
 0x7db   : > { %v16088_v23 = vrot.slane %v14935_v52, 7  ;;  %v6839_v14 = vrot.slane %v14935_v52, 1  ;;  %v6393_v45 = vmax.f32 %v6361_v24, 0.0  ;;  %6920 = vrot.lane.b32.xlu1 %v14935_v52, %s11129_s27  ;;  %vm6659_vm12 = vcmp.eq.s32.totalorder %v14961_v47, 1 }
 0x7dc   : > { %v6392_v2 = vmax.f32 %v6360_v29, 0.0  ;;  %v10098_v20 = vpop.f32.mrb[70].mxu1  ;;  %v6901_v46 = vsel %vm635_vm3, %v6840_v62, 0.0 }
 0x7dd   : > { %6425 = vst.msk [vmem:[%s14904_s18 + $0x28] sm:$0xff] %vm2299_vm7, %v6393_v45  ;;  %v6681_v35 = vsel %vm6649_vm13, %v6393_v45, 0.0  ;;  %v6363_v15 = vadd.f32 %v10098_v20, %v14889_v32  ;;  %v6188_v31 = vpop.f32.mrb[71].mxu1  ;;  %v6841_v40 = vsel %vm635_vm3, %v6839_v14, %v6840_v62  ;;  %v14953_v58 = vsel %vm538_vm0, %v16088_v23, %v6744_v39 }
 0x7de   : > { %v6747_v22 = vrot.slane %v6681_v35, 7  ;;  %v6843_v1 = vrot.slane %v6681_v35, 1  ;;  %6424 = vst.msk [vmem:[%s14904_s18 + $0x20] sm:$0xff] %vm2299_vm7, %v6392_v2  ;;  %v14957_v27 = vsel %vm6648_vm14, %v6392_v2, 0.0  ;;  %v6362_v51 = vadd.f32 %v14889_v32, %v6188_v31  ;;  %7034 = vrot.lane.b32.xlu0 %v6901_v46, %s11130_s28  ;;  %v15048_v31 = vpop.permute.xlu0 %6606 }
 0x7df   : > { %v16087_v42 = vrot.slane %v14957_v27, 7  ;;  %v6842_v49 = vrot.slane %v14957_v27, 1  ;;  %v6395_v63 = vmax.f32 %v6363_v15, 0.0  ;;  %7032 = vrot.lane.b32.xlu1 %v6841_v40, %s11130_s28  ;;  %vm6658_vm13 = vcmp.eq.s32.totalorder %v14968_v57, 1 }
 0x7e0   : > { %v6394_v11 = vmax.f32 %v6362_v51, 0.0  ;;  %v10101_v61 = vpop.f32.mrb[72].mxu1  ;;  %v6902_v55 = vsel %vm635_vm3, %v6843_v1, 0.0  ;;  %v15056_v51 = vpop.permute.xlu1 %6603  ;;  %vm6661_vm14 = vcmp.eq.s32.totalorder %v14996_v9, 1 }
 0x7e1   : > { %6427 = vst.msk [vmem:[%s14904_s18 + $0x38] sm:$0xff] %vm2299_vm7, %v6395_v63  ;;  %v14972_v56 = vsel %vm6651_vm15, %v6395_v63, 0.0  ;;  %v6365_v30 = vadd.f32 %v10101_v61, %v14889_v32  ;;  %v6198_v59 = vpop.f32.mrb[73].mxu1  ;;  %v6844_v6 = vsel %vm635_vm3, %v6842_v49, %v6843_v1  ;;  %v14979_v36 = vsel %vm538_vm0, %v16087_v42, %v6747_v22 }
 0x7e2   : > { %v6750_v53 = vrot.slane %v14972_v56, 7  ;;  %v6846_v12 = vrot.slane %v14972_v56, 1  ;;  %6426 = vst.msk [vmem:[%s14904_s18 + $0x30] sm:$0xff] %vm2299_vm7, %v6394_v11  ;;  %v14985_v13 = vsel %vm6650_vm1, %v6394_v11, 0.0  ;;  %v6364_v16 = vadd.f32 %v14889_v32, %v6198_v59  ;;  %6926 = vrot.lane.b32.xlu0 %v6681_v35, %s11129_s27 }
 0x7e3   : > { %v16086_v21 = vrot.slane %v14985_v13, 7  ;;  %v6845_v26 = vrot.slane %v14985_v13, 1  ;;  %v6397_v38 = vmax.f32 %v6365_v30, 0.0  ;;  %6924 = vrot.lane.b32.xlu1 %v14957_v27, %s11129_s27  ;;  %vm6660_vm15 = vcmp.eq.s32.totalorder %v15009_v8, 1 }
 0x7e4   : > { %v6396_v10 = vmax.f32 %v6364_v16, 0.0  ;;  %v10104_v3 = vpop.f32.mrb[74].mxu1  ;;  %v6903_v11 = vsel %vm635_vm3, %v6846_v12, 0.0  ;;  %v15104_v57 = vpop.permute.xlu1 %6609  ;;  %vm6663_vm1 = vcmp.eq.s32.totalorder %v15048_v31, 1 }
 0x7e5   : > { %6429 = vst.msk [vmem:[%s14904_s18 + $0x48] sm:$0xff] %vm2299_vm7, %v6397_v38  ;;  %v15000_v60 = vsel %vm6653_vm2, %v6397_v38, 0.0  ;;  %v6367_v19 = vadd.f32 %v10104_v3, %v14889_v32  ;;  %v6208_v5 = vpop.f32.mrb[75].mxu1  ;;  %v6847_v0 = vsel %vm635_vm3, %v6845_v26, %v6846_v12  ;;  %v15007_v7 = vsel %vm538_vm0, %v16086_v21, %v6750_v53 }
 0x7e6   : > { %v6753_v48 = vrot.slane %v15000_v60, 7  ;;  %v6849_v43 = vrot.slane %v15000_v60, 1  ;;  %6428 = vst.msk [vmem:[%s14904_s18 + $0x40] sm:$0xff] %vm2299_vm7, %v6396_v10  ;;  %v15015_v44 = vsel %vm6652_vm4, %v6396_v10, 0.0  ;;  %v6366_v34 = vadd.f32 %v14889_v32, %v6208_v5  ;;  %7038 = vrot.lane.b32.xlu0 %v6902_v55, %s11130_s28  ;;  %v15087_v55 = vpop.permute.xlu0 %6612 }
 0x7e7   : > { %v16084_v24 = vrot.slane %v15015_v44, 7  ;;  %v6848_v17 = vrot.slane %v15015_v44, 1  ;;  %v6399_v39 = vmax.f32 %v6367_v19, 0.0  ;;  %7036 = vrot.lane.b32.xlu1 %v6844_v6, %s11130_s28  ;;  %vm6662_vm2 = vcmp.eq.s32.totalorder %v15056_v51, 1 }
 0x7e8   : > { %v6398_v62 = vmax.f32 %v6366_v34, 0.0  ;;  %v10107_v29 = vpop.f32.mrb[76].mxu1  ;;  %vm6665_vm4 = vcmp.eq.s32.totalorder %v15087_v55, 1 }
 0x7e9   : > { %6431 = vst.msk [vmem:[%s14904_s18 + $0x58] sm:$0xff] %vm2299_vm7, %v6399_v39  ;;  %v15026_v14 = vsel %vm6655_vm5, %v6399_v39, 0.0  ;;  %v6369_v45 = vadd.f32 %v10107_v29, %v14889_v32  ;;  %v6218_v2 = vpop.f32.mrb[77].mxu1  ;;  %v15032_v20 = vsel %vm635_vm3, %v6848_v17, %v6849_v43  ;;  %v15037_v4 = vsel %vm538_vm0, %v16084_v24, %v6753_v48 }
 0x7ea   : > { %v6756_v54 = vrot.slane %v15026_v14, 7  ;;  %v6852_v46 = vrot.slane %v15026_v14, 1  ;;  %6430 = vst.msk [vmem:[%s14904_s18 + $0x50] sm:$0xff] %vm2299_vm7, %v6398_v62  ;;  %v15043_v35 = vsel %vm6654_vm6, %v6398_v62, 0.0  ;;  %v6368_v15 = vadd.f32 %v14889_v32, %v6218_v2  ;;  %6930 = vrot.lane.b32.xlu0 %v14972_v56, %s11129_s27 }
 0x7eb   : > { %v16082_v40 = vrot.slane %v15043_v35, 7  ;;  %v6851_v22 = vrot.slane %v15043_v35, 1  ;;  %v6401_v1 = vmax.f32 %v6369_v45, 0.0  ;;  %6928 = vrot.lane.b32.xlu1 %v14985_v13, %s11129_s27  ;;  %vm6664_vm5 = vcmp.eq.s32.totalorder %v15104_v57, 1 }
 0x7ec   : > { %v6400_v49 = vmax.f32 %v6368_v15, 0.0  ;;  %v10110_v63 = vpop.f32.mrb[78].mxu1 }
 0x7ed   : > { %6433 = vst.msk [vmem:[%s14904_s18 + $0x68] sm:$0xff] %vm2299_vm7, %v6401_v1  ;;  %v15061_v61 = vsel %vm6657_vm10, %v6401_v1, 0.0  ;;  %v6371_v56 = vadd.f32 %v10110_v63, %v14889_v32  ;;  %v6228_v30 = vpop.f32.mrb[79].mxu1  ;;  %v15067_v59 = vsel %vm635_vm3, %v6851_v22, %v6852_v46  ;;  %v15072_v37 = vsel %vm538_vm0, %v16082_v40, %v6756_v54 }
 0x7ee   : > { %v6759_v33 = vrot.slane %v15061_v61, 7  ;;  %v6855_v6 = vrot.slane %v15061_v61, 1  ;;  %6432 = vst.msk [vmem:[%s14904_s18 + $0x60] sm:$0xff] %vm2299_vm7, %v6400_v49  ;;  %v15078_v53 = vsel %vm6656_vm11, %v6400_v49, 0.0  ;;  %v6370_v12 = vadd.f32 %v14889_v32, %v6228_v30  ;;  %7042 = vrot.lane.b32.xlu0 %v6903_v11, %s11130_s28  ;;  %v6619_v30 = vpop.permute.xlu0 %6618 }
 0x7ef   : > { %v16081_v16 = vrot.slane %v15078_v53, 7  ;;  %v6854_v26 = vrot.slane %v15078_v53, 1  ;;  %v6403_v38 = vmax.f32 %v6371_v56, 0.0  ;;  %7040 = vrot.lane.b32.xlu1 %v6847_v0, %s11130_s28  ;;  %v6904_v22 = vsel %vm635_vm3, %v6849_v43, 0.0 }
 0x7f0   : > { %v6402_v10 = vmax.f32 %v6370_v12, 0.0  ;;  %v10113_v3 = vpop.f32.mrb[80].mxu1  ;;  %vm6667_vm6 = vcmp.eq.s32.totalorder %v6619_v30, 1 }
 0x7f1   : > { %6435 = vst.msk [vmem:[%s14904_s18 + $0x78] sm:$0xff] %vm2299_vm7, %v6403_v38  ;;  %v15091_v19 = vsel %vm6659_vm12, %v6403_v38, 0.0  ;;  %v6373_v5 = vadd.f32 %v10113_v3, %v14889_v32  ;;  %v6238_v48 = vpop.f32.mrb[81].mxu1  ;;  %v15097_v34 = vsel %vm635_vm3, %v6854_v26, %v6855_v6  ;;  %v15102_v47 = vsel %vm538_vm0, %v16081_v16, %v6759_v33  ;;  %v6616_v38 = vpop.permute.xlu1 %6615 }
 0x7f2   : > { %v6762_v0 = vrot.slane %v15091_v19, 7  ;;  %v6858_v17 = vrot.slane %v15091_v19, 1  ;;  %6434 = vst.msk [vmem:[%s14904_s18 + $0x70] sm:$0xff] %vm2299_vm7, %v6402_v10  ;;  %v15110_v39 = vsel %vm6658_vm13, %v6402_v10, 0.0  ;;  %v6372_v62 = vadd.f32 %v14889_v32, %v6238_v48  ;;  %6934 = vrot.lane.b32.xlu0 %v15000_v60, %s11129_s27 }
 0x7f3   : > { %v16080_v29 = vrot.slane %v15110_v39, 7  ;;  %v6857_v45 = vrot.slane %v15110_v39, 1  ;;  %v6405_v2 = vmax.f32 %v6373_v5, 0.0  ;;  %6932 = vrot.lane.b32.xlu1 %v15015_v44, %s11129_s27  ;;  %vm6666_vm10 = vcmp.eq.s32.totalorder %v6616_v38, 1 }
 0x7f4   : > { %v6404_v54 = vmax.f32 %v6372_v62, 0.0  ;;  %v10116_v15 = vpop.f32.mrb[82].mxu1  ;;  %v6907_v42 = vsel %vm635_vm3, %v6858_v17, 0.0 }
 0x7f5   : > { %6437 = vst.msk [vmem:[%s14904_s18 + $0x88] sm:$0xff] %vm2299_vm7, %v6405_v2  ;;  %v15126_v1 = vsel %vm6661_vm14, %v6405_v2, 0.0  ;;  %v6375_v49 = vadd.f32 %v10116_v15, %v14889_v32  ;;  %v6248_v63 = vpop.f32.mrb[83].mxu1  ;;  %v15132_v11 = vsel %vm635_vm3, %v6857_v45, %v6858_v17  ;;  %v15137_v9 = vsel %vm538_vm0, %v16080_v29, %v6762_v0 }
 0x7f6   : > { %v6765_v60 = vrot.slane %v15126_v1, 7  ;;  %v6861_v8 = vrot.slane %v15126_v1, 1  ;;  %6436 = vst.msk [vmem:[%s14904_s18 + $0x80] sm:$0xff] %vm2299_vm7, %v6404_v54  ;;  %v15143_v43 = vsel %vm6660_vm15, %v6404_v54, 0.0  ;;  %v6374_v56 = vadd.f32 %v14889_v32, %v6248_v63  ;;  %7046 = vrot.lane.b32.xlu0 %v6904_v22, %s11130_s28 }
 0x7f7   : > { %v16079_v33 = vrot.slane %v15143_v43, 7  ;;  %v6860_v12 = vrot.slane %v15143_v43, 1  ;;  %v6407_v26 = vmax.f32 %v6375_v49, 0.0  ;;  %7044 = vrot.lane.b32.xlu1 %v15032_v20, %s11130_s28 }
 0x7f8   : > { %v6406_v10 = vmax.f32 %v6374_v56, 0.0  ;;  %v10119_v3 = vpop.f32.mrb[84].mxu1  ;;  %v6625_v56 = vpop.permute.xlu0 %6624 }
 0x7f9   : > { %6439 = vst.msk [vmem:[%s14904_s18 + $0x98] sm:$0xff] %vm2299_vm7, %v6407_v26  ;;  %v15155_v5 = vsel %vm6663_vm1, %v6407_v26, 0.0  ;;  %v6377_v48 = vadd.f32 %v10119_v3, %v14889_v32  ;;  %v6258_v0 = vpop.f32.mrb[85].mxu1  ;;  %v15161_v62 = vsel %vm635_vm3, %v6860_v12, %v6861_v8  ;;  %v15166_v20 = vsel %vm538_vm0, %v16079_v33, %v6765_v60 }
 0x7fa   : > { %v6768_v31 = vrot.slane %v15155_v5, 7  ;;  %v6864_v51 = vrot.slane %v15155_v5, 1  ;;  %6438 = vst.msk [vmem:[%s14904_s18 + $0x90] sm:$0xff] %vm2299_vm7, %v6406_v10  ;;  %v15172_v45 = vsel %vm6662_vm2, %v6406_v10, 0.0  ;;  %v6376_v2 = vadd.f32 %v14889_v32, %v6258_v0  ;;  %6938 = vrot.lane.b32.xlu0 %v15026_v14, %s11129_s27  ;;  %v6622_v14 = vpop.permute.xlu1 %6621 }
 0x7fb   : > { %v16077_v54 = vrot.slane %v15172_v45, 7  ;;  %v6863_v15 = vrot.slane %v15172_v45, 1  ;;  %v6409_v22 = vmax.f32 %v6377_v48, 0.0  ;;  %6936 = vrot.lane.b32.xlu1 %v15043_v35, %s11129_s27  ;;  %v6905_v60 = vsel %vm635_vm3, %v6852_v46, 0.0 }
 0x7fc   : > { %v6408_v49 = vmax.f32 %v6376_v2, 0.0  ;;  %v10122_v63 = vpop.f32.mrb[86].mxu1  ;;  %vm6669_vm11 = vcmp.eq.s32.totalorder %v6625_v56, 1  ;;  %vm6668_vm12 = vcmp.eq.s32.totalorder %v6622_v14, 1 }
 0x7fd   : > { %6441 = vst.msk [vmem:[%s14904_s18 + $0xa8] sm:$0xff] %vm2299_vm7, %v6409_v22  ;;  %v15188_v12 = vsel %vm6665_vm4, %v6409_v22, 0.0  ;;  %v6379_v26 = vadd.f32 %v10122_v63, %v14889_v32  ;;  %v6268_v10 = vpop.f32.mrb[87].mxu1  ;;  %v15194_v55 = vsel %vm635_vm3, %v6863_v15, %v6864_v51  ;;  %v15199_v57 = vsel %vm538_vm0, %v16077_v54, %v6768_v31 }
 0x7fe   : > { %v6771_v46 = vrot.slane %v15188_v12, 7  ;;  %v6867_v3 = vrot.slane %v15188_v12, 1  ;;  %6440 = vst.msk [vmem:[%s14904_s18 + $0xa0] sm:$0xff] %vm2299_vm7, %v6408_v49  ;;  %v15205_v48 = vsel %vm6664_vm5, %v6408_v49, 0.0  ;;  %v6378_v0 = vadd.f32 %v14889_v32, %v6268_v10  ;;  %7050 = vrot.lane.b32.xlu0 %v6905_v60, %s11130_s28 }
 0x7ff   : > { %v16078_v2 = vrot.slane %v15205_v48, 7  ;;  %v6866_v31 = vrot.slane %v15205_v48, 1  ;;  %v6411_v15 = vmax.f32 %v6379_v26, 0.0  ;;  %7048 = vrot.lane.b32.xlu1 %v15067_v59, %s11130_s28 }
 0x800   : > { %v6410_v22 = vmax.f32 %v6378_v0, 0.0  ;;  %v10125_v63 = vpop.f32.mrb[88].mxu1 }
 0x801   : > { %6443 = vst.msk [vmem:[%s14904_s18 + $0xb8] sm:$0xff] %vm2299_vm7, %v6411_v15  ;;  %v15215_v49 = vsel %vm6667_vm6, %v6411_v15, 0.0  ;;  %v6381_v10 = vadd.f32 %v10125_v63, %v14889_v32  ;;  %v6278_v60 = vpop.f32.mrb[89].mxu1  ;;  %v15221_v54 = vsel %vm635_vm3, %v6866_v31, %v6867_v3  ;;  %v15226_v59 = vsel %vm538_vm0, %v16078_v2, %v6771_v46  ;;  %v6631_v31 = vpop.permute.xlu0 %6630 }
 0x802   : > { %v6774_v30 = vrot.slane %v15215_v49, 7  ;;  %v6870_v38 = vrot.slane %v15215_v49, 1  ;;  %6442 = vst.msk [vmem:[%s14904_s18 + $0xb0] sm:$0xff] %vm2299_vm7, %v6410_v22  ;;  %v15232_v26 = vsel %vm6666_vm10, %v6410_v22, 0.0  ;;  %v6380_v0 = vadd.f32 %v14889_v32, %v6278_v60  ;;  %6942 = vrot.lane.b32.xlu0 %v15061_v61, %s11129_s27  ;;  %v6628_v2 = vpop.permute.xlu1 %6627 }
 0x803   : > { %v16083_v15 = vrot.slane %v15232_v26, 7  ;;  %v6869_v46 = vrot.slane %v15232_v26, 1  ;;  %v6413_v63 = vmax.f32 %v6381_v10, 0.0  ;;  %6940 = vrot.lane.b32.xlu1 %v15078_v53, %s11129_s27  ;;  %v6906_v60 = vsel %vm635_vm3, %v6855_v6, 0.0 }
 0x804   : > { %v6412_v22 = vmax.f32 %v6380_v0, 0.0  ;;  %v10128_v33 = vpop.f32.mrb[90].mxu1  ;;  %vm6671_vm13 = vcmp.eq.s32.totalorder %v6631_v31, 1  ;;  %vm6670_vm14 = vcmp.eq.s32.totalorder %v6628_v2, 1 }
 0x805   : > { %6445 = vst.msk [vmem:[%s14904_s18 + $0xc8] sm:$0xff] %vm2299_vm7, %v6413_v63  ;;  %v15246_v29 = vsel %vm6669_vm11, %v6413_v63, 0.0  ;;  %v6383_v16 = vadd.f32 %v10128_v33, %v14889_v32  ;;  %v6288_v10 = vpop.f32.mrb[91].mxu1  ;;  %v15252_v40 = vsel %vm635_vm3, %v6869_v46, %v6870_v38  ;;  %v15257_v56 = vsel %vm538_vm0, %v16083_v15, %v6774_v30  ;;  %v6637_v24 = vpop.permute.xlu0 %6636 }
 0x806   : > { %v6777_v61 = vrot.slane %v15246_v29, 7  ;;  %v16091_v6 = vrot.slane %v15246_v29, 1  ;;  %6444 = vst.msk [vmem:[%s14904_s18 + $0xc0] sm:$0xff] %vm2299_vm7, %v6412_v22  ;;  %v15263_v14 = vsel %vm6668_vm12, %v6412_v22, 0.0  ;;  %v6382_v33 = vadd.f32 %v14889_v32, %v6288_v10  ;;  %7054 = vrot.lane.b32.xlu0 %v6906_v60, %s11130_s28  ;;  %v6634_v2 = vpop.permute.xlu1 %6633 }
 0x807   : > { %v16085_v0 = vrot.slane %v15263_v14, 7  ;;  %v6872_v46 = vrot.slane %v15263_v14, 1  ;;  %v6415_v63 = vmax.f32 %v6383_v16, 0.0  ;;  %7052 = vrot.lane.b32.xlu1 %v15097_v34, %s11130_s28  ;;  %vm6673_vm15 = vcmp.eq.s32.totalorder %v6637_v24, 1 }
 0x808   : > { %v6414_v30 = vmax.f32 %v6382_v33, 0.0  ;;  %v10131_v15 = vpop.f32.mrb[92].mxu1  ;;  %vm6672_vm1 = vcmp.eq.s32.totalorder %v6634_v2, 1 }
 0x809   : > { %6447 = vst.msk [vmem:[%s14904_s18 + $0xd8] sm:$0xff] %vm2299_vm7, %v6415_v63  ;;  %v15273_v22 = vsel %vm6671_vm13, %v6415_v63, 0.0  ;;  %v6385_v60 = vadd.f32 %v10131_v15, %v14889_v32  ;;  %v6298_v10 = vpop.f32.mrb[93].mxu1  ;;  %v15279_v16 = vsel %vm635_vm3, %v6872_v46, %v16091_v6  ;;  %v15284_v34 = vsel %vm538_vm0, %v16085_v0, %v6777_v61 }
 0x80a   : > { %v6780_v31 = vrot.slane %v15273_v22, 7  ;;  %v16093_v33 = vrot.slane %v15273_v22, 1  ;;  %6446 = vst.msk [vmem:[%s14904_s18 + $0xd0] sm:$0xff] %vm2299_vm7, %v6414_v30  ;;  %v15290_v15 = vsel %vm6670_vm14, %v6414_v30, 0.0  ;;  %v6384_v63 = vadd.f32 %v14889_v32, %v6298_v10  ;;  %6946 = vrot.lane.b32.xlu0 %v15091_v19, %s11129_s27  ;;  %v7188_v30 = vld [vmem:[%s16009_s10] sm:$0xff]  ;;  %v7189_v10 = vld [vmem:[%s16009_s10 + $0x8] sm:$0xff] }
 0x80b   : > { %v16092_v46 = vrot.slane %v15290_v15, 7  ;;  %v6875_v61 = vrot.slane %v15290_v15, 1  ;;  %v6417_v0 = vmax.f32 %v6385_v60, 0.0  ;;  %6944 = vrot.lane.b32.xlu1 %v15110_v39, %s11129_s27  ;;  %v15308_v60 = vpack.c.bf16 %v7189_v10, %v7188_v30 }
 0x80c   : > { %v6416_v21 = vmax.f32 %v6384_v63, 0.0  ;;  %v10134_v24 = vpop.f32.mrb[94].mxu1 }
 0x80d   : > { %6449 = vst.msk [vmem:[%s14904_s18 + $0xe8] sm:$0xff] %vm2299_vm7, %v6417_v0  ;;  %v15312_v23 = vsel %vm6673_vm15, %v6417_v0, 0.0  ;;  %v6387_v18 = vadd.f32 %v10134_v24, %v14889_v32  ;;  %v6308_v28 = vpop.f32.mrb[95].mxu1  ;;  %v6877_v6 = vsel %vm635_vm3, %v6875_v61, %v16093_v33  ;;  %v15321_v2 = vsel %vm538_vm0, %v16092_v46, %v6780_v31  ;;  %10618 = vmatprep.subr.bf16.mxu0 %v15308_v60  ;;  %v6643_v61 = vpop.permute.xlu0 %6642 }
 0x80e   : > { %v6783_v19 = vrot.slane %v15312_v23, 7  ;;  %v6879_v17 = vrot.slane %v15312_v23, 1  ;;  %6448 = vst.msk [vmem:[%s14904_s18 + $0xe0] sm:$0xff] %vm2299_vm7, %v6416_v21  ;;  %v15327_v0 = vsel %vm6672_vm1, %v6416_v21, 0.0  ;;  %v6386_v63 = vadd.f32 %v14889_v32, %v6308_v28  ;;  %7058 = vrot.lane.b32.xlu0 %v6907_v42, %s11130_s28  ;;  %v6640_v24 = vpop.permute.xlu1 %6639 }
 0x80f   : > { %v6782_v31 = vrot.slane %v15327_v0, 7  ;;  %v6878_v30 = vrot.slane %v15327_v0, 1  ;;  %v6419_v10 = vmax.f32 %v6387_v18, 0.0  ;;  %7056 = vrot.lane.b32.xlu1 %v15132_v11, %s11130_s28  ;;  %vm6675_vm2 = vcmp.eq.s32.totalorder %v6643_v61, 1 }
 0x810   : > { %v6418_v21 = vmax.f32 %v6386_v63, 0.0  ;;  %vm6674_vm4 = vcmp.eq.s32.totalorder %v6640_v24, 1 }
 0x811   : > { %6451 = vst.msk [vmem:[%s14904_s18 + $0xf8] sm:$0xff] %vm2299_vm7, %v6419_v10  ;;  %v6707_v32 = vsel %vm6675_vm2, %v6419_v10, 0.0  ;;  %v6880_v28 = vsel %vm635_vm3, %v6878_v30, %v6879_v17  ;;  %v15342_v42 = vsel %vm538_vm0, %v6782_v31, %v6783_v19  ;;  %v6908_v19 = vsel %vm635_vm3, %v6861_v8, 0.0 }
 0x812   : > { %v6786_v46 = vrot.slane %v6707_v32, 7  ;;  %v6882_v33 = vrot.slane %v6707_v32, 1  ;;  %6450 = vst.msk [vmem:[%s14904_s18 + $0xf0] sm:$0xff] %vm2299_vm7, %v6418_v21  ;;  %v15346_v18 = vsel %vm6674_vm4, %v6418_v21, 0.0  ;;  %6950 = vrot.lane.b32.xlu0 %v15126_v1, %s11129_s27  ;;  %v6909_v1 = vsel %vm635_vm3, %v6864_v51, 0.0 }
 0x813   : > { %v6785_v11 = vrot.slane %v15346_v18, 7  ;;  %v6881_v63 = vrot.slane %v15346_v18, 1  ;;  %6948 = vrot.lane.b32.xlu1 %v15143_v43, %s11129_s27  ;;  %v6910_v8 = vsel %vm635_vm3, %v6867_v3, 0.0 }
 0x815   : > { %v6883_v61 = vsel %vm635_vm3, %v6881_v63, %v6882_v33  ;;  %v15361_v30 = vsel %vm538_vm0, %v6785_v11, %v6786_v46  ;;  %v7190_v46 = vld [vmem:[%s16009_s10 + $0x10] sm:$0xff] }
 0x816   : > { %7062 = vrot.lane.b32.xlu0 %v6908_v19, %s11130_s28 }
 0x817   : > { %7060 = vrot.lane.b32.xlu1 %v15161_v62, %s11130_s28  ;;  %v16213_v62 = vrot.slane %v15246_v29, 1 }
 0x819   : > { %v6912_v51 = vsel %vm635_vm3, %v16213_v62, 0.0 }
 0x81a   : > { %6954 = vrot.lane.b32.xlu0 %v15155_v5, %s11129_s27  ;;  %v6911_v5 = vsel %vm635_vm3, %v6870_v38, 0.0  ;;  %v16215_v38 = vmax.f32 %v14898_v50, 0.0  ;;  %v16217_v50 = vrot.slane %v14935_v52, 7 }
 0x81b   : > { %6952 = vrot.lane.b32.xlu1 %v15172_v45, %s11129_s27 }
 0x81e   : > { %7066 = vrot.lane.b32.xlu0 %v6909_v1, %s11130_s28 }
 0x81f   : > { %7064 = vrot.lane.b32.xlu1 %v15194_v55, %s11130_s28  ;;  %v6550_v55 = vpop.permute.xlu1 %6549 }
 0x820   : > { %vm6644_vm6 = vcmp.eq.s32.totalorder %v6550_v55, 1 }
 0x822   : > { %6958 = vrot.lane.b32.xlu0 %v15188_v12, %s11129_s27  ;;  %v6553_v12 = vpop.permute.xlu0 %6552 }
 0x823   : > { %6956 = vrot.lane.b32.xlu1 %v15205_v48, %s11129_s27  ;;  %vm6645_vm5 = vcmp.eq.s32.totalorder %v6553_v12, 1 }
 0x826   : > { %7070 = vrot.lane.b32.xlu0 %v6910_v8, %s11130_s28 }
 0x827   : > { %7068 = vrot.lane.b32.xlu1 %v15221_v54, %s11130_s28 }
 0x82a   : > { %6962 = vrot.lane.b32.xlu0 %v15215_v49, %s11129_s27  ;;  %v6915_v49 = vsel %vm635_vm3, %v6882_v33, 0.0  ;;  %v7191_v33 = vld [vmem:[%s16009_s10 + $0x18] sm:$0xff] }
 0x82b   : > { %6960 = vrot.lane.b32.xlu1 %v15232_v26, %s11129_s27  ;;  %v10621_v52 = vpack.c.bf16 %v7191_v33, %v7190_v46  ;;  %v7197_v46 = vld [vmem:[%s16009_s10 + $0x48] sm:$0xff] }
 0x82e   : > { %7074 = vrot.lane.b32.xlu0 %v6911_v5, %s11130_s28 }
 0x82f   : > { %7072 = vrot.lane.b32.xlu1 %v15252_v40, %s11130_s28  ;;  %v16214_v40 = vrot.slane %v15273_v22, 1 }
 0x831   : > { %v6913_v54 = vsel %vm635_vm3, %v16214_v40, 0.0  ;;  %v7194_v40 = vld [vmem:[%s16009_s10 + $0x30] sm:$0xff] }
 0x832   : > { %6966 = vrot.lane.b32.xlu0 %v15246_v29, %s11129_s27  ;;  %v6914_v29 = vsel %vm635_vm3, %v6879_v17, 0.0  ;;  %v6821_v17 = vsel %vm538_vm0, 0.0, %v16217_v50 }
 0x833   : > { %6964 = vrot.lane.b32.xlu1 %v15263_v14, %s11129_s27 }
 0x836   : > { %7078 = vrot.lane.b32.xlu0 %v6912_v51, %s11130_s28 }
 0x837   : > { %7076 = vrot.lane.b32.xlu1 %v15279_v16, %s11130_s28 }
 0x83a   : > { %6970 = vrot.lane.b32.xlu0 %v15273_v22, %s11129_s27  ;;  %v16216_v22 = vmax.f32 %v14907_v25, 0.0 }
 0x83b   : > { %6968 = vrot.lane.b32.xlu1 %v15290_v15, %s11129_s27 }
 0x83c   : > { %v15433_v16 = vsel %vm6644_vm6, %v16216_v22, 0.0 }
 0x83e   : > { %7082 = vrot.lane.b32.xlu0 %v6913_v54, %s11130_s28  ;;  %v7195_v54 = vld [vmem:[%s16009_s10 + $0x38] sm:$0xff] }
 0x83f   : > { %7080 = vrot.lane.b32.xlu1 %v6877_v6, %s11130_s28  ;;  %v15428_v6 = vsel %vm6645_vm5, %v16215_v38, 0.0  ;;  %v10629_v38 = vpack.c.bf16 %v7195_v54, %v7194_v40 }
 0x840   : > { %v6837_v24 = vrot.slane %v15428_v6, 1 }
 0x842   : > { %6974 = vrot.lane.b32.xlu0 %v15312_v23, %s11129_s27  ;;  %v6900_v5 = vsel %vm635_vm3, %v6837_v24, 0.0 }
 0x843   : > { %6972 = vrot.lane.b32.xlu1 %v15327_v0, %s11129_s27 }
 0x846   : > { %7086 = vrot.lane.b32.xlu0 %v6914_v29, %s11130_s28  ;;  %v16218_v29 = vrot.slane %v14957_v27, 7  ;;  %v7196_v27 = vld [vmem:[%s16009_s10 + $0x40] sm:$0xff] }
 0x847   : > { %7084 = vrot.lane.b32.xlu1 %v6880_v28, %s11130_s28  ;;  %v10633_v50 = vpack.c.bf16 %v7197_v46, %v7196_v27 }
 0x84a   : > { %6978 = vrot.lane.b32.xlu0 %v6707_v32, %s11129_s27  ;;  %v6836_v32 = vrot.slane %v15433_v16, 1 }
 0x84b   : > { %6976 = vrot.lane.b32.xlu1 %v15346_v18, %s11129_s27 }
 0x84c   : > { %v6923_v3 = vpop.permute.xlu0 %6922  ;;  %v6838_v62 = vsel %vm635_vm3, %v6836_v32, %v6837_v24  ;;  %v16219_v24 = vrot.slane %v14985_v13, 7  ;;  %v7758_v13 = vld [vmem:[%s16009_s10 + $0xc0] sm:$0xff] }
 0x84d   : > { %v6921_v23 = vpop.permute.xlu1 %6920  ;;  %v7127_v28 = vsel %vm2299_vm7, %v14953_v58, %v6923_v3  ;;  %v7192_v58 = vld [vmem:[%s16009_s10 + $0x20] sm:$0xff] }
 0x84e   : > { %7090 = vrot.lane.b32.xlu0 %v6915_v49, %s11130_s28  ;;  %v7126_v25 = vsel %vm2299_vm7, %v6821_v17, %v6921_v23  ;;  %v7198_v17 = vld [vmem:[%s16009_s10 + $0x50] sm:$0xff] }
 0x84f   : > { %7088 = vrot.lane.b32.xlu1 %v6883_v61, %s11130_s28  ;;  %v7193_v61 = vld [vmem:[%s16009_s10 + $0x28] sm:$0xff] }
 0x850   : > { %v7035_v10 = vpop.permute.xlu0 %7034  ;;  %v10625_v51 = vpack.c.bf16 %v7193_v61, %v7192_v58 }
 0x851   : > { %v7033_v21 = vpop.permute.xlu1 %7032  ;;  %v15456_v19 = vsel %vm2332_vm8, %v7127_v28, %v7035_v10  ;;  %v7199_v10 = vld [vmem:[%s16009_s10 + $0x58] sm:$0xff] }
 0x852   : > { %v15451_v63 = vsel %vm2332_vm8, %v7126_v25, %v7033_v21  ;;  %6918 = vrot.lane.b32.xlu0 %v15428_v6, %s11129_s27  ;;  %v6823_v25 = vsel %vm538_vm0, 0.0, %v16219_v24  ;;  %v10637_v61 = vpack.c.bf16 %v7199_v10, %v7198_v17  ;;  %v16222_v24 = vrot.slane %v15078_v53, 7 }
 0x853   : > { %10159 = vmatprep.mubr.msk.f32.mxu0 %vm2461_vm9, %v15451_v63  ;;  %6916 = vrot.lane.b32.xlu1 %v15433_v16, %s11129_s27 }
 0x854   : > { %10160 = vmatmul.mubr.msk.f32.vlgmr.msra.gmra.mrb[64].mxu0 %vm2461_vm9, %v15456_v19  ;;  %v6927_v1 = vpop.permute.xlu0 %6926 }
 0x855   : > { %v6925_v8 = vpop.permute.xlu1 %6924  ;;  %10620 = vmatpush3.bf16.msra.mxu0 %v15308_v60  ;;  %v6822_v60 = vsel %vm538_vm0, 0.0, %v16218_v29  ;;  %v7129_v23 = vsel %vm2299_vm7, %v14979_v36, %v6927_v1 }
 0x856   : > { %7030 = vrot.lane.b32.xlu0 %v6900_v5, %s11130_s28  ;;  %10622 = vmatprep.subr.bf16.mxu0 %v10621_v52  ;;  %v7128_v55 = vsel %vm2299_vm7, %v6822_v60, %v6925_v8  ;;  %v7759_v8 = vld [vmem:[%s16009_s10 + $0xc8] sm:$0xff] }
 0x857   : > { %7028 = vrot.lane.b32.xlu1 %v6838_v62, %s11130_s28  ;;  %v15531_v62 = vpack.c.bf16 %v7759_v8, %v7758_v13  ;;  %v16223_v8 = vrot.slane %v15110_v39, 7 }
 0x858   : > { %v7039_v12 = vpop.permute.xlu0 %7038 }
 0x859   : > { %v7037_v3 = vpop.permute.xlu1 %7036  ;;  %10624 = vmatpush3.bf16.msra.mxu0 %v10621_v52  ;;  %v15491_v22 = vsel %vm2332_vm8, %v7129_v23, %v7039_v12 }
 0x85a   : > { %v15488_v49 = vsel %vm2332_vm8, %v7128_v55, %v7037_v3  ;;  %10626 = vmatprep.subr.bf16.mxu0 %v10625_v51 }
 0x85b   : > { %10162 = vmatprep.mubr.msk.f32.mxu0 %vm2461_vm9, %v15488_v49 }
 0x85c   : > { %10163 = vmatmul.mubr.msk.f32.gmra.mrb[66].mxu0 %vm2461_vm9, %v15491_v22  ;;  %v6931_v36 = vpop.permute.xlu0 %6930 }
 0x85d   : > { %v6929_v33 = vpop.permute.xlu1 %6928  ;;  %10628 = vmatpush3.bf16.msra.mxu0 %v10625_v51  ;;  %v7131_v52 = vsel %vm2299_vm7, %v15007_v7, %v6931_v36  ;;  %v16220_v51 = vrot.slane %v15015_v44, 7 }
 0x85e   : > { %10630 = vmatprep.subr.bf16.mxu0 %v10629_v38  ;;  %v7130_v32 = vsel %vm2299_vm7, %v6823_v25, %v6929_v33  ;;  %v6826_v25 = vsel %vm538_vm0, 0.0, %v16222_v24 }
 0x85f   : > { %v6824_v40 = vsel %vm538_vm0, 0.0, %v16220_v51 }
 0x860   : > { %v7043_v21 = vpop.permute.xlu0 %7042 }
 0x861   : > { %v7041_v28 = vpop.permute.xlu1 %7040  ;;  %10632 = vmatpush3.bf16.msra.mxu0 %v10629_v38  ;;  %v15519_v1 = vsel %vm2332_vm8, %v7131_v52, %v7043_v21  ;;  %v16221_v38 = vrot.slane %v15043_v35, 7 }
 0x862   : > { %v15516_v58 = vsel %vm2332_vm8, %v7130_v32, %v7041_v28  ;;  %10634 = vmatprep.subr.bf16.mxu0 %v10633_v50 }
 0x863   : > { %10165 = vmatprep.mubr.msk.f32.mxu0 %vm2461_vm9, %v15516_v58 }
 0x864   : > { %10166 = vmatmul.mubr.msk.f32.gmra.mrb[68].mxu0 %vm2461_vm9, %v15519_v1  ;;  %v6935_v7 = vpop.permute.xlu0 %6934 }
 0x865   : > { %v6933_v5 = vpop.permute.xlu1 %6932  ;;  %10636 = vmatpush3.bf16.msra.mxu0 %v10633_v50  ;;  %v7133_v12 = vsel %vm2299_vm7, %v15037_v4, %v6935_v7  ;;  %v6825_v4 = vsel %vm538_vm0, 0.0, %v16221_v38  ;;  %v6827_v7 = vsel %vm538_vm0, 0.0, %v16223_v8 }
 0x866   : > { %10638 = vmatprep.subr.bf16.mxu0 %v10637_v61  ;;  %v7132_v29 = vsel %vm2299_vm7, %v6824_v40, %v6933_v5 }
 0x868   : > { %v7047_v54 = vpop.permute.xlu0 %7046 }
 0x869   : > { %v7045_v60 = vpop.permute.xlu1 %7044  ;;  %10640 = vmatpush3.bf16.msra.mxu0 %v10637_v61  ;;  %v15544_v3 = vsel %vm2332_vm8, %v7133_v12, %v7047_v54  ;;  %v16224_v12 = vrot.slane %v15143_v43, 7 }
 0x86a   : > { %v15540_v55 = vsel %vm2332_vm8, %v7132_v29, %v7045_v60  ;;  %10642 = vmatprep.subr.bf16.mxu0 %v15531_v62 }
 0x86b   : > { %10168 = vmatprep.mubr.msk.f32.mxu0 %vm2461_vm9, %v15540_v55 }
 0x86c   : > { %10169 = vmatmul.mubr.msk.f32.gmra.mrb[70].mxu0 %vm2461_vm9, %v15544_v3  ;;  %v6939_v44 = vpop.permute.xlu0 %6938 }
 0x86d   : > { %v6937_v23 = vpop.permute.xlu1 %6936  ;;  %v7135_v33 = vsel %vm2299_vm7, %v15072_v37, %v6939_v44  ;;  %v6828_v44 = vsel %vm538_vm0, 0.0, %v16224_v12 }
 0x86e   : > { %v7134_v46 = vsel %vm2299_vm7, %v6825_v4, %v6937_v23 }
 0x870   : > { %v7051_v27 = vpop.permute.xlu0 %7050 }
 0x871   : > { %v7049_v36 = vpop.permute.xlu1 %7048  ;;  %v15560_v17 = vsel %vm2332_vm8, %v7135_v33, %v7051_v27  ;;  %v16225_v33 = vrot.slane %v15172_v45, 7 }
 0x872   : > { %v15557_v50 = vsel %vm2332_vm8, %v7134_v46, %v7049_v36 }
 0x873   : > { %10171 = vmatprep.mubr.msk.f32.mxu0 %vm2461_vm9, %v15557_v50 }
 0x874   : > { %10172 = vmatmul.mubr.msk.f32.gmra.mrb[72].mxu0 %vm2461_vm9, %v15560_v17  ;;  %v6943_v35 = vpop.permute.xlu0 %6942 }
 0x875   : > { %v6941_v10 = vpop.permute.xlu1 %6940  ;;  %v7137_v28 = vsel %vm2299_vm7, %v15102_v47, %v6943_v35  ;;  %v6829_v35 = vsel %vm538_vm0, 0.0, %v16225_v33 }
 0x876   : > { %v7136_v37 = vsel %vm2299_vm7, %v6826_v25, %v6941_v10 }
 0x878   : > { %v7055_v21 = vpop.permute.xlu0 %7054 }
 0x879   : > { %v7053_v32 = vpop.permute.xlu1 %7052  ;;  %v15576_v61 = vsel %vm2332_vm8, %v7137_v28, %v7055_v21  ;;  %v16226_v28 = vrot.slane %v15205_v48, 7 }
 0x87a   : > { %v15573_v52 = vsel %vm2332_vm8, %v7136_v37, %v7053_v32 }
 0x87b   : > { %10174 = vmatprep.mubr.msk.f32.mxu0 %vm2461_vm9, %v15573_v52 }
 0x87c   : > { %10175 = vmatmul.mubr.msk.f32.gmra.mrb[74].mxu0 %vm2461_vm9, %v15576_v61  ;;  %v6947_v53 = vpop.permute.xlu0 %6946 }
 0x87d   : > { %v6945_v13 = vpop.permute.xlu1 %6944  ;;  %v7139_v40 = vsel %vm2299_vm7, %v15137_v9, %v6947_v53  ;;  %v6830_v53 = vsel %vm538_vm0, 0.0, %v16226_v28 }
 0x87e   : > { %v7138_v47 = vsel %vm2299_vm7, %v6827_v7, %v6945_v13 }
 0x880   : > { %v7059_v5 = vpop.permute.xlu0 %7058 }
 0x881   : > { %v7057_v51 = vpop.permute.xlu1 %7056  ;;  %v15592_v29 = vsel %vm2332_vm8, %v7139_v40, %v7059_v5  ;;  %v16227_v40 = vrot.slane %v15232_v26, 7 }
 0x882   : > { %v15589_v54 = vsel %vm2332_vm8, %v7138_v47, %v7057_v51 }
 0x883   : > { %10177 = vmatprep.mubr.msk.f32.mxu0 %vm2461_vm9, %v15589_v54 }
 0x884   : > { %10178 = vmatmul.mubr.msk.f32.gmra.mrb[76].mxu0 %vm2461_vm9, %v15592_v29  ;;  %v6951_v39 = vpop.permute.xlu0 %6950 }
 0x885   : > { %v6949_v60 = vpop.permute.xlu1 %6948  ;;  %v7141_v4 = vsel %vm2299_vm7, %v15166_v20, %v6951_v39  ;;  %v6831_v39 = vsel %vm538_vm0, 0.0, %v16227_v40 }
 0x886   : > { %v7140_v9 = vsel %vm2299_vm7, %v6828_v44, %v6949_v60 }
 0x888   : > { %v7063_v23 = vpop.permute.xlu0 %7062 }
 0x889   : > { %v7061_v38 = vpop.permute.xlu1 %7060  ;;  %v15608_v46 = vsel %vm2332_vm8, %v7141_v4, %v7063_v23  ;;  %v16228_v4 = vrot.slane %v15263_v14, 7 }
 0x88a   : > { %v15605_v27 = vsel %vm2332_vm8, %v7140_v9, %v7061_v38 }
 0x88b   : > { %10180 = vmatprep.mubr.msk.f32.mxu0 %vm2461_vm9, %v15605_v27 }
 0x88c   : > { %10181 = vmatmul.mubr.msk.f32.gmra.mrb[78].mxu0 %vm2461_vm9, %v15608_v46  ;;  %v6955_v43 = vpop.permute.xlu0 %6954 }
 0x88d   : > { %v6953_v36 = vpop.permute.xlu1 %6952  ;;  %v7143_v25 = vsel %vm2299_vm7, %v15199_v57, %v6955_v43  ;;  %v6832_v43 = vsel %vm538_vm0, 0.0, %v16228_v4 }
 0x88e   : > { %v7142_v20 = vsel %vm2299_vm7, %v6829_v35, %v6953_v36 }
 0x890   : > { %v7067_v10 = vpop.permute.xlu0 %7066 }
 0x891   : > { %v7065_v24 = vpop.permute.xlu1 %7064  ;;  %v15624_v37 = vsel %vm2332_vm8, %v7143_v25, %v7067_v10  ;;  %v16229_v25 = vrot.slane %v15290_v15, 7 }
 0x892   : > { %v15621_v21 = vsel %vm2332_vm8, %v7142_v20, %v7065_v24 }
 0x893   : > { %10183 = vmatprep.mubr.msk.f32.mxu0 %vm2461_vm9, %v15621_v21 }
 0x894   : > { %10184 = vmatmul.mubr.msk.f32.gmra.mrb[80].mxu0 %vm2461_vm9, %v15624_v37  ;;  %v6959_v45 = vpop.permute.xlu0 %6958 }
 0x895   : > { %v6957_v32 = vpop.permute.xlu1 %6956  ;;  %v7145_v7 = vsel %vm2299_vm7, %v15226_v59, %v6959_v45  ;;  %v6833_v45 = vsel %vm538_vm0, 0.0, %v16229_v25  ;;  %v7763_v25 = vld [vmem:[%s16009_s10 + $0xe8] sm:$0xff] }
 0x896   : > { %v7144_v57 = vsel %vm2299_vm7, %v6830_v53, %v6957_v32 }
 0x898   : > { %v7071_v13 = vpop.permute.xlu0 %7070 }
 0x899   : > { %v7069_v8 = vpop.permute.xlu1 %7068  ;;  %v15640_v47 = vsel %vm2332_vm8, %v7145_v7, %v7071_v13  ;;  %v6834_v7 = vsel %vm538_vm0, 0.0, %v6782_v31 }
 0x89a   : > { %v15637_v5 = vsel %vm2332_vm8, %v7144_v57, %v7069_v8 }
 0x89b   : > { %10186 = vmatprep.mubr.msk.f32.mxu0 %vm2461_vm9, %v15637_v5 }
 0x89c   : > { %10187 = vmatmul.mubr.msk.f32.gmra.mrb[82].mxu0 %vm2461_vm9, %v15640_v47  ;;  %v6963_v48 = vpop.permute.xlu0 %6962 }
 0x89d   : > { %v6961_v51 = vpop.permute.xlu1 %6960  ;;  %v7147_v44 = vsel %vm2299_vm7, %v15257_v56, %v6963_v48 }
 0x89e   : > { %v7146_v59 = vsel %vm2299_vm7, %v6831_v39, %v6961_v51 }
 0x8a0   : > { %v7075_v60 = vpop.permute.xlu0 %7074 }
 0x8a1   : > { %v7073_v12 = vpop.permute.xlu1 %7072  ;;  %v15656_v9 = vsel %vm2332_vm8, %v7147_v44, %v7075_v60 }
 0x8a2   : > { %v15653_v23 = vsel %vm2332_vm8, %v7146_v59, %v7073_v12  ;;  %v6835_v59 = vsel %vm538_vm0, 0.0, %v6785_v11  ;;  %v6740_v11 = vrot.slane %v15433_v16, 7 }
 0x8a3   : > { %10189 = vmatprep.mubr.msk.f32.mxu0 %vm2461_vm9, %v15653_v23 }
 0x8a4   : > { %10190 = vmatmul.mubr.msk.f32.gmra.mrb[84].mxu0 %vm2461_vm9, %v15656_v9  ;;  %v6967_v26 = vpop.permute.xlu0 %6966 }
 0x8a5   : > { %v6965_v38 = vpop.permute.xlu1 %6964  ;;  %v7149_v35 = vsel %vm2299_vm7, %v15284_v34, %v6967_v26 }
 0x8a6   : > { %v7148_v56 = vsel %vm2299_vm7, %v6832_v43, %v6965_v38 }
 0x8a8   : > { %v7079_v36 = vpop.permute.xlu0 %7078 }
 0x8a9   : > { %v7077_v33 = vpop.permute.xlu1 %7076  ;;  %v15672_v20 = vsel %vm2332_vm8, %v7149_v35, %v7079_v36  ;;  %v7761_v36 = vld [vmem:[%s16009_s10 + $0xd8] sm:$0xff]  ;;  %v6820_v35 = vsel %vm538_vm0, 0.0, %v6740_v11 }
 0x8aa   : > { %v15669_v10 = vsel %vm2332_vm8, %v7148_v56, %v7077_v33  ;;  %v6741_v56 = vrot.slane %v15428_v6, 7 }
 0x8ab   : > { %10192 = vmatprep.mubr.msk.f32.mxu0 %vm2461_vm9, %v15669_v10 }
 0x8ac   : > { %10193 = vmatmul.mubr.msk.f32.gmra.mrb[86].mxu0 %vm2461_vm9, %v15672_v20  ;;  %v6971_v14 = vpop.permute.xlu0 %6970  ;;  %v6742_v6 = vsel %vm538_vm0, %v6740_v11, %v6741_v56 }
 0x8ad   : > { %v6969_v24 = vpop.permute.xlu1 %6968  ;;  %v7151_v53 = vsel %vm2299_vm7, %v15321_v2, %v6971_v14 }
 0x8ae   : > { %v7150_v34 = vsel %vm2299_vm7, %v6833_v45, %v6969_v24  ;;  %v7762_v24 = vld [vmem:[%s16009_s10 + $0xe0] sm:$0xff] }
 0x8b0   : > { %v7083_v32 = vpop.permute.xlu0 %7082 }
 0x8b1   : > { %v7081_v28 = vpop.permute.xlu1 %7080  ;;  %v15688_v57 = vsel %vm2332_vm8, %v7151_v53, %v7083_v32 }
 0x8b2   : > { %v15685_v13 = vsel %vm2332_vm8, %v7150_v34, %v7081_v28  ;;  %v10649_v28 = vpack.c.bf16 %v7763_v25, %v7762_v24 }
 0x8b3   : > { %10195 = vmatprep.mubr.msk.f32.mxu0 %vm2461_vm9, %v15685_v13 }
 0x8b4   : > { %10196 = vmatmul.mubr.msk.f32.gmra.mrb[88].mxu0 %vm2461_vm9, %v15688_v57  ;;  %v6975_v15 = vpop.permute.xlu0 %6974 }
 0x8b5   : > { %v6973_v8 = vpop.permute.xlu1 %6972  ;;  %v7153_v40 = vsel %vm2299_vm7, %v15342_v42, %v6975_v15  ;;  %v7764_v15 = vld [vmem:[%s16009_s10 + $0xf0] sm:$0xff] }
 0x8b6   : > { %v7152_v2 = vsel %vm2299_vm7, %v6834_v7, %v6973_v8  ;;  %v7766_v8 = vld [vmem:[%s16009_s10 + $0x100] sm:$0xff]  ;;  %v7767_v7 = vld [vmem:[%s16009_s10 + $0x108] sm:$0xff] }
 0x8b8   : > { %v7087_v48 = vpop.permute.xlu0 %7086 }
 0x8b9   : > { %v7085_v51 = vpop.permute.xlu1 %7084  ;;  %v15704_v60 = vsel %vm2332_vm8, %v7153_v40, %v7087_v48  ;;  %v10657_v48 = vpack.c.bf16 %v7767_v7, %v7766_v8 }
 0x8ba   : > { %v15701_v39 = vsel %vm2332_vm8, %v7152_v2, %v7085_v51  ;;  %v7768_v2 = vld [vmem:[%s16009_s10 + $0x110] sm:$0xff]  ;;  %v7769_v51 = vld [vmem:[%s16009_s10 + $0x118] sm:$0xff] }
 0x8bb   : > { %10198 = vmatprep.mubr.msk.f32.mxu0 %vm2461_vm9, %v15701_v39  ;;  %v10661_v40 = vpack.c.bf16 %v7769_v51, %v7768_v2 }
 0x8bc   : > { %10199 = vmatmul.mubr.msk.f32.gmra.mrb[90].mxu0 %vm2461_vm9, %v15704_v60  ;;  %v6979_v0 = vpop.permute.xlu0 %6978 }
 0x8bd   : > { %v6977_v31 = vpop.permute.xlu1 %6976  ;;  %v7155_v26 = vsel %vm2299_vm7, %v15361_v30, %v6979_v0  ;;  %v7760_v30 = vld [vmem:[%s16009_s10 + $0xd0] sm:$0xff] }
 0x8be   : > { %v7154_v42 = vsel %vm2299_vm7, %v6835_v59, %v6977_v31  ;;  %v10645_v14 = vpack.c.bf16 %v7761_v36, %v7760_v30 }
 0x8c0   : > { %v7091_v12 = vpop.permute.xlu0 %7090 }
 0x8c1   : > { %v7089_v44 = vpop.permute.xlu1 %7088  ;;  %v15720_v4 = vsel %vm2332_vm8, %v7155_v26, %v7091_v12 }
 0x8c2   : > { %v15717_v38 = vsel %vm2332_vm8, %v7154_v42, %v7089_v44 }
 0x8c3   : > { %10201 = vmatprep.mubr.msk.f32.mxu0 %vm2461_vm9, %v15717_v38 }
 0x8c4   : > { %10202 = vmatmul.mubr.msk.f32.gmra.mrb[92].mxu0 %vm2461_vm9, %v15720_v4  ;;  %v6919_v43 = vpop.permute.xlu0 %6918 }
 0x8c5   : > { %v6917_v18 = vpop.permute.xlu1 %6916  ;;  %10204 = vmatprep.mubr.f32.mxu0 %v16212_v41  ;;  %v7125_v34 = vsel %vm2299_vm7, %v6742_v6, %v6919_v43 }
 0x8c6   : > { %v7124_v16 = vsel %vm2299_vm7, %v6820_v35, %v6917_v18 }
 0x8c8   : > { %10205 = vmatmul.mubr.f32.gmra.mrb[94].mxu0 %v16212_v41  ;;  %v7031_v45 = vpop.permute.xlu0 %7030 }
 0x8c9   : > { %v7029_v33 = vpop.permute.xlu1 %7028  ;;  %10231 = vmatprep.mubr.f32.mxu0 %v16212_v41  ;;  %v7157_v53 = vsel %vm2332_vm8, %v7125_v34, %v7031_v45 }
 0x8ca   : > { %v7156_v32 = vsel %vm2332_vm8, %v7124_v16, %v7029_v33 }
 0x8cc   : > { %10232 = vmatmul.mubr.f32.vlgmr.msra.gmra.mrb[64].mxu0 %v16212_v41  ;;  %v7765_v41 = vld [vmem:[%s16009_s10 + $0xf8] sm:$0xff] }
 0x8cd   : > { %10644 = vmatpush3.bf16.msra.mxu0 %v15531_v62  ;;  %10234 = vmatprep.mubr.msk.f32.mxu0 %vm2461_vm9, %v7156_v32  ;;  %v10653_v62 = vpack.c.bf16 %v7765_v41, %v7764_v15 }
 0x8ce   : > { %10646 = vmatprep.subr.bf16.mxu0 %v10645_v14 }
 0x8d0   : > { %10235 = vmatmul.mubr.msk.f32.gmra.mrb[66].mxu0 %vm2461_vm9, %v7157_v53 }
 0x8d1   : > { %10237 = vmatprep.mubr.msk.f32.mxu0 %vm2461_vm9, %v15451_v63  ;;  %10648 = vmatpush3.bf16.msra.mxu0 %v10645_v14 }
 0x8d2   : > { %10650 = vmatprep.subr.bf16.mxu0 %v10649_v28 }
 0x8d4   : > { %10238 = vmatmul.mubr.msk.f32.gmra.mrb[68].mxu0 %vm2461_vm9, %v15456_v19 }
 0x8d5   : > { %10240 = vmatprep.mubr.msk.f32.mxu0 %vm2461_vm9, %v15488_v49  ;;  %10652 = vmatpush3.bf16.msra.mxu0 %v10649_v28 }
 0x8d6   : > { %10654 = vmatprep.subr.bf16.mxu0 %v10653_v62 }
 0x8d8   : > { %10241 = vmatmul.mubr.msk.f32.gmra.mrb[70].mxu0 %vm2461_vm9, %v15491_v22 }
 0x8d9   : > { %10243 = vmatprep.mubr.msk.f32.mxu0 %vm2461_vm9, %v15516_v58  ;;  %10656 = vmatpush3.bf16.msra.mxu0 %v10653_v62 }
 0x8da   : > { %10658 = vmatprep.subr.bf16.mxu0 %v10657_v48 }
 0x8dc   : > { %10244 = vmatmul.mubr.msk.f32.gmra.mrb[72].mxu0 %vm2461_vm9, %v15519_v1 }
 0x8dd   : > { %10246 = vmatprep.mubr.msk.f32.mxu0 %vm2461_vm9, %v15540_v55  ;;  %10660 = vmatpush3.bf16.msra.mxu0 %v10657_v48 }
 0x8de   : > { %10662 = vmatprep.subr.bf16.mxu0 %v10661_v40 }
 0x8e0   : > { %10247 = vmatmul.mubr.msk.f32.gmra.mrb[74].mxu0 %vm2461_vm9, %v15544_v3 }
 0x8e1   : > { %10249 = vmatprep.mubr.msk.f32.mxu0 %vm2461_vm9, %v15557_v50  ;;  %10664 = vmatpush3.bf16.msra.mxu0 %v10661_v40 }
 0x8e4   : > { %10250 = vmatmul.mubr.msk.f32.gmra.mrb[76].mxu0 %vm2461_vm9, %v15560_v17 }
 0x8e5   : > { %10252 = vmatprep.mubr.msk.f32.mxu0 %vm2461_vm9, %v15573_v52 }
 0x8e8   : > { %10253 = vmatmul.mubr.msk.f32.gmra.mrb[78].mxu0 %vm2461_vm9, %v15576_v61 }
 0x8e9   : > { %10255 = vmatprep.mubr.msk.f32.mxu0 %vm2461_vm9, %v15589_v54 }
 0x8ec   : > { %10256 = vmatmul.mubr.msk.f32.gmra.mrb[80].mxu0 %vm2461_vm9, %v15592_v29 }
 0x8ed   : > { %10258 = vmatprep.mubr.msk.f32.mxu0 %vm2461_vm9, %v15605_v27 }
 0x8f0   : > { %10259 = vmatmul.mubr.msk.f32.gmra.mrb[82].mxu0 %vm2461_vm9, %v15608_v46 }
 0x8f1   : > { %10261 = vmatprep.mubr.msk.f32.mxu0 %vm2461_vm9, %v15621_v21 }
 0x8f4   : > { %10262 = vmatmul.mubr.msk.f32.gmra.mrb[84].mxu0 %vm2461_vm9, %v15624_v37 }
 0x8f5   : > { %10264 = vmatprep.mubr.msk.f32.mxu0 %vm2461_vm9, %v15637_v5 }
 0x8f8   : > { %10265 = vmatmul.mubr.msk.f32.gmra.mrb[86].mxu0 %vm2461_vm9, %v15640_v47 }
 0x8f9   : > { %10267 = vmatprep.mubr.msk.f32.mxu0 %vm2461_vm9, %v15653_v23 }
 0x8fc   : > { %10268 = vmatmul.mubr.msk.f32.gmra.mrb[88].mxu0 %vm2461_vm9, %v15656_v9 }
 0x8fd   : > { %10270 = vmatprep.mubr.msk.f32.mxu0 %vm2461_vm9, %v15669_v10 }
 0x900   : > { %10271 = vmatmul.mubr.msk.f32.gmra.mrb[90].mxu0 %vm2461_vm9, %v15672_v20 }
 0x901   : > { %10273 = vmatprep.mubr.msk.f32.mxu0 %vm2461_vm9, %v15685_v13 }
 0x904   : > { %10274 = vmatmul.mubr.msk.f32.gmra.mrb[92].mxu0 %vm2461_vm9, %v15688_v57 }
 0x905   : > { %10276 = vmatprep.mubr.msk.f32.mxu0 %vm2461_vm9, %v15701_v39 }
 0x908   : > { %10277 = vmatmul.mubr.msk.f32.gmra.mrb[94].mxu0 %vm2461_vm9, %v15704_v60 }
 0x909   : > { %10303 = vmatprep.mubr.msk.f32.mxu0 %vm2461_vm9, %v7156_v32 }
 0x90c   : > { %10304 = vmatmul.mubr.msk.f32.vlgmr.msra.gmra.mrb[64].mxu0 %vm2461_vm9, %v7157_v53 }
 0x90d   : > { %10306 = vmatprep.mubr.msk.f32.mxu0 %vm2461_vm9, %v15451_v63  ;;  %v15892_v63 = vld [vmem:[%s16010_s11] ss:$0 sm:$0xff] }
 0x910   : > { %10307 = vmatmul.mubr.msk.f32.gmra.mrb[66].mxu0 %vm2461_vm9, %v15456_v19 }
 0x911   : > { %10309 = vmatprep.mubr.msk.f32.mxu0 %vm2461_vm9, %v15488_v49 }
 0x914   : > { %10310 = vmatmul.mubr.msk.f32.gmra.mrb[68].mxu0 %vm2461_vm9, %v15491_v22 }
 0x915   : > { %10312 = vmatprep.mubr.msk.f32.mxu0 %vm2461_vm9, %v15516_v58 }
 0x918   : > { %10313 = vmatmul.mubr.msk.f32.gmra.mrb[70].mxu0 %vm2461_vm9, %v15519_v1 }
 0x919   : > { %10315 = vmatprep.mubr.msk.f32.mxu0 %vm2461_vm9, %v15540_v55 }
 0x91c   : > { %10316 = vmatmul.mubr.msk.f32.gmra.mrb[72].mxu0 %vm2461_vm9, %v15544_v3 }
 0x91d   : > { %10318 = vmatprep.mubr.msk.f32.mxu0 %vm2461_vm9, %v15557_v50 }
 0x920   : > { %10319 = vmatmul.mubr.msk.f32.gmra.mrb[74].mxu0 %vm2461_vm9, %v15560_v17 }
 0x921   : > { %10321 = vmatprep.mubr.msk.f32.mxu0 %vm2461_vm9, %v15573_v52 }
 0x924   : > { %10322 = vmatmul.mubr.msk.f32.gmra.mrb[76].mxu0 %vm2461_vm9, %v15576_v61 }
 0x925   : > { %10324 = vmatprep.mubr.msk.f32.mxu0 %vm2461_vm9, %v15589_v54 }
 0x928   : > { %10325 = vmatmul.mubr.msk.f32.gmra.mrb[78].mxu0 %vm2461_vm9, %v15592_v29 }
 0x929   : > { %10327 = vmatprep.mubr.msk.f32.mxu0 %vm2461_vm9, %v15605_v27 }
 0x92c   : > { %10328 = vmatmul.mubr.msk.f32.gmra.mrb[80].mxu0 %vm2461_vm9, %v15608_v46 }
 0x92d   : > { %10330 = vmatprep.mubr.msk.f32.mxu0 %vm2461_vm9, %v15621_v21 }
 0x930   : > { %10331 = vmatmul.mubr.msk.f32.gmra.mrb[82].mxu0 %vm2461_vm9, %v15624_v37 }
 0x931   : > { %10333 = vmatprep.mubr.msk.f32.mxu0 %vm2461_vm9, %v15637_v5 }
 0x934   : > { %10334 = vmatmul.mubr.msk.f32.gmra.mrb[84].mxu0 %vm2461_vm9, %v15640_v47 }
 0x935   : > { %10336 = vmatprep.mubr.msk.f32.mxu0 %vm2461_vm9, %v15653_v23 }
 0x938   : > { %10337 = vmatmul.mubr.msk.f32.gmra.mrb[86].mxu0 %vm2461_vm9, %v15656_v9 }
 0x939   : > { %10339 = vmatprep.mubr.msk.f32.mxu0 %vm2461_vm9, %v15669_v10 }
 0x93c   : > { %10340 = vmatmul.mubr.msk.f32.gmra.mrb[88].mxu0 %vm2461_vm9, %v15672_v20 }
 0x93d   : > { %10342 = vmatprep.mubr.msk.f32.mxu0 %vm2461_vm9, %v15685_v13 }
 0x940   : > { %10343 = vmatmul.mubr.msk.f32.gmra.mrb[90].mxu0 %vm2461_vm9, %v15688_v57 }
 0x941   : > { %10345 = vmatprep.mubr.msk.f32.mxu0 %vm2461_vm9, %v15701_v39 }
 0x944   : > { %10346 = vmatmul.mubr.msk.f32.gmra.mrb[92].mxu0 %vm2461_vm9, %v15704_v60 }
 0x945   : > { %10348 = vmatprep.mubr.msk.f32.mxu0 %vm2461_vm9, %v15717_v38 }
 0x948   : > { %10349 = vmatmul.mubr.msk.f32.gmra.mrb[94].mxu0 %vm2461_vm9, %v15720_v4 }
 0x9df   : > { %v10305_v19 = vpop.f32.mrb[64].mxu0 }
 0x9e0   : > { %v8035_v49 = vadd.f32 %v10305_v19, %v15892_v63  ;;  %v7836_v22 = vpop.f32.mrb[65].mxu0 }
 0x9e1   : > { %v8034_v58 = vadd.f32 %v15892_v63, %v7836_v22 }
 0x9e2   : > { %v8067_v1 = vmax.f32 %v8035_v49, 0.0 }
 0x9e3   : > { %v8066_v55 = vmax.f32 %v8034_v58, 0.0  ;;  %v10308_v3 = vpop.f32.mrb[66].mxu0 }
 0x9e4   : > { %8099 = vst.msk [vmem:[%s15899_s30 + $0x8] sm:$0xff] %vm2299_vm7, %v8067_v1  ;;  %v8037_v50 = vadd.f32 %v10308_v3, %v15892_v63  ;;  %v7846_v17 = vpop.f32.mrb[67].mxu0 }
 0x9e5   : > { %8098 = vst.msk [vmem:[%s15899_s30] sm:$0xff] %vm2299_vm7, %v8066_v55  ;;  %v8036_v52 = vadd.f32 %v15892_v63, %v7846_v17 }
 0x9e6   : > { %v8069_v61 = vmax.f32 %v8037_v50, 0.0 }
 0x9e7   : > { %v8068_v54 = vmax.f32 %v8036_v52, 0.0  ;;  %v10311_v29 = vpop.f32.mrb[68].mxu0 }
 0x9e8   : > { %8101 = vst.msk [vmem:[%s15899_s30 + $0x18] sm:$0xff] %vm2299_vm7, %v8069_v61  ;;  %v8039_v27 = vadd.f32 %v10311_v29, %v15892_v63  ;;  %v7856_v46 = vpop.f32.mrb[69].mxu0 }
 0x9e9   : > { %8100 = vst.msk [vmem:[%s15899_s30 + $0x10] sm:$0xff] %vm2299_vm7, %v8068_v54  ;;  %v8038_v21 = vadd.f32 %v15892_v63, %v7856_v46 }
 0x9ea   : > { %v8071_v37 = vmax.f32 %v8039_v27, 0.0 }
 0x9eb   : > { %v8070_v5 = vmax.f32 %v8038_v21, 0.0  ;;  %v10314_v47 = vpop.f32.mrb[70].mxu0 }
 0x9ec   : > { %8103 = vst.msk [vmem:[%s15899_s30 + $0x28] sm:$0xff] %vm2299_vm7, %v8071_v37  ;;  %v8041_v23 = vadd.f32 %v10314_v47, %v15892_v63  ;;  %v7866_v9 = vpop.f32.mrb[71].mxu0 }
 0x9ed   : > { %8102 = vst.msk [vmem:[%s15899_s30 + $0x20] sm:$0xff] %vm2299_vm7, %v8070_v5  ;;  %v8040_v10 = vadd.f32 %v15892_v63, %v7866_v9 }
 0x9ee   : > { %v8073_v20 = vmax.f32 %v8041_v23, 0.0 }
 0x9ef   : > { %v8072_v13 = vmax.f32 %v8040_v10, 0.0  ;;  %v10317_v57 = vpop.f32.mrb[72].mxu0 }
 0x9f0   : > { %8105 = vst.msk [vmem:[%s15899_s30 + $0x38] sm:$0xff] %vm2299_vm7, %v8073_v20  ;;  %v8043_v39 = vadd.f32 %v10317_v57, %v15892_v63  ;;  %v7876_v60 = vpop.f32.mrb[73].mxu0 }
 0x9f1   : > { %8104 = vst.msk [vmem:[%s15899_s30 + $0x30] sm:$0xff] %vm2299_vm7, %v8072_v13  ;;  %v8042_v0 = vadd.f32 %v15892_v63, %v7876_v60 }
 0x9f2   : > { %v8075_v31 = vmax.f32 %v8043_v39, 0.0 }
 0x9f3   : > { %v8074_v59 = vmax.f32 %v8042_v0, 0.0  ;;  %v10320_v12 = vpop.f32.mrb[74].mxu0 }
 0x9f4   : > { %8107 = vst.msk [vmem:[%s15899_s30 + $0x48] sm:$0xff] %vm2299_vm7, %v8075_v31  ;;  %v8045_v42 = vadd.f32 %v10320_v12, %v15892_v63  ;;  %v7886_v44 = vpop.f32.mrb[75].mxu0 }
 0x9f5   : > { %8106 = vst.msk [vmem:[%s15899_s30 + $0x40] sm:$0xff] %vm2299_vm7, %v8074_v59  ;;  %v8044_v26 = vadd.f32 %v15892_v63, %v7886_v44 }
 0x9f6   : > { %v8077_v38 = vmax.f32 %v8045_v42, 0.0 }
 0x9f7   : > { %v8076_v4 = vmax.f32 %v8044_v26, 0.0  ;;  %v10323_v18 = vpop.f32.mrb[76].mxu0 }
 0x9f8   : > { %8109 = vst.msk [vmem:[%s15899_s30 + $0x58] sm:$0xff] %vm2299_vm7, %v8077_v38  ;;  %v8047_v11 = vadd.f32 %v10323_v18, %v15892_v63  ;;  %v7896_v43 = vpop.f32.mrb[77].mxu0 }
 0x9f9   : > { %8108 = vst.msk [vmem:[%s15899_s30 + $0x50] sm:$0xff] %vm2299_vm7, %v8076_v4  ;;  %v8046_v30 = vadd.f32 %v15892_v63, %v7896_v43 }
 0x9fa   : > { %v8079_v36 = vmax.f32 %v8047_v11, 0.0 }
 0x9fb   : > { %v8078_v56 = vmax.f32 %v8046_v30, 0.0  ;;  %v10326_v33 = vpop.f32.mrb[78].mxu0 }
 0x9fc   : > { %8111 = vst.msk [vmem:[%s15899_s30 + $0x68] sm:$0xff] %vm2299_vm7, %v8079_v36  ;;  %v8049_v35 = vadd.f32 %v10326_v33, %v15892_v63  ;;  %v7906_v14 = vpop.f32.mrb[79].mxu0 }
 0x9fd   : > { %8110 = vst.msk [vmem:[%s15899_s30 + $0x60] sm:$0xff] %vm2299_vm7, %v8078_v56  ;;  %v8048_v16 = vadd.f32 %v15892_v63, %v7906_v14 }
 0x9fe   : > { %v8081_v24 = vmax.f32 %v8049_v35, 0.0 }
 0x9ff   : > { %v8080_v25 = vmax.f32 %v8048_v16, 0.0  ;;  %v10329_v45 = vpop.f32.mrb[80].mxu0 }
 0xa00   : > { %8113 = vst.msk [vmem:[%s15899_s30 + $0x78] sm:$0xff] %vm2299_vm7, %v8081_v24  ;;  %v8051_v32 = vadd.f32 %v10329_v45, %v15892_v63  ;;  %v7916_v6 = vpop.f32.mrb[81].mxu0 }
 0xa01   : > { %8112 = vst.msk [vmem:[%s15899_s30 + $0x70] sm:$0xff] %vm2299_vm7, %v8080_v25  ;;  %v8050_v34 = vadd.f32 %v15892_v63, %v7916_v6 }
 0xa02   : > { %v8083_v28 = vmax.f32 %v8051_v32, 0.0 }
 0xa03   : > { %v8082_v53 = vmax.f32 %v8050_v34, 0.0  ;;  %v10332_v15 = vpop.f32.mrb[82].mxu0 }
 0xa04   : > { %8115 = vst.msk [vmem:[%s15899_s30 + $0x88] sm:$0xff] %vm2299_vm7, %v8083_v28  ;;  %v8053_v41 = vadd.f32 %v10332_v15, %v15892_v63  ;;  %v7926_v62 = vpop.f32.mrb[83].mxu0 }
 0xa05   : > { %8114 = vst.msk [vmem:[%s15899_s30 + $0x80] sm:$0xff] %vm2299_vm7, %v8082_v53  ;;  %v8052_v8 = vadd.f32 %v15892_v63, %v7926_v62 }
 0xa06   : > { %v8085_v7 = vmax.f32 %v8053_v41, 0.0 }
 0xa07   : > { %v8084_v48 = vmax.f32 %v8052_v8, 0.0  ;;  %v10335_v2 = vpop.f32.mrb[84].mxu0 }
 0xa08   : > { %8117 = vst.msk [vmem:[%s15899_s30 + $0x98] sm:$0xff] %vm2299_vm7, %v8085_v7  ;;  %v8055_v51 = vadd.f32 %v10335_v2, %v15892_v63  ;;  %v7936_v40 = vpop.f32.mrb[85].mxu0 }
 0xa09   : > { %8116 = vst.msk [vmem:[%s15899_s30 + $0x90] sm:$0xff] %vm2299_vm7, %v8084_v48  ;;  %v8054_v19 = vadd.f32 %v15892_v63, %v7936_v40 }
 0xa0a   : > { %v8087_v49 = vmax.f32 %v8055_v51, 0.0 }
 0xa0b   : > { %v8086_v22 = vmax.f32 %v8054_v19, 0.0  ;;  %v10338_v58 = vpop.f32.mrb[86].mxu0 }
 0xa0c   : > { %8119 = vst.msk [vmem:[%s15899_s30 + $0xa8] sm:$0xff] %vm2299_vm7, %v8087_v49  ;;  %v8057_v1 = vadd.f32 %v10338_v58, %v15892_v63  ;;  %v7946_v55 = vpop.f32.mrb[87].mxu0 }
 0xa0d   : > { %8118 = vst.msk [vmem:[%s15899_s30 + $0xa0] sm:$0xff] %vm2299_vm7, %v8086_v22  ;;  %v8056_v3 = vadd.f32 %v15892_v63, %v7946_v55 }
 0xa0e   : > { %v8089_v50 = vmax.f32 %v8057_v1, 0.0 }
 0xa0f   : > { %v8088_v17 = vmax.f32 %v8056_v3, 0.0  ;;  %v10341_v52 = vpop.f32.mrb[88].mxu0 }
 0xa10   : > { %8121 = vst.msk [vmem:[%s15899_s30 + $0xb8] sm:$0xff] %vm2299_vm7, %v8089_v50  ;;  %v8059_v61 = vadd.f32 %v10341_v52, %v15892_v63  ;;  %v7956_v54 = vpop.f32.mrb[89].mxu0 }
 0xa11   : > { %8120 = vst.msk [vmem:[%s15899_s30 + $0xb0] sm:$0xff] %vm2299_vm7, %v8088_v17  ;;  %v8058_v29 = vadd.f32 %v15892_v63, %v7956_v54 }
 0xa12   : > { %v8091_v27 = vmax.f32 %v8059_v61, 0.0 }
 0xa13   : > { %v8090_v46 = vmax.f32 %v8058_v29, 0.0  ;;  %v10344_v21 = vpop.f32.mrb[90].mxu0 }
 0xa14   : > { %8123 = vst.msk [vmem:[%s15899_s30 + $0xc8] sm:$0xff] %vm2299_vm7, %v8091_v27  ;;  %v8061_v37 = vadd.f32 %v10344_v21, %v15892_v63  ;;  %v7966_v5 = vpop.f32.mrb[91].mxu0 }
 0xa15   : > { %8122 = vst.msk [vmem:[%s15899_s30 + $0xc0] sm:$0xff] %vm2299_vm7, %v8090_v46  ;;  %v8060_v47 = vadd.f32 %v15892_v63, %v7966_v5 }
 0xa16   : > { %v8093_v23 = vmax.f32 %v8061_v37, 0.0 }
 0xa17   : > { %v8092_v9 = vmax.f32 %v8060_v47, 0.0  ;;  %v10347_v10 = vpop.f32.mrb[92].mxu0 }
 0xa18   : > { %8125 = vst.msk [vmem:[%s15899_s30 + $0xd8] sm:$0xff] %vm2299_vm7, %v8093_v23  ;;  %v8063_v20 = vadd.f32 %v10347_v10, %v15892_v63  ;;  %v7976_v13 = vpop.f32.mrb[93].mxu0 }
 0xa19   : > { %8124 = vst.msk [vmem:[%s15899_s30 + $0xd0] sm:$0xff] %vm2299_vm7, %v8092_v9  ;;  %v8062_v57 = vadd.f32 %v15892_v63, %v7976_v13 }
 0xa1a   : > { %v8095_v39 = vmax.f32 %v8063_v20, 0.0 }
 0xa1b   : > { %v8094_v60 = vmax.f32 %v8062_v57, 0.0  ;;  %v10350_v0 = vpop.f32.mrb[94].mxu0 }
 0xa1c   : > { %8127 = vst.msk [vmem:[%s15899_s30 + $0xe8] sm:$0xff] %vm2299_vm7, %v8095_v39  ;;  %v8065_v31 = vadd.f32 %v10350_v0, %v15892_v63  ;;  %v7986_v59 = vpop.f32.mrb[95].mxu0 }
 0xa1d   : > { %8126 = vst.msk [vmem:[%s15899_s30 + $0xe0] sm:$0xff] %vm2299_vm7, %v8094_v60  ;;  %v8064_v12 = vadd.f32 %v15892_v63, %v7986_v59 }
 0xa1e   : > { %v8097_v42 = vmax.f32 %v8065_v31, 0.0 }
 0xa1f   : > { %v8096_v44 = vmax.f32 %v8064_v12, 0.0 }
 0xa20   : > { %8129 = vst.msk [vmem:[%s15899_s30 + $0xf8] sm:$0xff] %vm2299_vm7, %v8097_v42 }
 0xa21   : > { %8128 = vst.msk [vmem:[%s15899_s30 + $0xf0] sm:$0xff] %vm2299_vm7, %v8096_v44 }
 0xa22 PF: > { %s24_s25 = sadd.s32 1, %s11123_s25  }
 0xa23   : > { %p21_p4 = scmp.ge.s32.totalorder %s24_s25, 4  }
 0xa25   :  { %23 = sbr.rel (!%p21_p4) target bundleno = 1 (0x1), region = 113 }

</bundles_post_ra>
